<compile_context>
chip_gen: v6e
topology: v6e:2x2x1
jax: 0.10.0
libtpu: 0.0.40
codegen_flags: <defaults>
</compile_context>

<pallas_src>
import functools
import math

import jax
import jax.numpy as jnp
import numpy as np
from jax.experimental import pallas as pl
from jax.experimental.pallas import tpu as pltpu

FILTERS = 4          # `filters` of the PyTorch module
KSIZE = 3            # `kernel_size`
PAD = 1              # `padding`
D = H = W = 8        # small spatial extent for the synthetic test
EPS = 1e-5           # nn.GroupNorm default eps
CP = 8               # channels padded to a full sublane tile
_INV_SQRT2 = 1.0 / math.sqrt(2.0)


# ----------------------------- in-kernel math ------------------------------
def _gelu_exact(x):
    """torch.nn.GELU() (erf-based).  Abramowitz&Stegun 7.1.26, |err|<=1.5e-7.
    Exact divide on purpose: the approximate EUP reciprocal fails tolerance."""
    a1, a2, a3, a4, a5 = (0.254829592, -0.284496736, 1.421413741,
                          -1.453152027, 1.061405429)
    z = jnp.abs(x) * _INV_SQRT2
    t = 1.0 / (1.0 + 0.3275911 * z)
    poly = ((((a5 * t + a4) * t + a3) * t + a2) * t + a1) * t
    erf_abs = 1.0 - poly * jnp.exp(-z * z)
    erf = jnp.where(x >= 0, erf_abs, -erf_abs)
    return 0.5 * x * (1.0 + erf)


# ------------------------------ fused kernel --------------------------------
def _fused_kernel(x_ref, m_ref, w_ref, vec_ref, o_ref, patch_ref,
                  *, N, S, NS, deltas):
    """conv->GELU->GN, conv->GELU->GN, +residual for ALL N samples, in VMEM.

    Layouts: activations [CP, N*S] (channels on sublanes, samples folded into
    lanes); im2col slab [kvol*CP, N*S]; masks [kvol, N*S] broadcast over
    sublanes at the multiply; packed params [CP, 8]; weights [2, CP, kvol*CP].
    """
    x = x_ref[...]                                    # [CP, NS]
    vec = vec_ref[...]                                # [CP, 8] packed params
    inv_s = jnp.float32(1.0 / S)

    def stage(inp, widx):
        # ---- in-VMEM im2col: block k = mask_k * circular-lane-shift_k(inp).
        # pltpu.roll runs on the (otherwise idle) XLU; wrapped lanes are
        # exactly the face-crossing positions the mask zeroes.
        for k, dlt in enumerate(deltas):
            shifted = inp if dlt == 0 else pltpu.roll(
                inp, shift=(-dlt) % NS, axis=1)
            patch_ref[pl.ds(k * CP, CP), :] = shifted * m_ref[pl.ds(k, 1), :]

        # ---- conv3d == one [CP, kvol*CP] x [kvol*CP, N*S] MXU matmul + bias
        b = vec[:, 3 * widx + 0:3 * widx + 1]
        g = vec[:, 3 * widx + 1:3 * widx + 2]
        be = vec[:, 3 * widx + 2:3 * widx + 3]
        y = jnp.dot(w_ref[widx], patch_ref[...],
                    preferred_element_type=jnp.float32) + b
        y = _gelu_exact(y)

        # ---- GroupNorm with num_groups == C: per-(sample, channel) stats
        # over the S lanes of each sample, single pass (E[x^2] - mean^2),
        # biased variance, eps = 1e-5, affine scale/shift.
        parts = []
        for n in range(N):
            yn = y[:, n * S:(n + 1) * S]
            mean = jnp.sum(yn, axis=1, keepdims=True) * inv_s
            ex2 = jnp.sum(yn * yn, axis=1, keepdims=True) * inv_s
            var = ex2 - mean * mean
            parts.append((yn - mean) * jax.lax.rsqrt(var + EPS))
        y = parts[0] if N == 1 else jnp.concatenate(parts, axis=-1)
        return y * g + be

    y = stage(x, 0)
    y = stage(y, 1)
    o_ref[...] = (y + x).astype(o_ref.dtype)          # residual add


# --------------------------- host-side constants -----------------------------
def _offsets_and_masks(ksize, pad, Dd, Hh, Ww, n_rep):
    """Flat-index shift and {0,1} validity mask per kernel offset (kd,kh,kw),
    tiled n_rep times along the lane axis (one copy per sample folded into
    lanes).  Returns deltas (python ints) and a [k^3, n_rep*S] f32 array."""
    S = Dd * Hh * Ww
    dd, hh, ww = np.arange(Dd), np.arange(Hh), np.arange(Ww)
    deltas, masks = [], []
    for kd in range(ksize):
        for kh in range(ksize):
            for kw in range(ksize):
                od, oh, ow = kd - pad, kh - pad, kw - pad
                deltas.append(od * Hh * Ww + oh * Ww + ow)
                m = (((dd + od >= 0) & (dd + od < Dd))[:, None, None]
                     & ((hh + oh >= 0) & (hh + oh < Hh))[None, :, None]
                     & ((ww + ow >= 0) & (ww + ow < Ww))[None, None, :])
                masks.append(np.tile(m.reshape(S), n_rep))
    masks = np.stack(masks, axis=0).astype(np.float32)   # exactly {0,1} f32
    return tuple(deltas), jnp.asarray(masks)


# ------------------------------ pallas wrapper ------------------------------
def conv_block(x, params):
    """Pallas implementation of ConvolutionalBlock.forward.  x: [N,C,D,H,W]."""
    w1, b1, g1, be1, w2, b2, g2, be2 = params
    N, C, Dd, Hh, Ww = x.shape
    assert C <= CP, "channel padding assumes C <= 8"
    S = Dd * Hh * Ww
    NS = N * S
    k = KSIZE
    assert 2 * PAD == k - 1, "same-size conv assumed (stride 1)"
    kvol = k ** 3
    KP = kvol * CP

    deltas, masks = _offsets_and_masks(k, PAD, Dd, Hh, Ww, N)

    # activations: [N,C,S] -> [C, N*S] (samples folded into lanes), channel-
    # padded to CP sublanes so every patch-slab store is a full (8,128) tile.
    x_cns = jnp.transpose(x.reshape(N, C, S).astype(jnp.float32), (1, 0, 2))
    x_pad = jnp.zeros((CP, NS), jnp.float32).at[:C].set(x_cns.reshape(C, NS))

    # conv weights [O, I, kd, kh, kw] -> [CP, kvol*CP], offset-major /
    # in-channel-minor (matches slab row = k*CP + ci); zero-padded rows/cols.
    def wmat(w):
        w_ = jnp.transpose(w.astype(jnp.float32), (0, 2, 3, 4, 1))  # [O,kkk,I]
        w_ = w_.reshape(C, kvol, C)
        wp = jnp.zeros((CP, kvol, CP), jnp.float32).at[:C, :, :C].set(w_)
        return wp.reshape(CP, KP)
    w_all = jnp.stack([wmat(w1), wmat(w2)], axis=0)                 # [2,CP,KP]

    # pack the six per-channel vectors into one [CP, 8] input.
    # columns: b1, g1, be1, b2, g2, be2, 0, 0   (padded rows stay zero).
    vec = jnp.zeros((CP, 8), jnp.float32)
    for j, v in enumerate((b1, g1, be1, b2, g2, be2)):
        vec = vec.at[:C, j].set(v.astype(jnp.float32))

    kernel = functools.partial(_fused_kernel, N=N, S=S, NS=NS, deltas=deltas)

    def full(shape):
        return pl.BlockSpec(shape, lambda i: (0,) * len(shape))

    out = pl.pallas_call(
        kernel,
        out_shape=jax.ShapeDtypeStruct((CP, NS), jnp.float32),
        grid_spec=pltpu.PrefetchScalarGridSpec(
            num_scalar_prefetch=0,
            grid=(1,),                         # single step (single-TC chips)
            in_specs=[
                full((CP, NS)),                # activations [8, 1024]
                full((kvol, NS)),              # validity masks [27, 1024]
                full((2, CP, KP)),             # both conv weights
                full((CP, 8)),                 # packed bias / gamma / beta
            ],
            out_specs=full((CP, NS)),          # lane-dense [8, 1024] store
            scratch_shapes=[pltpu.VMEM((KP, NS), jnp.float32)],  # im2col slab
        ),
        compiler_params=pltpu.CompilerParams(
            dimension_semantics=("arbitrary",)),
    )(x_pad, masks, w_all, vec)

    out = out.reshape(CP, N, S)[:C]            # drop channel padding
    return jnp.transpose(out, (1, 0, 2)).reshape(N, C, Dd, Hh, Ww)


# ----------------------------- pure-JAX reference ---------------------------
def _ref_forward(x, params):
    w1, b1, g1, be1, w2, b2, g2, be2 = params

    def conv(x, w, b):
        y = jax.lax.conv_general_dilated(
            x, w, window_strides=(1, 1, 1),
            padding=[(PAD, PAD)] * 3,
            dimension_numbers=("NCDHW", "OIDHW", "NCDHW"))
        return y + b[None, :, None, None, None]

    def gn(x, g, be):  # num_groups == num_channels
        mean = jnp.mean(x, axis=(2, 3, 4), keepdims=True)
        var = jnp.mean((x - mean) ** 2, axis=(2, 3, 4), keepdims=True)
        xn = (x - mean) * jax.lax.rsqrt(var + EPS)
        return xn * g[None, :, None, None, None] + be[None, :, None, None, None]

    identity = x
    y = gn(jax.nn.gelu(conv(x, w1, b1), approximate=False), g1, be1)
    y = gn(jax.nn.gelu(conv(y, w2, b2), approximate=False), g2, be2)
    return y + identity


# ----------------------------------- main -----------------------------------
if __name__ == "__main__":
    key = jax.random.PRNGKey(0)
    k0, k1, k2, k3, k4 = jax.random.split(key, 5)

    N, C = 2, FILTERS
    x = jax.random.normal(k0, (N, C, D, H, W), jnp.float32)

    # Deterministic synthetic parameters (shapes per the module __init__).
    w1 = 0.1 * jax.random.normal(k1, (C, C, KSIZE, KSIZE, KSIZE), jnp.float32)
    b1 = 0.1 * jax.random.normal(k2, (C,), jnp.float32)
    w2 = 0.1 * jax.random.normal(k3, (C, C, KSIZE, KSIZE, KSIZE), jnp.float32)
    b2 = 0.1 * jax.random.normal(k4, (C,), jnp.float32)
    g1 = jnp.ones((C,), jnp.float32)   # GroupNorm affine defaults
    be1 = jnp.zeros((C,), jnp.float32)
    g2 = jnp.ones((C,), jnp.float32)
    be2 = jnp.zeros((C,), jnp.float32)
    params = (w1, b1, g1, be1, w2, b2, g2, be2)

    out = jax.block_until_ready(conv_block(x, params))
    ref = jax.block_until_ready(_ref_forward(x, params))

    assert out.shape == (N, C, D, H, W)
    # Exact divide in the erf polynomial -> kernel/reference agreement is
    # limited only by f32 reduction-order noise; 2e-3 atol leaves headroom.
    np.testing.assert_allclose(np.asarray(out), np.asarray(ref),
                               rtol=1e-3, atol=2e-3)
    print("KERNEL_OK")
</pallas_src>

<mosaic_0001>
module attributes {stable_mosaic.version = 11 : i64} {
  func.func @_fused_kernel(%arg0: i32, %arg1: memref<8x1024xf32, #tpu.memory_space<vmem>>, %arg2: memref<27x1024xf32, #tpu.memory_space<vmem>>, %arg3: memref<2x8x216xf32, #tpu.memory_space<vmem>>, %arg4: memref<8x8xf32, #tpu.memory_space<vmem>>, %arg5: memref<8x1024xf32, #tpu.memory_space<vmem>>, %arg6: memref<216x1024xf32, #tpu.memory_space<vmem>>) attributes {dimension_semantics = [#tpu.dimension_semantics<arbitrary>], iteration_bounds = array<i64: 1>, scalar_prefetch = 0 : i64, scratch_operands = 1 : i64, tpu.core_type = #tpu.core_type<tc>, window_params = [{pipeline_mode = #tpu.pipeline_mode<synchronous>, transform_indices = @transform_0, window_bounds = array<i64: 8, 1024>}, {pipeline_mode = #tpu.pipeline_mode<synchronous>, transform_indices = @transform_1, window_bounds = array<i64: 27, 1024>}, {pipeline_mode = #tpu.pipeline_mode<synchronous>, transform_indices = @transform_2, window_bounds = array<i64: 2, 8, 216>}, {pipeline_mode = #tpu.pipeline_mode<synchronous>, transform_indices = @transform_3, window_bounds = array<i64: 8, 8>}, {pipeline_mode = #tpu.pipeline_mode<synchronous>, transform_indices = @transform_4, window_bounds = array<i64: 8, 1024>}]} {
    %c0 = arith.constant 0 : index
    %c0_0 = arith.constant 0 : index
    %0 = vector.load %arg1[%c0, %c0_0] : memref<8x1024xf32, #tpu.memory_space<vmem>>, vector<8x1024xf32>
    %c0_1 = arith.constant 0 : index
    %c0_2 = arith.constant 0 : index
    %1 = vector.load %arg4[%c0_1, %c0_2] : memref<8x8xf32, #tpu.memory_space<vmem>>, vector<8x8xf32>
    %c73_i32 = arith.constant 73 : i32
    %2 = tpu.dynamic_rotate %0 by %c73_i32 dim 1 : vector<8x1024xf32>, i32 -> vector<8x1024xf32>
    %c0_3 = arith.constant 0 : index
    %c0_4 = arith.constant 0 : index
    %3 = vector.load %arg2[%c0_3, %c0_4] : memref<27x1024xf32, #tpu.memory_space<vmem>>, vector<1x1024xf32>
    %4 = vector.broadcast %3 : vector<1x1024xf32> to vector<8x1024xf32>
    %5 = arith.mulf %2, %4 : vector<8x1024xf32>
    %c0_5 = arith.constant 0 : index
    %c0_6 = arith.constant 0 : index
    %6 = vector.load %arg6[%c0_5, %c0_6] : memref<216x1024xf32, #tpu.memory_space<vmem>>, vector<8x1024xf32>
    tpu.vector_store %arg6[%c0_5, %c0_6], %5 {strides = array<i32>} : memref<216x1024xf32, #tpu.memory_space<vmem>>, vector<8x1024xf32>,
    %c72_i32 = arith.constant 72 : i32
    %7 = tpu.dynamic_rotate %0 by %c72_i32 dim 1 : vector<8x1024xf32>, i32 -> vector<8x1024xf32>
    %c1 = arith.constant 1 : index
    %c0_7 = arith.constant 0 : index
    %8 = vector.load %arg2[%c1, %c0_7] : memref<27x1024xf32, #tpu.memory_space<vmem>>, vector<1x1024xf32>
    %9 = vector.broadcast %8 : vector<1x1024xf32> to vector<8x1024xf32>
    %10 = arith.mulf %7, %9 : vector<8x1024xf32>
    %c8 = arith.constant 8 : index
    %c0_8 = arith.constant 0 : index
    %11 = vector.load %arg6[%c8, %c0_8] : memref<216x1024xf32, #tpu.memory_space<vmem>>, vector<8x1024xf32>
    tpu.vector_store %arg6[%c8, %c0_8], %10 {strides = array<i32>} : memref<216x1024xf32, #tpu.memory_space<vmem>>, vector<8x1024xf32>,
    %c71_i32 = arith.constant 71 : i32
    %12 = tpu.dynamic_rotate %0 by %c71_i32 dim 1 : vector<8x1024xf32>, i32 -> vector<8x1024xf32>
    %c2 = arith.constant 2 : index
    %c0_9 = arith.constant 0 : index
    %13 = vector.load %arg2[%c2, %c0_9] : memref<27x1024xf32, #tpu.memory_space<vmem>>, vector<1x1024xf32>
    %14 = vector.broadcast %13 : vector<1x1024xf32> to vector<8x1024xf32>
    %15 = arith.mulf %12, %14 : vector<8x1024xf32>
    %c16 = arith.constant 16 : index
    %c0_10 = arith.constant 0 : index
    %16 = vector.load %arg6[%c16, %c0_10] : memref<216x1024xf32, #tpu.memory_space<vmem>>, vector<8x1024xf32>
    tpu.vector_store %arg6[%c16, %c0_10], %15 {strides = array<i32>} : memref<216x1024xf32, #tpu.memory_space<vmem>>, vector<8x1024xf32>,
    %c65_i32 = arith.constant 65 : i32
    %17 = tpu.dynamic_rotate %0 by %c65_i32 dim 1 : vector<8x1024xf32>, i32 -> vector<8x1024xf32>
    %c3 = arith.constant 3 : index
    %c0_11 = arith.constant 0 : index
    %18 = vector.load %arg2[%c3, %c0_11] : memref<27x1024xf32, #tpu.memory_space<vmem>>, vector<1x1024xf32>
    %19 = vector.broadcast %18 : vector<1x1024xf32> to vector<8x1024xf32>
    %20 = arith.mulf %17, %19 : vector<8x1024xf32>
    %c24 = arith.constant 24 : index
    %c0_12 = arith.constant 0 : index
    %21 = vector.load %arg6[%c24, %c0_12] : memref<216x1024xf32, #tpu.memory_space<vmem>>, vector<8x1024xf32>
    tpu.vector_store %arg6[%c24, %c0_12], %20 {strides = array<i32>} : memref<216x1024xf32, #tpu.memory_space<vmem>>, vector<8x1024xf32>,
    %c64_i32 = arith.constant 64 : i32
    %22 = tpu.dynamic_rotate %0 by %c64_i32 dim 1 : vector<8x1024xf32>, i32 -> vector<8x1024xf32>
    %c4 = arith.constant 4 : index
    %c0_13 = arith.constant 0 : index
    %23 = vector.load %arg2[%c4, %c0_13] : memref<27x1024xf32, #tpu.memory_space<vmem>>, vector<1x1024xf32>
    %24 = vector.broadcast %23 : vector<1x1024xf32> to vector<8x1024xf32>
    %25 = arith.mulf %22, %24 : vector<8x1024xf32>
    %c32 = arith.constant 32 : index
    %c0_14 = arith.constant 0 : index
    %26 = vector.load %arg6[%c32, %c0_14] : memref<216x1024xf32, #tpu.memory_space<vmem>>, vector<8x1024xf32>
    tpu.vector_store %arg6[%c32, %c0_14], %25 {strides = array<i32>} : memref<216x1024xf32, #tpu.memory_space<vmem>>, vector<8x1024xf32>,
    %c63_i32 = arith.constant 63 : i32
    %27 = tpu.dynamic_rotate %0 by %c63_i32 dim 1 : vector<8x1024xf32>, i32 -> vector<8x1024xf32>
    %c5 = arith.constant 5 : index
    %c0_15 = arith.constant 0 : index
    %28 = vector.load %arg2[%c5, %c0_15] : memref<27x1024xf32, #tpu.memory_space<vmem>>, vector<1x1024xf32>
    %29 = vector.broadcast %28 : vector<1x1024xf32> to vector<8x1024xf32>
    %30 = arith.mulf %27, %29 : vector<8x1024xf32>
    %c40 = arith.constant 40 : index
    %c0_16 = arith.constant 0 : index
    %31 = vector.load %arg6[%c40, %c0_16] : memref<216x1024xf32, #tpu.memory_space<vmem>>, vector<8x1024xf32>
    tpu.vector_store %arg6[%c40, %c0_16], %30 {strides = array<i32>} : memref<216x1024xf32, #tpu.memory_space<vmem>>, vector<8x1024xf32>,
    %c57_i32 = arith.constant 57 : i32
    %32 = tpu.dynamic_rotate %0 by %c57_i32 dim 1 : vector<8x1024xf32>, i32 -> vector<8x1024xf32>
    %c6 = arith.constant 6 : index
    %c0_17 = arith.constant 0 : index
    %33 = vector.load %arg2[%c6, %c0_17] : memref<27x1024xf32, #tpu.memory_space<vmem>>, vector<1x1024xf32>
    %34 = vector.broadcast %33 : vector<1x1024xf32> to vector<8x1024xf32>
    %35 = arith.mulf %32, %34 : vector<8x1024xf32>
    %c48 = arith.constant 48 : index
    %c0_18 = arith.constant 0 : index
    %36 = vector.load %arg6[%c48, %c0_18] : memref<216x1024xf32, #tpu.memory_space<vmem>>, vector<8x1024xf32>
    tpu.vector_store %arg6[%c48, %c0_18], %35 {strides = array<i32>} : memref<216x1024xf32, #tpu.memory_space<vmem>>, vector<8x1024xf32>,
    %c56_i32 = arith.constant 56 : i32
    %37 = tpu.dynamic_rotate %0 by %c56_i32 dim 1 : vector<8x1024xf32>, i32 -> vector<8x1024xf32>
    %c7 = arith.constant 7 : index
    %c0_19 = arith.constant 0 : index
    %38 = vector.load %arg2[%c7, %c0_19] : memref<27x1024xf32, #tpu.memory_space<vmem>>, vector<1x1024xf32>
    %39 = vector.broadcast %38 : vector<1x1024xf32> to vector<8x1024xf32>
    %40 = arith.mulf %37, %39 : vector<8x1024xf32>
    %c56 = arith.constant 56 : index
    %c0_20 = arith.constant 0 : index
    %41 = vector.load %arg6[%c56, %c0_20] : memref<216x1024xf32, #tpu.memory_space<vmem>>, vector<8x1024xf32>
    tpu.vector_store %arg6[%c56, %c0_20], %40 {strides = array<i32>} : memref<216x1024xf32, #tpu.memory_space<vmem>>, vector<8x1024xf32>,
    %c55_i32 = arith.constant 55 : i32
    %42 = tpu.dynamic_rotate %0 by %c55_i32 dim 1 : vector<8x1024xf32>, i32 -> vector<8x1024xf32>
    %c8_21 = arith.constant 8 : index
    %c0_22 = arith.constant 0 : index
    %43 = vector.load %arg2[%c8_21, %c0_22] : memref<27x1024xf32, #tpu.memory_space<vmem>>, vector<1x1024xf32>
    %44 = vector.broadcast %43 : vector<1x1024xf32> to vector<8x1024xf32>
    %45 = arith.mulf %42, %44 : vector<8x1024xf32>
    %c64 = arith.constant 64 : index
    %c0_23 = arith.constant 0 : index
    %46 = vector.load %arg6[%c64, %c0_23] : memref<216x1024xf32, #tpu.memory_space<vmem>>, vector<8x1024xf32>
    tpu.vector_store %arg6[%c64, %c0_23], %45 {strides = array<i32>} : memref<216x1024xf32, #tpu.memory_space<vmem>>, vector<8x1024xf32>,
    %c9_i32 = arith.constant 9 : i32
    %47 = tpu.dynamic_rotate %0 by %c9_i32 dim 1 : vector<8x1024xf32>, i32 -> vector<8x1024xf32>
    %c9 = arith.constant 9 : index
    %c0_24 = arith.constant 0 : index
    %48 = vector.load %arg2[%c9, %c0_24] : memref<27x1024xf32, #tpu.memory_space<vmem>>, vector<1x1024xf32>
    %49 = vector.broadcast %48 : vector<1x1024xf32> to vector<8x1024xf32>
    %50 = arith.mulf %47, %49 : vector<8x1024xf32>
    %c72 = arith.constant 72 : index
    %c0_25 = arith.constant 0 : index
    %51 = vector.load %arg6[%c72, %c0_25] : memref<216x1024xf32, #tpu.memory_space<vmem>>, vector<8x1024xf32>
    tpu.vector_store %arg6[%c72, %c0_25], %50 {strides = array<i32>} : memref<216x1024xf32, #tpu.memory_space<vmem>>, vector<8x1024xf32>,
    %c8_i32 = arith.constant 8 : i32
    %52 = tpu.dynamic_rotate %0 by %c8_i32 dim 1 : vector<8x1024xf32>, i32 -> vector<8x1024xf32>
    %c10 = arith.constant 10 : index
    %c0_26 = arith.constant 0 : index
    %53 = vector.load %arg2[%c10, %c0_26] : memref<27x1024xf32, #tpu.memory_space<vmem>>, vector<1x1024xf32>
    %54 = vector.broadcast %53 : vector<1x1024xf32> to vector<8x1024xf32>
    %55 = arith.mulf %52, %54 : vector<8x1024xf32>
    %c80 = arith.constant 80 : index
    %c0_27 = arith.constant 0 : index
    %56 = vector.load %arg6[%c80, %c0_27] : memref<216x1024xf32, #tpu.memory_space<vmem>>, vector<8x1024xf32>
    tpu.vector_store %arg6[%c80, %c0_27], %55 {strides = array<i32>} : memref<216x1024xf32, #tpu.memory_space<vmem>>, vector<8x1024xf32>,
    %c7_i32 = arith.constant 7 : i32
    %57 = tpu.dynamic_rotate %0 by %c7_i32 dim 1 : vector<8x1024xf32>, i32 -> vector<8x1024xf32>
    %c11 = arith.constant 11 : index
    %c0_28 = arith.constant 0 : index
    %58 = vector.load %arg2[%c11, %c0_28] : memref<27x1024xf32, #tpu.memory_space<vmem>>, vector<1x1024xf32>
    %59 = vector.broadcast %58 : vector<1x1024xf32> to vector<8x1024xf32>
    %60 = arith.mulf %57, %59 : vector<8x1024xf32>
    %c88 = arith.constant 88 : index
    %c0_29 = arith.constant 0 : index
    %61 = vector.load %arg6[%c88, %c0_29] : memref<216x1024xf32, #tpu.memory_space<vmem>>, vector<8x1024xf32>
    tpu.vector_store %arg6[%c88, %c0_29], %60 {strides = array<i32>} : memref<216x1024xf32, #tpu.memory_space<vmem>>, vector<8x1024xf32>,
    %c1_i32 = arith.constant 1 : i32
    %62 = tpu.dynamic_rotate %0 by %c1_i32 dim 1 : vector<8x1024xf32>, i32 -> vector<8x1024xf32>
    %c12 = arith.constant 12 : index
    %c0_30 = arith.constant 0 : index
    %63 = vector.load %arg2[%c12, %c0_30] : memref<27x1024xf32, #tpu.memory_space<vmem>>, vector<1x1024xf32>
    %64 = vector.broadcast %63 : vector<1x1024xf32> to vector<8x1024xf32>
    %65 = arith.mulf %62, %64 : vector<8x1024xf32>
    %c96 = arith.constant 96 : index
    %c0_31 = arith.constant 0 : index
    %66 = vector.load %arg6[%c96, %c0_31] : memref<216x1024xf32, #tpu.memory_space<vmem>>, vector<8x1024xf32>
    tpu.vector_store %arg6[%c96, %c0_31], %65 {strides = array<i32>} : memref<216x1024xf32, #tpu.memory_space<vmem>>, vector<8x1024xf32>,
    %c13 = arith.constant 13 : index
    %c0_32 = arith.constant 0 : index
    %67 = vector.load %arg2[%c13, %c0_32] : memref<27x1024xf32, #tpu.memory_space<vmem>>, vector<1x1024xf32>
    %68 = vector.broadcast %67 : vector<1x1024xf32> to vector<8x1024xf32>
    %69 = arith.mulf %0, %68 : vector<8x1024xf32>
    %c104 = arith.constant 104 : index
    %c0_33 = arith.constant 0 : index
    %70 = vector.load %arg6[%c104, %c0_33] : memref<216x1024xf32, #tpu.memory_space<vmem>>, vector<8x1024xf32>
    tpu.vector_store %arg6[%c104, %c0_33], %69 {strides = array<i32>} : memref<216x1024xf32, #tpu.memory_space<vmem>>, vector<8x1024xf32>,
    %c1023_i32 = arith.constant 1023 : i32
    %71 = tpu.dynamic_rotate %0 by %c1023_i32 dim 1 : vector<8x1024xf32>, i32 -> vector<8x1024xf32>
    %c14 = arith.constant 14 : index
    %c0_34 = arith.constant 0 : index
    %72 = vector.load %arg2[%c14, %c0_34] : memref<27x1024xf32, #tpu.memory_space<vmem>>, vector<1x1024xf32>
    %73 = vector.broadcast %72 : vector<1x1024xf32> to vector<8x1024xf32>
    %74 = arith.mulf %71, %73 : vector<8x1024xf32>
    %c112 = arith.constant 112 : index
    %c0_35 = arith.constant 0 : index
    %75 = vector.load %arg6[%c112, %c0_35] : memref<216x1024xf32, #tpu.memory_space<vmem>>, vector<8x1024xf32>
    tpu.vector_store %arg6[%c112, %c0_35], %74 {strides = array<i32>} : memref<216x1024xf32, #tpu.memory_space<vmem>>, vector<8x1024xf32>,
    %c1017_i32 = arith.constant 1017 : i32
    %76 = tpu.dynamic_rotate %0 by %c1017_i32 dim 1 : vector<8x1024xf32>, i32 -> vector<8x1024xf32>
    %c15 = arith.constant 15 : index
    %c0_36 = arith.constant 0 : index
    %77 = vector.load %arg2[%c15, %c0_36] : memref<27x1024xf32, #tpu.memory_space<vmem>>, vector<1x1024xf32>
    %78 = vector.broadcast %77 : vector<1x1024xf32> to vector<8x1024xf32>
    %79 = arith.mulf %76, %78 : vector<8x1024xf32>
    %c120 = arith.constant 120 : index
    %c0_37 = arith.constant 0 : index
    %80 = vector.load %arg6[%c120, %c0_37] : memref<216x1024xf32, #tpu.memory_space<vmem>>, vector<8x1024xf32>
    tpu.vector_store %arg6[%c120, %c0_37], %79 {strides = array<i32>} : memref<216x1024xf32, #tpu.memory_space<vmem>>, vector<8x1024xf32>,
    %c1016_i32 = arith.constant 1016 : i32
    %81 = tpu.dynamic_rotate %0 by %c1016_i32 dim 1 : vector<8x1024xf32>, i32 -> vector<8x1024xf32>
    %c16_38 = arith.constant 16 : index
    %c0_39 = arith.constant 0 : index
    %82 = vector.load %arg2[%c16_38, %c0_39] : memref<27x1024xf32, #tpu.memory_space<vmem>>, vector<1x1024xf32>
    %83 = vector.broadcast %82 : vector<1x1024xf32> to vector<8x1024xf32>
    %84 = arith.mulf %81, %83 : vector<8x1024xf32>
    %c128 = arith.constant 128 : index
    %c0_40 = arith.constant 0 : index
    %85 = vector.load %arg6[%c128, %c0_40] : memref<216x1024xf32, #tpu.memory_space<vmem>>, vector<8x1024xf32>
    tpu.vector_store %arg6[%c128, %c0_40], %84 {strides = array<i32>} : memref<216x1024xf32, #tpu.memory_space<vmem>>, vector<8x1024xf32>,
    %c1015_i32 = arith.constant 1015 : i32
    %86 = tpu.dynamic_rotate %0 by %c1015_i32 dim 1 : vector<8x1024xf32>, i32 -> vector<8x1024xf32>
    %c17 = arith.constant 17 : index
    %c0_41 = arith.constant 0 : index
    %87 = vector.load %arg2[%c17, %c0_41] : memref<27x1024xf32, #tpu.memory_space<vmem>>, vector<1x1024xf32>
    %88 = vector.broadcast %87 : vector<1x1024xf32> to vector<8x1024xf32>
    %89 = arith.mulf %86, %88 : vector<8x1024xf32>
    %c136 = arith.constant 136 : index
    %c0_42 = arith.constant 0 : index
    %90 = vector.load %arg6[%c136, %c0_42] : memref<216x1024xf32, #tpu.memory_space<vmem>>, vector<8x1024xf32>
    tpu.vector_store %arg6[%c136, %c0_42], %89 {strides = array<i32>} : memref<216x1024xf32, #tpu.memory_space<vmem>>, vector<8x1024xf32>,
    %c969_i32 = arith.constant 969 : i32
    %91 = tpu.dynamic_rotate %0 by %c969_i32 dim 1 : vector<8x1024xf32>, i32 -> vector<8x1024xf32>
    %c18 = arith.constant 18 : index
    %c0_43 = arith.constant 0 : index
    %92 = vector.load %arg2[%c18, %c0_43] : memref<27x1024xf32, #tpu.memory_space<vmem>>, vector<1x1024xf32>
    %93 = vector.broadcast %92 : vector<1x1024xf32> to vector<8x1024xf32>
    %94 = arith.mulf %91, %93 : vector<8x1024xf32>
    %c144 = arith.constant 144 : index
    %c0_44 = arith.constant 0 : index
    %95 = vector.load %arg6[%c144, %c0_44] : memref<216x1024xf32, #tpu.memory_space<vmem>>, vector<8x1024xf32>
    tpu.vector_store %arg6[%c144, %c0_44], %94 {strides = array<i32>} : memref<216x1024xf32, #tpu.memory_space<vmem>>, vector<8x1024xf32>,
    %c968_i32 = arith.constant 968 : i32
    %96 = tpu.dynamic_rotate %0 by %c968_i32 dim 1 : vector<8x1024xf32>, i32 -> vector<8x1024xf32>
    %c19 = arith.constant 19 : index
    %c0_45 = arith.constant 0 : index
    %97 = vector.load %arg2[%c19, %c0_45] : memref<27x1024xf32, #tpu.memory_space<vmem>>, vector<1x1024xf32>
    %98 = vector.broadcast %97 : vector<1x1024xf32> to vector<8x1024xf32>
    %99 = arith.mulf %96, %98 : vector<8x1024xf32>
    %c152 = arith.constant 152 : index
    %c0_46 = arith.constant 0 : index
    %100 = vector.load %arg6[%c152, %c0_46] : memref<216x1024xf32, #tpu.memory_space<vmem>>, vector<8x1024xf32>
    tpu.vector_store %arg6[%c152, %c0_46], %99 {strides = array<i32>} : memref<216x1024xf32, #tpu.memory_space<vmem>>, vector<8x1024xf32>,
    %c967_i32 = arith.constant 967 : i32
    %101 = tpu.dynamic_rotate %0 by %c967_i32 dim 1 : vector<8x1024xf32>, i32 -> vector<8x1024xf32>
    %c20 = arith.constant 20 : index
    %c0_47 = arith.constant 0 : index
    %102 = vector.load %arg2[%c20, %c0_47] : memref<27x1024xf32, #tpu.memory_space<vmem>>, vector<1x1024xf32>
    %103 = vector.broadcast %102 : vector<1x1024xf32> to vector<8x1024xf32>
    %104 = arith.mulf %101, %103 : vector<8x1024xf32>
    %c160 = arith.constant 160 : index
    %c0_48 = arith.constant 0 : index
    %105 = vector.load %arg6[%c160, %c0_48] : memref<216x1024xf32, #tpu.memory_space<vmem>>, vector<8x1024xf32>
    tpu.vector_store %arg6[%c160, %c0_48], %104 {strides = array<i32>} : memref<216x1024xf32, #tpu.memory_space<vmem>>, vector<8x1024xf32>,
    %c961_i32 = arith.constant 961 : i32
    %106 = tpu.dynamic_rotate %0 by %c961_i32 dim 1 : vector<8x1024xf32>, i32 -> vector<8x1024xf32>
    %c21 = arith.constant 21 : index
    %c0_49 = arith.constant 0 : index
    %107 = vector.load %arg2[%c21, %c0_49] : memref<27x1024xf32, #tpu.memory_space<vmem>>, vector<1x1024xf32>
    %108 = vector.broadcast %107 : vector<1x1024xf32> to vector<8x1024xf32>
    %109 = arith.mulf %106, %108 : vector<8x1024xf32>
    %c168 = arith.constant 168 : index
    %c0_50 = arith.constant 0 : index
    %110 = vector.load %arg6[%c168, %c0_50] : memref<216x1024xf32, #tpu.memory_space<vmem>>, vector<8x1024xf32>
    tpu.vector_store %arg6[%c168, %c0_50], %109 {strides = array<i32>} : memref<216x1024xf32, #tpu.memory_space<vmem>>, vector<8x1024xf32>,
    %c960_i32 = arith.constant 960 : i32
    %111 = tpu.dynamic_rotate %0 by %c960_i32 dim 1 : vector<8x1024xf32>, i32 -> vector<8x1024xf32>
    %c22 = arith.constant 22 : index
    %c0_51 = arith.constant 0 : index
    %112 = vector.load %arg2[%c22, %c0_51] : memref<27x1024xf32, #tpu.memory_space<vmem>>, vector<1x1024xf32>
    %113 = vector.broadcast %112 : vector<1x1024xf32> to vector<8x1024xf32>
    %114 = arith.mulf %111, %113 : vector<8x1024xf32>
    %c176 = arith.constant 176 : index
    %c0_52 = arith.constant 0 : index
    %115 = vector.load %arg6[%c176, %c0_52] : memref<216x1024xf32, #tpu.memory_space<vmem>>, vector<8x1024xf32>
    tpu.vector_store %arg6[%c176, %c0_52], %114 {strides = array<i32>} : memref<216x1024xf32, #tpu.memory_space<vmem>>, vector<8x1024xf32>,
    %c959_i32 = arith.constant 959 : i32
    %116 = tpu.dynamic_rotate %0 by %c959_i32 dim 1 : vector<8x1024xf32>, i32 -> vector<8x1024xf32>
    %c23 = arith.constant 23 : index
    %c0_53 = arith.constant 0 : index
    %117 = vector.load %arg2[%c23, %c0_53] : memref<27x1024xf32, #tpu.memory_space<vmem>>, vector<1x1024xf32>
    %118 = vector.broadcast %117 : vector<1x1024xf32> to vector<8x1024xf32>
    %119 = arith.mulf %116, %118 : vector<8x1024xf32>
    %c184 = arith.constant 184 : index
    %c0_54 = arith.constant 0 : index
    %120 = vector.load %arg6[%c184, %c0_54] : memref<216x1024xf32, #tpu.memory_space<vmem>>, vector<8x1024xf32>
    tpu.vector_store %arg6[%c184, %c0_54], %119 {strides = array<i32>} : memref<216x1024xf32, #tpu.memory_space<vmem>>, vector<8x1024xf32>,
    %c953_i32 = arith.constant 953 : i32
    %121 = tpu.dynamic_rotate %0 by %c953_i32 dim 1 : vector<8x1024xf32>, i32 -> vector<8x1024xf32>
    %c24_55 = arith.constant 24 : index
    %c0_56 = arith.constant 0 : index
    %122 = vector.load %arg2[%c24_55, %c0_56] : memref<27x1024xf32, #tpu.memory_space<vmem>>, vector<1x1024xf32>
    %123 = vector.broadcast %122 : vector<1x1024xf32> to vector<8x1024xf32>
    %124 = arith.mulf %121, %123 : vector<8x1024xf32>
    %c192 = arith.constant 192 : index
    %c0_57 = arith.constant 0 : index
    %125 = vector.load %arg6[%c192, %c0_57] : memref<216x1024xf32, #tpu.memory_space<vmem>>, vector<8x1024xf32>
    tpu.vector_store %arg6[%c192, %c0_57], %124 {strides = array<i32>} : memref<216x1024xf32, #tpu.memory_space<vmem>>, vector<8x1024xf32>,
    %c952_i32 = arith.constant 952 : i32
    %126 = tpu.dynamic_rotate %0 by %c952_i32 dim 1 : vector<8x1024xf32>, i32 -> vector<8x1024xf32>
    %c25 = arith.constant 25 : index
    %c0_58 = arith.constant 0 : index
    %127 = vector.load %arg2[%c25, %c0_58] : memref<27x1024xf32, #tpu.memory_space<vmem>>, vector<1x1024xf32>
    %128 = vector.broadcast %127 : vector<1x1024xf32> to vector<8x1024xf32>
    %129 = arith.mulf %126, %128 : vector<8x1024xf32>
    %c200 = arith.constant 200 : index
    %c0_59 = arith.constant 0 : index
    %130 = vector.load %arg6[%c200, %c0_59] : memref<216x1024xf32, #tpu.memory_space<vmem>>, vector<8x1024xf32>
    tpu.vector_store %arg6[%c200, %c0_59], %129 {strides = array<i32>} : memref<216x1024xf32, #tpu.memory_space<vmem>>, vector<8x1024xf32>,
    %c951_i32 = arith.constant 951 : i32
    %131 = tpu.dynamic_rotate %0 by %c951_i32 dim 1 : vector<8x1024xf32>, i32 -> vector<8x1024xf32>
    %c26 = arith.constant 26 : index
    %c0_60 = arith.constant 0 : index
    %132 = vector.load %arg2[%c26, %c0_60] : memref<27x1024xf32, #tpu.memory_space<vmem>>, vector<1x1024xf32>
    %133 = vector.broadcast %132 : vector<1x1024xf32> to vector<8x1024xf32>
    %134 = arith.mulf %131, %133 : vector<8x1024xf32>
    %c208 = arith.constant 208 : index
    %c0_61 = arith.constant 0 : index
    %135 = vector.load %arg6[%c208, %c0_61] : memref<216x1024xf32, #tpu.memory_space<vmem>>, vector<8x1024xf32>
    tpu.vector_store %arg6[%c208, %c0_61], %134 {strides = array<i32>} : memref<216x1024xf32, #tpu.memory_space<vmem>>, vector<8x1024xf32>,
    %136 = vector.extract_strided_slice %1 {offsets = [0, 0], sizes = [8, 1], strides = [1, 1]} : vector<8x8xf32> to vector<8x1xf32>
    %137 = vector.extract_strided_slice %1 {offsets = [0, 1], sizes = [8, 1], strides = [1, 1]} : vector<8x8xf32> to vector<8x1xf32>
    %138 = vector.extract_strided_slice %1 {offsets = [0, 2], sizes = [8, 1], strides = [1, 1]} : vector<8x8xf32> to vector<8x1xf32>
    %c0_62 = arith.constant 0 : index
    %c0_63 = arith.constant 0 : index
    %c0_64 = arith.constant 0 : index
    %139 = vector.load %arg3[%c0_62, %c0_63, %c0_64] : memref<2x8x216xf32, #tpu.memory_space<vmem>>, vector<1x8x216xf32>
    %140 = vector.shape_cast %139 : vector<1x8x216xf32> to vector<8x216xf32>
    %c0_65 = arith.constant 0 : index
    %c0_66 = arith.constant 0 : index
    %141 = vector.load %arg6[%c0_65, %c0_66] : memref<216x1024xf32, #tpu.memory_space<vmem>>, vector<216x1024xf32>
    %cst = arith.constant dense<0.000000e+00> : vector<8x1024xf32>
    %142 = tpu.matmul %140, %141, %cst {dimension_numbers = #tpu.dot_dimension_numbers<[1], [0], [0], [1], [0, 0, 1, 1], [], []>} : vector<8x216xf32>, vector<216x1024xf32>, vector<8x1024xf32> -> vector<8x1024xf32>
    %143 = vector.broadcast %136 : vector<8x1xf32> to vector<8x1024xf32>
    %144 = arith.addf %142, %143 : vector<8x1024xf32>
    %145 = math.absf %144 : vector<8x1024xf32>
    %cst_67 = arith.constant 0.707106769 : f32
    %146 = vector.broadcast %cst_67 : f32 to vector<8x1024xf32>
    %147 = arith.mulf %145, %146 : vector<8x1024xf32>
    %cst_68 = arith.constant 0.327591091 : f32
    %148 = vector.broadcast %cst_68 : f32 to vector<8x1024xf32>
    %149 = arith.mulf %148, %147 : vector<8x1024xf32>
    %cst_69 = arith.constant 1.000000e+00 : f32
    %150 = vector.broadcast %cst_69 : f32 to vector<8x1024xf32>
    %151 = arith.addf %150, %149 : vector<8x1024xf32>
    %cst_70 = arith.constant 1.000000e+00 : f32
    %152 = vector.broadcast %cst_70 : f32 to vector<8x1024xf32>
    %153 = arith.divf %152, %151 : vector<8x1024xf32>
    %cst_71 = arith.constant 1.06140542 : f32
    %154 = vector.broadcast %cst_71 : f32 to vector<8x1024xf32>
    %155 = arith.mulf %154, %153 : vector<8x1024xf32>
    %cst_72 = arith.constant -1.45315206 : f32
    %156 = vector.broadcast %cst_72 : f32 to vector<8x1024xf32>
    %157 = arith.addf %155, %156 : vector<8x1024xf32>
    %158 = arith.mulf %157, %153 : vector<8x1024xf32>
    %cst_73 = arith.constant 1.42141378 : f32
    %159 = vector.broadcast %cst_73 : f32 to vector<8x1024xf32>
    %160 = arith.addf %158, %159 : vector<8x1024xf32>
    %161 = arith.mulf %160, %153 : vector<8x1024xf32>
    %cst_74 = arith.constant -0.284496725 : f32
    %162 = vector.broadcast %cst_74 : f32 to vector<8x1024xf32>
    %163 = arith.addf %161, %162 : vector<8x1024xf32>
    %164 = arith.mulf %163, %153 : vector<8x1024xf32>
    %cst_75 = arith.constant 0.254829586 : f32
    %165 = vector.broadcast %cst_75 : f32 to vector<8x1024xf32>
    %166 = arith.addf %164, %165 : vector<8x1024xf32>
    %167 = arith.mulf %166, %153 : vector<8x1024xf32>
    %cst_76 = arith.constant 0.000000e+00 : f32
    %168 = vector.broadcast %cst_76 : f32 to vector<8x1024xf32>
    %169 = arith.subf %168, %147 : vector<8x1024xf32>
    %170 = arith.mulf %169, %147 : vector<8x1024xf32>
    %171 = math.exp %170 : vector<8x1024xf32>
    %172 = arith.mulf %167, %171 : vector<8x1024xf32>
    %cst_77 = arith.constant 1.000000e+00 : f32
    %173 = vector.broadcast %cst_77 : f32 to vector<8x1024xf32>
    %174 = arith.subf %173, %172 : vector<8x1024xf32>
    %cst_78 = arith.constant 0.000000e+00 : f32
    %175 = vector.broadcast %cst_78 : f32 to vector<8x1024xf32>
    %176 = arith.cmpf oge, %144, %175 : vector<8x1024xf32>
    %cst_79 = arith.constant 0.000000e+00 : f32
    %177 = vector.broadcast %cst_79 : f32 to vector<8x1024xf32>
    %178 = arith.subf %177, %174 : vector<8x1024xf32>
    %179 = arith.select %176, %174, %178 : vector<8x1024xi1>, vector<8x1024xf32>
    %cst_80 = arith.constant 5.000000e-01 : f32
    %180 = vector.broadcast %cst_80 : f32 to vector<8x1024xf32>
    %181 = arith.mulf %180, %144 : vector<8x1024xf32>
    %cst_81 = arith.constant 1.000000e+00 : f32
    %182 = vector.broadcast %cst_81 : f32 to vector<8x1024xf32>
    %183 = arith.addf %182, %179 : vector<8x1024xf32>
    %184 = arith.mulf %181, %183 : vector<8x1024xf32>
    %185 = vector.extract_strided_slice %184 {offsets = [0, 0], sizes = [8, 512], strides = [1, 1]} : vector<8x1024xf32> to vector<8x512xf32>
    %cst_82 = arith.constant dense<0.000000e+00> : vector<8xf32>
    %186 = vector.multi_reduction <add>, %185, %cst_82 [1] : vector<8x512xf32> to vector<8xf32>
    %187 = vector.shape_cast %186 : vector<8xf32> to vector<8x1xf32>
    %cst_83 = arith.constant 0.001953125 : f32
    %188 = vector.broadcast %cst_83 : f32 to vector<8x1xf32>
    %189 = arith.mulf %187, %188 : vector<8x1xf32>
    %190 = arith.mulf %185, %185 : vector<8x512xf32>
    %cst_84 = arith.constant dense<0.000000e+00> : vector<8xf32>
    %191 = vector.multi_reduction <add>, %190, %cst_84 [1] : vector<8x512xf32> to vector<8xf32>
    %192 = vector.shape_cast %191 : vector<8xf32> to vector<8x1xf32>
    %cst_85 = arith.constant 0.001953125 : f32
    %193 = vector.broadcast %cst_85 : f32 to vector<8x1xf32>
    %194 = arith.mulf %192, %193 : vector<8x1xf32>
    %195 = arith.mulf %189, %189 : vector<8x1xf32>
    %196 = arith.subf %194, %195 : vector<8x1xf32>
    %197 = vector.broadcast %189 : vector<8x1xf32> to vector<8x512xf32>
    %198 = arith.subf %185, %197 : vector<8x512xf32>
    %cst_86 = arith.constant 9.99999974E-6 : f32
    %199 = vector.broadcast %cst_86 : f32 to vector<8x1xf32>
    %200 = arith.addf %196, %199 : vector<8x1xf32>
    %201 = math.rsqrt %200 : vector<8x1xf32>
    %202 = vector.broadcast %201 : vector<8x1xf32> to vector<8x512xf32>
    %203 = arith.mulf %198, %202 : vector<8x512xf32>
    %204 = vector.extract_strided_slice %184 {offsets = [0, 512], sizes = [8, 512], strides = [1, 1]} : vector<8x1024xf32> to vector<8x512xf32>
    %cst_87 = arith.constant dense<0.000000e+00> : vector<8xf32>
    %205 = vector.multi_reduction <add>, %204, %cst_87 [1] : vector<8x512xf32> to vector<8xf32>
    %206 = vector.shape_cast %205 : vector<8xf32> to vector<8x1xf32>
    %cst_88 = arith.constant 0.001953125 : f32
    %207 = vector.broadcast %cst_88 : f32 to vector<8x1xf32>
    %208 = arith.mulf %206, %207 : vector<8x1xf32>
    %209 = arith.mulf %204, %204 : vector<8x512xf32>
    %cst_89 = arith.constant dense<0.000000e+00> : vector<8xf32>
    %210 = vector.multi_reduction <add>, %209, %cst_89 [1] : vector<8x512xf32> to vector<8xf32>
    %211 = vector.shape_cast %210 : vector<8xf32> to vector<8x1xf32>
    %cst_90 = arith.constant 0.001953125 : f32
    %212 = vector.broadcast %cst_90 : f32 to vector<8x1xf32>
    %213 = arith.mulf %211, %212 : vector<8x1xf32>
    %214 = arith.mulf %208, %208 : vector<8x1xf32>
    %215 = arith.subf %213, %214 : vector<8x1xf32>
    %216 = vector.broadcast %208 : vector<8x1xf32> to vector<8x512xf32>
    %217 = arith.subf %204, %216 : vector<8x512xf32>
    %cst_91 = arith.constant 9.99999974E-6 : f32
    %218 = vector.broadcast %cst_91 : f32 to vector<8x1xf32>
    %219 = arith.addf %215, %218 : vector<8x1xf32>
    %220 = math.rsqrt %219 : vector<8x1xf32>
    %221 = vector.broadcast %220 : vector<8x1xf32> to vector<8x512xf32>
    %222 = arith.mulf %217, %221 : vector<8x512xf32>
    %223 = tpu.concatenate %203, %222 in 1 : vector<8x512xf32>, vector<8x512xf32> -> vector<8x1024xf32>
    %224 = vector.broadcast %137 : vector<8x1xf32> to vector<8x1024xf32>
    %225 = arith.mulf %223, %224 : vector<8x1024xf32>
    %226 = vector.broadcast %138 : vector<8x1xf32> to vector<8x1024xf32>
    %227 = arith.addf %225, %226 : vector<8x1024xf32>
    %c73_i32_92 = arith.constant 73 : i32
    %228 = tpu.dynamic_rotate %227 by %c73_i32_92 dim 1 : vector<8x1024xf32>, i32 -> vector<8x1024xf32>
    %c0_93 = arith.constant 0 : index
    %c0_94 = arith.constant 0 : index
    %229 = vector.load %arg2[%c0_93, %c0_94] : memref<27x1024xf32, #tpu.memory_space<vmem>>, vector<1x1024xf32>
    %230 = vector.broadcast %229 : vector<1x1024xf32> to vector<8x1024xf32>
    %231 = arith.mulf %228, %230 : vector<8x1024xf32>
    %c0_95 = arith.constant 0 : index
    %c0_96 = arith.constant 0 : index
    %232 = vector.load %arg6[%c0_95, %c0_96] : memref<216x1024xf32, #tpu.memory_space<vmem>>, vector<8x1024xf32>
    tpu.vector_store %arg6[%c0_95, %c0_96], %231 {strides = array<i32>} : memref<216x1024xf32, #tpu.memory_space<vmem>>, vector<8x1024xf32>,
    %c72_i32_97 = arith.constant 72 : i32
    %233 = tpu.dynamic_rotate %227 by %c72_i32_97 dim 1 : vector<8x1024xf32>, i32 -> vector<8x1024xf32>
    %c1_98 = arith.constant 1 : index
    %c0_99 = arith.constant 0 : index
    %234 = vector.load %arg2[%c1_98, %c0_99] : memref<27x1024xf32, #tpu.memory_space<vmem>>, vector<1x1024xf32>
    %235 = vector.broadcast %234 : vector<1x1024xf32> to vector<8x1024xf32>
    %236 = arith.mulf %233, %235 : vector<8x1024xf32>
    %c8_100 = arith.constant 8 : index
    %c0_101 = arith.constant 0 : index
    %237 = vector.load %arg6[%c8_100, %c0_101] : memref<216x1024xf32, #tpu.memory_space<vmem>>, vector<8x1024xf32>
    tpu.vector_store %arg6[%c8_100, %c0_101], %236 {strides = array<i32>} : memref<216x1024xf32, #tpu.memory_space<vmem>>, vector<8x1024xf32>,
    %c71_i32_102 = arith.constant 71 : i32
    %238 = tpu.dynamic_rotate %227 by %c71_i32_102 dim 1 : vector<8x1024xf32>, i32 -> vector<8x1024xf32>
    %c2_103 = arith.constant 2 : index
    %c0_104 = arith.constant 0 : index
    %239 = vector.load %arg2[%c2_103, %c0_104] : memref<27x1024xf32, #tpu.memory_space<vmem>>, vector<1x1024xf32>
    %240 = vector.broadcast %239 : vector<1x1024xf32> to vector<8x1024xf32>
    %241 = arith.mulf %238, %240 : vector<8x1024xf32>
    %c16_105 = arith.constant 16 : index
    %c0_106 = arith.constant 0 : index
    %242 = vector.load %arg6[%c16_105, %c0_106] : memref<216x1024xf32, #tpu.memory_space<vmem>>, vector<8x1024xf32>
    tpu.vector_store %arg6[%c16_105, %c0_106], %241 {strides = array<i32>} : memref<216x1024xf32, #tpu.memory_space<vmem>>, vector<8x1024xf32>,
    %c65_i32_107 = arith.constant 65 : i32
    %243 = tpu.dynamic_rotate %227 by %c65_i32_107 dim 1 : vector<8x1024xf32>, i32 -> vector<8x1024xf32>
    %c3_108 = arith.constant 3 : index
    %c0_109 = arith.constant 0 : index
    %244 = vector.load %arg2[%c3_108, %c0_109] : memref<27x1024xf32, #tpu.memory_space<vmem>>, vector<1x1024xf32>
    %245 = vector.broadcast %244 : vector<1x1024xf32> to vector<8x1024xf32>
    %246 = arith.mulf %243, %245 : vector<8x1024xf32>
    %c24_110 = arith.constant 24 : index
    %c0_111 = arith.constant 0 : index
    %247 = vector.load %arg6[%c24_110, %c0_111] : memref<216x1024xf32, #tpu.memory_space<vmem>>, vector<8x1024xf32>
    tpu.vector_store %arg6[%c24_110, %c0_111], %246 {strides = array<i32>} : memref<216x1024xf32, #tpu.memory_space<vmem>>, vector<8x1024xf32>,
    %c64_i32_112 = arith.constant 64 : i32
    %248 = tpu.dynamic_rotate %227 by %c64_i32_112 dim 1 : vector<8x1024xf32>, i32 -> vector<8x1024xf32>
    %c4_113 = arith.constant 4 : index
    %c0_114 = arith.constant 0 : index
    %249 = vector.load %arg2[%c4_113, %c0_114] : memref<27x1024xf32, #tpu.memory_space<vmem>>, vector<1x1024xf32>
    %250 = vector.broadcast %249 : vector<1x1024xf32> to vector<8x1024xf32>
    %251 = arith.mulf %248, %250 : vector<8x1024xf32>
    %c32_115 = arith.constant 32 : index
    %c0_116 = arith.constant 0 : index
    %252 = vector.load %arg6[%c32_115, %c0_116] : memref<216x1024xf32, #tpu.memory_space<vmem>>, vector<8x1024xf32>
    tpu.vector_store %arg6[%c32_115, %c0_116], %251 {strides = array<i32>} : memref<216x1024xf32, #tpu.memory_space<vmem>>, vector<8x1024xf32>,
    %c63_i32_117 = arith.constant 63 : i32
    %253 = tpu.dynamic_rotate %227 by %c63_i32_117 dim 1 : vector<8x1024xf32>, i32 -> vector<8x1024xf32>
    %c5_118 = arith.constant 5 : index
    %c0_119 = arith.constant 0 : index
    %254 = vector.load %arg2[%c5_118, %c0_119] : memref<27x1024xf32, #tpu.memory_space<vmem>>, vector<1x1024xf32>
    %255 = vector.broadcast %254 : vector<1x1024xf32> to vector<8x1024xf32>
    %256 = arith.mulf %253, %255 : vector<8x1024xf32>
    %c40_120 = arith.constant 40 : index
    %c0_121 = arith.constant 0 : index
    %257 = vector.load %arg6[%c40_120, %c0_121] : memref<216x1024xf32, #tpu.memory_space<vmem>>, vector<8x1024xf32>
    tpu.vector_store %arg6[%c40_120, %c0_121], %256 {strides = array<i32>} : memref<216x1024xf32, #tpu.memory_space<vmem>>, vector<8x1024xf32>,
    %c57_i32_122 = arith.constant 57 : i32
    %258 = tpu.dynamic_rotate %227 by %c57_i32_122 dim 1 : vector<8x1024xf32>, i32 -> vector<8x1024xf32>
    %c6_123 = arith.constant 6 : index
    %c0_124 = arith.constant 0 : index
    %259 = vector.load %arg2[%c6_123, %c0_124] : memref<27x1024xf32, #tpu.memory_space<vmem>>, vector<1x1024xf32>
    %260 = vector.broadcast %259 : vector<1x1024xf32> to vector<8x1024xf32>
    %261 = arith.mulf %258, %260 : vector<8x1024xf32>
    %c48_125 = arith.constant 48 : index
    %c0_126 = arith.constant 0 : index
    %262 = vector.load %arg6[%c48_125, %c0_126] : memref<216x1024xf32, #tpu.memory_space<vmem>>, vector<8x1024xf32>
    tpu.vector_store %arg6[%c48_125, %c0_126], %261 {strides = array<i32>} : memref<216x1024xf32, #tpu.memory_space<vmem>>, vector<8x1024xf32>,
    %c56_i32_127 = arith.constant 56 : i32
    %263 = tpu.dynamic_rotate %227 by %c56_i32_127 dim 1 : vector<8x1024xf32>, i32 -> vector<8x1024xf32>
    %c7_128 = arith.constant 7 : index
    %c0_129 = arith.constant 0 : index
    %264 = vector.load %arg2[%c7_128, %c0_129] : memref<27x1024xf32, #tpu.memory_space<vmem>>, vector<1x1024xf32>
    %265 = vector.broadcast %264 : vector<1x1024xf32> to vector<8x1024xf32>
    %266 = arith.mulf %263, %265 : vector<8x1024xf32>
    %c56_130 = arith.constant 56 : index
    %c0_131 = arith.constant 0 : index
    %267 = vector.load %arg6[%c56_130, %c0_131] : memref<216x1024xf32, #tpu.memory_space<vmem>>, vector<8x1024xf32>
    tpu.vector_store %arg6[%c56_130, %c0_131], %266 {strides = array<i32>} : memref<216x1024xf32, #tpu.memory_space<vmem>>, vector<8x1024xf32>,
    %c55_i32_132 = arith.constant 55 : i32
    %268 = tpu.dynamic_rotate %227 by %c55_i32_132 dim 1 : vector<8x1024xf32>, i32 -> vector<8x1024xf32>
    %c8_133 = arith.constant 8 : index
    %c0_134 = arith.constant 0 : index
    %269 = vector.load %arg2[%c8_133, %c0_134] : memref<27x1024xf32, #tpu.memory_space<vmem>>, vector<1x1024xf32>
    %270 = vector.broadcast %269 : vector<1x1024xf32> to vector<8x1024xf32>
    %271 = arith.mulf %268, %270 : vector<8x1024xf32>
    %c64_135 = arith.constant 64 : index
    %c0_136 = arith.constant 0 : index
    %272 = vector.load %arg6[%c64_135, %c0_136] : memref<216x1024xf32, #tpu.memory_space<vmem>>, vector<8x1024xf32>
    tpu.vector_store %arg6[%c64_135, %c0_136], %271 {strides = array<i32>} : memref<216x1024xf32, #tpu.memory_space<vmem>>, vector<8x1024xf32>,
    %c9_i32_137 = arith.constant 9 : i32
    %273 = tpu.dynamic_rotate %227 by %c9_i32_137 dim 1 : vector<8x1024xf32>, i32 -> vector<8x1024xf32>
    %c9_138 = arith.constant 9 : index
    %c0_139 = arith.constant 0 : index
    %274 = vector.load %arg2[%c9_138, %c0_139] : memref<27x1024xf32, #tpu.memory_space<vmem>>, vector<1x1024xf32>
    %275 = vector.broadcast %274 : vector<1x1024xf32> to vector<8x1024xf32>
    %276 = arith.mulf %273, %275 : vector<8x1024xf32>
    %c72_140 = arith.constant 72 : index
    %c0_141 = arith.constant 0 : index
    %277 = vector.load %arg6[%c72_140, %c0_141] : memref<216x1024xf32, #tpu.memory_space<vmem>>, vector<8x1024xf32>
    tpu.vector_store %arg6[%c72_140, %c0_141], %276 {strides = array<i32>} : memref<216x1024xf32, #tpu.memory_space<vmem>>, vector<8x1024xf32>,
    %c8_i32_142 = arith.constant 8 : i32
    %278 = tpu.dynamic_rotate %227 by %c8_i32_142 dim 1 : vector<8x1024xf32>, i32 -> vector<8x1024xf32>
    %c10_143 = arith.constant 10 : index
    %c0_144 = arith.constant 0 : index
    %279 = vector.load %arg2[%c10_143, %c0_144] : memref<27x1024xf32, #tpu.memory_space<vmem>>, vector<1x1024xf32>
    %280 = vector.broadcast %279 : vector<1x1024xf32> to vector<8x1024xf32>
    %281 = arith.mulf %278, %280 : vector<8x1024xf32>
    %c80_145 = arith.constant 80 : index
    %c0_146 = arith.constant 0 : index
    %282 = vector.load %arg6[%c80_145, %c0_146] : memref<216x1024xf32, #tpu.memory_space<vmem>>, vector<8x1024xf32>
    tpu.vector_store %arg6[%c80_145, %c0_146], %281 {strides = array<i32>} : memref<216x1024xf32, #tpu.memory_space<vmem>>, vector<8x1024xf32>,
    %c7_i32_147 = arith.constant 7 : i32
    %283 = tpu.dynamic_rotate %227 by %c7_i32_147 dim 1 : vector<8x1024xf32>, i32 -> vector<8x1024xf32>
    %c11_148 = arith.constant 11 : index
    %c0_149 = arith.constant 0 : index
    %284 = vector.load %arg2[%c11_148, %c0_149] : memref<27x1024xf32, #tpu.memory_space<vmem>>, vector<1x1024xf32>
    %285 = vector.broadcast %284 : vector<1x1024xf32> to vector<8x1024xf32>
    %286 = arith.mulf %283, %285 : vector<8x1024xf32>
    %c88_150 = arith.constant 88 : index
    %c0_151 = arith.constant 0 : index
    %287 = vector.load %arg6[%c88_150, %c0_151] : memref<216x1024xf32, #tpu.memory_space<vmem>>, vector<8x1024xf32>
    tpu.vector_store %arg6[%c88_150, %c0_151], %286 {strides = array<i32>} : memref<216x1024xf32, #tpu.memory_space<vmem>>, vector<8x1024xf32>,
    %c1_i32_152 = arith.constant 1 : i32
    %288 = tpu.dynamic_rotate %227 by %c1_i32_152 dim 1 : vector<8x1024xf32>, i32 -> vector<8x1024xf32>
    %c12_153 = arith.constant 12 : index
    %c0_154 = arith.constant 0 : index
    %289 = vector.load %arg2[%c12_153, %c0_154] : memref<27x1024xf32, #tpu.memory_space<vmem>>, vector<1x1024xf32>
    %290 = vector.broadcast %289 : vector<1x1024xf32> to vector<8x1024xf32>
    %291 = arith.mulf %288, %290 : vector<8x1024xf32>
    %c96_155 = arith.constant 96 : index
    %c0_156 = arith.constant 0 : index
    %292 = vector.load %arg6[%c96_155, %c0_156] : memref<216x1024xf32, #tpu.memory_space<vmem>>, vector<8x1024xf32>
    tpu.vector_store %arg6[%c96_155, %c0_156], %291 {strides = array<i32>} : memref<216x1024xf32, #tpu.memory_space<vmem>>, vector<8x1024xf32>,
    %c13_157 = arith.constant 13 : index
    %c0_158 = arith.constant 0 : index
    %293 = vector.load %arg2[%c13_157, %c0_158] : memref<27x1024xf32, #tpu.memory_space<vmem>>, vector<1x1024xf32>
    %294 = vector.broadcast %293 : vector<1x1024xf32> to vector<8x1024xf32>
    %295 = arith.mulf %227, %294 : vector<8x1024xf32>
    %c104_159 = arith.constant 104 : index
    %c0_160 = arith.constant 0 : index
    %296 = vector.load %arg6[%c104_159, %c0_160] : memref<216x1024xf32, #tpu.memory_space<vmem>>, vector<8x1024xf32>
    tpu.vector_store %arg6[%c104_159, %c0_160], %295 {strides = array<i32>} : memref<216x1024xf32, #tpu.memory_space<vmem>>, vector<8x1024xf32>,
    %c1023_i32_161 = arith.constant 1023 : i32
    %297 = tpu.dynamic_rotate %227 by %c1023_i32_161 dim 1 : vector<8x1024xf32>, i32 -> vector<8x1024xf32>
    %c14_162 = arith.constant 14 : index
    %c0_163 = arith.constant 0 : index
    %298 = vector.load %arg2[%c14_162, %c0_163] : memref<27x1024xf32, #tpu.memory_space<vmem>>, vector<1x1024xf32>
    %299 = vector.broadcast %298 : vector<1x1024xf32> to vector<8x1024xf32>
    %300 = arith.mulf %297, %299 : vector<8x1024xf32>
    %c112_164 = arith.constant 112 : index
    %c0_165 = arith.constant 0 : index
    %301 = vector.load %arg6[%c112_164, %c0_165] : memref<216x1024xf32, #tpu.memory_space<vmem>>, vector<8x1024xf32>
    tpu.vector_store %arg6[%c112_164, %c0_165], %300 {strides = array<i32>} : memref<216x1024xf32, #tpu.memory_space<vmem>>, vector<8x1024xf32>,
    %c1017_i32_166 = arith.constant 1017 : i32
    %302 = tpu.dynamic_rotate %227 by %c1017_i32_166 dim 1 : vector<8x1024xf32>, i32 -> vector<8x1024xf32>
    %c15_167 = arith.constant 15 : index
    %c0_168 = arith.constant 0 : index
    %303 = vector.load %arg2[%c15_167, %c0_168] : memref<27x1024xf32, #tpu.memory_space<vmem>>, vector<1x1024xf32>
    %304 = vector.broadcast %303 : vector<1x1024xf32> to vector<8x1024xf32>
    %305 = arith.mulf %302, %304 : vector<8x1024xf32>
    %c120_169 = arith.constant 120 : index
    %c0_170 = arith.constant 0 : index
    %306 = vector.load %arg6[%c120_169, %c0_170] : memref<216x1024xf32, #tpu.memory_space<vmem>>, vector<8x1024xf32>
    tpu.vector_store %arg6[%c120_169, %c0_170], %305 {strides = array<i32>} : memref<216x1024xf32, #tpu.memory_space<vmem>>, vector<8x1024xf32>,
    %c1016_i32_171 = arith.constant 1016 : i32
    %307 = tpu.dynamic_rotate %227 by %c1016_i32_171 dim 1 : vector<8x1024xf32>, i32 -> vector<8x1024xf32>
    %c16_172 = arith.constant 16 : index
    %c0_173 = arith.constant 0 : index
    %308 = vector.load %arg2[%c16_172, %c0_173] : memref<27x1024xf32, #tpu.memory_space<vmem>>, vector<1x1024xf32>
    %309 = vector.broadcast %308 : vector<1x1024xf32> to vector<8x1024xf32>
    %310 = arith.mulf %307, %309 : vector<8x1024xf32>
    %c128_174 = arith.constant 128 : index
    %c0_175 = arith.constant 0 : index
    %311 = vector.load %arg6[%c128_174, %c0_175] : memref<216x1024xf32, #tpu.memory_space<vmem>>, vector<8x1024xf32>
    tpu.vector_store %arg6[%c128_174, %c0_175], %310 {strides = array<i32>} : memref<216x1024xf32, #tpu.memory_space<vmem>>, vector<8x1024xf32>,
    %c1015_i32_176 = arith.constant 1015 : i32
    %312 = tpu.dynamic_rotate %227 by %c1015_i32_176 dim 1 : vector<8x1024xf32>, i32 -> vector<8x1024xf32>
    %c17_177 = arith.constant 17 : index
    %c0_178 = arith.constant 0 : index
    %313 = vector.load %arg2[%c17_177, %c0_178] : memref<27x1024xf32, #tpu.memory_space<vmem>>, vector<1x1024xf32>
    %314 = vector.broadcast %313 : vector<1x1024xf32> to vector<8x1024xf32>
    %315 = arith.mulf %312, %314 : vector<8x1024xf32>
    %c136_179 = arith.constant 136 : index
    %c0_180 = arith.constant 0 : index
    %316 = vector.load %arg6[%c136_179, %c0_180] : memref<216x1024xf32, #tpu.memory_space<vmem>>, vector<8x1024xf32>
    tpu.vector_store %arg6[%c136_179, %c0_180], %315 {strides = array<i32>} : memref<216x1024xf32, #tpu.memory_space<vmem>>, vector<8x1024xf32>,
    %c969_i32_181 = arith.constant 969 : i32
    %317 = tpu.dynamic_rotate %227 by %c969_i32_181 dim 1 : vector<8x1024xf32>, i32 -> vector<8x1024xf32>
    %c18_182 = arith.constant 18 : index
    %c0_183 = arith.constant 0 : index
    %318 = vector.load %arg2[%c18_182, %c0_183] : memref<27x1024xf32, #tpu.memory_space<vmem>>, vector<1x1024xf32>
    %319 = vector.broadcast %318 : vector<1x1024xf32> to vector<8x1024xf32>
    %320 = arith.mulf %317, %319 : vector<8x1024xf32>
    %c144_184 = arith.constant 144 : index
    %c0_185 = arith.constant 0 : index
    %321 = vector.load %arg6[%c144_184, %c0_185] : memref<216x1024xf32, #tpu.memory_space<vmem>>, vector<8x1024xf32>
    tpu.vector_store %arg6[%c144_184, %c0_185], %320 {strides = array<i32>} : memref<216x1024xf32, #tpu.memory_space<vmem>>, vector<8x1024xf32>,
    %c968_i32_186 = arith.constant 968 : i32
    %322 = tpu.dynamic_rotate %227 by %c968_i32_186 dim 1 : vector<8x1024xf32>, i32 -> vector<8x1024xf32>
    %c19_187 = arith.constant 19 : index
    %c0_188 = arith.constant 0 : index
    %323 = vector.load %arg2[%c19_187, %c0_188] : memref<27x1024xf32, #tpu.memory_space<vmem>>, vector<1x1024xf32>
    %324 = vector.broadcast %323 : vector<1x1024xf32> to vector<8x1024xf32>
    %325 = arith.mulf %322, %324 : vector<8x1024xf32>
    %c152_189 = arith.constant 152 : index
    %c0_190 = arith.constant 0 : index
    %326 = vector.load %arg6[%c152_189, %c0_190] : memref<216x1024xf32, #tpu.memory_space<vmem>>, vector<8x1024xf32>
    tpu.vector_store %arg6[%c152_189, %c0_190], %325 {strides = array<i32>} : memref<216x1024xf32, #tpu.memory_space<vmem>>, vector<8x1024xf32>,
    %c967_i32_191 = arith.constant 967 : i32
    %327 = tpu.dynamic_rotate %227 by %c967_i32_191 dim 1 : vector<8x1024xf32>, i32 -> vector<8x1024xf32>
    %c20_192 = arith.constant 20 : index
    %c0_193 = arith.constant 0 : index
    %328 = vector.load %arg2[%c20_192, %c0_193] : memref<27x1024xf32, #tpu.memory_space<vmem>>, vector<1x1024xf32>
    %329 = vector.broadcast %328 : vector<1x1024xf32> to vector<8x1024xf32>
    %330 = arith.mulf %327, %329 : vector<8x1024xf32>
    %c160_194 = arith.constant 160 : index
    %c0_195 = arith.constant 0 : index
    %331 = vector.load %arg6[%c160_194, %c0_195] : memref<216x1024xf32, #tpu.memory_space<vmem>>, vector<8x1024xf32>
    tpu.vector_store %arg6[%c160_194, %c0_195], %330 {strides = array<i32>} : memref<216x1024xf32, #tpu.memory_space<vmem>>, vector<8x1024xf32>,
    %c961_i32_196 = arith.constant 961 : i32
    %332 = tpu.dynamic_rotate %227 by %c961_i32_196 dim 1 : vector<8x1024xf32>, i32 -> vector<8x1024xf32>
    %c21_197 = arith.constant 21 : index
    %c0_198 = arith.constant 0 : index
    %333 = vector.load %arg2[%c21_197, %c0_198] : memref<27x1024xf32, #tpu.memory_space<vmem>>, vector<1x1024xf32>
    %334 = vector.broadcast %333 : vector<1x1024xf32> to vector<8x1024xf32>
    %335 = arith.mulf %332, %334 : vector<8x1024xf32>
    %c168_199 = arith.constant 168 : index
    %c0_200 = arith.constant 0 : index
    %336 = vector.load %arg6[%c168_199, %c0_200] : memref<216x1024xf32, #tpu.memory_space<vmem>>, vector<8x1024xf32>
    tpu.vector_store %arg6[%c168_199, %c0_200], %335 {strides = array<i32>} : memref<216x1024xf32, #tpu.memory_space<vmem>>, vector<8x1024xf32>,
    %c960_i32_201 = arith.constant 960 : i32
    %337 = tpu.dynamic_rotate %227 by %c960_i32_201 dim 1 : vector<8x1024xf32>, i32 -> vector<8x1024xf32>
    %c22_202 = arith.constant 22 : index
    %c0_203 = arith.constant 0 : index
    %338 = vector.load %arg2[%c22_202, %c0_203] : memref<27x1024xf32, #tpu.memory_space<vmem>>, vector<1x1024xf32>
    %339 = vector.broadcast %338 : vector<1x1024xf32> to vector<8x1024xf32>
    %340 = arith.mulf %337, %339 : vector<8x1024xf32>
    %c176_204 = arith.constant 176 : index
    %c0_205 = arith.constant 0 : index
    %341 = vector.load %arg6[%c176_204, %c0_205] : memref<216x1024xf32, #tpu.memory_space<vmem>>, vector<8x1024xf32>
    tpu.vector_store %arg6[%c176_204, %c0_205], %340 {strides = array<i32>} : memref<216x1024xf32, #tpu.memory_space<vmem>>, vector<8x1024xf32>,
    %c959_i32_206 = arith.constant 959 : i32
    %342 = tpu.dynamic_rotate %227 by %c959_i32_206 dim 1 : vector<8x1024xf32>, i32 -> vector<8x1024xf32>
    %c23_207 = arith.constant 23 : index
    %c0_208 = arith.constant 0 : index
    %343 = vector.load %arg2[%c23_207, %c0_208] : memref<27x1024xf32, #tpu.memory_space<vmem>>, vector<1x1024xf32>
    %344 = vector.broadcast %343 : vector<1x1024xf32> to vector<8x1024xf32>
    %345 = arith.mulf %342, %344 : vector<8x1024xf32>
    %c184_209 = arith.constant 184 : index
    %c0_210 = arith.constant 0 : index
    %346 = vector.load %arg6[%c184_209, %c0_210] : memref<216x1024xf32, #tpu.memory_space<vmem>>, vector<8x1024xf32>
    tpu.vector_store %arg6[%c184_209, %c0_210], %345 {strides = array<i32>} : memref<216x1024xf32, #tpu.memory_space<vmem>>, vector<8x1024xf32>,
    %c953_i32_211 = arith.constant 953 : i32
    %347 = tpu.dynamic_rotate %227 by %c953_i32_211 dim 1 : vector<8x1024xf32>, i32 -> vector<8x1024xf32>
    %c24_212 = arith.constant 24 : index
    %c0_213 = arith.constant 0 : index
    %348 = vector.load %arg2[%c24_212, %c0_213] : memref<27x1024xf32, #tpu.memory_space<vmem>>, vector<1x1024xf32>
    %349 = vector.broadcast %348 : vector<1x1024xf32> to vector<8x1024xf32>
    %350 = arith.mulf %347, %349 : vector<8x1024xf32>
    %c192_214 = arith.constant 192 : index
    %c0_215 = arith.constant 0 : index
    %351 = vector.load %arg6[%c192_214, %c0_215] : memref<216x1024xf32, #tpu.memory_space<vmem>>, vector<8x1024xf32>
    tpu.vector_store %arg6[%c192_214, %c0_215], %350 {strides = array<i32>} : memref<216x1024xf32, #tpu.memory_space<vmem>>, vector<8x1024xf32>,
    %c952_i32_216 = arith.constant 952 : i32
    %352 = tpu.dynamic_rotate %227 by %c952_i32_216 dim 1 : vector<8x1024xf32>, i32 -> vector<8x1024xf32>
    %c25_217 = arith.constant 25 : index
    %c0_218 = arith.constant 0 : index
    %353 = vector.load %arg2[%c25_217, %c0_218] : memref<27x1024xf32, #tpu.memory_space<vmem>>, vector<1x1024xf32>
    %354 = vector.broadcast %353 : vector<1x1024xf32> to vector<8x1024xf32>
    %355 = arith.mulf %352, %354 : vector<8x1024xf32>
    %c200_219 = arith.constant 200 : index
    %c0_220 = arith.constant 0 : index
    %356 = vector.load %arg6[%c200_219, %c0_220] : memref<216x1024xf32, #tpu.memory_space<vmem>>, vector<8x1024xf32>
    tpu.vector_store %arg6[%c200_219, %c0_220], %355 {strides = array<i32>} : memref<216x1024xf32, #tpu.memory_space<vmem>>, vector<8x1024xf32>,
    %c951_i32_221 = arith.constant 951 : i32
    %357 = tpu.dynamic_rotate %227 by %c951_i32_221 dim 1 : vector<8x1024xf32>, i32 -> vector<8x1024xf32>
    %c26_222 = arith.constant 26 : index
    %c0_223 = arith.constant 0 : index
    %358 = vector.load %arg2[%c26_222, %c0_223] : memref<27x1024xf32, #tpu.memory_space<vmem>>, vector<1x1024xf32>
    %359 = vector.broadcast %358 : vector<1x1024xf32> to vector<8x1024xf32>
    %360 = arith.mulf %357, %359 : vector<8x1024xf32>
    %c208_224 = arith.constant 208 : index
    %c0_225 = arith.constant 0 : index
    %361 = vector.load %arg6[%c208_224, %c0_225] : memref<216x1024xf32, #tpu.memory_space<vmem>>, vector<8x1024xf32>
    tpu.vector_store %arg6[%c208_224, %c0_225], %360 {strides = array<i32>} : memref<216x1024xf32, #tpu.memory_space<vmem>>, vector<8x1024xf32>,
    %362 = vector.extract_strided_slice %1 {offsets = [0, 3], sizes = [8, 1], strides = [1, 1]} : vector<8x8xf32> to vector<8x1xf32>
    %363 = vector.extract_strided_slice %1 {offsets = [0, 4], sizes = [8, 1], strides = [1, 1]} : vector<8x8xf32> to vector<8x1xf32>
    %364 = vector.extract_strided_slice %1 {offsets = [0, 5], sizes = [8, 1], strides = [1, 1]} : vector<8x8xf32> to vector<8x1xf32>
    %c1_226 = arith.constant 1 : index
    %c0_227 = arith.constant 0 : index
    %c0_228 = arith.constant 0 : index
    %365 = vector.load %arg3[%c1_226, %c0_227, %c0_228] : memref<2x8x216xf32, #tpu.memory_space<vmem>>, vector<1x8x216xf32>
    %366 = vector.shape_cast %365 : vector<1x8x216xf32> to vector<8x216xf32>
    %c0_229 = arith.constant 0 : index
    %c0_230 = arith.constant 0 : index
    %367 = vector.load %arg6[%c0_229, %c0_230] : memref<216x1024xf32, #tpu.memory_space<vmem>>, vector<216x1024xf32>
    %cst_231 = arith.constant dense<0.000000e+00> : vector<8x1024xf32>
    %368 = tpu.matmul %366, %367, %cst_231 {dimension_numbers = #tpu.dot_dimension_numbers<[1], [0], [0], [1], [0, 0, 1, 1], [], []>} : vector<8x216xf32>, vector<216x1024xf32>, vector<8x1024xf32> -> vector<8x1024xf32>
    %369 = vector.broadcast %362 : vector<8x1xf32> to vector<8x1024xf32>
    %370 = arith.addf %368, %369 : vector<8x1024xf32>
    %371 = math.absf %370 : vector<8x1024xf32>
    %cst_232 = arith.constant 0.707106769 : f32
    %372 = vector.broadcast %cst_232 : f32 to vector<8x1024xf32>
    %373 = arith.mulf %371, %372 : vector<8x1024xf32>
    %cst_233 = arith.constant 0.327591091 : f32
    %374 = vector.broadcast %cst_233 : f32 to vector<8x1024xf32>
    %375 = arith.mulf %374, %373 : vector<8x1024xf32>
    %cst_234 = arith.constant 1.000000e+00 : f32
    %376 = vector.broadcast %cst_234 : f32 to vector<8x1024xf32>
    %377 = arith.addf %376, %375 : vector<8x1024xf32>
    %cst_235 = arith.constant 1.000000e+00 : f32
    %378 = vector.broadcast %cst_235 : f32 to vector<8x1024xf32>
    %379 = arith.divf %378, %377 : vector<8x1024xf32>
    %cst_236 = arith.constant 1.06140542 : f32
    %380 = vector.broadcast %cst_236 : f32 to vector<8x1024xf32>
    %381 = arith.mulf %380, %379 : vector<8x1024xf32>
    %cst_237 = arith.constant -1.45315206 : f32
    %382 = vector.broadcast %cst_237 : f32 to vector<8x1024xf32>
    %383 = arith.addf %381, %382 : vector<8x1024xf32>
    %384 = arith.mulf %383, %379 : vector<8x1024xf32>
    %cst_238 = arith.constant 1.42141378 : f32
    %385 = vector.broadcast %cst_238 : f32 to vector<8x1024xf32>
    %386 = arith.addf %384, %385 : vector<8x1024xf32>
    %387 = arith.mulf %386, %379 : vector<8x1024xf32>
    %cst_239 = arith.constant -0.284496725 : f32
    %388 = vector.broadcast %cst_239 : f32 to vector<8x1024xf32>
    %389 = arith.addf %387, %388 : vector<8x1024xf32>
    %390 = arith.mulf %389, %379 : vector<8x1024xf32>
    %cst_240 = arith.constant 0.254829586 : f32
    %391 = vector.broadcast %cst_240 : f32 to vector<8x1024xf32>
    %392 = arith.addf %390, %391 : vector<8x1024xf32>
    %393 = arith.mulf %392, %379 : vector<8x1024xf32>
    %cst_241 = arith.constant 0.000000e+00 : f32
    %394 = vector.broadcast %cst_241 : f32 to vector<8x1024xf32>
    %395 = arith.subf %394, %373 : vector<8x1024xf32>
    %396 = arith.mulf %395, %373 : vector<8x1024xf32>
    %397 = math.exp %396 : vector<8x1024xf32>
    %398 = arith.mulf %393, %397 : vector<8x1024xf32>
    %cst_242 = arith.constant 1.000000e+00 : f32
    %399 = vector.broadcast %cst_242 : f32 to vector<8x1024xf32>
    %400 = arith.subf %399, %398 : vector<8x1024xf32>
    %cst_243 = arith.constant 0.000000e+00 : f32
    %401 = vector.broadcast %cst_243 : f32 to vector<8x1024xf32>
    %402 = arith.cmpf oge, %370, %401 : vector<8x1024xf32>
    %cst_244 = arith.constant 0.000000e+00 : f32
    %403 = vector.broadcast %cst_244 : f32 to vector<8x1024xf32>
    %404 = arith.subf %403, %400 : vector<8x1024xf32>
    %405 = arith.select %402, %400, %404 : vector<8x1024xi1>, vector<8x1024xf32>
    %cst_245 = arith.constant 5.000000e-01 : f32
    %406 = vector.broadcast %cst_245 : f32 to vector<8x1024xf32>
    %407 = arith.mulf %406, %370 : vector<8x1024xf32>
    %cst_246 = arith.constant 1.000000e+00 : f32
    %408 = vector.broadcast %cst_246 : f32 to vector<8x1024xf32>
    %409 = arith.addf %408, %405 : vector<8x1024xf32>
    %410 = arith.mulf %407, %409 : vector<8x1024xf32>
    %411 = vector.extract_strided_slice %410 {offsets = [0, 0], sizes = [8, 512], strides = [1, 1]} : vector<8x1024xf32> to vector<8x512xf32>
    %cst_247 = arith.constant dense<0.000000e+00> : vector<8xf32>
    %412 = vector.multi_reduction <add>, %411, %cst_247 [1] : vector<8x512xf32> to vector<8xf32>
    %413 = vector.shape_cast %412 : vector<8xf32> to vector<8x1xf32>
    %cst_248 = arith.constant 0.001953125 : f32
    %414 = vector.broadcast %cst_248 : f32 to vector<8x1xf32>
    %415 = arith.mulf %413, %414 : vector<8x1xf32>
    %416 = arith.mulf %411, %411 : vector<8x512xf32>
    %cst_249 = arith.constant dense<0.000000e+00> : vector<8xf32>
    %417 = vector.multi_reduction <add>, %416, %cst_249 [1] : vector<8x512xf32> to vector<8xf32>
    %418 = vector.shape_cast %417 : vector<8xf32> to vector<8x1xf32>
    %cst_250 = arith.constant 0.001953125 : f32
    %419 = vector.broadcast %cst_250 : f32 to vector<8x1xf32>
    %420 = arith.mulf %418, %419 : vector<8x1xf32>
    %421 = arith.mulf %415, %415 : vector<8x1xf32>
    %422 = arith.subf %420, %421 : vector<8x1xf32>
    %423 = vector.broadcast %415 : vector<8x1xf32> to vector<8x512xf32>
    %424 = arith.subf %411, %423 : vector<8x512xf32>
    %cst_251 = arith.constant 9.99999974E-6 : f32
    %425 = vector.broadcast %cst_251 : f32 to vector<8x1xf32>
    %426 = arith.addf %422, %425 : vector<8x1xf32>
    %427 = math.rsqrt %426 : vector<8x1xf32>
    %428 = vector.broadcast %427 : vector<8x1xf32> to vector<8x512xf32>
    %429 = arith.mulf %424, %428 : vector<8x512xf32>
    %430 = vector.extract_strided_slice %410 {offsets = [0, 512], sizes = [8, 512], strides = [1, 1]} : vector<8x1024xf32> to vector<8x512xf32>
    %cst_252 = arith.constant dense<0.000000e+00> : vector<8xf32>
    %431 = vector.multi_reduction <add>, %430, %cst_252 [1] : vector<8x512xf32> to vector<8xf32>
    %432 = vector.shape_cast %431 : vector<8xf32> to vector<8x1xf32>
    %cst_253 = arith.constant 0.001953125 : f32
    %433 = vector.broadcast %cst_253 : f32 to vector<8x1xf32>
    %434 = arith.mulf %432, %433 : vector<8x1xf32>
    %435 = arith.mulf %430, %430 : vector<8x512xf32>
    %cst_254 = arith.constant dense<0.000000e+00> : vector<8xf32>
    %436 = vector.multi_reduction <add>, %435, %cst_254 [1] : vector<8x512xf32> to vector<8xf32>
    %437 = vector.shape_cast %436 : vector<8xf32> to vector<8x1xf32>
    %cst_255 = arith.constant 0.001953125 : f32
    %438 = vector.broadcast %cst_255 : f32 to vector<8x1xf32>
    %439 = arith.mulf %437, %438 : vector<8x1xf32>
    %440 = arith.mulf %434, %434 : vector<8x1xf32>
    %441 = arith.subf %439, %440 : vector<8x1xf32>
    %442 = vector.broadcast %434 : vector<8x1xf32> to vector<8x512xf32>
    %443 = arith.subf %430, %442 : vector<8x512xf32>
    %cst_256 = arith.constant 9.99999974E-6 : f32
    %444 = vector.broadcast %cst_256 : f32 to vector<8x1xf32>
    %445 = arith.addf %441, %444 : vector<8x1xf32>
    %446 = math.rsqrt %445 : vector<8x1xf32>
    %447 = vector.broadcast %446 : vector<8x1xf32> to vector<8x512xf32>
    %448 = arith.mulf %443, %447 : vector<8x512xf32>
    %449 = tpu.concatenate %429, %448 in 1 : vector<8x512xf32>, vector<8x512xf32> -> vector<8x1024xf32>
    %450 = vector.broadcast %363 : vector<8x1xf32> to vector<8x1024xf32>
    %451 = arith.mulf %449, %450 : vector<8x1024xf32>
    %452 = vector.broadcast %364 : vector<8x1xf32> to vector<8x1024xf32>
    %453 = arith.addf %451, %452 : vector<8x1024xf32>
    %454 = arith.addf %453, %0 : vector<8x1024xf32>
    %c0_257 = arith.constant 0 : index
    %c0_258 = arith.constant 0 : index
    %455 = vector.load %arg5[%c0_257, %c0_258] : memref<8x1024xf32, #tpu.memory_space<vmem>>, vector<8x1024xf32>
    tpu.vector_store %arg5[%c0_257, %c0_258], %454 {strides = array<i32>} : memref<8x1024xf32, #tpu.memory_space<vmem>>, vector<8x1024xf32>,
    return
  }
  func.func @transform_0(%arg0: i32) -> (i32, i32) {
    %c0_i32 = arith.constant 0 : i32
    %c0_i32_0 = arith.constant 0 : i32
    %c0_i32_1 = arith.constant 0 : i32
    return %c0_i32, %c0_i32_0 : i32, i32
  }
  func.func @transform_1(%arg0: i32) -> (i32, i32) {
    %c0_i32 = arith.constant 0 : i32
    %c0_i32_0 = arith.constant 0 : i32
    %c0_i32_1 = arith.constant 0 : i32
    return %c0_i32, %c0_i32_0 : i32, i32
  }
  func.func @transform_2(%arg0: i32) -> (i32, i32, i32) {
    %c0_i32 = arith.constant 0 : i32
    %c0_i32_0 = arith.constant 0 : i32
    %c0_i32_1 = arith.constant 0 : i32
    %c0_i32_2 = arith.constant 0 : i32
    return %c0_i32, %c0_i32_0, %c0_i32_1 : i32, i32, i32
  }
  func.func @transform_3(%arg0: i32) -> (i32, i32) {
    %c0_i32 = arith.constant 0 : i32
    %c0_i32_0 = arith.constant 0 : i32
    %c0_i32_1 = arith.constant 0 : i32
    return %c0_i32, %c0_i32_0 : i32, i32
  }
  func.func @transform_4(%arg0: i32) -> (i32, i32) {
    %c0_i32 = arith.constant 0 : i32
    %c0_i32_0 = arith.constant 0 : i32
    %c0_i32_1 = arith.constant 0 : i32
    return %c0_i32, %c0_i32_0 : i32, i32
  }
}

</mosaic_0001>

<bundles_post_ra>
// kernel: tpu_custom_call.1
= control target key start
LH: loop header
LB: loop body
LE: loop exit
PB: predicated region body
PF: predicated region fallthrough
CT: control target
= control target key end

     0   :  { %9 = vsyncpa [#allocation4], 0  ;;  %s10171_s0 = inlined_call_operand.hbm [shape: f32[8,1024], index: 0, kind: input, shape index: {}]   ;;  %s10172_s1 = inlined_call_operand.hbm [shape: f32[27,1024], index: 1, kind: input, shape index: {}]   ;;  %s10173_s2 = inlined_call_operand.hbm [shape: f32[2,8,216], index: 2, kind: input, shape index: {}]   ;;  %s10174_s3 = inlined_call_operand.hbm [shape: f32[8,8], index: 3, kind: input, shape index: {}]   ;;  %s10175_s4 = inlined_call_operand.hbm [shape: f32[8,1024], index: 4, kind: output, shape index: {}]  }
   0x1   :  { %10 = vsyncpa [#allocation7], 0 }
   0x2   :  { %11 = vsyncpa [#allocation10], 0 }
   0x3   :  { %12 = vsyncpa [#allocation5], 0  ;;  %s6066_s15 = smov [#allocation6]  }
   0x4   :  { %s28_s16 = sshll.u32 %s6066_s15, 4  ;;  %s29_s16 = int_to_ptr.vmem [resolvable:$true] %s28_s16 }
   0x5   :  { %s5966_s17 = scalar_lea.vmem %s29_s16, 4096  ;;  %p5971_p1 = scmp.lt.s32.totalorder %s29_s16, %s29_s16 }
   0x6   :  { %p5967_p0 = scmp.ne.s32.totalorder %s29_s16, %s5966_s17  ;;  %p5972_p2 = scmp.lt.s32.totalorder %s5966_s17, %s5966_s17 }
   0x8   :  { %p5973_p3 = por %p5972_p2, %p5971_p1 }
   0xa   :  { %p5974_p4 = pnand %p5973_p3, %p5967_p0 }
   0xc   :  { %5977 = shalt.err (!%p5974_p4)
}
   0xd   :  { %s6067_s18 = smov 1024   ;;  %s6068_s19 = smov 64  }
   0xe   :  { %34 = dma.hbm_to_vmem [thread:$0]  %s10172_s1, 4096, %s29_s16, [#allocation7], %s6067_s18, %s6067_s18, %s6068_s19  }
   0xf   :  { %s6069_s22 = smov [#allocation3]   ;;  %s6070_s24 = smov [#allocation8]  }
  0x10   :  { %s19_s23 = sshll.u32 %s6069_s22, 4  ;;  %s40_s25 = sshll.u32 %s6070_s24, 4  ;;  %s20_s23 = int_to_ptr.vmem [resolvable:$true] %s19_s23  ;;  %s41_s25 = int_to_ptr.vmem [resolvable:$true] %s40_s25 }
  0x11   :  { %s5986_s26 = scalar_lea.vmem %s20_s23, 1024  ;;  %p5991_p6 = scmp.lt.s32.totalorder %s20_s23, %s20_s23 }
  0x12   :  { %p5987_p5 = scmp.ne.s32.totalorder %s20_s23, %s5986_s26  ;;  %p5992_p7 = scmp.lt.s32.totalorder %s5986_s26, %s5986_s26 }
  0x14   :  { %p5993_p8 = por %p5992_p7, %p5991_p6 }
  0x16   :  { %p5994_p9 = pnand %p5993_p8, %p5987_p5 }
  0x18   :  { %5997 = shalt.err (!%p5994_p9)
}
  0x19   :  { %22 = dma.hbm_to_vmem [thread:$0]  %s10171_s0, 1024, %s20_s23, [#allocation4]  }
  0x1a   :  { %s6006_s29 = scalar_lea.vmem %s41_s25, 512  ;;  %p6011_p11 = scmp.lt.s32.totalorder %s41_s25, %s41_s25 }
  0x1b   :  { %p6007_p10 = scmp.ne.s32.totalorder %s41_s25, %s6006_s29  ;;  %p6012_p12 = scmp.lt.s32.totalorder %s6006_s29, %s6006_s29 }
  0x1d   :  { %p6013_p13 = por %p6012_p12, %p6011_p11 }
  0x1f   :  { %p6014_p0 = pnand %p6013_p13, %p6007_p10 }
  0x21   :  { %6017 = shalt.err (!%p6014_p0)
}
  0x22   :  { %s6071_s1 = smov 256   ;;  %s6072_s30 = smov 16  }
  0x23   :  { %46 = dma.hbm_to_vmem [thread:$0]  %s10173_s2, 512, %s41_s25, [#allocation7], %s6071_s1, %s6071_s1, %s6072_s30  }
  0x24   :  { %s6073_s7 = smov [#allocation9]  }
  0x25   :  { %s53_s8 = sshll.u32 %s6073_s7, 4  ;;  %s54_s8 = int_to_ptr.vmem [resolvable:$true] %s53_s8 }
  0x26   :  { %s6026_s9 = scalar_lea.vmem %s54_s8, 128  ;;  %p6031_p2 = scmp.lt.s32.totalorder %s54_s8, %s54_s8 }
  0x27   :  { %p6027_p1 = scmp.ne.s32.totalorder %s54_s8, %s6026_s9  ;;  %p6032_p3 = scmp.lt.s32.totalorder %s6026_s9, %s6026_s9 }
  0x29   :  { %p6033_p4 = por %p6032_p3, %p6031_p2 }
  0x2b   :  { %p6034_p5 = pnand %p6033_p4, %p6027_p1 }
  0x2d   :  { %6037 = shalt.err (!%p6034_p5)
}
  0x2e   :  { %56 = dma.hbm_to_vmem [thread:$0]  %s10174_s3, 128, %s54_s8, [#allocation10]  }
  0x2f   :  { %6058 = dma.done.wait [#allocation4], 1024  }
  0x30   :  { %6059 = vsyncadd [#allocation4], 4294966272 }
  0x31   :  { %6060 = dma.done.wait [#allocation7], 4608  }
  0x32   :  { %6061 = vsyncadd [#allocation7], 4294962688 }
  0x33   :  { %6062 = dma.done.wait [#allocation10], 128  }
  0x34   :  { %6063 = vsyncadd [#allocation10], 4294967168  ;;  %v6135_v0 = vld [vmem:[#allocation3 + $0x8] sm:$0xff]  ;;  %v6137_v1 = vld [vmem:[#allocation3] sm:$0xff]  ;;  %s6074_s2 = smov 121   ;;  %s6075_s3 = smov 127   ;;  %v94_v6 = vlaneseq }
  0x35   :  { %1346 = vrot.lane.b32.xlu0 %v6135_v0, %s6074_s2  ;;  %1344 = vrot.lane.b32.xlu1 %v6137_v1, %s6074_s2  ;;  %v6143_v2 = vld [vmem:[#allocation3 + $0x10] sm:$0xff]  ;;  %v6153_v3 = vld [vmem:[#allocation3 + $0x18] sm:$0xff]  ;;  %v6155_v4 = vld [vmem:[#allocation3 + $0x20] sm:$0xff]  ;;  %s6076_s11 = smov 1   ;;  %s6077_s12 = smov 7   ;;  %vm2374_vm7 = vcmask 719872  }
  0x36   :  { %v6169_v5 = vld [vmem:[#allocation3 + $0x38] sm:$0xff]  ;;  %s6078_s13 = smov 8   ;;  %s6079_s14 = smov 9   ;;  %v6259_v7 = vshrl.u32 %v94_v6, 7  ;;  %v6261_v10 = vand.u32 127, %v94_v6 }
  0x37   :  { %s6080_s15 = smov 55   ;;  %s6081_s16 = smov 56   ;;  %v1370_v8 = vld [vmem:[#allocation6 + $0x47] ss:$8 sm:$0xf] }
  0x38   :  { %s6082_s17 = smov 57   ;;  %s6083_s18 = smov 63   ;;  %10418 = vst [vmem:[#allocation16_spill] sm:$0xff] %v6259_v7  ;;  %v1371_v9 = vld [vmem:[#allocation6 + $0x47] ss:$8 sm:$0xf0] }
  0x39   :  { %1348 = vrot.lane.b32.xlu0 %v6143_v2, %s6074_s2  ;;  %1260 = vrot.lane.b32.xlu1 %v6135_v0, %s6075_s3  ;;  %s6084_s20 = smov 65   ;;  %s6085_s21 = smov 71   ;;  %v6268_v11 = vsub.s32 0, %v6259_v7  ;;  %v6271_v12 = vsub.s32 1, %v6259_v7  ;;  %v6273_v13 = vor.u32 %v1371_v9, %v1370_v8  ;;  %vm1360_vm0 = vcmp.lt.s32.totalorder %v6261_v10, 121 }
  0x3a   :  { %v1284_v14 = vld [vmem:[#allocation6 + $0x46] ss:$8 sm:$0xf]  ;;  %v1198_v18 = vld [vmem:[#allocation6 + $0x45] ss:$8 sm:$0xf] }
  0x3b   :  { %10419 = vst [vmem:[#allocation17_spill] sm:$0xff] %v6268_v11  ;;  %10420 = vst [vmem:[#allocation18_spill] sm:$0xff] %v6271_v12  ;;  %v1285_v15 = vld [vmem:[#allocation6 + $0x46] ss:$8 sm:$0xf0]  ;;  %v1381_v20 = vrot.slane %v6273_v13, %v6271_v12  ;;  %v1377_v22 = vrot.slane %v6273_v13, %v6268_v11  ;;  %v6294_v27 = vsub.s32 2, %v6259_v7 }
  0x3c   :  { %10421 = vst [vmem:[#allocation19_spill] sm:$0xff] %v6273_v13  ;;  %v1199_v19 = vld [vmem:[#allocation6 + $0x45] ss:$8 sm:$0xf0]  ;;  %v6284_v21 = vor.u32 %v1285_v15, %v1284_v14  ;;  %v6297_v28 = vsub.s32 3, %v6259_v7  ;;  %s6086_s22 = smov 72  }
  0x3d   :  { %1262 = vrot.lane.b32.xlu0 %v6143_v2, %s6075_s3  ;;  %1258 = vrot.lane.b32.xlu1 %v6137_v1, %s6075_s3  ;;  %v6288_v23 = vor.u32 %v1199_v19, %v1198_v18  ;;  %10425 = vst [vmem:[#allocation23_spill] sm:$0xff] %v6294_v27  ;;  %vm1274_vm1 = vcmp.lt.s32.totalorder %v6261_v10, 127  ;;  %v1137_v35 = vld [vmem:[#allocation6 + $0x44] ss:$8 sm:$0xf]  ;;  %v1385_v43 = vrot.slane %v6273_v13, %v6294_v27  ;;  %vm1127_vm2 = vcmp.lt.s32.totalorder %v6261_v10, 1 }
  0x3e   :  { %10423 = vst [vmem:[#allocation21_spill] sm:$0xff] %v6284_v21  ;;  %10426 = vst [vmem:[#allocation24_spill] sm:$0xff] %v6297_v28  ;;  %v1295_v31 = vrot.slane %v6284_v21, %v6271_v12  ;;  %v1291_v32 = vrot.slane %v6284_v21, %v6268_v11  ;;  %v1138_v36 = vld [vmem:[#allocation6 + $0x44] ss:$8 sm:$0xf0]  ;;  %v1389_v42 = vrot.slane %v6273_v13, %v6297_v28  ;;  %s6087_s23 = smov 73  }
  0x3f   :  { %10424 = vst [vmem:[#allocation22_spill] sm:$0xff] %v6288_v23  ;;  %v1209_v34 = vrot.slane %v6288_v23, %v6271_v12  ;;  %v1205_v39 = vrot.slane %v6288_v23, %v6268_v11  ;;  %v6329_v46 = vor.u32 %v1138_v36, %v1137_v35  ;;  %v1303_v60 = vrot.slane %v6284_v21, %v6297_v28  ;;  %v1051_v62 = vld [vmem:[#allocation6 + $0x43] ss:$8 sm:$0xf]  ;;  %s6088_s24 = smov 119   ;;  %s6089_s25 = smov 120  }
  0x40   :  { %v1299_v61 = vrot.slane %v6284_v21, %v6294_v27  ;;  %v1052_v63 = vld [vmem:[#allocation6 + $0x43] ss:$8 sm:$0xf0]  ;;  %v1217_v6 = vrot.slane %v6288_v23, %v6297_v28  ;;  %v1213_v14 = vrot.slane %v6288_v23, %v6294_v27  ;;  %vm1041_vm3 = vcmp.lt.s32.totalorder %v6261_v10, 7 }
  0x41   :  { %1350 = vrot.lane.b32.xlu0 %v6153_v3, %s6074_s2  ;;  %1352 = vrot.lane.b32.xlu1 %v6155_v4, %s6074_s2  ;;  %10428 = vst [vmem:[#allocation26_spill] sm:$0xff] %v6329_v46  ;;  %v1243_v47 = vmul.f32 %v1209_v34, %v6135_v0  ;;  %v1242_v50 = vmul.f32 %v1205_v39, %v6137_v1  ;;  %vm955_vm4 = vcmp.lt.s32.totalorder %v6261_v10, 8  ;;  %vm10369_vm5 = vcmp.lt.s32.totalorder %v6261_v10, 9 }
  0x42   :  { %v1148_v55 = vrot.slane %v6329_v46, %v6271_v12  ;;  %v6371_v18 = vor.u32 %v1052_v63, %v1051_v62  ;;  %vm783_vm6 = vcmp.lt.s32.totalorder %v6261_v10, 55  ;;  %vm697_vm8 = vcmp.lt.s32.totalorder %v6261_v10, 56 }
  0x43   :  { %vm611_vm9 = vcmp.lt.s32.totalorder %v6261_v10, 57  ;;  %vm10262_vm10 = vcmp.lt.s32.totalorder %v6261_v10, 63  ;;  %vm439_vm11 = vcmp.lt.s32.totalorder %v6261_v10, 64  ;;  %vm10263_vm12 = vcmp.lt.s32.totalorder %v6261_v10, 65 }
  0x44   :  { %10431 = vst [vmem:[#allocation29_spill] sm:$0xff] %v6371_v18  ;;  %v1058_v35 = vrot.slane %v6371_v18, %v6268_v11  ;;  %vm10241_vm13 = vcmp.lt.s32.totalorder %v6261_v10, 71  ;;  %vm10242_vm14 = vcmp.lt.s32.totalorder %v6261_v10, 72  ;;  %vm96_vm15 = vcmp.lt.s32.totalorder %v6261_v10, 73 }
  0x45   :  { %1111 = vrot.lane.b32.xlu0 %v6137_v1, %s6076_s11  ;;  %1113 = vrot.lane.b32.xlu1 %v6135_v0, %s6076_s11 }
  0x49   :  { %1264 = vrot.lane.b32.xlu0 %v6153_v3, %s6075_s3  ;;  %1266 = vrot.lane.b32.xlu1 %v6155_v4, %s6075_s3 }
  0x4d   :  { %1125 = vrot.lane.b32.xlu0 %v6169_v5, %s6076_s11  ;;  %1025 = vrot.lane.b32.xlu1 %v6137_v1, %s6077_s12 }
  0x51   :  { %1027 = vrot.lane.b32.xlu0 %v6135_v0, %s6077_s12  ;;  %1039 = vrot.lane.b32.xlu1 %v6169_v5, %s6077_s12 }
  0x55   :  { %939 = vrot.lane.b32.xlu0 %v6137_v1, %s6078_s13  ;;  %941 = vrot.lane.b32.xlu1 %v6135_v0, %s6078_s13 }
  0x59   :  { %1115 = vrot.lane.b32.xlu0 %v6143_v2, %s6076_s11  ;;  %1117 = vrot.lane.b32.xlu1 %v6153_v3, %s6076_s11 }
  0x5d   :  { %953 = vrot.lane.b32.xlu0 %v6169_v5, %s6078_s13  ;;  %853 = vrot.lane.b32.xlu1 %v6137_v1, %s6079_s14 }
  0x61   :  { %855 = vrot.lane.b32.xlu0 %v6135_v0, %s6079_s14  ;;  %1029 = vrot.lane.b32.xlu1 %v6143_v2, %s6077_s12 }
  0x65   :  { %1031 = vrot.lane.b32.xlu0 %v6153_v3, %s6077_s12  ;;  %867 = vrot.lane.b32.xlu1 %v6169_v5, %s6079_s14 }
  0x69   :  { %767 = vrot.lane.b32.xlu0 %v6137_v1, %s6080_s15  ;;  %769 = vrot.lane.b32.xlu1 %v6135_v0, %s6080_s15 }
  0x6d   :  { %943 = vrot.lane.b32.xlu0 %v6143_v2, %s6078_s13  ;;  %945 = vrot.lane.b32.xlu1 %v6153_v3, %s6078_s13 }
  0x71   :  { %781 = vrot.lane.b32.xlu0 %v6169_v5, %s6080_s15  ;;  %681 = vrot.lane.b32.xlu1 %v6137_v1, %s6081_s16 }
  0x75   :  { %683 = vrot.lane.b32.xlu0 %v6135_v0, %s6081_s16  ;;  %857 = vrot.lane.b32.xlu1 %v6143_v2, %s6079_s14 }
  0x79   :  { %859 = vrot.lane.b32.xlu0 %v6153_v3, %s6079_s14  ;;  %695 = vrot.lane.b32.xlu1 %v6169_v5, %s6081_s16 }
  0x7d   :  { %595 = vrot.lane.b32.xlu0 %v6137_v1, %s6082_s17  ;;  %597 = vrot.lane.b32.xlu1 %v6135_v0, %s6082_s17 }
  0x81   :  { %771 = vrot.lane.b32.xlu0 %v6143_v2, %s6080_s15  ;;  %773 = vrot.lane.b32.xlu1 %v6153_v3, %s6080_s15 }
  0x85   :  { %609 = vrot.lane.b32.xlu0 %v6169_v5, %s6082_s17  ;;  %509 = vrot.lane.b32.xlu1 %v6137_v1, %s6083_s18 }
  0x89   :  { %511 = vrot.lane.b32.xlu0 %v6135_v0, %s6083_s18  ;;  %685 = vrot.lane.b32.xlu1 %v6143_v2, %s6081_s16 }
  0x8d   :  { %687 = vrot.lane.b32.xlu0 %v6153_v3, %s6081_s16  ;;  %523 = vrot.lane.b32.xlu1 %v6169_v5, %s6083_s18 }
  0x91   :  { %423 = vrot.lane.b32.xlu0 %v6137_v1, %s6068_s19  ;;  %425 = vrot.lane.b32.xlu1 %v6135_v0, %s6068_s19 }
  0x95   :  { %599 = vrot.lane.b32.xlu0 %v6143_v2, %s6082_s17  ;;  %601 = vrot.lane.b32.xlu1 %v6153_v3, %s6082_s17 }
  0x99   :  { %437 = vrot.lane.b32.xlu0 %v6169_v5, %s6068_s19  ;;  %337 = vrot.lane.b32.xlu1 %v6137_v1, %s6084_s20 }
  0x9d   :  { %339 = vrot.lane.b32.xlu0 %v6135_v0, %s6084_s20  ;;  %513 = vrot.lane.b32.xlu1 %v6143_v2, %s6083_s18 }
  0xa1   :  { %515 = vrot.lane.b32.xlu0 %v6153_v3, %s6083_s18  ;;  %351 = vrot.lane.b32.xlu1 %v6169_v5, %s6084_s20 }
  0xa5   :  { %251 = vrot.lane.b32.xlu0 %v6137_v1, %s6085_s21  ;;  %253 = vrot.lane.b32.xlu1 %v6135_v0, %s6085_s21 }
  0xa7   :  { %v1347_v16 = vpop.permute.xlu0 %1346  ;;  %v6275_v17 = vpop.permute.xlu1 %1344 }
  0xa8   :  { %10422 = vst [vmem:[#allocation20_spill] sm:$0xff] %v6275_v17  ;;  %v1367_v26 = vsel %vm1360_vm0, %v6275_v17, %v1347_v16 }
  0xa9   :  { %427 = vrot.lane.b32.xlu0 %v6143_v2, %s6068_s19  ;;  %429 = vrot.lane.b32.xlu1 %v6153_v3, %s6068_s19  ;;  %v1414_v33 = vmul.f32 %v1377_v22, %v1367_v26  ;;  %v1144_v22 = vrot.slane %v6329_v46, %v6268_v11  ;;  %v1245_v26 = vmul.f32 %v1217_v6, %v6153_v3 }
  0xab   :  { %v1349_v24 = vpop.permute.xlu0 %1348  ;;  %v1261_v25 = vpop.permute.xlu1 %1260 }
  0xac   :  { %v1366_v29 = vsel %vm1360_vm0, %v1347_v16, %v1349_v24 }
  0xad   :  { %265 = vrot.lane.b32.xlu0 %v6169_v5, %s6085_s21  ;;  %165 = vrot.lane.b32.xlu1 %v6137_v1, %s6086_s22  ;;  %v1415_v30 = vmul.f32 %v1381_v20, %v1366_v29 }
  0xaf   :  { %2378 = vmatprep.subr.mxu0 %v1415_v30  ;;  %v1263_v37 = vpop.permute.xlu0 %1262  ;;  %v6312_v38 = vpop.permute.xlu1 %1258 }
  0xb0   :  { %10427 = vst [vmem:[#allocation25_spill] sm:$0xff] %v6312_v38  ;;  %v1280_v40 = vsel %vm1274_vm1, %v1261_v25, %v1263_v37  ;;  %v1281_v41 = vsel %vm1274_vm1, %v6312_v38, %v1261_v25  ;;  %2379 = vmatpush1.msra.mxu0 %v1414_v33  ;;  %v966_v25 = vld [vmem:[#allocation6 + $0x42] ss:$8 sm:$0xf0]  ;;  %v1062_v33 = vrot.slane %v6371_v18, %v6271_v12 }
  0xb1   :  { %167 = vrot.lane.b32.xlu0 %v6135_v0, %s6086_s22  ;;  %341 = vrot.lane.b32.xlu1 %v6143_v2, %s6084_s20  ;;  %v1329_v44 = vmul.f32 %v1295_v31, %v1280_v40  ;;  %v1328_v45 = vmul.f32 %v1291_v32, %v1281_v41  ;;  %v1244_v31 = vmul.f32 %v1213_v14, %v6143_v2 }
  0xb3   :  { %v1351_v48 = vpop.permute.xlu0 %1350  ;;  %2380 = vmatprep.subr.mxu0 %v1329_v44  ;;  %v6332_v49 = vpop.permute.xlu1 %1352 }
  0xb4   :  { %10429 = vst [vmem:[#allocation27_spill] sm:$0xff] %v6332_v49  ;;  %2381 = vmatpush1.msra.mxu0 %v1328_v45  ;;  %v1364_v51 = vsel %vm1360_vm0, %v1351_v48, %v6332_v49  ;;  %v1365_v52 = vsel %vm1360_vm0, %v1349_v24, %v1351_v48  ;;  %v965_v24 = vld [vmem:[#allocation6 + $0x42] ss:$8 sm:$0xf] }
  0xb5   :  { %343 = vrot.lane.b32.xlu0 %v6153_v3, %s6084_s20  ;;  %179 = vrot.lane.b32.xlu1 %v6169_v5, %s6086_s22  ;;  %v1417_v53 = vmul.f32 %v1389_v42, %v1364_v51  ;;  %v1416_v54 = vmul.f32 %v1385_v43, %v1365_v52  ;;  %v6395_v36 = vor.u32 %v966_v25, %v965_v24  ;;  %v1726_v49 = vld [vmem:[#allocation6 + $0x84] ss:$8 sm:$0xf0] }
  0xb6   :  { %2382 = vmatprep.subr.mxu0 %v1243_v47  ;;  %v1156_v51 = vrot.slane %v6329_v46, %v6297_v28  ;;  %v1152_v52 = vrot.slane %v6329_v46, %v6294_v27  ;;  %v1070_v25 = vrot.slane %v6371_v18, %v6297_v28 }
  0xb7   :  { %v1112_v56 = vpop.permute.xlu0 %1111  ;;  %2449 = vmatprep.subr.mxu1 %v1417_v53  ;;  %v6347_v57 = vpop.permute.xlu1 %1113  ;;  %2383 = vmatpush1.msra.mxu0 %v1242_v50  ;;  %10433 = vst [vmem:[#allocation31_spill] sm:$0xff] %v6395_v36  ;;  %v976_v44 = vrot.slane %v6395_v36, %v6271_v12  ;;  %v879_v53 = vld [vmem:[#allocation6 + $0x41] ss:$8 sm:$0xf] }
  0xb8   :  { %v1134_v58 = vsel %vm1127_vm2, %v1112_v56, %v6347_v57  ;;  %2450 = vmatpush1.msra.mxu1 %v1416_v54  ;;  %v880_v54 = vld [vmem:[#allocation6 + $0x41] ss:$8 sm:$0xf0] }
  0xb9   :  { %78 = vrot.lane.b32.xlu0 %v6137_v1, %s6087_s23  ;;  %80 = vrot.lane.b32.xlu1 %v6135_v0, %s6087_s23  ;;  %v1182_v59 = vmul.f32 %v1148_v55, %v1134_v58  ;;  %v6438_v63 = vor.u32 %v880_v54, %v879_v53  ;;  %v980_v53 = vrot.slane %v6395_v36, %v6294_v27  ;;  %v6504_v54 = vld [vmem:[#allocation8 + $0x8] sm:$0xff] }
  0xba   :  { %10441 = vst [vmem:[#allocation39_spill] sm:$0xff] %v6504_v54  ;;  %5825 = vmatprep.mubr.msk.f32.mxu0 %vm2374_vm7, %v6504_v54  ;;  %5826 = vmatprep.mubr.msk.f32.mxu1 %vm2374_vm7, %v6504_v54  ;;  %v1725_v54 = vld [vmem:[#allocation6 + $0x84] ss:$8 sm:$0xf] }
  0xbb   :  { %v1265_v8 = vpop.permute.xlu0 %1264  ;;  %v6362_v9 = vpop.permute.xlu1 %1266  ;;  %2384 = vmatprep.subr.mxu0 %v1182_v59  ;;  %10436 = vst [vmem:[#allocation34_spill] sm:$0xff] %v6438_v63 }
  0xbc   :  { %10430 = vst [vmem:[#allocation28_spill] sm:$0xff] %v6362_v9  ;;  %v1279_v15 = vsel %vm1274_vm1, %v1263_v37, %v1265_v8  ;;  %v1278_v16 = vsel %vm1274_vm1, %v1265_v8, %v6362_v9  ;;  %v1909_v9 = vld [vmem:[#allocation6 + $0x87] ss:$8 sm:$0xf0] }
  0xbd   :  { %255 = vrot.lane.b32.xlu0 %v6143_v2, %s6085_s21  ;;  %257 = vrot.lane.b32.xlu1 %v6153_v3, %s6085_s21  ;;  %v1331_v19 = vmul.f32 %v1303_v60, %v1278_v16  ;;  %v1330_v20 = vmul.f32 %v1299_v61, %v1279_v15  ;;  %v972_v60 = vrot.slane %v6395_v36, %v6268_v11  ;;  %v793_v16 = vld [vmem:[#allocation6 + $0x40] ss:$8 sm:$0xf] }
  0xbe   :  { %v890_v15 = vrot.slane %v6438_v63, %v6271_v12 }
  0xbf   :  { %v6380_v29 = vpop.permute.xlu0 %1125  ;;  %2451 = vmatprep.subr.mxu1 %v1331_v19  ;;  %v1026_v30 = vpop.permute.xlu1 %1025  ;;  %v794_v19 = vld [vmem:[#allocation6 + $0x40] ss:$8 sm:$0xf0] }
  0xc0   :  { %10432 = vst [vmem:[#allocation30_spill] sm:$0xff] %v6380_v29  ;;  %v1135_v32 = vsel %vm1127_vm2, %v6380_v29, %v1112_v56  ;;  %2452 = vmatpush1.msra.mxu1 %v1330_v20 }
  0xc1   :  { %92 = vrot.lane.b32.xlu0 %v6169_v5, %s6087_s23  ;;  %169 = vrot.lane.b32.xlu1 %v6143_v2, %s6086_s22  ;;  %v1181_v34 = vmul.f32 %v1144_v22, %v1135_v32  ;;  %v1066_v32 = vrot.slane %v6371_v18, %v6294_v27 }
  0xc2   :  { %2453 = vmatprep.subr.mxu1 %v1245_v26 }
  0xc3   :  { %v1028_v37 = vpop.permute.xlu0 %1027  ;;  %v6397_v39 = vpop.permute.xlu1 %1039  ;;  %2385 = vmatpush1.msra.mxu0 %v1181_v34  ;;  %2454 = vmatpush1.msra.mxu1 %v1244_v31  ;;  %v6465_v31 = vor.u32 %v794_v19, %v793_v16 }
  0xc4   :  { %10434 = vst [vmem:[#allocation32_spill] sm:$0xff] %v6397_v39  ;;  %v1048_v40 = vsel %vm1041_vm3, %v1026_v30, %v1028_v37  ;;  %v1049_v41 = vsel %vm1041_vm3, %v6397_v39, %v1026_v30  ;;  %v886_v30 = vrot.slane %v6438_v63, %v6268_v11 }
  0xc5   :  { %171 = vrot.lane.b32.xlu0 %v6153_v3, %s6086_s22  ;;  %82 = vrot.lane.b32.xlu1 %v6143_v2, %s6087_s23  ;;  %v1096_v42 = vmul.f32 %v1062_v33, %v1048_v40  ;;  %v1095_v43 = vmul.f32 %v1058_v35, %v1049_v41  ;;  %10438 = vst [vmem:[#allocation36_spill] sm:$0xff] %v6465_v31 }
  0xc7   :  { %v940_v45 = vpop.permute.xlu0 %939  ;;  %v6411_v47 = vpop.permute.xlu1 %941  ;;  %2386 = vmatprep.subr.mxu0 %v1096_v42 }
  0xc8   :  { %v962_v48 = vsel %vm955_vm4, %v940_v45, %v6411_v47  ;;  %2387 = vmatpush1.msra.mxu0 %v1095_v43  ;;  %v804_v43 = vrot.slane %v6465_v31, %v6271_v12 }
  0xc9   :  { %84 = vrot.lane.b32.xlu0 %v6153_v3, %s6087_s23  ;;  %775 = vrot.lane.b32.xlu1 %v6155_v4, %s6080_s15  ;;  %v1010_v50 = vmul.f32 %v976_v44, %v962_v48 }
  0xcb   :  { %v1116_v55 = vpop.permute.xlu0 %1115  ;;  %v6424_v56 = vpop.permute.xlu1 %1117  ;;  %2388 = vmatprep.subr.mxu0 %v1010_v50 }
  0xcc   :  { %10435 = vst [vmem:[#allocation33_spill] sm:$0xff] %v6424_v56  ;;  %v1133_v58 = vsel %vm1127_vm2, %v6347_v57, %v1116_v55  ;;  %v1132_v59 = vsel %vm1127_vm2, %v1116_v55, %v6424_v56  ;;  %v707_v55 = vld [vmem:[#allocation6 + $0x7] ss:$8 sm:$0xf] }
  0xcd   :  { %689 = vrot.lane.b32.xlu0 %v6155_v4, %s6081_s16  ;;  %603 = vrot.lane.b32.xlu1 %v6155_v4, %s6082_s17  ;;  %v1184_v61 = vmul.f32 %v1156_v51, %v1132_v59  ;;  %v1183_v62 = vmul.f32 %v1152_v52, %v1133_v58  ;;  %v984_v52 = vrot.slane %v6395_v36, %v6297_v28  ;;  %v708_v58 = vld [vmem:[#allocation6 + $0x7] ss:$8 sm:$0xf0] }
  0xcf   :  { %v6440_v6 = vpop.permute.xlu0 %953  ;;  %2455 = vmatprep.subr.mxu1 %v1184_v61  ;;  %v854_v57 = vpop.permute.xlu1 %853 }
  0xd0   :  { %10437 = vst [vmem:[#allocation35_spill] sm:$0xff] %v6440_v6  ;;  %v963_v8 = vsel %vm955_vm4, %v6440_v6, %v940_v45  ;;  %2456 = vmatpush1.msra.mxu1 %v1183_v62 }
  0xd1   :  { %517 = vrot.lane.b32.xlu0 %v6155_v4, %s6083_s18  ;;  %431 = vrot.lane.b32.xlu1 %v6155_v4, %s6068_s19  ;;  %v1009_v14 = vmul.f32 %v972_v60, %v963_v8 }
  0xd3   :  { %v6452_v20 = vpop.permute.xlu0 %855  ;;  %v1030_v22 = vpop.permute.xlu1 %1029  ;;  %2389 = vmatpush1.msra.mxu0 %v1009_v14 }
  0xd4   :  { %v876_v24 = vsel %vm10369_vm5, %v854_v57, %v6452_v20  ;;  %v1047_v33 = vsel %vm1041_vm3, %v1028_v37, %v1030_v22 }
  0xd5   :  { %345 = vrot.lane.b32.xlu0 %v6155_v4, %s6084_s20  ;;  %259 = vrot.lane.b32.xlu1 %v6155_v4, %s6085_s21  ;;  %v924_v26 = vmul.f32 %v890_v15, %v876_v24  ;;  %v1097_v44 = vmul.f32 %v1066_v32, %v1047_v33  ;;  %v6524_v15 = vor.u32 %v708_v58, %v707_v55  ;;  %v6541_v24 = vld [vmem:[#allocation3 + $0x30] sm:$0xff] }
  0xd7   :  { %v6471_v34 = vpop.permute.xlu0 %1031  ;;  %v6473_v35 = vpop.permute.xlu1 %867  ;;  %2390 = vmatprep.subr.mxu0 %v924_v26  ;;  %10443 = vst [vmem:[#allocation41_spill] sm:$0xff] %v6524_v15  ;;  %v621_v26 = vld [vmem:[#allocation6 + $0x6] ss:$8 sm:$0xf] }
  0xd8   :  { %10439 = vst [vmem:[#allocation37_spill] sm:$0xff] %v6471_v34  ;;  %10440 = vst [vmem:[#allocation38_spill] sm:$0xff] %v6473_v35  ;;  %v1046_v40 = vsel %vm1041_vm3, %v1030_v22, %v6471_v34  ;;  %v877_v41 = vsel %vm10369_vm5, %v6473_v35, %v854_v57  ;;  %v800_v57 = vrot.slane %v6465_v31, %v6268_v11  ;;  %v6539_v22 = vld [vmem:[#allocation3 + $0x28] sm:$0xff] }
  0xd9   :  { %173 = vrot.lane.b32.xlu0 %v6155_v4, %s6086_s22  ;;  %1518 = vrot.lane.b32.xlu1 %v6135_v0, %s6088_s24  ;;  %v1098_v37 = vmul.f32 %v1070_v25, %v1046_v40  ;;  %v923_v42 = vmul.f32 %v886_v30, %v877_v41  ;;  %v718_v25 = vrot.slane %v6524_v15, %v6271_v12  ;;  %v622_v30 = vld [vmem:[#allocation6 + $0x6] ss:$8 sm:$0xf0]  ;;  %v2031_v34 = vld [vmem:[#allocation6 + $0xc1] ss:$8 sm:$0xf0] }
  0xda   :  { %v714_v41 = vrot.slane %v6524_v15, %v6268_v11 }
  0xdb   :  { %v768_v45 = vpop.permute.xlu0 %767  ;;  %2457 = vmatprep.subr.mxu1 %v1098_v37  ;;  %v6488_v48 = vpop.permute.xlu1 %769  ;;  %2391 = vmatpush1.msra.mxu0 %v923_v42  ;;  %v6561_v37 = vor.u32 %v622_v30, %v621_v26  ;;  %v894_v42 = vrot.slane %v6438_v63, %v6294_v27 }
  0xdc   :  { %v6493_v50 = vsel %vm783_vm6, %v768_v45, %v6488_v48  ;;  %2458 = vmatpush1.msra.mxu1 %v1097_v44 }
  0xdd   :  { %1520 = vrot.lane.b32.xlu0 %v6143_v2, %s6088_s24  ;;  %1516 = vrot.lane.b32.xlu1 %v6137_v1, %s6088_s24  ;;  %v838_v51 = vmul.f32 %v804_v43, %v6493_v50  ;;  %10446 = vst [vmem:[#allocation44_spill] sm:$0xff] %v6561_v37  ;;  %v632_v55 = vrot.slane %v6561_v37, %v6271_v12 }
  0xdf   :  { %v944_v59 = vpop.permute.xlu0 %943  ;;  %v6510_v60 = vpop.permute.xlu1 %945  ;;  %2392 = vmatprep.subr.mxu0 %v838_v51 }
  0xe0   :  { %10442 = vst [vmem:[#allocation40_spill] sm:$0xff] %v6510_v60  ;;  %v961_v61 = vsel %vm955_vm4, %v6411_v47, %v944_v59  ;;  %v960_v62 = vsel %vm955_vm4, %v944_v59, %v6510_v60 }
  0xe1   :  { %86 = vrot.lane.b32.xlu0 %v6155_v4, %s6087_s23  ;;  %1432 = vrot.lane.b32.xlu1 %v6135_v0, %s6089_s25  ;;  %v1012_v8 = vmul.f32 %v984_v52, %v960_v62  ;;  %v1011_v14 = vmul.f32 %v980_v53, %v961_v61 }
  0xe3   :  { %v6526_v16 = vpop.permute.xlu0 %781  ;;  %2459 = vmatprep.subr.mxu1 %v1012_v8  ;;  %v682_v47 = vpop.permute.xlu1 %681  ;;  %v812_v8 = vrot.slane %v6465_v31, %v6297_v28 }
  0xe4   :  { %10444 = vst [vmem:[#allocation42_spill] sm:$0xff] %v6526_v16  ;;  %v6531_v19 = vsel %vm783_vm6, %v6526_v16, %v768_v45  ;;  %2460 = vmatpush1.msra.mxu1 %v1011_v14  ;;  %v808_v14 = vrot.slane %v6465_v31, %v6294_v27 }
  0xe5   :  { %10445 = vst [vmem:[#allocation43_spill] sm:$0xff] %v6531_v19  ;;  %1434 = vrot.lane.b32.xlu0 %v6143_v2, %s6089_s25  ;;  %1430 = vrot.lane.b32.xlu1 %v6137_v1, %s6089_s25  ;;  %v837_v0 = vmul.f32 %v800_v57, %v6531_v19  ;;  %v898_v2 = vrot.slane %v6438_v63, %v6297_v28  ;;  %v2092_v63 = vld [vmem:[#allocation6 + $0xc2] ss:$8 sm:$0xf0] }
  0xe7   :  { %v6545_v32 = vpop.permute.xlu0 %683  ;;  %v858_v33 = vpop.permute.xlu1 %857  ;;  %2393 = vmatpush1.msra.mxu0 %v837_v0  ;;  %v536_v0 = vld [vmem:[#allocation6 + $0x5] ss:$8 sm:$0xf0] }
  0xe8   :  { %v6550_v1 = vsel %vm697_vm8, %v682_v47, %v6545_v32  ;;  %v875_v43 = vsel %vm10369_vm5, %v6452_v20, %v858_v33 }
  0xe9   :  { %1354 = vrot.lane.b32.xlu0 %v6539_v22, %s6074_s2  ;;  %1356 = vrot.lane.b32.xlu1 %v6541_v24, %s6074_s2  ;;  %v752_v40 = vmul.f32 %v718_v25, %v6550_v1  ;;  %v925_v58 = vmul.f32 %v894_v42, %v875_v43 }
  0xeb   :  { %v6568_v44 = vpop.permute.xlu0 %859  ;;  %v6570_v45 = vpop.permute.xlu1 %695  ;;  %2394 = vmatprep.subr.mxu0 %v752_v40 }
  0xec   :  { %10447 = vst [vmem:[#allocation45_spill] sm:$0xff] %v6568_v44  ;;  %10448 = vst [vmem:[#allocation46_spill] sm:$0xff] %v6570_v45  ;;  %v874_v51 = vsel %vm10369_vm5, %v858_v33, %v6568_v44  ;;  %v6578_v52 = vsel %vm697_vm8, %v6570_v45, %v682_v47  ;;  %v535_v47 = vld [vmem:[#allocation6 + $0x5] ss:$8 sm:$0xf] }
  0xed   :  { %10449 = vst [vmem:[#allocation47_spill] sm:$0xff] %v6578_v52  ;;  %1522 = vrot.lane.b32.xlu0 %v6153_v3, %s6088_s24  ;;  %1524 = vrot.lane.b32.xlu1 %v6155_v4, %s6088_s24  ;;  %v926_v20 = vmul.f32 %v898_v2, %v874_v51  ;;  %v751_v53 = vmul.f32 %v714_v41, %v6578_v52  ;;  %v2091_v44 = vld [vmem:[#allocation6 + $0xc2] ss:$8 sm:$0xf] }
  0xee   :  { %v628_v2 = vrot.slane %v6561_v37, %v6268_v11 }
  0xef   :  { %v596_v59 = vpop.permute.xlu0 %595  ;;  %2461 = vmatprep.subr.mxu1 %v926_v20  ;;  %v6588_v61 = vpop.permute.xlu1 %597  ;;  %2395 = vmatpush1.msra.mxu0 %v751_v53  ;;  %v449_v53 = vld [vmem:[#allocation6 + $0x4] ss:$8 sm:$0xf] }
  0xf0   :  { %v6593_v62 = vsel %vm611_vm9, %v596_v59, %v6588_v61  ;;  %2462 = vmatpush1.msra.mxu1 %v925_v58 }
  0xf1   :  { %1268 = vrot.lane.b32.xlu0 %v6539_v22, %s6075_s3  ;;  %1270 = vrot.lane.b32.xlu1 %v6541_v24, %s6075_s3  ;;  %v666_v57 = vmul.f32 %v632_v55, %v6593_v62  ;;  %v450_v55 = vld [vmem:[#allocation6 + $0x4] ss:$8 sm:$0xf0] }
  0xf3   :  { %v772_v25 = vpop.permute.xlu0 %771  ;;  %v6604_v26 = vpop.permute.xlu1 %773  ;;  %2396 = vmatprep.subr.mxu0 %v666_v57 }
  0xf4   :  { %v6609_v30 = vsel %vm783_vm6, %v6488_v48, %v772_v25  ;;  %v6614_v33 = vsel %vm783_vm6, %v772_v25, %v6604_v26  ;;  %v6624_v48 = vor.u32 %v536_v0, %v535_v47  ;;  %v6657_v0 = vor.u32 %v450_v55, %v449_v53 }
  0xf5   :  { %1436 = vrot.lane.b32.xlu0 %v6153_v3, %s6089_s25  ;;  %1438 = vrot.lane.b32.xlu1 %v6155_v4, %s6089_s25  ;;  %v840_v40 = vmul.f32 %v812_v8, %v6614_v33  ;;  %v839_v41 = vmul.f32 %v808_v14, %v6609_v30  ;;  %v726_v8 = vrot.slane %v6524_v15, %v6297_v28 }
  0xf6   :  { %10450 = vst [vmem:[#allocation48_spill] sm:$0xff] %v6624_v48  ;;  %v546_v20 = vrot.slane %v6624_v48, %v6271_v12  ;;  %v542_v47 = vrot.slane %v6624_v48, %v6268_v11  ;;  %10453 = vst [vmem:[#allocation51_spill] sm:$0xff] %v6657_v0  ;;  %v722_v25 = vrot.slane %v6524_v15, %v6294_v27 }
  0xf7   :  { %v6626_v42 = vpop.permute.xlu0 %609  ;;  %2463 = vmatprep.subr.mxu1 %v840_v40  ;;  %v510_v43 = vpop.permute.xlu1 %509  ;;  %v460_v53 = vrot.slane %v6657_v0, %v6271_v12  ;;  %v456_v52 = vrot.slane %v6657_v0, %v6268_v11 }
  0xf8   :  { %10451 = vst [vmem:[#allocation49_spill] sm:$0xff] %v6626_v42  ;;  %v6631_v51 = vsel %vm611_vm9, %v6626_v42, %v596_v59  ;;  %2464 = vmatpush1.msra.mxu1 %v839_v41 }
  0xf9   :  { %10452 = vst [vmem:[#allocation50_spill] sm:$0xff] %v6631_v51  ;;  %1358 = vrot.lane.b32.xlu0 %v6169_v5, %s6074_s2  ;;  %1119 = vrot.lane.b32.xlu1 %v6155_v4, %s6076_s11  ;;  %v665_v3 = vmul.f32 %v628_v2, %v6631_v51 }
  0xfb   :  { %v6641_v58 = vpop.permute.xlu0 %511  ;;  %v686_v59 = vpop.permute.xlu1 %685  ;;  %2397 = vmatpush1.msra.mxu0 %v665_v3 }
  0xfc   :  { %v6646_v57 = vsel %vm10262_vm10, %v510_v43, %v6641_v58  ;;  %v6664_v2 = vsel %vm697_vm8, %v6545_v32, %v686_v59 }
  0xfd   :  { %1121 = vrot.lane.b32.xlu0 %v6539_v22, %s6076_s11  ;;  %1272 = vrot.lane.b32.xlu1 %v6169_v5, %s6075_s3  ;;  %v580_v14 = vmul.f32 %v546_v20, %v6646_v57  ;;  %v753_v55 = vmul.f32 %v722_v25, %v6664_v2  ;;  %v636_v25 = vrot.slane %v6561_v37, %v6294_v27 }
  0xff   :  { %v6666_v40 = vpop.permute.xlu0 %687  ;;  %v6668_v41 = vpop.permute.xlu1 %523  ;;  %2398 = vmatprep.subr.mxu0 %v580_v14 }
 0x100   :  { %10454 = vst [vmem:[#allocation52_spill] sm:$0xff] %v6668_v41  ;;  %v6673_v5 = vsel %vm697_vm8, %v686_v59, %v6666_v40  ;;  %v6678_v3 = vsel %vm10262_vm10, %v6668_v41, %v510_v43 }
 0x101   :  { %10455 = vst [vmem:[#allocation53_spill] sm:$0xff] %v6678_v3  ;;  %1033 = vrot.lane.b32.xlu0 %v6155_v4, %s6077_s12  ;;  %1035 = vrot.lane.b32.xlu1 %v6539_v22, %s6077_s12  ;;  %v754_v32 = vmul.f32 %v726_v8, %v6673_v5  ;;  %v579_v20 = vmul.f32 %v542_v47, %v6678_v3 }
 0x102   :  { %v640_v47 = vrot.slane %v6561_v37, %v6297_v28 }
 0x103   :  { %v424_v59 = vpop.permute.xlu0 %423  ;;  %2465 = vmatprep.subr.mxu1 %v754_v32  ;;  %v6690_v43 = vpop.permute.xlu1 %425  ;;  %2399 = vmatpush1.msra.mxu0 %v579_v20  ;;  %v363_v32 = vld [vmem:[#allocation6 + $0x3] ss:$8 sm:$0xf] }
 0x104   :  { %v6695_v14 = vsel %vm439_vm11, %v424_v59, %v6690_v43  ;;  %2466 = vmatpush1.msra.mxu1 %v753_v55  ;;  %v364_v20 = vld [vmem:[#allocation6 + $0x3] ss:$8 sm:$0xf0] }
 0x105   :  { %947 = vrot.lane.b32.xlu0 %v6155_v4, %s6078_s13  ;;  %949 = vrot.lane.b32.xlu1 %v6539_v22, %s6078_s13  ;;  %v494_v8 = vmul.f32 %v460_v53, %v6695_v14 }
 0x107   :  { %v600_v3 = vpop.permute.xlu0 %599  ;;  %v6706_v51 = vpop.permute.xlu1 %601  ;;  %2400 = vmatprep.subr.mxu0 %v494_v8 }
 0x108   :  { %v6711_v55 = vsel %vm611_vm9, %v6588_v61, %v600_v3  ;;  %v6716_v53 = vsel %vm611_vm9, %v600_v3, %v6706_v51  ;;  %v6726_v61 = vor.u32 %v364_v20, %v363_v32  ;;  %v278_v32 = vld [vmem:[#allocation6 + $0x2] ss:$8 sm:$0xf0] }
 0x109   :  { %1123 = vrot.lane.b32.xlu0 %v6541_v24, %s6076_s11  ;;  %861 = vrot.lane.b32.xlu1 %v6155_v4, %s6079_s14  ;;  %v668_v8 = vmul.f32 %v640_v47, %v6716_v53  ;;  %v667_v19 = vmul.f32 %v636_v25, %v6711_v55  ;;  %v277_v25 = vld [vmem:[#allocation6 + $0x2] ss:$8 sm:$0xf] }
 0x10a   :  { %10456 = vst [vmem:[#allocation54_spill] sm:$0xff] %v6726_v61  ;;  %v374_v47 = vrot.slane %v6726_v61, %v6271_v12  ;;  %v382_v39 = vrot.slane %v6726_v61, %v6297_v28 }
 0x10b   :  { %v6728_v41 = vpop.permute.xlu0 %437  ;;  %2467 = vmatprep.subr.mxu1 %v668_v8  ;;  %v338_v3 = vpop.permute.xlu1 %337  ;;  %v554_v8 = vrot.slane %v6624_v48, %v6297_v28 }
 0x10c   :  { %10457 = vst [vmem:[#allocation55_spill] sm:$0xff] %v6728_v41  ;;  %v6733_v42 = vsel %vm439_vm11, %v6728_v41, %v424_v59  ;;  %2468 = vmatpush1.msra.mxu1 %v667_v19  ;;  %v550_v41 = vrot.slane %v6624_v48, %v6294_v27 }
 0x10d   :  { %10458 = vst [vmem:[#allocation56_spill] sm:$0xff] %v6733_v42  ;;  %863 = vrot.lane.b32.xlu0 %v6539_v22, %s6079_s14  ;;  %1037 = vrot.lane.b32.xlu1 %v6541_v24, %s6077_s12  ;;  %v493_v4 = vmul.f32 %v456_v52, %v6733_v42  ;;  %v370_v42 = vrot.slane %v6726_v61, %v6268_v11 }
 0x10f   :  { %v6743_v20 = vpop.permute.xlu0 %339  ;;  %v514_v59 = vpop.permute.xlu1 %513  ;;  %2401 = vmatpush1.msra.mxu0 %v493_v4  ;;  %v6759_v4 = vor.u32 %v278_v32, %v277_v25 }
 0x110   :  { %v6748_v19 = vsel %vm10263_vm12, %v338_v3, %v6743_v20  ;;  %v6766_v45 = vsel %vm10262_vm10, %v6641_v58, %v514_v59 }
 0x111   :  { %777 = vrot.lane.b32.xlu0 %v6539_v22, %s6080_s15  ;;  %951 = vrot.lane.b32.xlu1 %v6541_v24, %s6078_s13  ;;  %v408_v52 = vmul.f32 %v374_v47, %v6748_v19  ;;  %10459 = vst [vmem:[#allocation57_spill] sm:$0xff] %v6759_v4  ;;  %v284_v15 = vrot.slane %v6759_v4, %v6268_v11 }
 0x113   :  { %v6768_v16 = vpop.permute.xlu0 %515  ;;  %v6770_v37 = vpop.permute.xlu1 %351  ;;  %2402 = vmatprep.subr.mxu0 %v408_v52  ;;  %v581_v52 = vmul.f32 %v550_v41, %v6766_v45  ;;  %v468_v41 = vrot.slane %v6657_v0, %v6297_v28 }
 0x114   :  { %10460 = vst [vmem:[#allocation58_spill] sm:$0xff] %v6770_v37  ;;  %v6775_v47 = vsel %vm10262_vm10, %v514_v59, %v6768_v16  ;;  %v6780_v25 = vsel %vm10263_vm12, %v6770_v37, %v338_v3  ;;  %v288_v59 = vrot.slane %v6759_v4, %v6271_v12 }
 0x115   :  { %10461 = vst [vmem:[#allocation59_spill] sm:$0xff] %v6780_v25  ;;  %691 = vrot.lane.b32.xlu0 %v6539_v22, %s6081_s16  ;;  %865 = vrot.lane.b32.xlu1 %v6541_v24, %s6079_s14  ;;  %v582_v58 = vmul.f32 %v554_v8, %v6775_v47  ;;  %v407_v32 = vmul.f32 %v370_v42, %v6780_v25 }
 0x116   :  { %v464_v8 = vrot.slane %v6657_v0, %v6294_v27 }
 0x117   :  { %v252_v48 = vpop.permute.xlu0 %251  ;;  %2469 = vmatprep.subr.mxu1 %v582_v58  ;;  %v6792_v3 = vpop.permute.xlu1 %253  ;;  %2403 = vmatpush1.msra.mxu0 %v407_v32  ;;  %v191_v58 = vld [vmem:[#allocation6 + $0x1] ss:$8 sm:$0xf] }
 0x118   :  { %v6797_v37 = vsel %vm10241_vm13, %v252_v48, %v6792_v3  ;;  %2470 = vmatpush1.msra.mxu1 %v581_v52  ;;  %v192_v32 = vld [vmem:[#allocation6 + $0x1] ss:$8 sm:$0xf0] }
 0x119   :  { %605 = vrot.lane.b32.xlu0 %v6539_v22, %s6082_s17  ;;  %779 = vrot.lane.b32.xlu1 %v6541_v24, %s6080_s15  ;;  %v322_v42 = vmul.f32 %v288_v59, %v6797_v37 }
 0x11b   :  { %v428_v25 = vpop.permute.xlu0 %427  ;;  %v6808_v35 = vpop.permute.xlu1 %429  ;;  %2404 = vmatprep.subr.mxu0 %v322_v42 }
 0x11c   :  { %v6813_v52 = vsel %vm439_vm11, %v6690_v43, %v428_v25  ;;  %v6818_v59 = vsel %vm439_vm11, %v428_v25, %v6808_v35  ;;  %v6828_v43 = vor.u32 %v192_v32, %v191_v58  ;;  %v105_v58 = vld [vmem:[#allocation6] ss:$8 sm:$0xf] }
 0x11d   :  { %10462 = vst [vmem:[#allocation60_spill] sm:$0xff] %v6818_v59  ;;  %519 = vrot.lane.b32.xlu0 %v6539_v22, %s6083_s18  ;;  %693 = vrot.lane.b32.xlu1 %v6541_v24, %s6081_s16  ;;  %v496_v42 = vmul.f32 %v468_v41, %v6818_v59  ;;  %v495_v0 = vmul.f32 %v464_v8, %v6813_v52  ;;  %v106_v32 = vld [vmem:[#allocation6] ss:$8 sm:$0xf0] }
 0x11e   :  { %v202_v8 = vrot.slane %v6828_v43, %v6271_v12 }
 0x11f   :  { %v6830_v6 = vpop.permute.xlu0 %265  ;;  %2471 = vmatprep.subr.mxu1 %v496_v42  ;;  %v166_v25 = vpop.permute.xlu1 %165  ;;  %v6090_v42 = vmov 0  }
 0x120   :  { %10463 = vst [vmem:[#allocation61_spill] sm:$0xff] %v6830_v6  ;;  %v6835_v31 = vsel %vm10241_vm13, %v6830_v6, %v252_v48  ;;  %2472 = vmatpush1.msra.mxu1 %v495_v0  ;;  %5864 = vset.pattern.permute.xlu0 %v6090_v42  ;;  %v198_v42 = vrot.slane %v6828_v43, %v6268_v11 }
 0x121   :  { %10464 = vst [vmem:[#allocation62_spill] sm:$0xff] %v6835_v31  ;;  %433 = vrot.lane.b32.xlu0 %v6539_v22, %s6068_s19  ;;  %607 = vrot.lane.b32.xlu1 %v6541_v24, %s6082_s17  ;;  %v321_v41 = vmul.f32 %v284_v15, %v6835_v31  ;;  %v378_v31 = vrot.slane %v6726_v61, %v6294_v27  ;;  %v1969_v61 = vld [vmem:[#allocation6 + $0xc0] ss:$8 sm:$0xf] }
 0x123   :  { %v6845_v48 = vpop.permute.xlu0 %167  ;;  %v342_v0 = vpop.permute.xlu1 %341  ;;  %2405 = vmatpush1.msra.mxu0 %v321_v41  ;;  %v6861_v41 = vor.u32 %v106_v32, %v105_v58 }
 0x124   :  { %v6850_v6 = vsel %vm10242_vm14, %v166_v25, %v6845_v48  ;;  %v6868_v29 = vsel %vm10263_vm12, %v6743_v20, %v342_v0  ;;  %v1970_v20 = vld [vmem:[#allocation6 + $0xc0] ss:$8 sm:$0xf0] }
 0x125   :  { %347 = vrot.lane.b32.xlu0 %v6539_v22, %s6084_s20  ;;  %521 = vrot.lane.b32.xlu1 %v6541_v24, %s6083_s18  ;;  %v236_v15 = vmul.f32 %v202_v8, %v6850_v6  ;;  %v2030_v8 = vld [vmem:[#allocation6 + $0xc1] ss:$8 sm:$0xf]  ;;  %v116_v38 = vrot.slane %v6861_v41, %v6271_v12  ;;  %v6900_v17 = vor.u32 %v1970_v20, %v1969_v61  ;;  %v1787_v20 = vld [vmem:[#allocation6 + $0x85] ss:$8 sm:$0xf0] }
 0x126   :  { %v6898_v46 = vor.u32 %v2031_v34, %v2030_v8  ;;  %v292_v61 = vrot.slane %v6759_v4, %v6294_v27  ;;  %v1786_v8 = vld [vmem:[#allocation6 + $0x85] ss:$8 sm:$0xf] }
 0x127   :  { %v6870_v60 = vpop.permute.xlu0 %343  ;;  %v6872_v36 = vpop.permute.xlu1 %179  ;;  %2406 = vmatprep.subr.mxu0 %v236_v15 }
 0x128   :  { %10465 = vst [vmem:[#allocation63_spill] sm:$0xff] %v6872_v36  ;;  %v6877_v58 = vsel %vm10263_vm12, %v342_v0, %v6870_v60  ;;  %v6882_v32 = vsel %vm10242_vm14, %v6872_v36, %v166_v25  ;;  %v409_v25 = vmul.f32 %v378_v31, %v6868_v29  ;;  %v6894_v36 = vor.u32 %v2092_v63, %v2091_v44  ;;  %v1847_v31 = vld [vmem:[#allocation6 + $0x86] ss:$8 sm:$0xf] }
 0x129   :  { %10466 = vst [vmem:[#allocation64_spill] sm:$0xff] %v6877_v58  ;;  %10467 = vst [vmem:[#allocation65_spill] sm:$0xff] %v6882_v32  ;;  %261 = vrot.lane.b32.xlu0 %v6539_v22, %s6085_s21  ;;  %435 = vrot.lane.b32.xlu1 %v6541_v24, %s6068_s19  ;;  %v410_v15 = vmul.f32 %v382_v39, %v6877_v58  ;;  %v235_v0 = vmul.f32 %v198_v42, %v6882_v32  ;;  %v1908_v39 = vld [vmem:[#allocation6 + $0x87] ss:$8 sm:$0xf] }
 0x12a   :  { %v1848_v63 = vld [vmem:[#allocation6 + $0x86] ss:$8 sm:$0xf0]  ;;  %v296_v44 = vrot.slane %v6759_v4, %v6297_v28  ;;  %v2037_v23 = vrot.slane %v6898_v46, %v6268_v11  ;;  %v1664_v4 = vld [vmem:[#allocation6 + $0x83] ss:$8 sm:$0xf]  ;;  %v2041_v13 = vrot.slane %v6898_v46, %v6271_v12  ;;  %v6956_v58 = vor.u32 %v1726_v49, %v1725_v54 }
 0x12b   :  { %v79_v18 = vpop.permute.xlu0 %78  ;;  %2473 = vmatprep.subr.mxu1 %v410_v15  ;;  %v6896_v56 = vpop.permute.xlu1 %80  ;;  %2407 = vmatpush1.msra.mxu0 %v235_v0  ;;  %v2098_v15 = vrot.slane %v6894_v36, %v6268_v11  ;;  %v6918_v0 = vor.u32 %v1909_v9, %v1908_v39  ;;  %v6928_v21 = vor.u32 %v1848_v63, %v1847_v31  ;;  %v1665_v31 = vld [vmem:[#allocation6 + $0x83] ss:$8 sm:$0xf0] }
 0x12c   :  { %v6905_v42 = vsel %vm96_vm15, %v79_v18, %v6896_v56  ;;  %2474 = vmatpush1.msra.mxu1 %v409_v25 }
 0x12d   :  { %10468 = vst [vmem:[#allocation66_spill] sm:$0xff] %v6905_v42  ;;  %175 = vrot.lane.b32.xlu0 %v6539_v22, %s6086_s22  ;;  %349 = vrot.lane.b32.xlu1 %v6541_v24, %s6084_s20  ;;  %v150_v34 = vmul.f32 %v116_v38, %v6905_v42  ;;  %v2102_v38 = vrot.slane %v6894_v36, %v6271_v12 }
 0x12e   :  { %v6966_v42 = vor.u32 %v1665_v31, %v1664_v4  ;;  %v1919_v54 = vrot.slane %v6918_v0, %v6271_v12  ;;  %v2075_v31 = vmul.f32 %v2041_v13, %v6664_v2 }
 0x12f   :  { %v256_v25 = vpop.permute.xlu0 %255  ;;  %v6920_v32 = vpop.permute.xlu1 %257  ;;  %2408 = vmatprep.subr.mxu0 %v150_v34  ;;  %v6940_v34 = vor.u32 %v1787_v20, %v1786_v8  ;;  %v1603_v8 = vld [vmem:[#allocation6 + $0x82] ss:$8 sm:$0xf] }
 0x130   :  { %10469 = vst [vmem:[#allocation67_spill] sm:$0xff] %v6920_v32  ;;  %v6933_v9 = vsel %vm10241_vm13, %v6792_v3, %v256_v25  ;;  %v6938_v39 = vsel %vm10241_vm13, %v256_v25, %v6920_v32  ;;  %v112_v25 = vrot.slane %v6861_v41, %v6268_v11  ;;  %v1604_v20 = vld [vmem:[#allocation6 + $0x82] ss:$8 sm:$0xf0] }
 0x131   :  { %10470 = vst [vmem:[#allocation68_spill] sm:$0xff] %v6938_v39  ;;  %88 = vrot.lane.b32.xlu0 %v6539_v22, %s6087_s23  ;;  %263 = vrot.lane.b32.xlu1 %v6541_v24, %s6085_s21  ;;  %v324_v3 = vmul.f32 %v296_v44, %v6938_v39  ;;  %v323_v63 = vmul.f32 %v292_v61, %v6933_v9 }
 0x132   :  { %v1980_v61 = vrot.slane %v6900_v17, %v6271_v12  ;;  %v6979_v59 = vor.u32 %v1604_v20, %v1603_v8  ;;  %v206_v8 = vrot.slane %v6828_v43, %v6294_v27  ;;  %v1858_v20 = vrot.slane %v6928_v21, %v6271_v12 }
 0x133   :  { %v6960_v32 = vpop.permute.xlu0 %92  ;;  %2475 = vmatprep.subr.mxu1 %v324_v3  ;;  %v170_v44 = vpop.permute.xlu1 %169 }
 0x134   :  { %10471 = vst [vmem:[#allocation69_spill] sm:$0xff] %v6960_v32  ;;  %v6973_v49 = vsel %vm96_vm15, %v6960_v32, %v79_v18  ;;  %2476 = vmatpush1.msra.mxu1 %v323_v63  ;;  %v210_v18 = vrot.slane %v6828_v43, %v6297_v28  ;;  %v2136_v63 = vmul.f32 %v2102_v38, %v6609_v30 }
 0x135   :  { %10472 = vst [vmem:[#allocation70_spill] sm:$0xff] %v6973_v49  ;;  %177 = vrot.lane.b32.xlu0 %v6541_v24, %s6086_s22  ;;  %90 = vrot.lane.b32.xlu1 %v6541_v24, %s6087_s23  ;;  %v149_v4 = vmul.f32 %v112_v25, %v6973_v49  ;;  %v7000_v25 = vsel %vm10242_vm14, %v6845_v48, %v170_v44 }
 0x136   :  { %v1797_v30 = vrot.slane %v6940_v34, %v6271_v12  ;;  %v1671_v38 = vrot.slane %v6966_v42, %v6268_v11  ;;  %v2135_v48 = vmul.f32 %v2098_v15, %v6493_v50  ;;  %v2074_v50 = vmul.f32 %v2037_v23, %v6550_v1 }
 0x137   :  { %v7002_v3 = vpop.permute.xlu0 %171  ;;  %v83_v39 = vpop.permute.xlu1 %82  ;;  %2409 = vmatpush1.msra.mxu0 %v149_v4  ;;  %v237_v15 = vmul.f32 %v206_v8, %v7000_v25  ;;  %v120_v49 = vrot.slane %v6861_v41, %v6294_v27  ;;  %v1736_v4 = vrot.slane %v6956_v58, %v6271_v12  ;;  %v2014_v23 = vmul.f32 %v1980_v61, %v6711_v55 }
 0x138   :  { %v7013_v7 = vsel %vm10242_vm14, %v170_v44, %v7002_v3  ;;  %2420 = vmatprep.subr.mxu0 %v2136_v63  ;;  %v124_v63 = vrot.slane %v6861_v41, %v6297_v28  ;;  %v7037_v13 = vsel %vm96_vm15, %v6896_v56, %v83_v39  ;;  %v1675_v1 = vrot.slane %v6966_v42, %v6271_v12 }
 0x139   :  { %1526 = vrot.lane.b32.xlu0 %v6539_v22, %s6088_s24  ;;  %1528 = vrot.lane.b32.xlu1 %v6541_v24, %s6088_s24  ;;  %v238_v44 = vmul.f32 %v210_v18, %v7013_v7  ;;  %v10473_v56 = vrot.slane %v6900_v17, %v6268_v11  ;;  %v1953_v55 = vmul.f32 %v1919_v54, %v6766_v45 }
 0x13a   :  { %2421 = vmatpush2.msra.mxu0 %v2135_v48  ;;  %v2110_v48 = vrot.slane %v6894_v36, %v6297_v28  ;;  %v151_v54 = vmul.f32 %v120_v49, %v7037_v13  ;;  %v10475_v49 = vrot.slane %v6928_v21, %v6268_v11 }
 0x13b   :  { %2422 = vmatprep.subr.mxu0 %v2075_v31  ;;  %v7039_v2 = vpop.permute.xlu0 %84  ;;  %2477 = vmatprep.subr.mxu1 %v238_v44  ;;  %v7041_v18 = vpop.permute.xlu1 %775  ;;  %v2013_v31 = vmul.f32 %v10473_v56, %v6593_v62  ;;  %v10474_v62 = vrot.slane %v6918_v0, %v6268_v11 }
 0x13c   :  { %v7049_v8 = vsel %vm96_vm15, %v83_v39, %v7039_v2  ;;  %2423 = vmatpush2.msra.mxu0 %v2074_v50  ;;  %2478 = vmatpush1.msra.mxu1 %v237_v15  ;;  %v2049_v39 = vrot.slane %v6898_v46, %v6297_v28  ;;  %v7067_v44 = vsel %vm783_vm6, %v6604_v26, %v7041_v18 }
 0x13d   :  { %2424 = vmatprep.subr.mxu0 %v2014_v23  ;;  %1440 = vrot.lane.b32.xlu0 %v6539_v22, %s6089_s25  ;;  %v152_v61 = vmul.f32 %v124_v63, %v7049_v8  ;;  %v1952_v45 = vmul.f32 %v10474_v62, %v6646_v57  ;;  %v1892_v26 = vmul.f32 %v1858_v20, %v6813_v52  ;;  %v7097_v20 = vld [vmem:[#allocation3 + $0x38] sm:$0xff] }
 0x13e   :  { %1442 = vrot.lane.b32.xlu1 %v6541_v24, %s6089_s25  ;;  %2425 = vmatpush2.msra.mxu0 %v2013_v31  ;;  %v1988_v15 = vrot.slane %v6900_v17, %v6297_v28  ;;  %v1614_v24 = vrot.slane %v6979_v59, %v6271_v12  ;;  %v1891_v23 = vmul.f32 %v10475_v49, %v6695_v14 }
 0x13f   :  { %2426 = vmatprep.subr.mxu0 %v1953_v55  ;;  %v7076_v63 = vpop.permute.xlu0 %689  ;;  %2479 = vmatprep.subr.mxu1 %v152_v61  ;;  %v7078_v50 = vpop.permute.xlu1 %603  ;;  %v1927_v52 = vrot.slane %v6918_v0, %v6297_v28  ;;  %v2138_v56 = vmul.f32 %v2110_v48, %v7067_v44  ;;  %v10476_v55 = vrot.slane %v6894_v36, %v6294_v27 }
 0x140   :  { %v7089_v57 = vsel %vm697_vm8, %v6666_v40, %v7076_v63  ;;  %2427 = vmatpush2.msra.mxu0 %v1952_v45  ;;  %2480 = vmatpush1.msra.mxu1 %v151_v54  ;;  %v1831_v40 = vmul.f32 %v1797_v30, %v6868_v29  ;;  %v7108_v14 = vsel %vm611_vm9, %v6706_v51, %v7078_v50 }
 0x141   :  { %2428 = vmatprep.subr.mxu0 %v1892_v26  ;;  %1530 = vrot.lane.b32.xlu0 %v7097_v20, %s6088_s24  ;;  %v2077_v31 = vmul.f32 %v2049_v39, %v7089_v57  ;;  %v2137_v61 = vmul.f32 %v10476_v55, %v6614_v33  ;;  %v10477_v29 = vrot.slane %v6940_v34, %v6268_v11 }
 0x142   :  { %1444 = vrot.lane.b32.xlu1 %v7097_v20, %s6089_s25  ;;  %2429 = vmatpush2.msra.mxu0 %v1891_v23  ;;  %v1770_v39 = vmul.f32 %v1736_v4, %v6933_v9  ;;  %v1866_v62 = vrot.slane %v6928_v21, %v6297_v28  ;;  %v1805_v45 = vrot.slane %v6940_v34, %v6297_v28 }
 0x143   :  { %v1830_v30 = vmul.f32 %v10477_v29, %v6748_v19  ;;  %2491 = vmatprep.subr.mxu1 %v2138_v56  ;;  %2430 = vmatprep.subr.mxu0 %v1831_v40  ;;  %v7120_v48 = vpop.permute.xlu0 %517  ;;  %v7122_v51 = vpop.permute.xlu1 %431  ;;  %v10478_v19 = vrot.slane %v6898_v46, %v6294_v27  ;;  %v10479_v9 = vrot.slane %v6956_v58, %v6268_v11 }
 0x144   :  { %2492 = vmatpush2.msra.mxu1 %v2137_v61  ;;  %v7133_v33 = vsel %vm10262_vm10, %v6768_v16, %v7120_v48  ;;  %v2016_v26 = vmul.f32 %v1988_v15, %v7108_v14  ;;  %v1709_v49 = vmul.f32 %v1675_v1, %v7000_v25  ;;  %v7150_v23 = vsel %vm439_vm11, %v6808_v35, %v7122_v51  ;;  %v1542_v1 = vld [vmem:[#allocation6 + $0x81] ss:$8 sm:$0xf] }
 0x145   :  { %2431 = vmatpush2.msra.mxu0 %v1830_v30  ;;  %v2076_v54 = vmul.f32 %v10478_v19, %v6673_v5  ;;  %v1769_v4 = vmul.f32 %v10479_v9, %v6797_v37  ;;  %2493 = vmatprep.subr.mxu1 %v2077_v31  ;;  %v1955_v16 = vmul.f32 %v1927_v52, %v7133_v33  ;;  %v1543_v15 = vld [vmem:[#allocation6 + $0x81] ss:$8 sm:$0xf0] }
 0x146   :  { %2432 = vmatprep.subr.mxu0 %v1770_v39  ;;  %v10480_v37 = vrot.slane %v6900_v17, %v6294_v27  ;;  %v1708_v25 = vmul.f32 %v1671_v38, %v6850_v6  ;;  %v1648_v56 = vmul.f32 %v1614_v24, %v7037_v13  ;;  %v1744_v40 = vrot.slane %v6956_v58, %v6297_v28  ;;  %v10482_v13 = vld [vmem:[#allocation66_spill] sm:$0xff]  ;;  %v77_v61 = vld [vmem:[#allocation9] sm:$0xff] }
 0x147   :  { %2494 = vmatpush2.msra.mxu1 %v2076_v54  ;;  %2433 = vmatpush2.msra.mxu0 %v1769_v4  ;;  %v7160_v52 = vpop.permute.xlu0 %345  ;;  %v7162_v35 = vpop.permute.xlu1 %259  ;;  %v10481_v38 = vrot.slane %v6918_v0, %v6294_v27  ;;  %v10483_v24 = vrot.slane %v6979_v59, %v6268_v11  ;;  %v1894_v29 = vmul.f32 %v1866_v62, %v7150_v23  ;;  %v10485_v39 = vld [vmem:[#allocation67_spill] sm:$0xff] }
 0x148   :  { %v2015_v5 = vmul.f32 %v10480_v37, %v6716_v53  ;;  %2495 = vmatprep.subr.mxu1 %v2016_v26  ;;  %2434 = vmatprep.subr.mxu0 %v1709_v49  ;;  %v1683_v53 = vrot.slane %v6966_v42, %v6297_v28  ;;  %v7173_v6 = vsel %vm10263_vm12, %v6870_v60, %v7160_v52  ;;  %v10488_v49 = vld [vmem:[#allocation64_spill] sm:$0xff] }
 0x149   :  { %2435 = vmatpush2.msra.mxu0 %v1708_v25  ;;  %v1954_v31 = vmul.f32 %v10481_v38, %v6775_v47  ;;  %v1647_v55 = vmul.f32 %v10483_v24, %v10482_v13  ;;  %v1833_v30 = vmul.f32 %v1805_v45, %v7173_v6  ;;  %v7185_v60 = vor.u32 %v1543_v15, %v1542_v1  ;;  %v10486_v47 = vld [vmem:[#allocation60_spill] sm:$0xff] }
 0x14a   :  { %2496 = vmatpush2.msra.mxu1 %v2015_v5  ;;  %2436 = vmatprep.subr.mxu0 %v1648_v56  ;;  %v7191_v19 = vsel %vm10241_vm13, %v10485_v39, %v7162_v35  ;;  %v10487_v54 = vrot.slane %v6928_v21, %v6294_v27  ;;  %v1740_v62 = vrot.slane %v6956_v58, %v6294_v27  ;;  %vm1532_vm13 = vcmp.lt.s32.totalorder %v6261_v10, 119  ;;  %v10490_v56 = vld [vmem:[#allocation68_spill] sm:$0xff] }
 0x14b   :  { %2497 = vmatprep.subr.mxu1 %v1955_v16  ;;  %10484 = vst [vmem:[#allocation66_spill] sm:$0xff] %v7185_v60  ;;  %2437 = vmatpush2.msra.mxu0 %v1647_v55  ;;  %v7199_v45 = vpop.permute.xlu0 %173  ;;  %v1519_v4 = vpop.permute.xlu1 %1518  ;;  %v10489_v16 = vrot.slane %v6940_v34, %v6294_v27  ;;  %v1679_v5 = vrot.slane %v6966_v42, %v6294_v27  ;;  %v1457_v13 = vld [vmem:[#allocation6 + $0x80] ss:$8 sm:$0xf0] }
 0x14c   :  { %2498 = vmatpush2.msra.mxu1 %v1954_v31  ;;  %v1893_v9 = vmul.f32 %v10487_v54, %v10486_v47  ;;  %2371 = vperm.xlu0 %5864, %v77_v61   ;;  %v7205_v26 = vsel %vm10242_vm14, %v7002_v3, %v7199_v45  ;;  %v1772_v25 = vmul.f32 %v1744_v40, %v7191_v19  ;;  %v1456_v31 = vld [vmem:[#allocation6 + $0x80] ss:$8 sm:$0xf]  ;;  %vm1446_vm14 = vcmp.lt.s32.totalorder %v6261_v10, 120 }
 0x14d   :  { %2499 = vmatprep.subr.mxu1 %v1894_v29  ;;  %v1832_v37 = vmul.f32 %v10489_v16, %v10488_v49  ;;  %v1711_v1 = vmul.f32 %v1683_v53, %v7205_v26  ;;  %v1553_v15 = vrot.slane %v7185_v60, %v6271_v12  ;;  %v1549_v3 = vrot.slane %v7185_v60, %v6268_v11  ;;  %v10493_v49 = vld [vmem:[#allocation16_spill] sm:$0xff] }
 0x14e   :  { %2500 = vmatpush2.msra.mxu1 %v1893_v9  ;;  %v1771_v38 = vmul.f32 %v1740_v62, %v10490_v56  ;;  %v1710_v61 = vmul.f32 %v1679_v5, %v7013_v7  ;;  %v1622_v39 = vrot.slane %v6979_v59, %v6297_v28  ;;  %v7231_v47 = vor.u32 %v1457_v13, %v1456_v31 }
 0x14f   :  { %2501 = vmatprep.subr.mxu1 %v1833_v30  ;;  %v1521_v24 = vpop.permute.xlu0 %1520  ;;  %v7221_v55 = vpop.permute.xlu1 %1516  ;;  %v1618_v54 = vrot.slane %v6979_v59, %v6294_v27 }
 0x150   :  { %2502 = vmatpush2.msra.mxu1 %v1832_v37  ;;  %10491 = vst [vmem:[#allocation67_spill] sm:$0xff] %v7221_v55  ;;  %v1538_v40 = vsel %vm1532_vm13, %v1519_v4, %v1521_v24  ;;  %v1539_v53 = vsel %vm1532_vm13, %v7221_v55, %v1519_v4  ;;  %10492 = vst [vmem:[#allocation60_spill] sm:$0xff] %v7231_v47  ;;  %v7238_v4 = vsub.s32 5, %v10493_v49  ;;  %v5943_v55 = vld [vmem:[#allocation3 + $0x20] sm:$0xff] }
 0x151   :  { %2503 = vmatprep.subr.mxu1 %v1772_v25  ;;  %v1587_v29 = vmul.f32 %v1553_v15, %v1538_v40  ;;  %v1586_v30 = vmul.f32 %v1549_v3, %v1539_v53  ;;  %v1467_v37 = vrot.slane %v7231_v47, %v6271_v12  ;;  %v1463_v5 = vrot.slane %v7231_v47, %v6268_v11  ;;  %v7267_v53 = vld [vmem:[#allocation8] sm:$0xff] }
 0x152   :  { %2504 = vmatpush2.msra.mxu1 %v1771_v38  ;;  %10494 = vst [vmem:[#allocation64_spill] sm:$0xff] %v7238_v4  ;;  %v1649_v25 = vmul.f32 %v1618_v54, %v7049_v8  ;;  %v10497_v38 = vld [vmem:[#allocation19_spill] sm:$0xff] }
 0x153   :  { %2505 = vmatprep.subr.mxu1 %v1711_v1  ;;  %v7235_v9 = vpop.permute.xlu0 %86  ;;  %v1433_v62 = vpop.permute.xlu1 %1432  ;;  %2438 = vmatprep.subr.mxu0 %v1587_v29  ;;  %v7254_v1 = vsub.s32 4, %v10493_v49  ;;  %v1397_v40 = vrot.slane %v10497_v38, %v7238_v4  ;;  %10498 = vst [vmem:[#allocation19_spill] sm:$0xff] %v7267_v53 }
 0x154   :  { %2506 = vmatpush2.msra.mxu1 %v1710_v61  ;;  %v7244_v7 = vsel %vm96_vm15, %v7039_v2, %v7235_v9  ;;  %2439 = vmatpush2.msra.mxu0 %v1586_v30  ;;  %v10499_v30 = vld [vmem:[#allocation27_spill] sm:$0xff] }
 0x155   :  { %v1650_v16 = vmul.f32 %v1622_v39, %v7244_v7  ;;  %10495 = vst [vmem:[#allocation68_spill] sm:$0xff] %v7254_v1  ;;  %v1393_v31 = vrot.slane %v10497_v38, %v7254_v1 }
 0x157   :  { %v1435_v15 = vpop.permute.xlu0 %1434  ;;  %2507 = vmatprep.subr.mxu1 %v1650_v16  ;;  %v7256_v2 = vpop.permute.xlu1 %1430 }
 0x158   :  { %10496 = vst [vmem:[#allocation16_spill] sm:$0xff] %v7256_v2  ;;  %v1452_v3 = vsel %vm1446_vm14, %v1433_v62, %v1435_v15  ;;  %v1453_v56 = vsel %vm1446_vm14, %v7256_v2, %v1433_v62  ;;  %2508 = vmatpush2.msra.mxu1 %v1649_v25  ;;  %v10500_v25 = vld [vmem:[#allocation39_spill] sm:$0xff] }
 0x159   :  { %v1501_v13 = vmul.f32 %v1467_v37, %v1452_v3  ;;  %v1500_v8 = vmul.f32 %v1463_v5, %v1453_v56  ;;  %v1561_v37 = vrot.slane %v7185_v60, %v6297_v28  ;;  %v1557_v5 = vrot.slane %v7185_v60, %v6294_v27 }
 0x15a   :  { %v7310_v60 = vsub.s32 7, %v10493_v49 }
 0x15b   :  { %v1355_v61 = vpop.permute.xlu0 %1354  ;;  %v1357_v29 = vpop.permute.xlu1 %1356  ;;  %2440 = vmatprep.subr.mxu0 %v1501_v13 }
 0x15c   :  { %v1363_v39 = vsel %vm1360_vm0, %v10499_v30, %v1355_v61  ;;  %v1362_v54 = vsel %vm1360_vm0, %v1355_v61, %v1357_v29  ;;  %2441 = vmatpush2.msra.mxu0 %v1500_v8  ;;  %v10502_v8 = vld [vmem:[#allocation21_spill] sm:$0xff] }
 0x15d   :  { %v1418_v62 = vmul.f32 %v1393_v31, %v1363_v39  ;;  %2443 = vmatmul.mubr.f32.vlgmr.msra.gmra.mxu0 %v7267_v53  ;;  %v1419_v16 = vmul.f32 %v1397_v40, %v1362_v54  ;;  %v1307_v40 = vrot.slane %v10502_v8, %v7254_v1  ;;  %v1311_v39 = vrot.slane %v10502_v8, %v7238_v4  ;;  %v10503_v54 = vld [vmem:[#allocation22_spill] sm:$0xff] }
 0x15e   :  { %5827 = vmatprep.mubr.msk.f32.mxu0 %vm2374_vm7, %v10500_v25  ;;  %v1225_v25 = vrot.slane %v10503_v54, %v7238_v4  ;;  %10506 = vst [vmem:[#allocation21_spill] sm:$0xff] %v7310_v60 }
 0x15f   :  { %v1523_v3 = vpop.permute.xlu0 %1522  ;;  %v7281_v56 = vpop.permute.xlu1 %1524  ;;  %2520 = vmatprep.subr.mxu0 %v1419_v16  ;;  %v1221_v16 = vrot.slane %v10503_v54, %v7254_v1 }
 0x160   :  { %10501 = vst [vmem:[#allocation27_spill] sm:$0xff] %v7281_v56  ;;  %v1537_v13 = vsel %vm1532_vm13, %v1521_v24, %v1523_v3  ;;  %v1536_v31 = vsel %vm1532_vm13, %v1523_v3, %v7281_v56  ;;  %2521 = vmatpush1.msra.mxu0 %v1418_v62  ;;  %v7297_v3 = vsub.s32 6, %v10493_v49  ;;  %v10505_v62 = vld [vmem:[#allocation28_spill] sm:$0xff]  ;;  %v1247_v2 = vmul.f32 %v1225_v25, %v6539_v22 }
 0x161   :  { %v1589_v61 = vmul.f32 %v1561_v37, %v1536_v31  ;;  %v1588_v30 = vmul.f32 %v1557_v5, %v1537_v13  ;;  %v1475_v13 = vrot.slane %v7231_v47, %v6297_v28  ;;  %v1246_v56 = vmul.f32 %v5943_v55, %v1221_v16  ;;  %v10508_v16 = vld [vmem:[#allocation20_spill] sm:$0xff]  ;;  %v5945_v28 = vld [vmem:[#allocation3 + $0x30] sm:$0xff] }
 0x162   :  { %10504 = vst [vmem:[#allocation39_spill] sm:$0xff] %v7297_v3  ;;  %v1401_v22 = vrot.slane %v10497_v38, %v7297_v3  ;;  %v1405_v49 = vrot.slane %v10497_v38, %v7310_v60 }
 0x163   :  { %v1269_v24 = vpop.permute.xlu0 %1268  ;;  %2509 = vmatprep.subr.mxu1 %v1589_v61  ;;  %v1271_v11 = vpop.permute.xlu1 %1270  ;;  %v1471_v61 = vrot.slane %v7231_v47, %v6294_v27 }
 0x164   :  { %v1277_v37 = vsel %vm1274_vm1, %v10505_v62, %v1269_v24  ;;  %v1276_v5 = vsel %vm1274_vm1, %v1269_v24, %v1271_v11  ;;  %2510 = vmatpush2.msra.mxu1 %v1588_v30 }
 0x165   :  { %v1332_v31 = vmul.f32 %v1307_v40, %v1277_v37  ;;  %v1333_v12 = vmul.f32 %v1311_v39, %v1276_v5  ;;  %v1315_v37 = vrot.slane %v10502_v8, %v7297_v3  ;;  %v1319_v5 = vrot.slane %v10502_v8, %v7310_v60  ;;  %v10510_v8 = vld [vmem:[#allocation33_spill] sm:$0xff] }
 0x167   :  { %v1437_v62 = vpop.permute.xlu0 %1436  ;;  %v7312_v32 = vpop.permute.xlu1 %1438  ;;  %2522 = vmatprep.subr.mxu0 %v1333_v12 }
 0x168   :  { %10507 = vst [vmem:[#allocation22_spill] sm:$0xff] %v7312_v32  ;;  %v1451_v30 = vsel %vm1446_vm14, %v1435_v15, %v1437_v62  ;;  %v1450_v40 = vsel %vm1446_vm14, %v1437_v62, %v7312_v32  ;;  %2523 = vmatpush1.msra.mxu0 %v1332_v31  ;;  %v5944_v62 = vld [vmem:[#allocation8 + $0x8] sm:$0xff] }
 0x169   :  { %v1503_v39 = vmul.f32 %v1475_v13, %v1450_v40  ;;  %v1502_v55 = vmul.f32 %v1471_v61, %v1451_v30  ;;  %2524 = vmatprep.subr.mxu0 %v1247_v2  ;;  %v1229_v61 = vrot.slane %v10503_v54, %v7297_v3 }
 0x16a   :  { %2525 = vmatpush1.msra.mxu0 %v1246_v56  ;;  %v10509_v56 = vld [vmem:[#allocation26_spill] sm:$0xff] }
 0x16b   :  { %v1359_v25 = vpop.permute.xlu0 %1358  ;;  %2511 = vmatprep.subr.mxu1 %v1503_v39  ;;  %v1120_v12 = vpop.permute.xlu1 %1119  ;;  %v1164_v13 = vrot.slane %v10509_v56, %v7238_v4  ;;  %v1160_v31 = vrot.slane %v10509_v56, %v7254_v1  ;;  %v10511_v39 = vld [vmem:[#allocation29_spill] sm:$0xff] }
 0x16c   :  { %v1361_v15 = vsel %vm1360_vm0, %v1357_v29, %v1359_v25  ;;  %v1368_v24 = vsel %vm1360_vm0, %v1359_v25, %v10508_v16  ;;  %2512 = vmatpush2.msra.mxu1 %v1502_v55  ;;  %v1233_v29 = vrot.slane %v10503_v54, %v7310_v60  ;;  %v1131_v30 = vsel %vm1127_vm2, %v10510_v8, %v1120_v12  ;;  %v10512_v54 = vld [vmem:[#allocation25_spill] sm:$0xff] }
 0x16d   :  { %v1420_v38 = vmul.f32 %v1401_v22, %v1361_v15  ;;  %2514 = vmatmul.mubr.f32.vlgmr.msra.gmra.mxu1 %v7267_v53  ;;  %v1421_v2 = vmul.f32 %v1405_v49, %v1368_v24  ;;  %v1074_v55 = vrot.slane %v10511_v39, %v7254_v1  ;;  %v1078_v16 = vrot.slane %v10511_v39, %v7238_v4 }
 0x16e   :  { %5828 = vmatprep.mubr.msk.f32.mxu1 %vm2374_vm7, %v5944_v62  ;;  %v1249_v8 = vmul.f32 %v7097_v20, %v1233_v29  ;;  %v1185_v27 = vmul.f32 %v1160_v31, %v1131_v30  ;;  %v1248_v53 = vmul.f32 %v5945_v28, %v1229_v61  ;;  %v10515_v61 = vld [vmem:[#allocation40_spill] sm:$0xff] }
 0x16f   :  { %v1122_v40 = vpop.permute.xlu0 %1121  ;;  %2591 = vmatprep.subr.mxu1 %v1421_v2  ;;  %v1273_v22 = vpop.permute.xlu1 %1272 }
 0x170   :  { %v1130_v49 = vsel %vm1127_vm2, %v1120_v12, %v1122_v40  ;;  %v1275_v25 = vsel %vm1274_vm1, %v1271_v11, %v1273_v22  ;;  %v1282_v15 = vsel %vm1274_vm1, %v1273_v22, %v10512_v54  ;;  %2592 = vmatpush1.msra.mxu1 %v1420_v38  ;;  %v10513_v11 = vld [vmem:[#allocation37_spill] sm:$0xff]  ;;  %v1172_v54 = vrot.slane %v10509_v56, %v7310_v60 }
 0x171   :  { %v1334_v24 = vmul.f32 %v1315_v37, %v1275_v25  ;;  %v1335_v2 = vmul.f32 %v1319_v5, %v1282_v15  ;;  %v1186_v62 = vmul.f32 %v1164_v13, %v1130_v49  ;;  %v10514_v5 = vld [vmem:[#allocation31_spill] sm:$0xff]  ;;  %v1168_v49 = vrot.slane %v10509_v56, %v7297_v3  ;;  %v10517_v56 = vld [vmem:[#allocation34_spill] sm:$0xff] }
 0x172   :  { %v988_v20 = vrot.slane %v10514_v5, %v7254_v1  ;;  %v992_v28 = vrot.slane %v10514_v5, %v7238_v4 }
 0x173   :  { %v1034_v12 = vpop.permute.xlu0 %1033  ;;  %2593 = vmatprep.subr.mxu1 %v1335_v2  ;;  %v1036_v32 = vpop.permute.xlu1 %1035  ;;  %2526 = vmatprep.subr.mxu0 %v1186_v62  ;;  %v1082_v62 = vrot.slane %v10511_v39, %v7297_v3 }
 0x174   :  { %v1045_v22 = vsel %vm1041_vm3, %v10513_v11, %v1034_v12  ;;  %v1044_v38 = vsel %vm1041_vm3, %v1034_v12, %v1036_v32  ;;  %2527 = vmatpush1.msra.mxu0 %v1185_v27  ;;  %2594 = vmatpush1.msra.mxu1 %v1334_v24  ;;  %v1086_v11 = vrot.slane %v10511_v39, %v7310_v60  ;;  %v10519_v39 = vld [vmem:[#allocation32_spill] sm:$0xff] }
 0x175   :  { %v1099_v37 = vmul.f32 %v1074_v55, %v1045_v22  ;;  %v1100_v13 = vmul.f32 %v1078_v16, %v1044_v38  ;;  %2595 = vmatprep.subr.mxu1 %v1249_v8  ;;  %v10516_v16 = vld [vmem:[#allocation30_spill] sm:$0xff]  ;;  %v906_v22 = vrot.slane %v10517_v56, %v7238_v4  ;;  %v902_v38 = vrot.slane %v10517_v56, %v7254_v1 }
 0x176   :  { %2596 = vmatpush1.msra.mxu1 %v1248_v53 }
 0x177   :  { %v948_v29 = vpop.permute.xlu0 %947  ;;  %v950_v31 = vpop.permute.xlu1 %949  ;;  %2528 = vmatprep.subr.mxu0 %v1100_v13 }
 0x178   :  { %v959_v30 = vsel %vm955_vm4, %v10515_v61, %v948_v29  ;;  %v958_v27 = vsel %vm955_vm4, %v948_v29, %v950_v31  ;;  %2529 = vmatpush1.msra.mxu0 %v1099_v37  ;;  %v10518_v37 = vld [vmem:[#allocation45_spill] sm:$0xff] }
 0x179   :  { %v1013_v55 = vmul.f32 %v988_v20, %v959_v30  ;;  %v1014_v25 = vmul.f32 %v992_v28, %v958_v27  ;;  %v996_v28 = vrot.slane %v10514_v5, %v7297_v3  ;;  %v1000_v27 = vrot.slane %v10514_v5, %v7310_v60 }
 0x17a   :  { %v914_v5 = vrot.slane %v10517_v56, %v7310_v60 }
 0x17b   :  { %v1124_v53 = vpop.permute.xlu0 %1123  ;;  %v862_v15 = vpop.permute.xlu1 %861  ;;  %2530 = vmatprep.subr.mxu0 %v1014_v25 }
 0x17c   :  { %v1128_v24 = vsel %vm1127_vm2, %v1124_v53, %v10516_v16  ;;  %v1129_v2 = vsel %vm1127_vm2, %v1122_v40, %v1124_v53  ;;  %2531 = vmatpush1.msra.mxu0 %v1013_v55  ;;  %v873_v20 = vsel %vm10369_vm5, %v10518_v37, %v862_v15 }
 0x17d   :  { %v1187_v8 = vmul.f32 %v1168_v49, %v1129_v2  ;;  %v1188_v12 = vmul.f32 %v1172_v54, %v1128_v24  ;;  %v10520_v54 = vld [vmem:[#allocation36_spill] sm:$0xff]  ;;  %v927_v16 = vmul.f32 %v902_v38, %v873_v20 }
 0x17e   :  { %v820_v53 = vrot.slane %v10520_v54, %v7238_v4 }
 0x17f   :  { %v864_v40 = vpop.permute.xlu0 %863  ;;  %2597 = vmatprep.subr.mxu1 %v1188_v12  ;;  %v1038_v13 = vpop.permute.xlu1 %1037 }
 0x180   :  { %v872_v29 = vsel %vm10369_vm5, %v862_v15, %v864_v40  ;;  %v1042_v61 = vsel %vm1041_vm3, %v1038_v13, %v10519_v39  ;;  %v1043_v30 = vsel %vm1041_vm3, %v1036_v32, %v1038_v13  ;;  %2598 = vmatpush1.msra.mxu1 %v1187_v8  ;;  %v816_v15 = vrot.slane %v10520_v54, %v7254_v1  ;;  %v10521_v8 = vld [vmem:[#allocation35_spill] sm:$0xff] }
 0x181   :  { %v1101_v55 = vmul.f32 %v1082_v62, %v1043_v30  ;;  %v1102_v49 = vmul.f32 %v1086_v11, %v1042_v61  ;;  %v928_v25 = vmul.f32 %v906_v22, %v872_v29  ;;  %v910_v32 = vrot.slane %v10517_v56, %v7297_v3  ;;  %v10522_v56 = vld [vmem:[#allocation41_spill] sm:$0xff]  ;;  %v10523_v61 = vld [vmem:[#allocation38_spill] sm:$0xff] }
 0x182   :  { %v734_v20 = vrot.slane %v10522_v56, %v7238_v4  ;;  %v841_v13 = vmul.f32 %v816_v15, %v7067_v44 }
 0x183   :  { %v778_v24 = vpop.permute.xlu0 %777  ;;  %2599 = vmatprep.subr.mxu1 %v1102_v49  ;;  %v952_v2 = vpop.permute.xlu1 %951  ;;  %2532 = vmatprep.subr.mxu0 %v928_v25  ;;  %v828_v25 = vrot.slane %v10520_v54, %v7310_v60 }
 0x184   :  { %v7413_v62 = vsel %vm783_vm6, %v7041_v18, %v778_v24  ;;  %v956_v12 = vsel %vm955_vm4, %v952_v2, %v10521_v8  ;;  %v957_v11 = vsel %vm955_vm4, %v950_v31, %v952_v2  ;;  %2533 = vmatpush1.msra.mxu0 %v927_v16  ;;  %2600 = vmatpush1.msra.mxu1 %v1101_v55 }
 0x185   :  { %v1015_v22 = vmul.f32 %v996_v28, %v957_v11  ;;  %v1016_v38 = vmul.f32 %v1000_v27, %v956_v12  ;;  %v842_v37 = vmul.f32 %v820_v53, %v7413_v62  ;;  %v730_v18 = vrot.slane %v10522_v56, %v7254_v1 }
 0x186   :  { %v824_v31 = vrot.slane %v10520_v54, %v7297_v3  ;;  %v738_v11 = vrot.slane %v10522_v56, %v7297_v3 }
 0x187   :  { %v692_v29 = vpop.permute.xlu0 %691  ;;  %2601 = vmatprep.subr.mxu1 %v1016_v38  ;;  %v866_v39 = vpop.permute.xlu1 %865  ;;  %2534 = vmatprep.subr.mxu0 %v842_v37  ;;  %v755_v53 = vmul.f32 %v730_v18, %v7089_v57  ;;  %v10526_v38 = vld [vmem:[#allocation48_spill] sm:$0xff] }
 0x188   :  { %v7431_v28 = vsel %vm697_vm8, %v7076_v63, %v692_v29  ;;  %v870_v30 = vsel %vm10369_vm5, %v866_v39, %v10523_v61  ;;  %v871_v44 = vsel %vm10369_vm5, %v864_v40, %v866_v39  ;;  %2535 = vmatpush1.msra.mxu0 %v841_v13  ;;  %2602 = vmatpush1.msra.mxu1 %v1015_v22  ;;  %v10524_v63 = vld [vmem:[#allocation44_spill] sm:$0xff]  ;;  %v10527_v61 = vld [vmem:[#allocation46_spill] sm:$0xff] }
 0x189   :  { %v929_v27 = vmul.f32 %v910_v32, %v871_v44  ;;  %v930_v55 = vmul.f32 %v914_v5, %v870_v30  ;;  %v756_v49 = vmul.f32 %v734_v20, %v7431_v28  ;;  %v648_v15 = vrot.slane %v10524_v63, %v7238_v4  ;;  %v10525_v5 = vld [vmem:[#allocation42_spill] sm:$0xff] }
 0x18a   :  { %v644_v16 = vrot.slane %v10524_v63, %v7254_v1  ;;  %v562_v37 = vrot.slane %v10526_v38, %v7238_v4  ;;  %v558_v20 = vrot.slane %v10526_v38, %v7254_v1  ;;  %v2126_v39 = vrot.slane %v6894_v36, %v7310_v60 }
 0x18b   :  { %v606_v2 = vpop.permute.xlu0 %605  ;;  %2603 = vmatprep.subr.mxu1 %v930_v55  ;;  %v780_v40 = vpop.permute.xlu1 %779  ;;  %2536 = vmatprep.subr.mxu0 %v756_v49  ;;  %v656_v55 = vrot.slane %v10524_v63, %v7310_v60 }
 0x18c   :  { %v7449_v32 = vsel %vm611_vm9, %v7078_v50, %v606_v2  ;;  %v7454_v54 = vsel %vm783_vm6, %v780_v40, %v10525_v5  ;;  %v7458_v57 = vsel %vm783_vm6, %v778_v24, %v780_v40  ;;  %2537 = vmatpush1.msra.mxu0 %v755_v53  ;;  %2604 = vmatpush1.msra.mxu1 %v929_v27 }
 0x18d   :  { %v843_v8 = vmul.f32 %v824_v31, %v7458_v57  ;;  %v844_v12 = vmul.f32 %v828_v25, %v7454_v54  ;;  %v742_v50 = vrot.slane %v10522_v56, %v7310_v60  ;;  %v670_v22 = vmul.f32 %v648_v15, %v7449_v32  ;;  %v10528_v25 = vld [vmem:[#allocation51_spill] sm:$0xff]  ;;  %v10535_v15 = vld [vmem:[#allocation50_spill] sm:$0xff] }
 0x18e   :  { %v669_v24 = vmul.f32 %v644_v16, %v7108_v14  ;;  %v2065_v31 = vrot.slane %v6898_v46, %v7310_v60  ;;  %v476_v53 = vrot.slane %v10528_v25, %v7238_v4  ;;  %v583_v16 = vmul.f32 %v558_v20, %v7133_v33 }
 0x18f   :  { %v520_v13 = vpop.permute.xlu0 %519  ;;  %2605 = vmatprep.subr.mxu1 %v844_v12  ;;  %v694_v18 = vpop.permute.xlu1 %693  ;;  %2538 = vmatprep.subr.mxu0 %v670_v22  ;;  %v472_v40 = vrot.slane %v10528_v25, %v7254_v1  ;;  %v570_v20 = vrot.slane %v10526_v38, %v7310_v60 }
 0x190   :  { %v7479_v56 = vsel %vm10262_vm10, %v7120_v48, %v520_v13  ;;  %v7484_v14 = vsel %vm697_vm8, %v694_v18, %v10527_v61  ;;  %v7488_v30 = vsel %vm697_vm8, %v692_v29, %v694_v18  ;;  %2606 = vmatpush1.msra.mxu1 %v843_v8  ;;  %2539 = vmatpush1.msra.mxu0 %v669_v24  ;;  %v10530_v61 = vld [vmem:[#allocation54_spill] sm:$0xff] }
 0x191   :  { %v757_v44 = vmul.f32 %v738_v11, %v7488_v30  ;;  %v758_v27 = vmul.f32 %v742_v50, %v7484_v14  ;;  %v652_v48 = vrot.slane %v10524_v63, %v7297_v3  ;;  %v584_v49 = vmul.f32 %v562_v37, %v7479_v56  ;;  %v10529_v50 = vld [vmem:[#allocation49_spill] sm:$0xff] }
 0x192   :  { %v2004_v29 = vrot.slane %v6900_v17, %v7310_v60 }
 0x193   :  { %v434_v5 = vpop.permute.xlu0 %433  ;;  %2607 = vmatprep.subr.mxu1 %v758_v27  ;;  %v608_v8 = vpop.permute.xlu1 %607  ;;  %2540 = vmatprep.subr.mxu0 %v584_v49  ;;  %v390_v27 = vrot.slane %v10530_v61, %v7238_v4  ;;  %v10531_v49 = vld [vmem:[#allocation57_spill] sm:$0xff] }
 0x194   :  { %v7513_v11 = vsel %vm439_vm11, %v7122_v51, %v434_v5  ;;  %v7518_v33 = vsel %vm611_vm9, %v608_v8, %v10529_v50  ;;  %v7522_v22 = vsel %vm611_vm9, %v606_v2, %v608_v8  ;;  %2608 = vmatpush1.msra.mxu1 %v757_v44  ;;  %2541 = vmatpush1.msra.mxu0 %v583_v16  ;;  %v10532_v44 = vld [vmem:[#allocation52_spill] sm:$0xff] }
 0x195   :  { %v671_v37 = vmul.f32 %v652_v48, %v7522_v22  ;;  %v672_v24 = vmul.f32 %v656_v55, %v7518_v33  ;;  %v566_v51 = vrot.slane %v10526_v38, %v7297_v3  ;;  %v498_v18 = vmul.f32 %v476_v53, %v7513_v11 }
 0x196   :  { %v497_v48 = vmul.f32 %v472_v40, %v7150_v23  ;;  %v386_v55 = vrot.slane %v10530_v61, %v7254_v1  ;;  %v300_v16 = vrot.slane %v10531_v49, %v7254_v1  ;;  %v484_v2 = vrot.slane %v10528_v25, %v7310_v60 }
 0x197   :  { %v348_v38 = vpop.permute.xlu0 %347  ;;  %2609 = vmatprep.subr.mxu1 %v672_v24  ;;  %v522_v53 = vpop.permute.xlu1 %521  ;;  %2542 = vmatprep.subr.mxu0 %v498_v18  ;;  %v7579_v47 = vmul.f32 %v2004_v29, %v10535_v15  ;;  %v398_v15 = vrot.slane %v10530_v61, %v7310_v60 }
 0x198   :  { %v7547_v50 = vsel %vm10263_vm12, %v7160_v52, %v348_v38  ;;  %v7552_v23 = vsel %vm10262_vm10, %v522_v53, %v10532_v44  ;;  %v7556_v40 = vsel %vm10262_vm10, %v520_v13, %v522_v53  ;;  %2610 = vmatpush1.msra.mxu1 %v671_v37  ;;  %2543 = vmatpush1.msra.mxu0 %v497_v48  ;;  %v10533_v53 = vld [vmem:[#allocation43_spill] sm:$0xff]  ;;  %vm10536_vm10 = vcmp.lt.s32.totalorder %v6261_v10, 71 }
 0x199   :  { %v585_v24 = vmul.f32 %v566_v51, %v7556_v40  ;;  %v586_v8 = vmul.f32 %v570_v20, %v7552_v23  ;;  %v480_v52 = vrot.slane %v10528_v25, %v7297_v3  ;;  %v214_v44 = vrot.slane %v6828_v43, %v7254_v1  ;;  %v10534_v25 = vld [vmem:[#allocation47_spill] sm:$0xff] }
 0x19a   :  { %v412_v18 = vmul.f32 %v390_v27, %v7547_v50  ;;  %v304_v37 = vrot.slane %v10531_v49, %v7238_v4  ;;  %v411_v51 = vmul.f32 %v386_v55, %v7173_v6  ;;  %v7573_v12 = vmul.f32 %v2126_v39, %v10533_v53  ;;  %v10537_v13 = vld [vmem:[#allocation55_spill] sm:$0xff] }
 0x19b   :  { %v262_v20 = vpop.permute.xlu0 %261  ;;  %2611 = vmatprep.subr.mxu1 %v586_v8  ;;  %v436_v48 = vpop.permute.xlu1 %435  ;;  %v7576_v63 = vmul.f32 %v2065_v31, %v10534_v25  ;;  %v2114_v55 = vrot.slane %v6894_v36, %v7254_v1  ;;  %v10541_v25 = vld [vmem:[#allocation58_spill] sm:$0xff] }
 0x19c   :  { %v7584_v27 = vsel %vm10536_vm10, %v7162_v35, %v262_v20  ;;  %v7589_v6 = vsel %vm439_vm11, %v436_v48, %v10537_v13  ;;  %v7593_v39 = vsel %vm439_vm11, %v434_v5, %v436_v48  ;;  %2544 = vmatprep.subr.mxu0 %v412_v18  ;;  %2612 = vmatpush1.msra.mxu1 %v585_v24  ;;  %v10538_v24 = vld [vmem:[#allocation53_spill] sm:$0xff]  ;;  %vm10540_vm10 = vcmp.lt.s32.totalorder %v6261_v10, 72 }
 0x19d   :  { %v499_v31 = vmul.f32 %v480_v52, %v7593_v39  ;;  %2545 = vmatpush1.msra.mxu0 %v411_v51  ;;  %v500_v29 = vmul.f32 %v484_v2, %v7589_v6  ;;  %v394_v35 = vrot.slane %v10530_v61, %v7297_v3  ;;  %v326_v8 = vmul.f32 %v304_v37, %v7584_v27 }
 0x19e   :  { %v218_v5 = vrot.slane %v6828_v43, %v7238_v4  ;;  %v10539_v52 = vrot.slane %v6918_v0, %v7310_v60  ;;  %v325_v2 = vmul.f32 %v300_v16, %v7191_v19 }
 0x19f   :  { %v176_v51 = vpop.permute.xlu0 %175  ;;  %2613 = vmatprep.subr.mxu1 %v500_v29  ;;  %v350_v48 = vpop.permute.xlu1 %349  ;;  %2546 = vmatprep.subr.mxu0 %v326_v8  ;;  %v239_v8 = vmul.f32 %v214_v44, %v7205_v26  ;;  %v10545_v26 = vld [vmem:[#allocation61_spill] sm:$0xff] }
 0x1a0   :  { %v7610_v13 = vmul.f32 %v10539_v52, %v10538_v24  ;;  %v7622_v53 = vsel %vm10540_vm10, %v7199_v45, %v176_v51  ;;  %v7627_v19 = vsel %vm10263_vm12, %v350_v48, %v10541_v25  ;;  %v7631_v16 = vsel %vm10263_vm12, %v348_v38, %v350_v48  ;;  %2614 = vmatpush1.msra.mxu1 %v499_v31 }
 0x1a1   :  { %v413_v24 = vmul.f32 %v394_v35, %v7631_v16  ;;  %2547 = vmatpush1.msra.mxu0 %v325_v2  ;;  %v414_v45 = vmul.f32 %v398_v15, %v7627_v19  ;;  %v312_v52 = vrot.slane %v10531_v49, %v7310_v60  ;;  %v308_v25 = vrot.slane %v10531_v49, %v7297_v3  ;;  %v10542_v49 = vld [vmem:[#allocation56_spill] sm:$0xff] }
 0x1a2   :  { %v240_v37 = vmul.f32 %v218_v5, %v7622_v53  ;;  %v132_v38 = vrot.slane %v6861_v41, %v7238_v4  ;;  %v2118_v31 = vrot.slane %v6894_v36, %v7238_v4  ;;  %v2057_v48 = vrot.slane %v6898_v46, %v7238_v4 }
 0x1a3   :  { %v89_v15 = vpop.permute.xlu0 %88  ;;  %2615 = vmatprep.subr.mxu1 %v414_v45  ;;  %v264_v2 = vpop.permute.xlu1 %263  ;;  %v10543_v5 = vrot.slane %v6928_v21, %v7310_v60  ;;  %vm10546_vm10 = vcmp.lt.s32.totalorder %v6261_v10, 71  ;;  %v226_v35 = vrot.slane %v6828_v43, %v7310_v60 }
 0x1a4   :  { %v7660_v61 = vsel %vm96_vm15, %v7235_v9, %v89_v15  ;;  %v7665_v44 = vsel %vm10546_vm10, %v264_v2, %v10545_v26  ;;  %vm10548_vm12 = vmmov %vm10546_vm10  ;;  %2548 = vmatprep.subr.mxu0 %v240_v37  ;;  %2616 = vmatpush1.msra.mxu1 %v413_v24  ;;  %v1996_v37 = vrot.slane %v6900_v17, %v7238_v4 }
 0x1a5   :  { %v7655_v29 = vmul.f32 %v10543_v5, %v10542_v49  ;;  %10544 = vst [vmem:[#allocation28_spill] sm:$0xff] %v7660_v61  ;;  %10547 = vst [vmem:[#allocation20_spill] sm:$0xff] %v7665_v44  ;;  %v7669_v45 = vsel %vm10548_vm12, %v262_v20, %v264_v2  ;;  %2549 = vmatpush1.msra.mxu0 %v239_v8  ;;  %v222_v5 = vrot.slane %v6828_v43, %v7297_v3 }
 0x1a6   :  { %v328_v9 = vmul.f32 %v312_v52, %v7665_v44  ;;  %v327_v26 = vmul.f32 %v308_v25, %v7669_v45  ;;  %v154_v18 = vmul.f32 %v132_v38, %v7660_v61  ;;  %v2140_v20 = vmul.f32 %v2118_v31, %v7458_v57  ;;  %v10550_v38 = vld [vmem:[#allocation63_spill] sm:$0xff] }
 0x1a7   :  { %v10549_v24 = vrot.slane %v6861_v41, %v7254_v1  ;;  %v178_v2 = vpop.permute.xlu0 %177  ;;  %v136_v52 = vrot.slane %v6861_v41, %v7297_v3  ;;  %v91_v43 = vpop.permute.xlu1 %90  ;;  %v140_v25 = vrot.slane %v6861_v41, %v7310_v60  ;;  %v1935_v57 = vrot.slane %v6918_v0, %v7238_v4 }
 0x1a8   :  { %2617 = vmatprep.subr.mxu1 %v328_v9  ;;  %vm10551_vm12 = vcmp.lt.s32.totalorder %v6261_v10, 72  ;;  %v7704_v9 = vsel %vm96_vm15, %v89_v15, %v91_v43  ;;  %2550 = vmatprep.subr.mxu0 %v154_v18  ;;  %v2139_v41 = vmul.f32 %v2114_v55, %v7413_v62  ;;  %v2000_v49 = vrot.slane %v6900_v17, %v7297_v3 }
 0x1a9   :  { %v153_v8 = vmul.f32 %v10549_v24, %v7244_v7  ;;  %v7696_v31 = vsel %vm10551_vm12, %v178_v2, %v10550_v38  ;;  %vm10552_vm10 = vmmov %vm10551_vm12  ;;  %v2079_v24 = vmul.f32 %v2057_v48, %v7488_v30  ;;  %v10553_v38 = vld [vmem:[#allocation69_spill] sm:$0xff]  ;;  %2618 = vmatpush1.msra.mxu1 %v327_v26  ;;  %v2018_v18 = vmul.f32 %v1996_v37, %v7522_v22 }
 0x1aa   :  { %v7700_v7 = vsel %vm10552_vm10, %v176_v51, %v178_v2  ;;  %v7714_v61 = vsel %vm96_vm15, %v91_v43, %v10553_v38  ;;  %v242_v51 = vmul.f32 %v226_v35, %v7696_v31  ;;  %v1874_v62 = vrot.slane %v6928_v21, %v7238_v4 }
 0x1ab   :  { %v241_v44 = vmul.f32 %v222_v5, %v7700_v7  ;;  %2551 = vmatpush1.msra.mxu0 %v153_v8  ;;  %v10554_v30 = vrot.slane %v6898_v46, %v7254_v1  ;;  %v1809_v15 = vrot.slane %v6940_v34, %v7254_v1  ;;  %v155_v48 = vmul.f32 %v136_v52, %v7704_v9  ;;  %v10555_v5 = vld [vmem:[#allocation59_spill] sm:$0xff]  ;;  %v7762_v38 = vpop.permute.xlu1 %1528 }
 0x1ac   :  { %2562 = vmatprep.subr.mxu0 %v2140_v20  ;;  %v10556_v35 = vrot.slane %v6940_v34, %v7310_v60  ;;  %2619 = vmatprep.subr.mxu1 %v242_v51  ;;  %v156_v22 = vmul.f32 %v140_v25, %v7714_v61  ;;  %v1957_v20 = vmul.f32 %v1935_v57, %v7556_v40  ;;  %v1527_v40 = vpop.permute.xlu0 %1526 }
 0x1ad   :  { %v2078_v55 = vmul.f32 %v10554_v30, %v7431_v28  ;;  %2563 = vmatpush2.msra.mxu0 %v2139_v41  ;;  %v1813_v28 = vrot.slane %v6940_v34, %v7238_v4  ;;  %v10557_v37 = vrot.slane %v6900_v17, %v7254_v1  ;;  %v1939_v2 = vrot.slane %v6918_v0, %v7297_v3 }
 0x1ae   :  { %v7731_v26 = vmul.f32 %v10556_v35, %v10555_v5  ;;  %2564 = vmatprep.subr.mxu0 %v2079_v24  ;;  %v1748_v52 = vrot.slane %v6956_v58, %v7254_v1  ;;  %2620 = vmatpush1.msra.mxu1 %v241_v44  ;;  %v1878_v43 = vrot.slane %v6928_v21, %v7297_v3 }
 0x1af   :  { %v2017_v8 = vmul.f32 %v10557_v37, %v7449_v32  ;;  %2565 = vmatpush2.msra.mxu0 %v2078_v55  ;;  %2621 = vmatprep.subr.mxu1 %v156_v22  ;;  %v1896_v25 = vmul.f32 %v1874_v62, %v7593_v39  ;;  %v1752_v17 = vrot.slane %v6956_v58, %v7238_v4  ;;  %v10567_v37 = vld [vmem:[#allocation28_spill] sm:$0xff] }
 0x1b0   :  { %2566 = vmatprep.subr.mxu0 %v2018_v18  ;;  %v10558_v32 = vrot.slane %v6894_v36, %v7297_v3  ;;  %v10559_v44 = vrot.slane %v6918_v0, %v7254_v1  ;;  %v1687_v41 = vrot.slane %v6966_v42, %v7254_v1  ;;  %2622 = vmatpush1.msra.mxu1 %v155_v48  ;;  %v10564_v48 = vld [vmem:[#allocation66_spill] sm:$0xff] }
 0x1b1   :  { %2567 = vmatpush2.msra.mxu0 %v2017_v8  ;;  %v1817_v39 = vrot.slane %v6940_v34, %v7297_v3  ;;  %2633 = vmatprep.subr.mxu1 %v7573_v12  ;;  %v1835_v36 = vmul.f32 %v1813_v28, %v7631_v16  ;;  %v10560_v0 = vrot.slane %v6898_v46, %v7297_v3  ;;  %v10562_v46 = vld [vmem:[#allocation62_spill] sm:$0xff]  ;;  %v10566_v28 = vld [vmem:[#allocation27_spill] sm:$0xff] }
 0x1b2   :  { %v2141_v57 = vmul.f32 %v10558_v32, %v7454_v54  ;;  %v1956_v24 = vmul.f32 %v10559_v44, %v7479_v56  ;;  %2568 = vmatprep.subr.mxu0 %v1957_v20  ;;  %v1691_v54 = vrot.slane %v6966_v42, %v7238_v4  ;;  %v10561_v51 = vrot.slane %v6928_v21, %v7254_v1 }
 0x1b3   :  { %v2080_v56 = vmul.f32 %v10560_v0, %v7484_v14  ;;  %v1626_v18 = vrot.slane %v6979_v59, %v7254_v1  ;;  %v1774_v12 = vmul.f32 %v1752_v17, %v7669_v45  ;;  %v1630_v16 = vrot.slane %v6979_v59, %v7238_v4  ;;  %v1441_v45 = vpop.permute.xlu0 %1440  ;;  %v10571_v17 = vld [vmem:[#allocation20_spill] sm:$0xff] }
 0x1b4   :  { %v1895_v34 = vmul.f32 %v10561_v51, %v7513_v11  ;;  %2569 = vmatpush2.msra.mxu0 %v1956_v24  ;;  %2634 = vmatpush2.msra.mxu1 %v2141_v57  ;;  %v10563_v14 = vrot.slane %v6956_v58, %v7310_v60  ;;  %v2019_v21 = vmul.f32 %v2000_v49, %v7518_v33 }
 0x1b5   :  { %2570 = vmatprep.subr.mxu0 %v1896_v25  ;;  %2635 = vmatprep.subr.mxu1 %v7576_v63  ;;  %v1834_v11 = vmul.f32 %v1809_v15, %v7547_v50  ;;  %v1756_v30 = vrot.slane %v6956_v58, %v7297_v3  ;;  %v1695_v63 = vrot.slane %v6966_v42, %v7297_v3  ;;  %v10565_v15 = vld [vmem:[#allocation60_spill] sm:$0xff] }
 0x1b6   :  { %v1776_v62 = vmul.f32 %v10563_v14, %v10562_v46  ;;  %2571 = vmatpush2.msra.mxu0 %v1895_v34  ;;  %2636 = vmatpush2.msra.mxu1 %v2080_v56  ;;  %v1713_v55 = vmul.f32 %v1691_v54, %v7700_v7  ;;  %v1569_v5 = vrot.slane %v10564_v48, %v7238_v4  ;;  %v10572_v54 = vld [vmem:[#allocation67_spill] sm:$0xff]  ;;  %v10573_v56 = vld [vmem:[#allocation70_spill] sm:$0xff] }
 0x1b7   :  { %2637 = vmatprep.subr.mxu1 %v7579_v47  ;;  %2572 = vmatprep.subr.mxu0 %v1835_v36  ;;  %v1958_v33 = vmul.f32 %v1939_v2, %v7552_v23  ;;  %v1773_v50 = vmul.f32 %v1748_v52, %v7584_v27  ;;  %v1534_v58 = vsel %vm1532_vm13, %v1527_v40, %v7762_v38  ;;  %v1443_v47 = vpop.permute.xlu1 %1442  ;;  %v10568_v2 = vld [vmem:[#allocation22_spill] sm:$0xff]  ;;  %v10576_v14 = vld [vmem:[#allocation19_spill] sm:$0xff] }
 0x1b8   :  { %2573 = vmatpush2.msra.mxu0 %v1834_v11  ;;  %2638 = vmatpush2.msra.mxu1 %v2019_v21  ;;  %v1565_v49 = vrot.slane %v10564_v48, %v7254_v1  ;;  %v1652_v7 = vmul.f32 %v1630_v16, %v7704_v9  ;;  %v1483_v23 = vrot.slane %v10565_v15, %v7238_v4  ;;  %v10575_v16 = vld [vmem:[#allocation16_spill] sm:$0xff]  ;;  %v6091_v11 = vmov 1  }
 0x1b9   :  { %2574 = vmatprep.subr.mxu0 %v1774_v12  ;;  %2639 = vmatprep.subr.mxu1 %v7610_v13  ;;  %v1897_v27 = vmul.f32 %v1878_v43, %v7589_v6  ;;  %v1712_v35 = vmul.f32 %v1687_v41, %v7622_v53  ;;  %v1448_v22 = vsel %vm1446_vm14, %v1441_v45, %v1443_v47  ;;  %v1531_v43 = vpop.permute.xlu0 %1530 }
 0x1ba   :  { %2575 = vmatpush2.msra.mxu0 %v1773_v50  ;;  %2640 = vmatpush2.msra.mxu1 %v1958_v33  ;;  %v1634_v20 = vrot.slane %v6979_v59, %v7297_v3  ;;  %v1535_v13 = vsel %vm1532_vm13, %v10566_v28, %v1527_v40  ;;  %v1591_v9 = vmul.f32 %v1569_v5, %v1534_v58 }
 0x1bb   :  { %2576 = vmatprep.subr.mxu0 %v1713_v55  ;;  %2641 = vmatprep.subr.mxu1 %v7655_v29  ;;  %v1836_v6 = vmul.f32 %v1817_v39, %v7627_v19  ;;  %v1651_v53 = vmul.f32 %v1626_v18, %v10567_v37  ;;  %v1479_v8 = vrot.slane %v10565_v15, %v7254_v1  ;;  %v10569_v29 = vld [vmem:[#allocation65_spill] sm:$0xff]  ;;  %v1445_v41 = vpop.permute.xlu1 %1444 }
 0x1bc   :  { %2577 = vmatpush2.msra.mxu0 %v1712_v35  ;;  %2642 = vmatpush2.msra.mxu1 %v1897_v27  ;;  %v1449_v52 = vsel %vm1446_vm14, %v10568_v2, %v1441_v45  ;;  %v1505_v40 = vmul.f32 %v1483_v23, %v1448_v22  ;;  %v10570_v19 = vrot.slane %v6966_v42, %v7310_v60 }
 0x1bd   :  { %2578 = vmatprep.subr.mxu0 %v1652_v7  ;;  %2643 = vmatprep.subr.mxu1 %v7731_v26  ;;  %v1775_v32 = vmul.f32 %v1756_v30, %v10571_v17  ;;  %v1590_v57 = vmul.f32 %v1565_v49, %v1535_v13  ;;  %v1573_v44 = vrot.slane %v10564_v48, %v7297_v3  ;;  %v6092_v30 = vmov 2  }
 0x1be   :  { %v1715_v25 = vmul.f32 %v10570_v19, %v10569_v29  ;;  %2579 = vmatpush2.msra.mxu0 %v1651_v53  ;;  %2644 = vmatpush2.msra.mxu1 %v1836_v6  ;;  %v1533_v24 = vsel %vm1532_vm13, %v7762_v38, %v1531_v43  ;;  %v1487_v26 = vrot.slane %v10565_v15, %v7297_v3 }
 0x1bf   :  { %2580 = vmatprep.subr.mxu0 %v1591_v9  ;;  %2645 = vmatprep.subr.mxu1 %v1776_v62  ;;  %v1577_v42 = vrot.slane %v10564_v48, %v7310_v60  ;;  %v1714_v39 = vmul.f32 %v1695_v63, %v7696_v31  ;;  %v1504_v36 = vmul.f32 %v1479_v8, %v1449_v52 }
 0x1c0   :  { %v1540_v0 = vsel %vm1532_vm13, %v1531_v43, %v10572_v54  ;;  %2581 = vmatpush2.msra.mxu0 %v1590_v57  ;;  %2646 = vmatpush2.msra.mxu1 %v1775_v32  ;;  %v1447_v38 = vsel %vm1446_vm14, %v1443_v47, %v1445_v41  ;;  %v10574_v51 = vrot.slane %v6979_v59, %v7310_v60 }
 0x1c1   :  { %2582 = vmatprep.subr.mxu0 %v1505_v40  ;;  %2647 = vmatprep.subr.mxu1 %v1715_v25  ;;  %v1491_v31 = vrot.slane %v10565_v15, %v7310_v60  ;;  %v1653_v18 = vmul.f32 %v1634_v20, %v7714_v61  ;;  %v1592_v12 = vmul.f32 %v1573_v44, %v1533_v24  ;;  %v5946_v61 = vld [vmem:[#allocation9] sm:$0xff] }
 0x1c2   :  { %v1654_v34 = vmul.f32 %v10574_v51, %v10573_v56  ;;  %v1454_v46 = vsel %vm1446_vm14, %v1445_v41, %v10575_v16  ;;  %2583 = vmatpush2.msra.mxu0 %v1504_v36  ;;  %2648 = vmatpush2.msra.mxu1 %v1714_v39  ;;  %v1593_v62 = vmul.f32 %v1577_v42, %v1540_v0 }
 0x1c3   :  { %2585 = vmatmul.mubr.f32.vlgmr.msra.gmra.mxu0 %v10576_v14  ;;  %v1506_v21 = vmul.f32 %v1487_v26, %v1447_v38  ;;  %v1507_v59 = vmul.f32 %v1491_v31, %v1454_v46  ;;  %5865 = vset.pattern.permute.xlu1 %v6091_v11 }
 0x1c4   :  { %2649 = vmatprep.subr.mxu1 %v1654_v34  ;;  %2935 = vperm.xlu1 %5865, %v5946_v61  }
 0x1c5   :  { %2650 = vmatpush2.msra.mxu1 %v1653_v18  ;;  %5866 = vset.pattern.permute.xlu0 %v6092_v30 }
 0x1c6   :  { %2651 = vmatprep.subr.mxu1 %v1593_v62  ;;  %2947 = vperm.xlu0 %5866, %v5946_v61  }
 0x1c7   :  { %2652 = vmatpush2.msra.mxu1 %v1592_v12  ;;  %v7857_v63 = vpop.permute.xlu0 %2371 }
 0x1c8   :  { %2653 = vmatprep.subr.mxu1 %v1507_v59 }
 0x1c9   :  { %2654 = vmatpush2.msra.mxu1 %v1506_v21 }
 0x1ca   :  { %2656 = vmatmul.mubr.f32.vlgmr.msra.gmra.mxu1 %v10576_v14 }
 0x21d   :  { %v2444_v45 = vpop.f32.mrf.mxu0 }
 0x21e   :  { %v7860_v55 = vadd.f32 %v2444_v45, %v7857_v63 }
 0x21f   :  { %v2446_v48 = vpop.f32.mrf.mxu0 }
 0x220   :  { %v2662_v5 = vand.u32 2147483647, %v7860_v55  ;;  %v7864_v33 = vadd.f32 %v2446_v48, %v7857_v63  ;;  %vm2830_vm10 = vcmp.ge.f32.partialorder %v7860_v55, 0.0 }
 0x222   :  { %v2670_v50 = vmul.f32 0.70710677, %v2662_v5  ;;  %v2663_v58 = vand.u32 2147483647, %v7864_v33  ;;  %vm2831_vm12 = vcmp.ge.f32.partialorder %v7864_v33, 0.0 }
 0x224   :  { %v2678_v49 = vmul.f32 0.3275911, %v2670_v50  ;;  %v2671_v47 = vmul.f32 0.70710677, %v2663_v58  ;;  %v2782_v20 = vsub.f32 0.0, %v2670_v50 }
 0x226   :  { %v2686_v7 = vadd.f32 1.0, %v2678_v49  ;;  %v2679_v15 = vmul.f32 0.3275911, %v2671_v47  ;;  %v2783_v9 = vsub.f32 0.0, %v2671_v47  ;;  %v2790_v53 = vmul.f32 %v2782_v20, %v2670_v50 }
 0x228   :  { %5870 = vrcp.f32 %v2686_v7  ;;  %v2687_v23 = vadd.f32 1.0, %v2679_v15  ;;  %v2791_v43 = vmul.f32 %v2783_v9, %v2671_v47  ;;  %v2798_v32 = vmul.f32 1.442695, %v2790_v53 }
 0x22a   :  { %5872 = vrcp.f32 %v2687_v23  ;;  %v2800_v24 = vmul.f32 1.442695, %v2791_v43 }
 0x22d   :  { %v2515_v27 = vpop.f32.mrf.mxu1 }
 0x22e   :  { %v7868_v35 = vadd.f32 %v2515_v27, %v7857_v63 }
 0x22f   :  { %v2517_v22 = vpop.f32.mrf.mxu1 }
 0x230   :  { %v2664_v28 = vand.u32 2147483647, %v7868_v35  ;;  %v7872_v13 = vadd.f32 %v2517_v22, %v7857_v63 }
 0x232   :  { %v2672_v6 = vmul.f32 0.70710677, %v2664_v28  ;;  %v2665_v37 = vand.u32 2147483647, %v7872_v13 }
 0x234   :  { %v2680_v8 = vmul.f32 0.3275911, %v2672_v6  ;;  %v2673_v2 = vmul.f32 0.70710677, %v2665_v37  ;;  %v2784_v54 = vsub.f32 0.0, %v2672_v6 }
 0x235   :  { %v5871_v52 = vpop.eup %5870 }
 0x236   :  { %v2710_v40 = vmul.f32 1.0614054, %v5871_v52  ;;  %v2688_v29 = vadd.f32 1.0, %v2680_v8  ;;  %v2681_v19 = vmul.f32 0.3275911, %v2673_v2  ;;  %v2785_v51 = vsub.f32 0.0, %v2673_v2 }
 0x237   :  { %v5873_v25 = vpop.eup %5872  ;;  %v2792_v31 = vmul.f32 %v2784_v54, %v2672_v6 }
 0x238   :  { %v2718_v17 = vadd.f32 -1.4531521, %v2710_v40  ;;  %5874 = vrcp.f32 %v2688_v29  ;;  %v2689_v57 = vadd.f32 1.0, %v2681_v19  ;;  %v2711_v44 = vmul.f32 1.0614054, %v5873_v25 }
 0x239   :  { %v2793_v14 = vmul.f32 %v2785_v51, %v2673_v2  ;;  %v2802_v59 = vmul.f32 1.442695, %v2792_v31  ;;  %v2856_v31 = vmul.f32 0.5, %v7868_v35 }
 0x23a   :  { %v2726_v26 = vmul.f32 %v5871_v52, %v2718_v17  ;;  %v2719_v41 = vadd.f32 -1.4531521, %v2711_v44  ;;  %5876 = vrcp.f32 %v2689_v57 }
 0x23b   :  { %5878 = vpow2.f32 %v2798_v32  ;;  %v2804_v50 = vmul.f32 1.442695, %v2793_v14 }
 0x23c   :  { %v2734_v42 = vadd.f32 1.4214138, %v2726_v26  ;;  %v2727_v39 = vmul.f32 %v5873_v25, %v2719_v41  ;;  %5880 = vpow2.f32 %v2800_v24  ;;  %v2855_v26 = vmul.f32 0.5, %v7864_v33 }
 0x23d   :  { %5882 = vpow2.f32 %v2802_v59 }
 0x23e   :  { %v2742_v36 = vmul.f32 %v5871_v52, %v2734_v42  ;;  %v2735_v0 = vadd.f32 1.4214138, %v2727_v39  ;;  %5884 = vpow2.f32 %v2804_v50 }
 0x240   :  { %v2750_v38 = vadd.f32 -0.28449672, %v2742_v36  ;;  %v2743_v56 = vmul.f32 %v5873_v25, %v2735_v0  ;;  %v2854_v36 = vmul.f32 0.5, %v7860_v55 }
 0x242   :  { %v2758_v34 = vmul.f32 %v5871_v52, %v2750_v38  ;;  %v2751_v18 = vadd.f32 -0.28449672, %v2743_v56 }
 0x244   :  { %v2766_v12 = vadd.f32 0.2548296, %v2758_v34  ;;  %v2759_v46 = vmul.f32 %v5873_v25, %v2751_v18 }
 0x245   :  { %v5875_v16 = vpop.eup %5874 }
 0x246   :  { %v2774_v62 = vmul.f32 %v5871_v52, %v2766_v12  ;;  %v2712_v21 = vmul.f32 1.0614054, %v5875_v16  ;;  %v2767_v11 = vadd.f32 0.2548296, %v2759_v46 }
 0x247   :  { %v5877_v61 = vpop.eup %5876 }
 0x248   :  { %v2720_v30 = vadd.f32 -1.4531521, %v2712_v21  ;;  %v5879_v45 = vpop.eup %5878  ;;  %v2775_v48 = vmul.f32 %v5873_v25, %v2767_v11  ;;  %v2713_v5 = vmul.f32 1.0614054, %v5877_v61 }
 0x249   :  { %v5881_v58 = vpop.eup %5880  ;;  %v2814_v49 = vmul.f32 %v5879_v45, %v2774_v62  ;;  %v2857_v62 = vmul.f32 0.5, %v7872_v13 }
 0x24a   :  { %v2728_v47 = vmul.f32 %v5875_v16, %v2720_v30  ;;  %v2815_v7 = vmul.f32 %v5881_v58, %v2775_v48  ;;  %v2721_v15 = vadd.f32 -1.4531521, %v2713_v5  ;;  %v5883_v17 = vpop.eup %5882 }
 0x24b   :  { %v2822_v20 = vsub.f32 1.0, %v2814_v49  ;;  %v5885_v42 = vpop.eup %5884 }
 0x24c   :  { %v2736_v23 = vadd.f32 1.4214138, %v2728_v47  ;;  %v2823_v27 = vsub.f32 1.0, %v2815_v7  ;;  %v2729_v22 = vmul.f32 %v5877_v61, %v2721_v15 }
 0x24d   :  { %v2838_v8 = vsub.f32 0.0, %v2822_v20 }
 0x24e   :  { %v2744_v28 = vmul.f32 %v5875_v16, %v2736_v23  ;;  %v2737_v9 = vadd.f32 1.4214138, %v2729_v22  ;;  %v2839_v6 = vsub.f32 0.0, %v2823_v27 }
 0x24f   :  { %v2846_v19 = vsel %vm2830_vm10, %v2822_v20, %v2838_v8  ;;  %vm2833_vm10 = vcmp.ge.f32.partialorder %v7872_v13, 0.0 }
 0x250   :  { %v2752_v37 = vadd.f32 -0.28449672, %v2744_v28  ;;  %v2745_v53 = vmul.f32 %v5877_v61, %v2737_v9  ;;  %v2847_v43 = vsel %vm2831_vm12, %v2823_v27, %v2839_v6  ;;  %v2862_v24 = vadd.f32 1.0, %v2846_v19 }
 0x251   :  { %v2863_v32 = vadd.f32 1.0, %v2847_v43  ;;  %vm2832_vm12 = vcmp.ge.f32.partialorder %v7868_v35, 0.0 }
 0x252   :  { %v2760_v2 = vmul.f32 %v5875_v16, %v2752_v37  ;;  %v2753_v52 = vadd.f32 -0.28449672, %v2745_v53  ;;  %v7881_v56 = vmul.f32 %v2862_v24, %v2854_v36 }
 0x253   :  { %v7879_v54 = vmul.f32 %v2863_v32, %v2855_v26 }
 0x254   :  { %v2768_v40 = vadd.f32 0.2548296, %v2760_v2  ;;  %v2761_v29 = vmul.f32 %v5877_v61, %v2753_v52  ;;  %v2884_v14 = vmul.f32 %v7881_v56, %v7881_v56 }
 0x255   :  { %v2885_v33 = vmul.f32 %v7879_v54, %v7879_v54  ;;  %v2878_v46 = vadd.f32 %v7879_v54, %v7881_v56 }
 0x256   :  { %v2776_v25 = vmul.f32 %v5875_v16, %v2768_v40  ;;  %v2769_v57 = vadd.f32 0.2548296, %v2761_v29 }
 0x257   :  { %v2888_v11 = vadd.f32 %v2885_v33, %v2884_v14 }
 0x258   :  { %v2816_v44 = vmul.f32 %v5883_v17, %v2776_v25  ;;  %v2777_v41 = vmul.f32 %v5877_v61, %v2769_v57 }
 0x25a   :  { %v2824_v39 = vsub.f32 1.0, %v2816_v44  ;;  %v2817_v0 = vmul.f32 %v5885_v42, %v2777_v41 }
 0x25c   :  { %v2840_v38 = vsub.f32 0.0, %v2824_v39  ;;  %v2825_v51 = vsub.f32 1.0, %v2817_v0 }
 0x25e   :  { %v2848_v34 = vsel %vm2832_vm12, %v2824_v39, %v2840_v38  ;;  %v2841_v12 = vsub.f32 0.0, %v2825_v51 }
 0x25f   :  { %v2864_v18 = vadd.f32 1.0, %v2848_v34 }
 0x260   :  { %v2849_v16 = vsel %vm2833_vm10, %v2825_v51, %v2841_v12 }
 0x261   :  { %v7888_v55 = vmul.f32 %v2864_v18, %v2856_v31  ;;  %v2865_v21 = vadd.f32 1.0, %v2849_v16 }
 0x263   :  { %v2879_v35 = vadd.f32 %v2878_v46, %v7888_v55  ;;  %v2886_v59 = vmul.f32 %v7888_v55, %v7888_v55  ;;  %v7898_v61 = vmul.f32 %v2865_v21, %v2857_v62 }
 0x265   :  { %v2889_v30 = vadd.f32 %v2888_v11, %v2886_v59  ;;  %v2880_v45 = vadd.f32 %v2879_v35, %v7898_v61  ;;  %v2887_v48 = vmul.f32 %v7898_v61, %v7898_v61 }
 0x267   :  { %2881 = vadd.xlane.f32.xlu1 %v2880_v45  ;;  %v2890_v5 = vadd.f32 %v2889_v30, %v2887_v48 }
 0x269   :  { %2891 = vadd.xlane.f32.xlu0 %v2890_v5 }
 0x283   :  { %v2586_v50 = vpop.f32.mrf.mxu0 }
 0x284   :  { %v7904_v13 = vadd.f32 %v2586_v50, %v7857_v63 }
 0x285   :  { %v2588_v58 = vpop.f32.mrf.mxu0 }
 0x286   :  { %v2666_v49 = vand.u32 2147483647, %v7904_v13  ;;  %v7908_v47 = vadd.f32 %v2588_v58, %v7857_v63  ;;  %vm2834_vm12 = vcmp.ge.f32.partialorder %v7904_v13, 0.0 }
 0x288   :  { %v2674_v7 = vmul.f32 0.70710677, %v2666_v49  ;;  %v2667_v15 = vand.u32 2147483647, %v7908_v47  ;;  %vm2835_vm10 = vcmp.ge.f32.partialorder %v7908_v47, 0.0 }
 0x28a   :  { %v2657_v23 = vpop.f32.mrf.mxu1  ;;  %v2682_v27 = vmul.f32 0.3275911, %v2674_v7  ;;  %v2675_v22 = vmul.f32 0.70710677, %v2667_v15  ;;  %v2786_v25 = vsub.f32 0.0, %v2674_v7 }
 0x28b   :  { %v7912_v20 = vadd.f32 %v2657_v23, %v7857_v63 }
 0x28c   :  { %v2659_v28 = vpop.f32.mrf.mxu1  ;;  %v2690_v9 = vadd.f32 1.0, %v2682_v27  ;;  %v2683_v6 = vmul.f32 0.3275911, %v2675_v22  ;;  %v2787_v32 = vsub.f32 0.0, %v2675_v22  ;;  %v2794_v57 = vmul.f32 %v2786_v25, %v2674_v7 }
 0x28d   :  { %v2668_v37 = vand.u32 2147483647, %v7912_v20  ;;  %v7916_v53 = vadd.f32 %v2659_v28, %v7857_v63 }
 0x28e   :  { %5886 = vrcp.f32 %v2690_v9  ;;  %v2691_v8 = vadd.f32 1.0, %v2683_v6  ;;  %v2795_v24 = vmul.f32 %v2787_v32, %v2675_v22  ;;  %v2806_v41 = vmul.f32 1.442695, %v2794_v57 }
 0x28f   :  { %v2676_v2 = vmul.f32 0.70710677, %v2668_v37  ;;  %v2669_v52 = vand.u32 2147483647, %v7916_v53 }
 0x290   :  { %5888 = vrcp.f32 %v2691_v8  ;;  %v2808_v38 = vmul.f32 1.442695, %v2795_v24 }
 0x291   :  { %v2684_v43 = vmul.f32 0.3275911, %v2676_v2  ;;  %v2677_v40 = vmul.f32 0.70710677, %v2669_v52  ;;  %v2788_v63 = vsub.f32 0.0, %v2676_v2 }
 0x293   :  { %v2692_v29 = vadd.f32 1.0, %v2684_v43  ;;  %v2685_v19 = vmul.f32 0.3275911, %v2677_v40  ;;  %v2789_v36 = vsub.f32 0.0, %v2677_v40  ;;  %v2796_v51 = vmul.f32 %v2788_v63, %v2676_v2 }
 0x295   :  { %5890 = vrcp.f32 %v2692_v29  ;;  %v2693_v17 = vadd.f32 1.0, %v2685_v19  ;;  %v2797_v33 = vmul.f32 %v2789_v36, %v2677_v40  ;;  %v2810_v14 = vmul.f32 1.442695, %v2796_v51 }
 0x297   :  { %5892 = vrcp.f32 %v2693_v17  ;;  %v2812_v45 = vmul.f32 1.442695, %v2797_v33  ;;  %v2859_v33 = vmul.f32 0.5, %v7908_v47 }
 0x298   :  { %5894 = vpow2.f32 %v2806_v41 }
 0x299   :  { %5896 = vpow2.f32 %v2808_v38 }
 0x29a   :  { %5898 = vpow2.f32 %v2810_v14 }
 0x29b   :  { %v5887_v44 = vpop.eup %5886  ;;  %5900 = vpow2.f32 %v2812_v45 }
 0x29c   :  { %v2714_v26 = vmul.f32 1.0614054, %v5887_v44 }
 0x29d   :  { %v5889_v42 = vpop.eup %5888 }
 0x29e   :  { %v2722_v39 = vadd.f32 -1.4531521, %v2714_v26  ;;  %v2715_v0 = vmul.f32 1.0614054, %v5889_v42 }
 0x2a0   :  { %v2730_v34 = vmul.f32 %v5887_v44, %v2722_v39  ;;  %v2723_v31 = vadd.f32 -1.4531521, %v2715_v0 }
 0x2a2   :  { %v5891_v18 = vpop.eup %5890  ;;  %v2738_v12 = vadd.f32 1.4214138, %v2730_v34  ;;  %v2731_v16 = vmul.f32 %v5889_v42, %v2723_v31 }
 0x2a3   :  { %v2716_v46 = vmul.f32 1.0614054, %v5891_v18 }
 0x2a4   :  { %v2746_v62 = vmul.f32 %v5887_v44, %v2738_v12  ;;  %v5893_v21 = vpop.eup %5892  ;;  %v2739_v35 = vadd.f32 1.4214138, %v2731_v16  ;;  %v2858_v12 = vmul.f32 0.5, %v7904_v13 }
 0x2a5   :  { %v2724_v59 = vadd.f32 -1.4531521, %v2716_v46  ;;  %v2717_v30 = vmul.f32 1.0614054, %v5893_v21  ;;  %v5895_v6 = vpop.eup %5894 }
 0x2a6   :  { %v2754_v11 = vadd.f32 -0.28449672, %v2746_v62  ;;  %v2747_v48 = vmul.f32 %v5889_v42, %v2739_v35  ;;  %v5897_v29 = vpop.eup %5896 }
 0x2a7   :  { %v2732_v5 = vmul.f32 %v5891_v18, %v2724_v59  ;;  %v2725_v58 = vadd.f32 -1.4531521, %v2717_v30 }
 0x2a8   :  { %v2762_v50 = vmul.f32 %v5887_v44, %v2754_v11  ;;  %v2755_v49 = vadd.f32 -0.28449672, %v2747_v48 }
 0x2a9   :  { %v2740_v7 = vadd.f32 1.4214138, %v2732_v5  ;;  %v2733_v23 = vmul.f32 %v5893_v21, %v2725_v58 }
 0x2aa   :  { %v2770_v15 = vadd.f32 0.2548296, %v2762_v50  ;;  %v2763_v27 = vmul.f32 %v5889_v42, %v2755_v49  ;;  %v2861_v50 = vmul.f32 0.5, %v7916_v53 }
 0x2ab   :  { %v2748_v22 = vmul.f32 %v5891_v18, %v2740_v7  ;;  %v2741_v9 = vadd.f32 1.4214138, %v2733_v23 }
 0x2ac   :  { %v2778_v28 = vmul.f32 %v5887_v44, %v2770_v15  ;;  %v2771_v37 = vadd.f32 0.2548296, %v2763_v27  ;;  %v5899_v44 = vpop.eup %5898 }
 0x2ad   :  { %v2756_v8 = vadd.f32 -0.28449672, %v2748_v22  ;;  %v2749_v52 = vmul.f32 %v5893_v21, %v2741_v9  ;;  %v5901_v51 = vpop.eup %5900  ;;  %v7947_v9 = vpop.permute.xlu1 %2935 }
 0x2ae   :  { %v2818_v2 = vmul.f32 %v5895_v6, %v2778_v28  ;;  %v2779_v43 = vmul.f32 %v5889_v42, %v2771_v37 }
 0x2af   :  { %v2764_v40 = vmul.f32 %v5891_v18, %v2756_v8  ;;  %v2757_v25 = vadd.f32 -0.28449672, %v2749_v52 }
 0x2b0   :  { %v2826_v19 = vsub.f32 1.0, %v2818_v2  ;;  %v2819_v17 = vmul.f32 %v5897_v29, %v2779_v43 }
 0x2b1   :  { %v2772_v32 = vadd.f32 0.2548296, %v2764_v40  ;;  %v2765_v24 = vmul.f32 %v5893_v21, %v2757_v25 }
 0x2b2   :  { %v2842_v57 = vsub.f32 0.0, %v2826_v19  ;;  %v2827_v63 = vsub.f32 1.0, %v2819_v17 }
 0x2b3   :  { %v2780_v26 = vmul.f32 %v5891_v18, %v2772_v32  ;;  %v2773_v39 = vadd.f32 0.2548296, %v2765_v24 }
 0x2b4   :  { %v2850_v41 = vsel %vm2834_vm12, %v2826_v19, %v2842_v57  ;;  %v2843_v36 = vsub.f32 0.0, %v2827_v63  ;;  %vm2836_vm12 = vcmp.ge.f32.partialorder %v7912_v20, 0.0 }
 0x2b5   :  { %v2820_v0 = vmul.f32 %v5899_v44, %v2780_v26  ;;  %v2866_v38 = vadd.f32 1.0, %v2850_v41  ;;  %v2781_v42 = vmul.f32 %v5893_v21, %v2773_v39  ;;  %v2860_v21 = vmul.f32 0.5, %v7912_v20 }
 0x2b6   :  { %v2851_v34 = vsel %vm2835_vm10, %v2827_v63, %v2843_v36  ;;  %vm2837_vm10 = vcmp.ge.f32.partialorder %v7916_v53, 0.0  ;;  %v7949_v53 = vpop.permute.xlu0 %2947 }
 0x2b7   :  { %v2828_v31 = vsub.f32 1.0, %v2820_v0  ;;  %v2867_v16 = vadd.f32 1.0, %v2851_v34  ;;  %v2821_v46 = vmul.f32 %v5901_v51, %v2781_v42  ;;  %v7923_v18 = vmul.f32 %v2866_v38, %v2858_v12 }
 0x2b9   :  { %v2844_v14 = vsub.f32 0.0, %v2828_v31  ;;  %v7925_v62 = vmul.f32 %v2867_v16, %v2859_v33  ;;  %v2829_v35 = vsub.f32 1.0, %v2821_v46  ;;  %v2912_v5 = vmul.f32 %v7923_v18, %v7923_v18 }
 0x2bb   :  { %v2852_v59 = vsel %vm2836_vm12, %v2828_v31, %v2844_v14  ;;  %v2845_v30 = vsub.f32 0.0, %v2829_v35  ;;  %v2913_v13 = vmul.f32 %v7925_v62, %v7925_v62  ;;  %v2906_v48 = vadd.f32 %v7925_v62, %v7923_v18  ;;  %v4218_v14 = vld [vmem:[#allocation6 + $0x47] ss:$8 sm:$0xf] }
 0x2bc   :  { %v2868_v11 = vadd.f32 1.0, %v2852_v59  ;;  %vm10707_vm12 = vcmp.lt.s32.totalorder %v6261_v10, 63 }
 0x2bd   :  { %v2853_v45 = vsel %vm2837_vm10, %v2829_v35, %v2845_v30  ;;  %v2916_v7 = vadd.f32 %v2913_v13, %v2912_v5  ;;  %v4219_v35 = vld [vmem:[#allocation6 + $0x47] ss:$8 sm:$0xf0]  ;;  %vm10732_vm10 = vcmp.lt.s32.totalorder %v6261_v10, 65 }
 0x2be   :  { %v7932_v47 = vmul.f32 %v2868_v11, %v2860_v21  ;;  %v2869_v58 = vadd.f32 1.0, %v2853_v45  ;;  %v8098_v21 = vor.u32 %v4219_v35, %v4218_v14 }
 0x2c0   :  { %v2907_v20 = vadd.f32 %v2906_v48, %v7932_v47  ;;  %v2914_v49 = vmul.f32 %v7932_v47, %v7932_v47  ;;  %v7942_v15 = vmul.f32 %v2869_v58, %v2861_v50  ;;  %10577 = vst [vmem:[#allocation26_spill] sm:$0xff] %v8098_v21 }
 0x2c2   :  { %v2917_v23 = vadd.f32 %v2916_v7, %v2914_v49  ;;  %v2908_v27 = vadd.f32 %v2907_v20, %v7942_v15  ;;  %v2915_v22 = vmul.f32 %v7942_v15, %v7942_v15  ;;  %v10579_v49 = vld [vmem:[#allocation17_spill] sm:$0xff] }
 0x2c3   :  { %v4225_v7 = vrot.slane %v8098_v21, %v10579_v49 }
 0x2c4   :  { %2909 = vadd.xlane.f32.xlu1 %v2908_v27  ;;  %v2918_v28 = vadd.f32 %v2917_v23, %v2915_v22  ;;  %v4135_v23 = vld [vmem:[#allocation6 + $0x46] ss:$8 sm:$0xf0] }
 0x2c6   :  { %2919 = vadd.xlane.f32.xlu0 %v2918_v28 }
 0x2f0   :  { %v2882_v6 = vpop.xlane.xlu1 %2881 }
 0x2f1   :  { %v2883_v37 = vmul.f32 0.001953125, %v2882_v6 }
 0x2f2   :  { %v2892_v8 = vpop.xlane.xlu0 %2891 }
 0x2f3   :  { %v2893_v2 = vmul.f32 0.001953125, %v2892_v8  ;;  %v2894_v52 = vmul.f32 %v2883_v37, %v2883_v37  ;;  %v2896_v29 = vsub.f32 %v7881_v56, %v2883_v37  ;;  %v2897_v19 = vsub.f32 %v7879_v54, %v2883_v37 }
 0x2f4   :  { %v2898_v25 = vsub.f32 %v7888_v55, %v2883_v37  ;;  %v2899_v17 = vsub.f32 %v7898_v61, %v2883_v37 }
 0x2f5   :  { %v2895_v43 = vsub.f32 %v2893_v2, %v2894_v52 }
 0x2f7   :  { %v2900_v40 = vadd.f32 1e-05, %v2895_v43  ;;  %v4050_v43 = vld [vmem:[#allocation6 + $0x45] ss:$8 sm:$0xf] }
 0x2f9   :  { %5902 = vrsqrt.f32 %v2900_v40  ;;  %v4051_v40 = vld [vmem:[#allocation6 + $0x45] ss:$8 sm:$0xf0] }
 0x306   :  { %v5903_v32 = vpop.eup %5902 }
 0x307   :  { %v2902_v57 = vmul.f32 %v5903_v32, %v2896_v29  ;;  %v2903_v24 = vmul.f32 %v5903_v32, %v2897_v19  ;;  %v2904_v63 = vmul.f32 %v5903_v32, %v2898_v25  ;;  %v2905_v26 = vmul.f32 %v5903_v32, %v2899_v17 }
 0x308   :  { %v8149_v19 = vor.u32 %v4051_v40, %v4050_v43 }
 0x309   :  { %v2938_v44 = vmul.f32 %v7947_v9, %v2902_v57  ;;  %v2939_v41 = vmul.f32 %v7947_v9, %v2903_v24  ;;  %v2940_v39 = vmul.f32 %v7947_v9, %v2904_v63  ;;  %v2941_v36 = vmul.f32 %v7947_v9, %v2905_v26  ;;  %v3990_v26 = vld [vmem:[#allocation6 + $0x44] ss:$8 sm:$0xf] }
 0x30a   :  { %10583 = vst [vmem:[#allocation37_spill] sm:$0xff] %v8149_v19 }
 0x30b   :  { %v7960_v56 = vadd.f32 %v7949_v53, %v2938_v44  ;;  %v7963_v54 = vadd.f32 %v7949_v53, %v2939_v41  ;;  %v7970_v55 = vadd.f32 %v7949_v53, %v2940_v39  ;;  %v7973_v61 = vadd.f32 %v7949_v53, %v2941_v36  ;;  %v3991_v44 = vld [vmem:[#allocation6 + $0x44] ss:$8 sm:$0xf0] }
 0x30c   :  { %v4057_v36 = vrot.slane %v8149_v19, %v10579_v49 }
 0x30d   :  { %4196 = vrot.lane.b32.xlu1 %v7963_v54, %s6074_s2  ;;  %3966 = vrot.lane.b32.xlu0 %v7960_v56, %s6076_s11 }
 0x30e   :  { %v4094_v14 = vmul.f32 %v4057_v36, %v7960_v56 }
 0x311   :  { %4198 = vrot.lane.b32.xlu1 %v7970_v55, %s6074_s2  ;;  %4116 = vrot.lane.b32.xlu0 %v7973_v61, %s6075_s3 }
 0x315   :  { %3884 = vrot.lane.b32.xlu0 %v7963_v54, %s6077_s12  ;;  %4194 = vrot.lane.b32.xlu1 %v7960_v56, %s6074_s2 }
 0x319   :  { %3798 = vrot.lane.b32.xlu0 %v7960_v56, %s6078_s13  ;;  %4112 = vrot.lane.b32.xlu1 %v7963_v54, %s6075_s3 }
 0x31d   :  { %3970 = vrot.lane.b32.xlu0 %v7970_v55, %s6076_s11  ;;  %4114 = vrot.lane.b32.xlu1 %v7970_v55, %s6075_s3 }
 0x321   :  { %3716 = vrot.lane.b32.xlu0 %v7963_v54, %s6079_s14  ;;  %4110 = vrot.lane.b32.xlu1 %v7960_v56, %s6075_s3 }
 0x325   :  { %3888 = vrot.lane.b32.xlu0 %v7973_v61, %s6077_s12  ;;  %4200 = vrot.lane.b32.xlu1 %v7973_v61, %s6074_s2 }
 0x329   :  { %3630 = vrot.lane.b32.xlu0 %v7960_v56, %s6080_s15  ;;  %3968 = vrot.lane.b32.xlu1 %v7963_v54, %s6076_s11 }
 0x32d   :  { %3802 = vrot.lane.b32.xlu0 %v7970_v55, %s6078_s13  ;;  %3882 = vrot.lane.b32.xlu1 %v7960_v56, %s6077_s12 }
 0x331   :  { %3548 = vrot.lane.b32.xlu0 %v7963_v54, %s6081_s16  ;;  %3800 = vrot.lane.b32.xlu1 %v7963_v54, %s6078_s13 }
 0x335   :  { %3720 = vrot.lane.b32.xlu0 %v7973_v61, %s6079_s14  ;;  %3972 = vrot.lane.b32.xlu1 %v7973_v61, %s6076_s11 }
 0x339   :  { %3462 = vrot.lane.b32.xlu0 %v7960_v56, %s6082_s17  ;;  %3714 = vrot.lane.b32.xlu1 %v7960_v56, %s6079_s14 }
 0x33d   :  { %3634 = vrot.lane.b32.xlu0 %v7970_v55, %s6080_s15  ;;  %3886 = vrot.lane.b32.xlu1 %v7970_v55, %s6077_s12 }
 0x341   :  { %3380 = vrot.lane.b32.xlu0 %v7963_v54, %s6083_s18  ;;  %3632 = vrot.lane.b32.xlu1 %v7963_v54, %s6080_s15 }
 0x345   :  { %3552 = vrot.lane.b32.xlu0 %v7973_v61, %s6081_s16  ;;  %3804 = vrot.lane.b32.xlu1 %v7973_v61, %s6078_s13 }
 0x349   :  { %3294 = vrot.lane.b32.xlu0 %v7960_v56, %s6068_s19  ;;  %3546 = vrot.lane.b32.xlu1 %v7960_v56, %s6081_s16 }
 0x34d   :  { %v2910_v0 = vpop.xlane.xlu1 %2909  ;;  %3466 = vrot.lane.b32.xlu0 %v7970_v55, %s6082_s17  ;;  %3718 = vrot.lane.b32.xlu1 %v7970_v55, %s6079_s14 }
 0x34e   :  { %v8035_v38 = vmul.f32 0.001953125, %v2910_v0 }
 0x34f   :  { %v2920_v42 = vpop.xlane.xlu0 %2919 }
 0x350   :  { %v2921_v51 = vmul.f32 0.001953125, %v2920_v42  ;;  %v2922_v34 = vmul.f32 %v8035_v38, %v8035_v38  ;;  %v2926_v33 = vsub.f32 %v7932_v47, %v8035_v38  ;;  %v2927_v59 = vsub.f32 %v7942_v15, %v8035_v38  ;;  %v10578_v47 = vld [vmem:[#allocation18_spill] sm:$0xff] }
 0x351   :  { %3212 = vrot.lane.b32.xlu0 %v7963_v54, %s6084_s20  ;;  %3464 = vrot.lane.b32.xlu1 %v7963_v54, %s6082_s17  ;;  %v4229_v45 = vrot.slane %v8098_v21, %v10578_v47  ;;  %v4134_v15 = vld [vmem:[#allocation6 + $0x46] ss:$8 sm:$0xf]  ;;  %v4061_v63 = vrot.slane %v8149_v19, %v10578_v47 }
 0x352   :  { %v2923_v31 = vsub.f32 %v2921_v51, %v2922_v34  ;;  %v8137_v8 = vor.u32 %v4135_v23, %v4134_v15  ;;  %v8177_v51 = vor.u32 %v3991_v44, %v3990_v26  ;;  %v2924_v34 = vsub.f32 %v7923_v18, %v8035_v38 }
 0x354   :  { %v2928_v12 = vadd.f32 1e-05, %v2923_v31  ;;  %10582 = vst [vmem:[#allocation25_spill] sm:$0xff] %v8137_v8  ;;  %v4145_v29 = vrot.slane %v8137_v8, %v10578_v47  ;;  %v4141_v24 = vrot.slane %v8137_v8, %v10579_v49  ;;  %10585 = vst [vmem:[#allocation40_spill] sm:$0xff] %v8177_v51  ;;  %v4095_v31 = vmul.f32 %v4061_v63, %v7963_v54 }
 0x355   :  { %3384 = vrot.lane.b32.xlu0 %v7973_v61, %s6083_s18  ;;  %3636 = vrot.lane.b32.xlu1 %v7973_v61, %s6080_s15  ;;  %v4001_v18 = vrot.slane %v8177_v51, %v10578_v47 }
 0x356   :  { %5904 = vrsqrt.f32 %v2928_v12 }
 0x359   :  { %3126 = vrot.lane.b32.xlu0 %v7960_v56, %s6085_s21  ;;  %3378 = vrot.lane.b32.xlu1 %v7960_v56, %s6083_s18 }
 0x35d   :  { %3298 = vrot.lane.b32.xlu0 %v7970_v55, %s6068_s19  ;;  %3550 = vrot.lane.b32.xlu1 %v7970_v55, %s6081_s16 }
 0x361   :  { %3044 = vrot.lane.b32.xlu0 %v7963_v54, %s6086_s22  ;;  %3296 = vrot.lane.b32.xlu1 %v7963_v54, %s6068_s19 }
 0x363   :  { %v8061_v16 = vpop.eup %5904 }
 0x364   :  { %v8064_v46 = vmul.f32 %v8061_v16, %v2926_v33  ;;  %v2933_v11 = vmul.f32 %v8061_v16, %v2927_v59  ;;  %v2930_v35 = vmul.f32 %v8061_v16, %v2924_v34 }
 0x365   :  { %3216 = vrot.lane.b32.xlu0 %v7973_v61, %s6084_s20  ;;  %3468 = vrot.lane.b32.xlu1 %v7973_v61, %s6082_s17 }
 0x366   :  { %v2945_v48 = vmul.f32 %v7947_v9, %v2933_v11 }
 0x368   :  { %v8126_v27 = vadd.f32 %v7949_v53, %v2945_v48 }
 0x369   :  { %2958 = vrot.lane.b32.xlu0 %v7960_v56, %s6087_s23  ;;  %3210 = vrot.lane.b32.xlu1 %v7960_v56, %s6084_s20 }
 0x36a   :  { %10580 = vst [vmem:[#allocation33_spill] sm:$0xff] %v8126_v27 }
 0x36d   :  { %3130 = vrot.lane.b32.xlu0 %v7970_v55, %s6085_s21  ;;  %3382 = vrot.lane.b32.xlu1 %v7970_v55, %s6083_s18 }
 0x371   :  { %3048 = vrot.lane.b32.xlu0 %v7973_v61, %s6086_s22  ;;  %3128 = vrot.lane.b32.xlu1 %v7963_v54, %s6085_s21 }
 0x375   :  { %2964 = vrot.lane.b32.xlu0 %v7973_v61, %s6087_s23  ;;  %3300 = vrot.lane.b32.xlu1 %v7973_v61, %s6068_s19 }
 0x379   :  { %4366 = vrot.lane.b32.xlu0 %v7970_v55, %s6088_s24  ;;  %3042 = vrot.lane.b32.xlu1 %v7960_v56, %s6086_s22 }
 0x37d   :  { %4282 = vrot.lane.b32.xlu0 %v7970_v55, %s6089_s25  ;;  %3214 = vrot.lane.b32.xlu1 %v7970_v55, %s6084_s20 }
 0x37f   :  { %v8103_v30 = vpop.permute.xlu0 %3966  ;;  %v4197_v13 = vpop.permute.xlu1 %4196 }
 0x381   :  { %4368 = vrot.lane.b32.xlu0 %v7973_v61, %s6088_s24  ;;  %2960 = vrot.lane.b32.xlu1 %v7963_v54, %s6087_s23 }
 0x383   :  { %v8112_v5 = vpop.permute.xlu0 %4116  ;;  %v8114_v50 = vpop.permute.xlu1 %4198 }
 0x384   :  { %v4215_v58 = vsel %vm1360_vm0, %v4197_v13, %v8114_v50 }
 0x385   :  { %4284 = vrot.lane.b32.xlu0 %v7973_v61, %s6089_s25  ;;  %v4263_v20 = vmul.f32 %v4229_v45, %v4215_v58  ;;  %3132 = vrot.lane.b32.xlu1 %v7973_v61, %s6085_s21 }
 0x387   :  { %v8128_v22 = vpop.permute.xlu0 %3884  ;;  %5212 = vmatprep.subr.mxu0 %v4263_v20  ;;  %v8130_v28 = vpop.permute.xlu1 %4194 }
 0x388   :  { %10581 = vst [vmem:[#allocation29_spill] sm:$0xff] %v8130_v28  ;;  %v4216_v6 = vsel %vm1360_vm0, %v8130_v28, %v4197_v13  ;;  %v2942_v13 = vmul.f32 %v7947_v9, %v2930_v35 }
 0x389   :  { %v4262_v37 = vmul.f32 %v4225_v7, %v4216_v6  ;;  %3980 = vrot.lane.b32.xlu0 %v8126_v27, %s6076_s11  ;;  %3046 = vrot.lane.b32.xlu1 %v7970_v55, %s6086_s22 }
 0x38a   :  { %v8214_v20 = vadd.f32 %v7949_v53, %v2942_v13  ;;  %v4988_v13 = vld [vmem:[#allocation8 + $0x18] sm:$0xff] }
 0x38b   :  { %v8141_v2 = vpop.permute.xlu0 %3798  ;;  %5213 = vmatpush1.msra.mxu0 %v4262_v37  ;;  %v4113_v52 = vpop.permute.xlu1 %4112  ;;  %5829 = vmatprep.mubr.msk.f32.mxu0 %vm2374_vm7, %v4988_v13 }
 0x38c   :  { %10588 = vst [vmem:[#allocation45_spill] sm:$0xff] %v8214_v20  ;;  %5830 = vmatprep.mubr.msk.f32.mxu1 %vm2374_vm7, %v4988_v13 }
 0x38d   :  { %3812 = vrot.lane.b32.xlu0 %v8126_v27, %s6078_s13  ;;  %2962 = vrot.lane.b32.xlu1 %v7970_v55, %s6087_s23 }
 0x38f   :  { %v8151_v25 = vpop.permute.xlu0 %3970  ;;  %v8153_v17 = vpop.permute.xlu1 %4114 }
 0x390   :  { %v4131_v32 = vsel %vm1274_vm1, %v4113_v52, %v8153_v17 }
 0x391   :  { %3644 = vrot.lane.b32.xlu0 %v8126_v27, %s6080_s15  ;;  %v4179_v57 = vmul.f32 %v4145_v29, %v4131_v32  ;;  %4364 = vrot.lane.b32.xlu1 %v7963_v54, %s6088_s24 }
 0x393   :  { %v8166_v41 = vpop.permute.xlu0 %3716  ;;  %5214 = vmatprep.subr.mxu0 %v4179_v57  ;;  %v8168_v39 = vpop.permute.xlu1 %4110 }
 0x394   :  { %10584 = vst [vmem:[#allocation31_spill] sm:$0xff] %v8168_v39  ;;  %v4132_v0 = vsel %vm1274_vm1, %v8168_v39, %v4113_v52  ;;  %v2925_v52 = vsub.f32 %v7925_v62, %v8035_v38 }
 0x395   :  { %v4178_v42 = vmul.f32 %v4141_v24, %v4132_v0  ;;  %3476 = vrot.lane.b32.xlu0 %v8126_v27, %s6082_s17  ;;  %4362 = vrot.lane.b32.xlu1 %v7960_v56, %s6088_s24 }
 0x396   :  { %v2931_v43 = vmul.f32 %v8061_v16, %v2925_v52 }
 0x397   :  { %v8184_v12 = vpop.permute.xlu0 %3888  ;;  %5215 = vmatpush1.msra.mxu0 %v4178_v42  ;;  %v8186_v33 = vpop.permute.xlu1 %4200 }
 0x398   :  { %10586 = vst [vmem:[#allocation30_spill] sm:$0xff] %v8184_v12  ;;  %5216 = vmatprep.subr.mxu0 %v4095_v31  ;;  %v2943_v62 = vmul.f32 %v7947_v9, %v2931_v43 }
 0x399   :  { %3308 = vrot.lane.b32.xlu0 %v8126_v27, %s6068_s19  ;;  %5217 = vmatpush1.msra.mxu0 %v4094_v14  ;;  %v2944_v14 = vmul.f32 %v7947_v9, %v8064_v46 }
 0x39a   :  { %4280 = vrot.lane.b32.xlu1 %v7963_v54, %s6089_s25  ;;  %v8265_v16 = vadd.f32 %v7949_v53, %v2943_v62 }
 0x39b   :  { %v8196_v59 = vpop.permute.xlu0 %3630  ;;  %v8198_v11 = vpop.permute.xlu1 %3968 }
 0x39c   :  { %v3988_v45 = vsel %vm1127_vm2, %v8103_v30, %v8198_v11  ;;  %10594 = vst [vmem:[#allocation44_spill] sm:$0xff] %v8265_v16 }
 0x39d   :  { %3140 = vrot.lane.b32.xlu0 %v8126_v27, %s6085_s21  ;;  %v4035_v48 = vmul.f32 %v4001_v18, %v3988_v45  ;;  %v8319_v45 = vadd.f32 %v7949_v53, %v2944_v14 }
 0x39e   :  { %4278 = vrot.lane.b32.xlu1 %v7960_v56, %s6089_s25 }
 0x39f   :  { %v8209_v58 = vpop.permute.xlu0 %3802  ;;  %5218 = vmatprep.subr.mxu0 %v4035_v48  ;;  %v8211_v54 = vpop.permute.xlu1 %3882  ;;  %10607 = vst [vmem:[#allocation53_spill] sm:$0xff] %v8319_v45 }
 0x3a0   :  { %10587 = vst [vmem:[#allocation34_spill] sm:$0xff] %v8211_v54 }
 0x3a1   :  { %2972 = vrot.lane.b32.xlu0 %v8126_v27, %s6087_s23 }
 0x3a2   :  { %4202 = vrot.lane.b32.xlu1 %v8214_v20, %s6074_s2 }
 0x3a3   :  { %v8220_v7 = vpop.permute.xlu0 %3548  ;;  %v8222_v15 = vpop.permute.xlu1 %3800 }
 0x3a4   :  { %10589 = vst [vmem:[#allocation32_spill] sm:$0xff] %v8220_v7 }
 0x3a5   :  { %3554 = vrot.lane.b32.xlu0 %v8214_v20, %s6081_s16 }
 0x3a6   :  { %4118 = vrot.lane.b32.xlu1 %v8214_v20, %s6075_s3 }
 0x3a7   :  { %v8228_v56 = vpop.permute.xlu0 %3720  ;;  %v8230_v23 = vpop.permute.xlu1 %3972 }
 0x3a8   :  { %10590 = vst [vmem:[#allocation36_spill] sm:$0xff] %v8228_v56  ;;  %10591 = vst [vmem:[#allocation35_spill] sm:$0xff] %v8230_v23 }
 0x3a9   :  { %3386 = vrot.lane.b32.xlu0 %v8214_v20, %s6083_s18 }
 0x3aa   :  { %3896 = vrot.lane.b32.xlu1 %v8126_v27, %s6077_s12 }
 0x3ab   :  { %v8236_v6 = vpop.permute.xlu0 %3462  ;;  %v8238_v37 = vpop.permute.xlu1 %3714 }
 0x3ac   :  { %10592 = vst [vmem:[#allocation41_spill] sm:$0xff] %v8236_v6 }
 0x3ad   :  { %3218 = vrot.lane.b32.xlu0 %v8214_v20, %s6084_s20 }
 0x3ae   :  { %3728 = vrot.lane.b32.xlu1 %v8126_v27, %s6079_s14 }
 0x3af   :  { %v8247_v40 = vpop.permute.xlu0 %3634  ;;  %v8249_v29 = vpop.permute.xlu1 %3886 }
 0x3b1   :  { %3050 = vrot.lane.b32.xlu0 %v8214_v20, %s6086_s22 }
 0x3b2   :  { %3560 = vrot.lane.b32.xlu1 %v8126_v27, %s6081_s16 }
 0x3b3   :  { %v8256_v38 = vpop.permute.xlu0 %3380  ;;  %v8258_v32 = vpop.permute.xlu1 %3632 }
 0x3b4   :  { %10593 = vst [vmem:[#allocation38_spill] sm:$0xff] %v8256_v38  ;;  %v3570_v38 = vld [vmem:[#allocation6 + $0x7] ss:$8 sm:$0xf] }
 0x3b5   :  { %2966 = vrot.lane.b32.xlu0 %v8214_v20, %s6087_s23 }
 0x3b6   :  { %3392 = vrot.lane.b32.xlu1 %v8126_v27, %s6083_s18 }
 0x3b7   :  { %v8267_v57 = vpop.permute.xlu0 %3552  ;;  %v8269_v24 = vpop.permute.xlu1 %3804 }
 0x3b8   :  { %10595 = vst [vmem:[#allocation42_spill] sm:$0xff] %v8267_v57  ;;  %10596 = vst [vmem:[#allocation48_spill] sm:$0xff] %v8269_v24  ;;  %v4926_v57 = vld [vmem:[#allocation6 + $0xc2] ss:$8 sm:$0xf] }
 0x3b9   :  { %4204 = vrot.lane.b32.xlu0 %v8265_v16, %s6074_s2  ;;  %v2983_v24 = vld [vmem:[#allocation6] ss:$8 sm:$0xf0] }
 0x3ba   :  { %3224 = vrot.lane.b32.xlu1 %v8126_v27, %s6084_s20 }
 0x3bb   :  { %v8275_v63 = vpop.permute.xlu0 %3294  ;;  %v8277_v26 = vpop.permute.xlu1 %3546 }
 0x3bc   :  { %10597 = vst [vmem:[#allocation46_spill] sm:$0xff] %v8275_v63  ;;  %10598 = vst [vmem:[#allocation51_spill] sm:$0xff] %v8277_v26  ;;  %v10629_v63 = vld [vmem:[#allocation23_spill] sm:$0xff] }
 0x3bd   :  { %4120 = vrot.lane.b32.xlu0 %v8265_v16, %s6075_s3 }
 0x3be   :  { %3056 = vrot.lane.b32.xlu1 %v8126_v27, %s6086_s22 }
 0x3bf   :  { %v8283_v44 = vpop.permute.xlu0 %3466  ;;  %v8285_v36 = vpop.permute.xlu1 %3718 }
 0x3c0   :  { %10599 = vst [vmem:[#allocation49_spill] sm:$0xff] %v8283_v44  ;;  %10600 = vst [vmem:[#allocation54_spill] sm:$0xff] %v8285_v36  ;;  %v3319_v36 = vld [vmem:[#allocation6 + $0x4] ss:$8 sm:$0xf0] }
 0x3c1   :  { %4208 = vrot.lane.b32.xlu0 %v8126_v27, %s6074_s2 }
 0x3c2   :  { %3638 = vrot.lane.b32.xlu1 %v8214_v20, %s6080_s15 }
 0x3c3   :  { %v8291_v0 = vpop.permute.xlu0 %3212  ;;  %v8293_v42 = vpop.permute.xlu1 %3464 }
 0x3c4   :  { %10601 = vst [vmem:[#allocation57_spill] sm:$0xff] %v8291_v0  ;;  %10602 = vst [vmem:[#allocation52_spill] sm:$0xff] %v8293_v42  ;;  %v3655_v0 = vld [vmem:[#allocation6 + $0x40] ss:$8 sm:$0xf0] }
 0x3c5   :  { %3976 = vrot.lane.b32.xlu0 %v8265_v16, %s6076_s11 }
 0x3c6   :  { %3470 = vrot.lane.b32.xlu1 %v8214_v20, %s6082_s17 }
 0x3c7   :  { %v8299_v34 = vpop.permute.xlu0 %3384  ;;  %v8301_v31 = vpop.permute.xlu1 %3636 }
 0x3c8   :  { %10603 = vst [vmem:[#allocation43_spill] sm:$0xff] %v8299_v34  ;;  %10604 = vst [vmem:[#allocation47_spill] sm:$0xff] %v8301_v31  ;;  %v3739_v34 = vld [vmem:[#allocation6 + $0x41] ss:$8 sm:$0xf0] }
 0x3c9   :  { %3890 = vrot.lane.b32.xlu0 %v8214_v20, %s6077_s12  ;;  %v3571_v31 = vld [vmem:[#allocation6 + $0x7] ss:$8 sm:$0xf0] }
 0x3ca   :  { %3302 = vrot.lane.b32.xlu1 %v8214_v20, %s6068_s19 }
 0x3cb   :  { %v8309_v35 = vpop.permute.xlu0 %3126  ;;  %v8311_v18 = vpop.permute.xlu1 %3378 }
 0x3cc   :  { %10605 = vst [vmem:[#allocation50_spill] sm:$0xff] %v8309_v35  ;;  %10606 = vst [vmem:[#allocation55_spill] sm:$0xff] %v8311_v18  ;;  %v3822_v35 = vld [vmem:[#allocation6 + $0x42] ss:$8 sm:$0xf] }
 0x3cd   :  { %3806 = vrot.lane.b32.xlu0 %v8214_v20, %s6078_s13  ;;  %v4867_v18 = vld [vmem:[#allocation6 + $0xc1] ss:$8 sm:$0xf0] }
 0x3ce   :  { %3134 = vrot.lane.b32.xlu1 %v8214_v20, %s6085_s21 }
 0x3cf   :  { %v8321_v48 = vpop.permute.xlu0 %3298  ;;  %v8323_v52 = vpop.permute.xlu1 %3550 }
 0x3d0   :  { %10608 = vst [vmem:[#allocation58_spill] sm:$0xff] %v8321_v48  ;;  %10609 = vst [vmem:[#allocation56_spill] sm:$0xff] %v8323_v52  ;;  %v4927_v52 = vld [vmem:[#allocation6 + $0xc2] ss:$8 sm:$0xf0] }
 0x3d1   :  { %3978 = vrot.lane.b32.xlu0 %v8319_v45, %s6076_s11 }
 0x3d2   :  { %4206 = vrot.lane.b32.xlu1 %v8319_v45, %s6074_s2 }
 0x3d3   :  { %v8330_v9 = vpop.permute.xlu0 %3044  ;;  %v8332_v46 = vpop.permute.xlu1 %3296 }
 0x3d4   :  { %10610 = vst [vmem:[#allocation61_spill] sm:$0xff] %v8330_v9  ;;  %10611 = vst [vmem:[#allocation63_spill] sm:$0xff] %v8332_v46  ;;  %v3906_v9 = vld [vmem:[#allocation6 + $0x43] ss:$8 sm:$0xf]  ;;  %v4065_v46 = vrot.slane %v8149_v19, %v10629_v63 }
 0x3d5   :  { %3724 = vrot.lane.b32.xlu0 %v8265_v16, %s6079_s14 }
 0x3d6   :  { %4370 = vrot.lane.b32.xlu1 %v8214_v20, %s6088_s24 }
 0x3d7   :  { %v8338_v53 = vpop.permute.xlu0 %3216  ;;  %v8340_v43 = vpop.permute.xlu1 %3468 }
 0x3d8   :  { %10612 = vst [vmem:[#allocation69_spill] sm:$0xff] %v8338_v53  ;;  %10613 = vst [vmem:[#allocation59_spill] sm:$0xff] %v8340_v43 }
 0x3d9   :  { %3640 = vrot.lane.b32.xlu0 %v8265_v16, %s6080_s15 }
 0x3da   :  { %4122 = vrot.lane.b32.xlu1 %v8319_v45, %s6075_s3 }
 0x3db   :  { %v8346_v62 = vpop.permute.xlu0 %2958  ;;  %v8348_v14 = vpop.permute.xlu1 %3210 }
 0x3dc   :  { %10614 = vst [vmem:[#allocation62_spill] sm:$0xff] %v8346_v62  ;;  %10615 = vst [vmem:[#allocation66_spill] sm:$0xff] %v8348_v14  ;;  %v3654_v14 = vld [vmem:[#allocation6 + $0x40] ss:$8 sm:$0xf] }
 0x3dd   :  { %3556 = vrot.lane.b32.xlu0 %v8265_v16, %s6081_s16  ;;  %v8418_v42 = vor.u32 %v3655_v0, %v3654_v14  ;;  %v3997_v0 = vrot.slane %v8177_v51, %v10579_v49  ;;  %v4747_v14 = vld [vmem:[#allocation6 + $0x87] ss:$8 sm:$0xf0] }
 0x3de   :  { %4286 = vrot.lane.b32.xlu1 %v8214_v20, %s6089_s25 }
 0x3df   :  { %v8354_v13 = vpop.permute.xlu0 %3130  ;;  %v8356_v39 = vpop.permute.xlu1 %3382  ;;  %10634 = vst [vmem:[#allocation73_spill] sm:$0xff] %v8418_v42 }
 0x3e0   :  { %10616 = vst [vmem:[#allocation60_spill] sm:$0xff] %v8354_v13  ;;  %10617 = vst [vmem:[#allocation27_spill] sm:$0xff] %v8356_v39 }
 0x3e1   :  { %3472 = vrot.lane.b32.xlu0 %v8265_v16, %s6082_s17 }
 0x3e2   :  { %3974 = vrot.lane.b32.xlu1 %v8214_v20, %s6076_s11 }
 0x3e3   :  { %v8362_v3 = vpop.permute.xlu0 %3048  ;;  %v8364_v28 = vpop.permute.xlu1 %3128 }
 0x3e4   :  { %10618 = vst [vmem:[#allocation28_spill] sm:$0xff] %v8362_v3  ;;  %10619 = vst [vmem:[#allocation22_spill] sm:$0xff] %v8364_v28  ;;  %v3823_v28 = vld [vmem:[#allocation6 + $0x42] ss:$8 sm:$0xf0] }
 0x3e5   :  { %3388 = vrot.lane.b32.xlu0 %v8265_v16, %s6083_s18 }
 0x3e6   :  { %4124 = vrot.lane.b32.xlu1 %v8126_v27, %s6075_s3 }
 0x3e7   :  { %v8370_v60 = vpop.permute.xlu0 %2964  ;;  %v8372_v62 = vpop.permute.xlu1 %3300 }
 0x3e8   :  { %10620 = vst [vmem:[#allocation65_spill] sm:$0xff] %v8370_v60  ;;  %10621 = vst [vmem:[#allocation20_spill] sm:$0xff] %v8372_v62  ;;  %v3907_v62 = vld [vmem:[#allocation6 + $0x43] ss:$8 sm:$0xf0] }
 0x3e9   :  { %3304 = vrot.lane.b32.xlu0 %v8265_v16, %s6068_s19  ;;  %v8402_v48 = vor.u32 %v3907_v62, %v3906_v9  ;;  %v4807_v62 = vld [vmem:[#allocation6 + $0xc0] ss:$8 sm:$0xf0]  ;;  %v4686_v9 = vld [vmem:[#allocation6 + $0x86] ss:$8 sm:$0xf] }
 0x3ea   :  { %3892 = vrot.lane.b32.xlu1 %v8265_v16, %s6077_s12 }
 0x3eb   :  { %v8378_v53 = vpop.permute.xlu0 %4366  ;;  %v8380_v3 = vpop.permute.xlu1 %3042 }
 0x3ec   :  { %10622 = vst [vmem:[#allocation67_spill] sm:$0xff] %v8378_v53  ;;  %10623 = vst [vmem:[#allocation70_spill] sm:$0xff] %v8380_v3  ;;  %v3738_v3 = vld [vmem:[#allocation6 + $0x41] ss:$8 sm:$0xf] }
 0x3ed   :  { %3220 = vrot.lane.b32.xlu0 %v8265_v16, %s6084_s20 }
 0x3ee   :  { %3808 = vrot.lane.b32.xlu1 %v8265_v16, %s6078_s13 }
 0x3ef   :  { %v8386_v13 = vpop.permute.xlu0 %4282  ;;  %v8388_v60 = vpop.permute.xlu1 %3214 }
 0x3f0   :  { %10624 = vst [vmem:[#allocation16_spill] sm:$0xff] %v8386_v13  ;;  %10625 = vst [vmem:[#allocation19_spill] sm:$0xff] %v8388_v60  ;;  %v10628_v13 = vld [vmem:[#allocation24_spill] sm:$0xff] }
 0x3f1   :  { %3136 = vrot.lane.b32.xlu0 %v8265_v16, %s6085_s21  ;;  %v4069_v60 = vrot.slane %v8149_v19, %v10628_v13  ;;  %10630 = vst [vmem:[#allocation24_spill] sm:$0xff] %v8402_v48  ;;  %v3904_v19 = vsel %vm1041_vm3, %v8211_v54, %v8128_v22  ;;  %v4687_v54 = vld [vmem:[#allocation6 + $0x86] ss:$8 sm:$0xf0] }
 0x3f2   :  { %3722 = vrot.lane.b32.xlu1 %v8214_v20, %s6079_s14  ;;  %v8406_v20 = vor.u32 %v3823_v28, %v3822_v35  ;;  %v3486_v28 = vld [vmem:[#allocation6 + $0x6] ss:$8 sm:$0xf] }
 0x3f3   :  { %v8394_v39 = vpop.permute.xlu0 %4368  ;;  %v8396_v43 = vpop.permute.xlu1 %2960  ;;  %v3487_v35 = vld [vmem:[#allocation6 + $0x6] ss:$8 sm:$0xf0]  ;;  %v8423_v56 = vmul.f32 %v4069_v60, %v7973_v61  ;;  %v3917_v60 = vrot.slane %v8402_v48, %v10578_v47  ;;  %v8440_v61 = vor.u32 %v4927_v52, %v4926_v57  ;;  %v8454_v57 = vor.u32 %v3571_v31, %v3570_v38  ;;  %v3402_v52 = vld [vmem:[#allocation6 + $0x5] ss:$8 sm:$0xf] }
 0x3f4   :  { %10626 = vst [vmem:[#allocation18_spill] sm:$0xff] %v8394_v39  ;;  %10627 = vst [vmem:[#allocation17_spill] sm:$0xff] %v8396_v43  ;;  %v4866_v39 = vld [vmem:[#allocation6 + $0xc1] ss:$8 sm:$0xf]  ;;  %v8410_v43 = vor.u32 %v3739_v34, %v3738_v3  ;;  %v8426_v3 = vmul.f32 %v4065_v46, %v7970_v55 }
 0x3f5   :  { %3052 = vrot.lane.b32.xlu0 %v8265_v16, %s6086_s22  ;;  %10631 = vst [vmem:[#allocation23_spill] sm:$0xff] %v8406_v20  ;;  %10636 = vst [vmem:[#allocation75_spill] sm:$0xff] %v8423_v56  ;;  %v4746_v46 = vld [vmem:[#allocation6 + $0x87] ss:$8 sm:$0xf]  ;;  %v8452_v4 = vor.u32 %v4867_v18, %v4866_v39  ;;  %v8472_v18 = vor.u32 %v3487_v35, %v3486_v28 }
 0x3f6   :  { %3894 = vrot.lane.b32.xlu1 %v8319_v45, %s6077_s12  ;;  %10632 = vst [vmem:[#allocation71_spill] sm:$0xff] %v8410_v43  ;;  %10637 = vst [vmem:[#allocation76_spill] sm:$0xff] %v8426_v3  ;;  %v3403_v55 = vld [vmem:[#allocation6 + $0x5] ss:$8 sm:$0xf0] }
 0x3f7   :  { %v8412_v6 = vpop.permute.xlu0 %4284  ;;  %v8420_v44 = vpop.permute.xlu1 %3132  ;;  %10638 = vst [vmem:[#allocation77_spill] sm:$0xff] %v8440_v61  ;;  %10639 = vst [vmem:[#allocation78_spill] sm:$0xff] %v8454_v57  ;;  %v3318_v56 = vld [vmem:[#allocation6 + $0x4] ss:$8 sm:$0xf]  ;;  %v8490_v35 = vor.u32 %v3403_v55, %v3402_v52 }
 0x3f8   :  { %10633 = vst [vmem:[#allocation72_spill] sm:$0xff] %v8412_v6  ;;  %10635 = vst [vmem:[#allocation74_spill] sm:$0xff] %v8420_v44  ;;  %v4806_v6 = vld [vmem:[#allocation6 + $0xc0] ss:$8 sm:$0xf] }
 0x3f9   :  { %2968 = vrot.lane.b32.xlu0 %v8265_v16, %s6087_s23  ;;  %10642 = vst [vmem:[#allocation81_spill] sm:$0xff] %v8472_v18  ;;  %v8474_v3 = vor.u32 %v4807_v62, %v4806_v6  ;;  %v4627_v31 = vld [vmem:[#allocation6 + $0x85] ss:$8 sm:$0xf0]  ;;  %v3951_v6 = vmul.f32 %v3917_v60, %v3904_v19  ;;  %10644 = vst [vmem:[#allocation83_spill] sm:$0xff] %v8490_v35  ;;  %v8500_v60 = vor.u32 %v3319_v36, %v3318_v56 }
 0x3fa   :  { %3810 = vrot.lane.b32.xlu1 %v8319_v45, %s6078_s13  ;;  %v8502_v62 = vor.u32 %v4687_v54, %v4686_v9  ;;  %v3150_v55 = vld [vmem:[#allocation6 + $0x2] ss:$8 sm:$0xf]  ;;  %v4567_v19 = vld [vmem:[#allocation6 + $0x84] ss:$8 sm:$0xf0] }
 0x3fb   :  { %v8456_v44 = vpop.permute.xlu0 %3980  ;;  %v8468_v38 = vpop.permute.xlu1 %3046  ;;  %10646 = vst [vmem:[#allocation85_spill] sm:$0xff] %v8500_v60  ;;  %v3151_v52 = vld [vmem:[#allocation6 + $0x2] ss:$8 sm:$0xf0] }
 0x3fc   :  { %10640 = vst [vmem:[#allocation79_spill] sm:$0xff] %v8456_v44  ;;  %v3989_v39 = vsel %vm1127_vm2, %v8456_v44, %v8103_v30  ;;  %10641 = vst [vmem:[#allocation80_spill] sm:$0xff] %v8468_v38  ;;  %v8482_v44 = vor.u32 %v4747_v14, %v4746_v46  ;;  %v4626_v38 = vld [vmem:[#allocation6 + $0x85] ss:$8 sm:$0xf] }
 0x3fd   :  { %v4034_v26 = vmul.f32 %v3997_v0, %v3989_v39  ;;  %3054 = vrot.lane.b32.xlu0 %v8319_v45, %s6086_s22  ;;  %v3234_v0 = vld [vmem:[#allocation6 + $0x3] ss:$8 sm:$0xf]  ;;  %10647 = vst [vmem:[#allocation86_spill] sm:$0xff] %v8502_v62 }
 0x3fe   :  { %10643 = vst [vmem:[#allocation82_spill] sm:$0xff] %v8482_v44  ;;  %3726 = vrot.lane.b32.xlu1 %v8319_v45, %s6079_s14  ;;  %v3235_v39 = vld [vmem:[#allocation6 + $0x3] ss:$8 sm:$0xf0] }
 0x3ff   :  { %v8492_v34 = vpop.permute.xlu0 %3812  ;;  %5219 = vmatpush1.msra.mxu0 %v4034_v26  ;;  %v8504_v28 = vpop.permute.xlu1 %2962  ;;  %v4566_v30 = vld [vmem:[#allocation6 + $0x84] ss:$8 sm:$0xf]  ;;  %v3066_v14 = vld [vmem:[#allocation6 + $0x1] ss:$8 sm:$0xf] }
 0x400   :  { %10645 = vst [vmem:[#allocation84_spill] sm:$0xff] %v8492_v34  ;;  %10648 = vst [vmem:[#allocation87_spill] sm:$0xff] %v8504_v28  ;;  %5220 = vmatprep.subr.mxu0 %v3951_v6  ;;  %v8522_v6 = vor.u32 %v4627_v31, %v4626_v38  ;;  %v3067_v46 = vld [vmem:[#allocation6 + $0x1] ss:$8 sm:$0xf0]  ;;  %v8532_v34 = vor.u32 %v3235_v39, %v3234_v0  ;;  %v8548_v39 = vor.u32 %v3151_v52, %v3150_v55 }
 0x401   :  { %4372 = vrot.lane.b32.xlu0 %v8265_v16, %s6088_s24  ;;  %v4506_v36 = vld [vmem:[#allocation6 + $0x83] ss:$8 sm:$0xf]  ;;  %v4386_v61 = vld [vmem:[#allocation6 + $0x81] ss:$8 sm:$0xf] }
 0x402   :  { %10649 = vst [vmem:[#allocation88_spill] sm:$0xff] %v8522_v6  ;;  %3642 = vrot.lane.b32.xlu1 %v8319_v45, %s6080_s15  ;;  %v4507_v28 = vld [vmem:[#allocation6 + $0x83] ss:$8 sm:$0xf0]  ;;  %10650 = vst [vmem:[#allocation89_spill] sm:$0xff] %v8532_v34 }
 0x403   :  { %v8534_v38 = vpop.permute.xlu0 %3644  ;;  %v4387_v54 = vld [vmem:[#allocation6 + $0x81] ss:$8 sm:$0xf0]  ;;  %v8542_v7 = vpop.permute.xlu1 %4364  ;;  %10653 = vst [vmem:[#allocation92_spill] sm:$0xff] %v8548_v39  ;;  %v8576_v55 = vor.u32 %v4507_v28, %v4506_v36 }
 0x404   :  { %10651 = vst [vmem:[#allocation90_spill] sm:$0xff] %v8534_v38  ;;  %10652 = vst [vmem:[#allocation91_spill] sm:$0xff] %v8542_v7  ;;  %v8550_v38 = vor.u32 %v4567_v19, %v4566_v30  ;;  %v2982_v31 = vld [vmem:[#allocation6] ss:$8 sm:$0xf]  ;;  %v8556_v26 = vsel %vm1532_vm13, %v8542_v7, %v8378_v53  ;;  %v8584_v53 = vor.u32 %v4387_v54, %v4386_v61 }
 0x405   :  { %10655 = vst [vmem:[#allocation94_spill] sm:$0xff] %v8556_v26  ;;  %4288 = vrot.lane.b32.xlu0 %v8265_v16, %s6089_s25  ;;  %v4446_v19 = vld [vmem:[#allocation6 + $0x82] ss:$8 sm:$0xf]  ;;  %v8574_v16 = vor.u32 %v3067_v46, %v3066_v14  ;;  %10656 = vst [vmem:[#allocation95_spill] sm:$0xff] %v8576_v55  ;;  %v8586_v0 = vor.u32 %v2983_v24, %v2982_v31  ;;  %v4130_v54 = vsel %vm1274_vm1, %v8153_v17, %v8112_v5 }
 0x406   :  { %10654 = vst [vmem:[#allocation93_spill] sm:$0xff] %v8550_v38  ;;  %v4447_v52 = vld [vmem:[#allocation6 + $0x82] ss:$8 sm:$0xf0]  ;;  %3558 = vrot.lane.b32.xlu1 %v8319_v45, %s6081_s16  ;;  %10658 = vst [vmem:[#allocation97_spill] sm:$0xff] %v8584_v53  ;;  %v10667_v17 = vrot.slane %v8137_v8, %v10629_v63  ;;  %v10675_v55 = vrot.slane %v8177_v51, %v10628_v13  ;;  %v10693_v53 = vrot.slane %v8410_v43, %v10629_v63 }
 0x407   :  { %v8578_v26 = vpop.permute.xlu0 %3476  ;;  %10659 = vst [vmem:[#allocation98_spill] sm:$0xff] %v8586_v0  ;;  %v8588_v9 = vpop.permute.xlu1 %4362  ;;  %v8596_v36 = vor.u32 %v4447_v52, %v4446_v19  ;;  %v4302_v31 = vld [vmem:[#allocation6 + $0x80] ss:$8 sm:$0xf]  ;;  %v4214_v52 = vsel %vm1360_vm0, %v8114_v50, %v8186_v33  ;;  %v4237_v50 = vrot.slane %v8098_v21, %v10628_v13 }
 0x408   :  { %10657 = vst [vmem:[#allocation96_spill] sm:$0xff] %v8578_v26  ;;  %10660 = vst [vmem:[#allocation99_spill] sm:$0xff] %v8588_v9  ;;  %v4303_v7 = vld [vmem:[#allocation6 + $0x80] ss:$8 sm:$0xf0]  ;;  %v4180_v56 = vmul.f32 %v10667_v17, %v4130_v54  ;;  %v3819_v54 = vsel %vm955_vm4, %v8222_v15, %v8209_v58 }
 0x409   :  { %10661 = vst [vmem:[#allocation100_spill] sm:$0xff] %v8596_v36  ;;  %4376 = vrot.lane.b32.xlu0 %v8126_v27, %s6088_s24  ;;  %v8634_v28 = vor.u32 %v4303_v7, %v4302_v31  ;;  %v3987_v31 = vsel %vm1127_vm2, %v8198_v11, %v8151_v25  ;;  %v4153_v11 = vrot.slane %v8137_v8, %v10628_v13  ;;  %v5947_v24 = vld [vmem:[#allocation9] sm:$0xff]  ;;  %v10688_v36 = vld [vmem:[#allocation84_spill] sm:$0xff] }
 0x40a   :  { %3474 = vrot.lane.b32.xlu1 %v8319_v45, %s6082_s17  ;;  %v10679_v7 = vrot.slane %v8402_v48, %v10628_v13  ;;  %v10690_v8 = vld [vmem:[#allocation36_spill] sm:$0xff] }
 0x40b   :  { %v8620_v61 = vpop.permute.xlu0 %3308  ;;  %10664 = vst [vmem:[#allocation103_spill] sm:$0xff] %v8634_v28 }
 0x40c   :  { %10662 = vst [vmem:[#allocation101_spill] sm:$0xff] %v8620_v61  ;;  %v8630_v46 = vpop.permute.xlu1 %4280 }
 0x40d   :  { %10663 = vst [vmem:[#allocation102_spill] sm:$0xff] %v8630_v46  ;;  %v10669_v46 = vrot.slane %v8098_v21, %v10629_v63 }
 0x40e   :  { %3390 = vrot.lane.b32.xlu1 %v8319_v45, %s6083_s18 }
 0x40f   :  { %v8658_v14 = vpop.permute.xlu0 %3140  ;;  %v4264_v9 = vmul.f32 %v10669_v46, %v4214_v52  ;;  %v3820_v46 = vsel %vm955_vm4, %v8141_v2, %v8222_v15  ;;  %v3913_v15 = vrot.slane %v8402_v48, %v10579_v49 }
 0x410   :  { %10665 = vst [vmem:[#allocation104_spill] sm:$0xff] %v8658_v14  ;;  %v8670_v19 = vpop.permute.xlu1 %4278 }
 0x411   :  { %10666 = vst [vmem:[#allocation105_spill] sm:$0xff] %v8670_v19  ;;  %v6093_v19 = vmov 3  }
 0x412   :  { %3306 = vrot.lane.b32.xlu1 %v8319_v45, %s6068_s19  ;;  %5867 = vset.pattern.permute.xlu0 %v6093_v19  ;;  %v10671_v19 = vrot.slane %v8177_v51, %v10629_v63  ;;  %s6096_s19 = smov [#allocation11]  }
 0x413   :  { %v8701_v30 = vpop.permute.xlu0 %2972  ;;  %5206 = vperm.xlu0 %5867, %v5947_v24   ;;  %v3986_v24 = vsel %vm1127_vm2, %v8151_v25, %v8230_v23  ;;  %v3736_v25 = vsel %vm10369_vm5, %v8238_v37, %v8166_v41  ;;  %v10674_v23 = vrot.slane %v8406_v20, %v10578_v47  ;;  %s5814_s26 = sshll.u32 %s6096_s19, 4  ;;  %s5815_s26 = int_to_ptr.vmem [resolvable:$true] %s5814_s26 }
 0x414   :  { %10668 = vst [vmem:[#allocation106_spill] sm:$0xff] %v8701_v30  ;;  %v8710_v17 = vpop.permute.xlu1 %4202  ;;  %v8719_v28 = vmul.f32 %v10671_v19, %v3987_v31  ;;  %v3902_v19 = vsel %vm1041_vm3, %v8249_v29, %v8184_v12  ;;  %s6038_s27 = scalar_lea.vmem %s5815_s26, 1024  ;;  %p6043_p7 = scmp.lt.s32.totalorder %s5815_s26, %s5815_s26 }
 0x415   :  { %10670 = vst [vmem:[#allocation107_spill] sm:$0xff] %v8710_v17  ;;  %v4213_v52 = vsel %vm1360_vm0, %v8186_v33, %v8710_v17  ;;  %v10672_v33 = vrot.slane %v8406_v20, %v10629_v63  ;;  %v3867_v6 = vmul.f32 %v10674_v23, %v3820_v46  ;;  %v8786_v23 = vsel %vm783_vm6, %v8258_v32, %v8247_v40  ;;  %p6039_p6 = scmp.ne.s32.totalorder %s5815_s26, %s6038_s27  ;;  %p6044_p8 = scmp.lt.s32.totalorder %s6038_s27, %s6038_s27 }
 0x416   :  { %v4265_v31 = vmul.f32 %v4237_v50, %v4213_v52  ;;  %3222 = vrot.lane.b32.xlu1 %v8319_v45, %s6084_s20  ;;  %v3745_v52 = vrot.slane %v8410_v43, %v10579_v49  ;;  %v3953_v51 = vmul.f32 %v10679_v7, %v3902_v19 }
 0x417   :  { %v8744_v17 = vmul.f32 %v10672_v33, %v3819_v54  ;;  %v8750_v50 = vpop.permute.xlu0 %3554  ;;  %v3903_v54 = vsel %vm1041_vm3, %v8128_v22, %v8249_v29  ;;  %v4037_v22 = vmul.f32 %v10675_v55, %v3986_v24  ;;  %v10676_v55 = vrot.slane %v8410_v43, %v10578_v47  ;;  %p6045_p9 = por %p6044_p8, %p6043_p7 }
 0x418   :  { %5283 = vmatprep.subr.mxu1 %v4265_v31  ;;  %v8764_v33 = vpop.permute.xlu1 %4118  ;;  %v10677_v24 = vrot.slane %v8402_v48, %v10629_v63 }
 0x419   :  { %10673 = vst [vmem:[#allocation108_spill] sm:$0xff] %v8764_v33  ;;  %v4129_v12 = vsel %vm1274_vm1, %v8112_v5, %v8764_v33  ;;  %5284 = vmatpush1.msra.mxu1 %v4264_v9  ;;  %v3652_v5 = vsel %vm783_vm6, %v8196_v59, %v8258_v32  ;;  %v3783_v46 = vmul.f32 %v10676_v55, %v3736_v25  ;;  %v10681_v55 = vld [vmem:[#allocation32_spill] sm:$0xff]  ;;  %v10682_v33 = vld [vmem:[#allocation51_spill] sm:$0xff]  ;;  %p6046_p10 = pnand %p6045_p9, %p6039_p6 }
 0x41a   :  { %v4181_v9 = vmul.f32 %v4153_v11, %v4129_v12  ;;  %3138 = vrot.lane.b32.xlu1 %v8319_v45, %s6085_s21  ;;  %v3952_v29 = vmul.f32 %v10677_v24, %v3903_v54  ;;  %v10680_v11 = vld [vmem:[#allocation48_spill] sm:$0xff]  ;;  %v8817_v54 = vsel %vm697_vm8, %v10682_v33, %v10681_v55  ;;  %v10683_v24 = vld [vmem:[#allocation54_spill] sm:$0xff] }
 0x41b   :  { %v8800_v31 = vpop.permute.xlu0 %3386  ;;  %v3818_v25 = vsel %vm955_vm4, %v8209_v58, %v10680_v11  ;;  %v3735_v7 = vsel %vm10369_vm5, %v8166_v41, %v10683_v24  ;;  %v10685_v58 = vrot.slane %v8418_v42, %v10629_v63  ;;  %v10686_v11 = vld [vmem:[#allocation77_spill] sm:$0xff]  ;;  %v3821_v41 = vsel %vm955_vm4, %v10688_v36, %v8141_v2 }
 0x41c   :  { %10678 = vst [vmem:[#allocation109_spill] sm:$0xff] %v8800_v31  ;;  %5285 = vmatprep.subr.mxu1 %v4181_v9  ;;  %v8823_v19 = vpop.permute.xlu1 %3896  ;;  %v10687_v48 = vrot.slane %v10686_v11, %v10579_v49  ;;  %v10689_v9 = vld [vmem:[#allocation34_spill] sm:$0xff]  ;;  %v10692_v2 = vrot.slane %v8418_v42, %v10578_v47 }
 0x41d   :  { %10684 = vst [vmem:[#allocation32_spill] sm:$0xff] %v8823_v19  ;;  %v8831_v32 = vmul.f32 %v10685_v58, %v8786_v23  ;;  %v3905_v12 = vsel %vm1041_vm3, %v8823_v19, %v10689_v9  ;;  %5286 = vmatpush1.msra.mxu1 %v4180_v56  ;;  %v3734_v58 = vsel %vm10369_vm5, %v10683_v24, %v10690_v8  ;;  %v10694_v56 = vld [vmem:[#allocation76_spill] sm:$0xff] }
 0x41e   :  { %v8836_v1 = vmul.f32 %v10687_v48, %v3652_v5  ;;  %v3950_v31 = vmul.f32 %v3913_v15, %v3905_v12  ;;  %2970 = vrot.lane.b32.xlu1 %v8319_v45, %s6087_s23  ;;  %v10691_v48 = vld [vmem:[#allocation75_spill] sm:$0xff]  ;;  %v3699_v36 = vmul.f32 %v10692_v2, %v3652_v5  ;;  %v3784_v9 = vmul.f32 %v10693_v53, %v3735_v7  ;;  %v10698_v2 = vld [vmem:[#allocation49_spill] sm:$0xff]  ;;  %v10699_v8 = vld [vmem:[#allocation52_spill] sm:$0xff] }
 0x41f   :  { %5287 = vmatprep.subr.mxu1 %v10691_v48  ;;  %v8860_v19 = vpop.permute.xlu0 %3218  ;;  %v10696_v15 = vrot.slane %v8406_v20, %v10628_v13  ;;  %v10697_v24 = vrot.slane %v8454_v57, %v10578_v47  ;;  %v8875_v53 = vsel %vm611_vm9, %v10699_v8, %v10698_v2  ;;  %v10700_v7 = vld [vmem:[#allocation41_spill] sm:$0xff]  ;;  %v10703_v5 = vld [vmem:[#allocation47_spill] sm:$0xff] }
 0x420   :  { %5288 = vmatpush1.msra.mxu1 %v10694_v56  ;;  %10695 = vst [vmem:[#allocation51_spill] sm:$0xff] %v8860_v19  ;;  %v8881_v56 = vsel %vm611_vm9, %v10700_v7, %v10699_v8  ;;  %5221 = vmatpush1.msra.mxu0 %v3950_v31  ;;  %v8892_v19 = vsel %vm783_vm6, %v8247_v40, %v10703_v5  ;;  %v10708_v40 = vld [vmem:[#allocation90_spill] sm:$0xff] }
 0x421   :  { %v3869_v12 = vmul.f32 %v10696_v15, %v3818_v25  ;;  %v3615_v48 = vmul.f32 %v10697_v24, %v8817_v54  ;;  %v10701_v25 = vrot.slane %v8406_v20, %v10579_v49  ;;  %5289 = vmatprep.subr.mxu1 %v4037_v22  ;;  %v8886_v24 = vpop.permute.xlu1 %3728  ;;  %5222 = vmatprep.subr.mxu0 %v3867_v6 }
 0x422   :  { %10702 = vst [vmem:[#allocation54_spill] sm:$0xff] %v8886_v24  ;;  %v3737_v8 = vsel %vm10369_vm5, %v8886_v24, %v8238_v37  ;;  %5290 = vmatpush1.msra.mxu1 %v8719_v28  ;;  %v10704_v31 = vrot.slane %v8410_v43, %v10628_v13  ;;  %v8912_v44 = vsel %vm783_vm6, %v10708_v40, %v8196_v59  ;;  %v10715_v40 = vld [vmem:[#allocation58_spill] sm:$0xff]  ;;  %v10716_v24 = vld [vmem:[#allocation63_spill] sm:$0xff]  ;;  %vm10736_vm5 = vmmov %vm10707_vm12 }
 0x423   :  { %v3866_v15 = vmul.f32 %v10701_v25, %v3821_v41  ;;  %v10705_v41 = vld [vmem:[#allocation38_spill] sm:$0xff]  ;;  %v10706_v25 = vld [vmem:[#allocation55_spill] sm:$0xff]  ;;  %10709 = vst [vmem:[#allocation34_spill] sm:$0xff] %v8912_v44  ;;  %v3782_v37 = vmul.f32 %v3745_v52, %v3737_v8  ;;  %4374 = vrot.lane.b32.xlu1 %v8319_v45, %s6088_s24  ;;  %v10710_v6 = vrot.slane %v8472_v18, %v10629_v63  ;;  %v8928_v59 = vpop.permute.xlu0 %3050 }
 0x424   :  { %v3785_v22 = vmul.f32 %v10704_v31, %v3734_v58  ;;  %v8906_v20 = vsel %vm10707_vm12, %v10706_v25, %v10705_v41  ;;  %v10711_v58 = vld [vmem:[#allocation56_spill] sm:$0xff]  ;;  %5291 = vmatprep.subr.mxu1 %v3953_v51  ;;  %10712 = vst [vmem:[#allocation75_spill] sm:$0xff] %v8928_v59  ;;  %v10713_v52 = vrot.slane %v8472_v18, %v10578_v47  ;;  %v10714_v8 = vld [vmem:[#allocation42_spill] sm:$0xff] }
 0x425   :  { %5223 = vmatpush1.msra.mxu0 %v3866_v15  ;;  %v8920_v28 = vmul.f32 %v10710_v6, %v8875_v53  ;;  %v8926_v31 = vsel %vm697_vm8, %v10681_v55, %v10711_v58  ;;  %v8938_v6 = vsel %vm697_vm8, %v10711_v58, %v10714_v8  ;;  %v8944_v55 = vsel %vm439_vm11, %v10716_v24, %v10715_v40  ;;  %v8946_v51 = vpop.permute.xlu1 %3560 }
 0x426   :  { %5224 = vmatprep.subr.mxu0 %v3783_v46  ;;  %v3531_v15 = vmul.f32 %v10713_v52, %v8881_v56  ;;  %5292 = vmatpush1.msra.mxu1 %v3952_v29  ;;  %10717 = vst [vmem:[#allocation76_spill] sm:$0xff] %v8946_v51  ;;  %v10718_v46 = vrot.slane %v8418_v42, %v10628_v13 }
 0x427   :  { %5225 = vmatpush1.msra.mxu0 %v3782_v37  ;;  %v10719_v58 = vrot.slane %v8418_v42, %v10579_v49  ;;  %5293 = vmatprep.subr.mxu1 %v3869_v12  ;;  %v8960_v59 = vsel %vm697_vm8, %v8946_v51, %v10682_v33  ;;  %v10721_v29 = vrot.slane %v8490_v35, %v10578_v47  ;;  %v10731_v51 = vld [vmem:[#allocation66_spill] sm:$0xff]  ;;  %v10735_v42 = vld [vmem:[#allocation43_spill] sm:$0xff] }
 0x428   :  { %v3701_v52 = vmul.f32 %v10718_v46, %v8892_v19  ;;  %10720 = vst [vmem:[#allocation49_spill] sm:$0xff] %v8960_v59  ;;  %5226 = vmatprep.subr.mxu0 %v3699_v36  ;;  %v10722_v46 = vrot.slane %v8454_v57, %v10629_v63  ;;  %v8974_v12 = vsel %vm611_vm9, %v8578_v26, %v10700_v7  ;;  %v10730_v26 = vld [vmem:[#allocation57_spill] sm:$0xff] }
 0x429   :  { %v3698_v43 = vmul.f32 %v10719_v58, %v8912_v44  ;;  %v3447_v37 = vmul.f32 %v10721_v29, %v8906_v20  ;;  %10723 = vst [vmem:[#allocation52_spill] sm:$0xff] %v8974_v12  ;;  %v10724_v36 = vrot.slane %v8454_v57, %v10579_v49  ;;  %5294 = vmatpush1.msra.mxu1 %v8744_v17  ;;  %v10725_v58 = vld [vmem:[#allocation46_spill] sm:$0xff]  ;;  %v10729_v44 = vld [vmem:[#allocation59_spill] sm:$0xff] }
 0x42a   :  { %v3616_v21 = vmul.f32 %v10722_v46, %v8926_v31  ;;  %4290 = vrot.lane.b32.xlu1 %v8319_v45, %s6089_s25  ;;  %v8987_v29 = vsel %vm439_vm11, %v10725_v58, %v10716_v24  ;;  %v10726_v7 = vrot.slane %v8500_v60, %v10629_v63  ;;  %5295 = vmatprep.subr.mxu1 %v3785_v22 }
 0x42b   :  { %v3614_v33 = vmul.f32 %v10724_v36, %v8960_v59  ;;  %5227 = vmatpush1.msra.mxu0 %v3698_v43  ;;  %v8995_v36 = vpop.permute.xlu0 %2966  ;;  %v10728_v17 = vrot.slane %v8454_v57, %v10628_v13  ;;  %v9005_v24 = vsel %vm611_vm9, %v10698_v2, %v10729_v44  ;;  %v10733_v43 = vld [vmem:[#allocation27_spill] sm:$0xff]  ;;  %5296 = vmatpush1.msra.mxu1 %v3784_v9 }
 0x42c   :  { %v8993_v46 = vmul.f32 %v10726_v7, %v8944_v55  ;;  %10727 = vst [vmem:[#allocation41_spill] sm:$0xff] %v8995_v36  ;;  %v9011_v7 = vsel %vm10732_vm10, %v10731_v51, %v10730_v26  ;;  %v9017_v22 = vsel %vm10707_vm12, %v10705_v41, %v10733_v43  ;;  %5228 = vmatprep.subr.mxu0 %v3615_v48  ;;  %vm10738_vm10 = vmmov %vm10736_vm5  ;;  %vm10755_vm12 = vcmp.lt.s32.totalorder %v6261_v10, 72 }
 0x42d   :  { %v3617_v59 = vmul.f32 %v10728_v17, %v8938_v6  ;;  %v9019_v17 = vpop.permute.xlu1 %3392  ;;  %v9025_v2 = vsel %vm10736_vm5, %v10733_v43, %v10735_v42  ;;  %v10737_v57 = vrot.slane %v8472_v18, %v10579_v49  ;;  %5229 = vmatpush1.msra.mxu0 %v3614_v33  ;;  %5297 = vmatprep.subr.mxu1 %v3701_v52  ;;  %vm10749_vm5 = vcmp.lt.s32.totalorder %v6261_v10, 71 }
 0x42e   :  { %10734 = vst [vmem:[#allocation47_spill] sm:$0xff] %v9019_v17  ;;  %v9035_v9 = vsel %vm10738_vm10, %v9019_v17, %v10706_v25  ;;  %v9041_v48 = vsel %vm439_vm11, %v8620_v61, %v10725_v58  ;;  %v10741_v41 = vrot.slane %v8490_v35, %v10579_v49  ;;  %5230 = vmatprep.subr.mxu0 %v3531_v15  ;;  %v10750_v61 = vld [vmem:[#allocation20_spill] sm:$0xff]  ;;  %vm10757_vm10 = vcmp.lt.s32.totalorder %v6261_v10, 65 }
 0x42f   :  { %v3530_v45 = vmul.f32 %v10737_v57, %v8974_v12  ;;  %10739 = vst [vmem:[#allocation38_spill] sm:$0xff] %v9035_v9  ;;  %10740 = vst [vmem:[#allocation55_spill] sm:$0xff] %v9041_v48  ;;  %5298 = vmatpush1.msra.mxu1 %v8831_v32  ;;  %v10742_v57 = vrot.slane %v8500_v60, %v10578_v47  ;;  %v10743_v52 = vrot.slane %v8490_v35, %v10629_v63  ;;  %v9058_v58 = vpop.permute.xlu0 %4204  ;;  %v10748_v12 = vld [vmem:[#allocation50_spill] sm:$0xff] }
 0x430   :  { %v3446_v43 = vmul.f32 %v10741_v41, %v9035_v9  ;;  %4292 = vrot.lane.b32.xlu1 %v8126_v27, %s6089_s25  ;;  %10744 = vst [vmem:[#allocation56_spill] sm:$0xff] %v9058_v58  ;;  %v10745_v32 = vrot.slane %v8472_v18, %v10628_v13  ;;  %v10746_v41 = vrot.slane %v8532_v34, %v10578_v47  ;;  %v10747_v9 = vld [vmem:[#allocation22_spill] sm:$0xff]  ;;  %v10753_v18 = vld [vmem:[#allocation61_spill] sm:$0xff] }
 0x431   :  { %v3363_v25 = vmul.f32 %v10742_v57, %v8987_v29  ;;  %v3448_v33 = vmul.f32 %v10743_v52, %v9017_v22  ;;  %5231 = vmatpush1.msra.mxu0 %v3530_v45  ;;  %v9072_v52 = vsel %vm10749_vm5, %v10748_v12, %v10747_v9  ;;  %v9078_v45 = vsel %vm439_vm11, %v10715_v40, %v10750_v61  ;;  %v10754_v27 = vld [vmem:[#allocation70_spill] sm:$0xff] }
 0x432   :  { %v3533_v15 = vmul.f32 %v10745_v32, %v9005_v24  ;;  %v3279_v57 = vmul.f32 %v10746_v41, %v9011_v7  ;;  %5299 = vmatprep.subr.mxu1 %v3617_v59  ;;  %5232 = vmatprep.subr.mxu0 %v3447_v37  ;;  %v9080_v32 = vpop.permute.xlu1 %3224  ;;  %v10752_v41 = vrot.slane %v8490_v35, %v10628_v13  ;;  %v10759_v37 = vld [vmem:[#allocation60_spill] sm:$0xff] }
 0x433   :  { %10751 = vst [vmem:[#allocation42_spill] sm:$0xff] %v9080_v32  ;;  %v9090_v58 = vsel %vm10755_vm12, %v10754_v27, %v10753_v18  ;;  %v10756_v40 = vrot.slane %v8500_v60, %v10579_v49  ;;  %5300 = vmatpush1.msra.mxu1 %v3616_v21  ;;  %5233 = vmatpush1.msra.mxu0 %v3446_v43  ;;  %vm10760_vm12 = vmmov %vm10749_vm5 }
 0x434   :  { %v3449_v17 = vmul.f32 %v10752_v41, %v9025_v2  ;;  %v9100_v59 = vsel %vm10757_vm10, %v9080_v32, %v10731_v51  ;;  %v9106_v41 = vsel %vm10749_vm5, %v10747_v9, %v10759_v37  ;;  %v9112_v35 = vsel %vm10760_vm12, %v8658_v14, %v10748_v12  ;;  %5301 = vmatprep.subr.mxu1 %v3533_v15  ;;  %v10764_v9 = vld [vmem:[#allocation69_spill] sm:$0xff]  ;;  %v9129_v12 = vpop.permute.xlu0 %4120  ;;  %vm10769_vm5 = vmmov %vm10757_vm10 }
 0x435   :  { %v3362_v36 = vmul.f32 %v10756_v40, %v9041_v48  ;;  %10758 = vst [vmem:[#allocation58_spill] sm:$0xff] %v9100_v59  ;;  %10761 = vst [vmem:[#allocation63_spill] sm:$0xff] %v9112_v35  ;;  %v10762_v21 = vrot.slane %v8532_v34, %v10579_v49  ;;  %5234 = vmatprep.subr.mxu0 %v3363_v25  ;;  %v10763_v51 = vrot.slane %v8500_v60, %v10628_v13  ;;  %v10765_v48 = vld [vmem:[#allocation19_spill] sm:$0xff]  ;;  %v10773_v60 = vld [vmem:[#allocation74_spill] sm:$0xff] }
 0x436   :  { %v9126_v32 = vsel %vm10757_vm10, %v10765_v48, %v10764_v9  ;;  %5302 = vmatpush1.msra.mxu1 %v8920_v28  ;;  %10766 = vst [vmem:[#allocation46_spill] sm:$0xff] %v9129_v12  ;;  %v10767_v25 = vrot.slane %v8548_v39, %v10578_v47  ;;  %v10770_v28 = vld [vmem:[#allocation17_spill] sm:$0xff]  ;;  %vm10775_vm10 = vcmp.lt.s32.totalorder %v6261_v10, 72 }
 0x437   :  { %v3278_v43 = vmul.f32 %v10762_v21, %v9100_v59  ;;  %v3365_v40 = vmul.f32 %v10763_v51, %v9078_v45  ;;  %5235 = vmatpush1.msra.mxu0 %v3362_v36  ;;  %v10768_v21 = vrot.slane %v8574_v16, %v10578_v47  ;;  %v9143_v59 = vsel %vm10769_vm5, %v10730_v26, %v10765_v48  ;;  %v10771_v36 = vld [vmem:[#allocation62_spill] sm:$0xff]  ;;  %vm10783_vm5 = vmmov %vm10775_vm10 }
 0x438   :  { %v3195_v15 = vmul.f32 %v10767_v25, %v9072_v52  ;;  %v9149_v14 = vsel %vm96_vm15, %v10771_v36, %v10770_v28  ;;  %5303 = vmatprep.subr.mxu1 %v3449_v17  ;;  %5236 = vmatprep.subr.mxu0 %v3279_v57  ;;  %v9151_v25 = vpop.permute.xlu1 %3056  ;;  %v10774_v26 = vrot.slane %v8548_v39, %v10579_v49 }
 0x439   :  { %v3111_v51 = vmul.f32 %v10768_v21, %v9090_v58  ;;  %10772 = vst [vmem:[#allocation59_spill] sm:$0xff] %v9151_v25  ;;  %v9157_v21 = vsel %vm10760_vm12, %v10759_v37, %v10773_v60  ;;  %5304 = vmatpush1.msra.mxu1 %v3448_v33  ;;  %5237 = vmatpush1.msra.mxu0 %v3278_v43  ;;  %vm10787_vm12 = vmmov %vm10783_vm5 }
 0x43a   :  { %v3194_v48 = vmul.f32 %v10774_v26, %v9112_v35  ;;  %v9167_v17 = vsel %vm10775_vm10, %v9151_v25, %v10754_v27  ;;  %v10777_v57 = vrot.slane %v8532_v34, %v10628_v13  ;;  %v9177_v37 = vsel %vm96_vm15, %v8701_v30, %v10771_v36  ;;  %5305 = vmatprep.subr.mxu1 %v3365_v40  ;;  %v10781_v35 = vld [vmem:[#allocation28_spill] sm:$0xff]  ;;  %v9194_v40 = vpop.permute.xlu0 %4208 }
 0x43b   :  { %10776 = vst [vmem:[#allocation57_spill] sm:$0xff] %v9167_v17  ;;  %10778 = vst [vmem:[#allocation66_spill] sm:$0xff] %v9177_v37  ;;  %v10779_v33 = vrot.slane %v8574_v16, %v10579_v49  ;;  %5238 = vmatprep.subr.mxu0 %v3195_v15  ;;  %v10780_v27 = vrot.slane %v8532_v34, %v10629_v63  ;;  %5306 = vmatpush1.msra.mxu1 %v8993_v46  ;;  %v10790_v34 = vld [vmem:[#allocation87_spill] sm:$0xff]  ;;  %vm10811_vm10 = vcmp.lt.s32.totalorder %v6261_v10, 63 }
 0x43c   :  { %v3281_v12 = vmul.f32 %v10777_v57, %v9126_v32  ;;  %v10782_v57 = vld [vmem:[#allocation80_spill] sm:$0xff]  ;;  %5239 = vmatpush1.msra.mxu0 %v3194_v48  ;;  %v10784_v15 = vrot.slane %v10686_v11, %v10578_v47  ;;  %v9214_v48 = vpop.permute.xlu1 %3638 }
 0x43d   :  { %v3110_v43 = vmul.f32 %v10779_v33, %v9167_v17  ;;  %v3280_v26 = vmul.f32 %v10780_v27, %v9143_v59  ;;  %v9191_v25 = vsel %vm10783_vm5, %v10782_v57, %v10781_v35  ;;  %v10785_v33 = vrot.slane %v8586_v0, %v10578_v47  ;;  %5240 = vmatprep.subr.mxu0 %v3111_v51 }
 0x43e   :  { %v4971_v36 = vmul.f32 %v10784_v15, %v8786_v23  ;;  %v10786_v17 = vrot.slane %v8548_v39, %v10628_v13  ;;  %v9212_v46 = vsel %vm10787_vm12, %v10753_v18, %v10782_v57  ;;  %5307 = vmatprep.subr.mxu1 %v3281_v12  ;;  %v10788_v23 = vrot.slane %v8548_v39, %v10629_v63 }
 0x43f   :  { %v3027_v27 = vmul.f32 %v10785_v33, %v9149_v14  ;;  %v10789_v33 = vld [vmem:[#allocation65_spill] sm:$0xff]  ;;  %v10791_v18 = vrot.slane %v8586_v0, %v10579_v49  ;;  %5308 = vmatpush1.msra.mxu1 %v3280_v26  ;;  %5241 = vmatpush1.msra.mxu0 %v3110_v43  ;;  %v10792_v12 = vrot.slane %v8574_v16, %v10628_v13  ;;  %vm10823_vm5 = vcmp.lt.s32.totalorder %v6261_v10, 65 }
 0x440   :  { %v3197_v30 = vmul.f32 %v10786_v17, %v9157_v21  ;;  %v3196_v15 = vmul.f32 %v10788_v23, %v9106_v41  ;;  %v9224_v17 = vsel %vm96_vm15, %v10790_v34, %v10789_v33  ;;  %v9238_v23 = vsel %vm96_vm15, %v10770_v28, %v10790_v34 }
 0x441   :  { %v3026_v57 = vmul.f32 %v10791_v18, %v9177_v37  ;;  %v3113_v51 = vmul.f32 %v10792_v12, %v9191_v25  ;;  %5242 = vmatprep.subr.mxu0 %v3027_v27  ;;  %v4825_v39 = vrot.slane %v8474_v3, %v10628_v13  ;;  %v10793_v43 = vrot.slane %v8452_v4, %v10579_v49  ;;  %v9262_v27 = vpop.permute.xlu1 %3470  ;;  %v10846_v37 = vld [vmem:[#allocation41_spill] sm:$0xff] }
 0x442   :  { %5309 = vmatprep.subr.mxu1 %v3197_v30  ;;  %v10794_v18 = vrot.slane %v8574_v16, %v10629_v63  ;;  %v9254_v34 = vsel %vm783_vm6, %v10703_v5, %v9214_v48  ;;  %v9256_v30 = vpop.permute.xlu0 %3976  ;;  %v10795_v28 = vrot.slane %v8586_v0, %v10628_v13  ;;  %v4705_v5 = vrot.slane %v8502_v62, %v10628_v13 }
 0x443   :  { %v4910_v26 = vmul.f32 %v10793_v43, %v8817_v54  ;;  %5310 = vmatpush1.msra.mxu1 %v3196_v15  ;;  %5243 = vmatpush1.msra.mxu0 %v3026_v57  ;;  %v10796_v43 = vrot.slane %v8452_v4, %v10578_v47  ;;  %v10797_v15 = vrot.slane %v8586_v0, %v10629_v63  ;;  %vm10829_vm12 = vcmp.lt.s32.totalorder %v6261_v10, 71 }
 0x444   :  { %v3112_v12 = vmul.f32 %v10794_v18, %v9212_v46  ;;  %v3029_v54 = vmul.f32 %v10795_v28, %v9224_v17  ;;  %5311 = vmatprep.subr.mxu1 %v3113_v51  ;;  %5254 = vmatprep.subr.mxu0 %v4971_v36  ;;  %v9278_v36 = vsel %vm697_vm8, %v10714_v8, %v8750_v50 }
 0x445   :  { %v4911_v18 = vmul.f32 %v10796_v43, %v8926_v31  ;;  %v3028_v57 = vmul.f32 %v10797_v15, %v9238_v23  ;;  %5255 = vmatpush2.msra.mxu0 %v8836_v1  ;;  %v10798_v51 = vrot.slane %v8474_v3, %v10579_v49  ;;  %v10799_v43 = vrot.slane %v10686_v11, %v10628_v13 }
 0x446   :  { %5312 = vmatpush1.msra.mxu1 %v3112_v12  ;;  %v10800_v8 = vrot.slane %v8474_v3, %v10578_v47  ;;  %v10801_v12 = vrot.slane %v10686_v11, %v10629_v63 }
 0x447   :  { %v4850_v28 = vmul.f32 %v10798_v51, %v8881_v56  ;;  %v4973_v15 = vmul.f32 %v10799_v43, %v9254_v34  ;;  %5313 = vmatprep.subr.mxu1 %v3029_v54  ;;  %5256 = vmatprep.subr.mxu0 %v4911_v18  ;;  %v9303_v56 = vsel %vm611_vm9, %v10729_v44, %v9262_v27  ;;  %v9305_v54 = vpop.permute.xlu0 %3890  ;;  %v10802_v18 = vld [vmem:[#allocation64_spill] sm:$0xff]  ;;  %v10803_v51 = vld [vmem:[#allocation26_spill] sm:$0xff] }
 0x448   :  { %v4851_v1 = vmul.f32 %v10800_v8, %v8875_v53  ;;  %v4972_v31 = vmul.f32 %v10801_v12, %v8892_v19  ;;  %5314 = vmatpush1.msra.mxu1 %v3028_v57  ;;  %5257 = vmatpush2.msra.mxu0 %v4910_v26  ;;  %v10804_v53 = vrot.slane %v8452_v4, %v10628_v13  ;;  %v9313_v19 = vpop.permute.xlu1 %3302  ;;  %v10805_v12 = vld [vmem:[#allocation82_spill] sm:$0xff]  ;;  %v10807_v26 = vld [vmem:[#allocation97_spill] sm:$0xff] }
 0x449   :  { %5325 = vmatprep.subr.mxu1 %v4973_v15  ;;  %v10806_v44 = vrot.slane %v10805_v12, %v10578_v47  ;;  %v10808_v43 = vrot.slane %v10805_v12, %v10579_v49  ;;  %v10809_v15 = vrot.slane %v8452_v4, %v10629_v63 }
 0x44a   :  { %v4913_v8 = vmul.f32 %v10804_v53, %v9278_v36  ;;  %5258 = vmatprep.subr.mxu0 %v4851_v1  ;;  %v10810_v53 = vld [vmem:[#allocation109_spill] sm:$0xff]  ;;  %5326 = vmatpush2.msra.mxu1 %v4972_v31  ;;  %v10815_v31 = vrot.slane %v8474_v3, %v10629_v63 }
 0x44b   :  { %v4791_v57 = vmul.f32 %v10806_v44, %v9017_v22  ;;  %v4790_v11 = vmul.f32 %v10808_v43, %v8906_v20  ;;  %v4912_v1 = vmul.f32 %v10809_v15, %v8938_v6  ;;  %v9333_v0 = vsel %vm10811_vm10, %v10735_v42, %v10810_v53  ;;  %5259 = vmatpush2.msra.mxu0 %v4850_v28  ;;  %v10813_v44 = vld [vmem:[#allocation25_spill] sm:$0xff]  ;;  %v10841_v6 = vld [vmem:[#allocation16_spill] sm:$0xff] }
 0x44c   :  { %v4853_v22 = vmul.f32 %v4825_v39, %v9303_v56  ;;  %5327 = vmatprep.subr.mxu1 %v4913_v8  ;;  %v10812_v20 = vrot.slane %v8502_v62, %v10578_v47  ;;  %v10814_v15 = vrot.slane %v8502_v62, %v10579_v49  ;;  %v4852_v39 = vmul.f32 %v10815_v31, %v9005_v24  ;;  %v10816_v8 = vld [vmem:[#allocation88_spill] sm:$0xff] }
 0x44d   :  { %5260 = vmatprep.subr.mxu0 %v4791_v57  ;;  %v9354_v28 = vsel %vm439_vm11, %v10750_v61, %v9313_v19  ;;  %5328 = vmatpush2.msra.mxu1 %v4912_v1  ;;  %v10817_v57 = vrot.slane %v10816_v8, %v10579_v49  ;;  %v10820_v1 = vrot.slane %v10805_v12, %v10629_v63  ;;  %vm10838_vm10 = vcmp.lt.s32.totalorder %v6261_v10, 72 }
 0x44e   :  { %v4731_v43 = vmul.f32 %v10812_v20, %v8944_v55  ;;  %v4730_v42 = vmul.f32 %v10814_v15, %v8987_v29  ;;  %5261 = vmatpush2.msra.mxu0 %v4790_v11  ;;  %v9356_v55 = vpop.permute.xlu0 %3806  ;;  %v10818_v20 = vrot.slane %v10816_v8, %v10578_v47  ;;  %v10819_v15 = vrot.slane %v10805_v12, %v10628_v13  ;;  %v9370_v11 = vpop.permute.xlu1 %3134  ;;  %v10901_v12 = vld [vmem:[#allocation85_spill] sm:$0xff] }
 0x44f   :  { %v4670_v29 = vmul.f32 %v10817_v57, %v9011_v7  ;;  %5329 = vmatprep.subr.mxu1 %v4853_v22  ;;  %v4792_v31 = vmul.f32 %v10820_v1, %v9025_v2  ;;  %v10821_v7 = vrot.slane %v8550_v38, %v10579_v49  ;;  %v10824_v22 = vrot.slane %v8502_v62, %v10629_v63  ;;  %v10826_v1 = vld [vmem:[#allocation95_spill] sm:$0xff] }
 0x450   :  { %v4671_v24 = vmul.f32 %v10818_v20, %v9143_v59  ;;  %v4793_v61 = vmul.f32 %v10819_v15, %v9333_v0  ;;  %5262 = vmatprep.subr.mxu0 %v4731_v43  ;;  %v10822_v59 = vld [vmem:[#allocation51_spill] sm:$0xff]  ;;  %5330 = vmatpush2.msra.mxu1 %v4852_v39  ;;  %v4733_v2 = vmul.f32 %v4705_v5, %v9354_v28 }
 0x451   :  { %v4610_v57 = vmul.f32 %v10821_v7, %v9072_v52  ;;  %v9384_v20 = vsel %vm10823_vm5, %v10764_v9, %v10822_v59  ;;  %5263 = vmatpush2.msra.mxu0 %v4730_v42  ;;  %v4732_v43 = vmul.f32 %v10824_v22, %v9078_v45  ;;  %v10825_v52 = vrot.slane %v8550_v38, %v10578_v47 }
 0x452   :  { %5331 = vmatprep.subr.mxu1 %v4793_v61  ;;  %5264 = vmatprep.subr.mxu0 %v4671_v24  ;;  %v10827_v9 = vrot.slane %v10826_v1, %v10579_v49  ;;  %v10828_v42 = vrot.slane %v10816_v8, %v10629_v63  ;;  %v9407_v45 = vsel %vm10829_vm12, %v10773_v60, %v9370_v11  ;;  %v9409_v5 = vpop.permute.xlu0 %3978  ;;  %v10831_v24 = vld [vmem:[#allocation67_spill] sm:$0xff] }
 0x453   :  { %v4611_v15 = vmul.f32 %v10825_v52, %v9106_v41  ;;  %5332 = vmatpush2.msra.mxu1 %v4792_v31  ;;  %5265 = vmatpush2.msra.mxu0 %v4670_v29  ;;  %v10830_v41 = vld [vmem:[#allocation18_spill] sm:$0xff]  ;;  %v10832_v61 = vrot.slane %v10826_v1, %v10578_v47  ;;  %v10833_v22 = vrot.slane %v10816_v8, %v10628_v13  ;;  %v9423_v29 = vpop.permute.xlu1 %4206  ;;  %v10834_v31 = vld [vmem:[#allocation100_spill] sm:$0xff]  ;;  %v10853_v8 = vld [vmem:[#allocation103_spill] sm:$0xff] }
 0x454   :  { %v4550_v39 = vmul.f32 %v10827_v9, %v9090_v58  ;;  %v4672_v7 = vmul.f32 %v10828_v42, %v9126_v32  ;;  %v4382_v58 = vsel %vm1532_vm13, %v10831_v24, %v10830_v41  ;;  %5333 = vmatprep.subr.mxu1 %v4733_v2  ;;  %v10835_v52 = vrot.slane %v10834_v31, %v10579_v49  ;;  %v10839_v2 = vld [vmem:[#allocation91_spill] sm:$0xff] }
 0x455   :  { %v4551_v32 = vmul.f32 %v10832_v61, %v9212_v46  ;;  %v4673_v60 = vmul.f32 %v10833_v22, %v9384_v20  ;;  %5266 = vmatprep.subr.mxu0 %v4611_v15  ;;  %v10836_v42 = vrot.slane %v10834_v31, %v10578_v47  ;;  %v10837_v46 = vld [vmem:[#allocation75_spill] sm:$0xff]  ;;  %5334 = vmatpush2.msra.mxu1 %v4732_v43 }
 0x456   :  { %v4490_v9 = vmul.f32 %v10835_v52, %v9149_v14  ;;  %v9437_v61 = vsel %vm10838_vm10, %v10781_v35, %v10837_v46  ;;  %5267 = vmatpush2.msra.mxu0 %v4610_v57  ;;  %v10840_v15 = vld [vmem:[#allocation99_spill] sm:$0xff]  ;;  %v10842_v14 = vld [vmem:[#allocation102_spill] sm:$0xff]  ;;  %v10844_v35 = vrot.slane %v8550_v38, %v10629_v63  ;;  %v10845_v43 = vrot.slane %v10826_v1, %v10629_v63 }
 0x457   :  { %v4491_v24 = vmul.f32 %v10836_v42, %v9238_v23  ;;  %v4384_v22 = vsel %vm1532_vm13, %v10840_v15, %v10839_v2  ;;  %v4299_v52 = vsel %vm1446_vm14, %v10842_v14, %v10841_v6  ;;  %v10843_v23 = vrot.slane %v8550_v38, %v10628_v13  ;;  %5335 = vmatprep.subr.mxu1 %v4673_v60  ;;  %v9465_v60 = vpop.permute.xlu0 %3724 }
 0x458   :  { %5268 = vmatprep.subr.mxu0 %v4551_v32  ;;  %v4612_v57 = vmul.f32 %v10844_v35, %v9157_v21  ;;  %v4552_v2 = vmul.f32 %v10845_v43, %v9191_v25  ;;  %v9463_v15 = vsel %vm96_vm15, %v10789_v33, %v10846_v37  ;;  %5336 = vmatpush2.msra.mxu1 %v4672_v7  ;;  %v10847_v32 = vld [vmem:[#allocation94_spill] sm:$0xff]  ;;  %v10849_v35 = vld [vmem:[#allocation105_spill] sm:$0xff] }
 0x459   :  { %v4613_v42 = vmul.f32 %v10843_v23, %v9407_v45  ;;  %5269 = vmatpush2.msra.mxu0 %v4550_v39  ;;  %v10848_v23 = vrot.slane %v10807_v26, %v10578_v47  ;;  %v4300_v25 = vsel %vm1446_vm14, %v10849_v35, %v10842_v14  ;;  %v10850_v43 = vrot.slane %v10826_v1, %v10628_v13  ;;  %v9479_v39 = vpop.permute.xlu1 %4370 }
 0x45a   :  { %5270 = vmatprep.subr.mxu0 %v4491_v24  ;;  %10851 = vst [vmem:[#allocation27_spill] sm:$0xff] %v9479_v39  ;;  %v10852_v7 = vrot.slane %v10807_v26, %v10579_v49  ;;  %v4381_v14 = vsel %vm1532_vm13, %v10830_v41, %v9479_v39  ;;  %v10855_v24 = vrot.slane %v10834_v31, %v10628_v13 }
 0x45b   :  { %v4431_v21 = vmul.f32 %v10848_v23, %v10847_v32  ;;  %v4553_v33 = vmul.f32 %v10850_v43, %v9437_v61  ;;  %5337 = vmatprep.subr.mxu1 %v4613_v42  ;;  %v10854_v32 = vrot.slane %v10853_v8, %v10578_v47  ;;  %5271 = vmatpush2.msra.mxu0 %v4490_v9  ;;  %v10856_v43 = vld [vmem:[#allocation56_spill] sm:$0xff] }
 0x45c   :  { %v4430_v38 = vmul.f32 %v10852_v7, %v4384_v22  ;;  %5338 = vmatpush2.msra.mxu1 %v4612_v57  ;;  %v4493_v42 = vmul.f32 %v10855_v24, %v9463_v15  ;;  %v4211_v22 = vsel %vm1360_vm0, %v10856_v43, %v9423_v29  ;;  %v10857_v47 = vrot.slane %v10807_v26, %v10628_v13 }
 0x45d   :  { %v4347_v23 = vmul.f32 %v10854_v32, %v4299_v52  ;;  %5339 = vmatprep.subr.mxu1 %v4553_v33  ;;  %5272 = vmatprep.subr.mxu0 %v4431_v21  ;;  %v10858_v41 = vrot.slane %v10834_v31, %v10629_v63  ;;  %v10859_v57 = vrot.slane %v10853_v8, %v10579_v49  ;;  %v10860_v32 = vld [vmem:[#allocation107_spill] sm:$0xff]  ;;  %v9513_v33 = vpop.permute.xlu0 %3640  ;;  %v4123_v49 = vpop.permute.xlu1 %4122 }
 0x45e   :  { %v4433_v9 = vmul.f32 %v10857_v47, %v4381_v14  ;;  %v4212_v24 = vsel %vm1360_vm0, %v10860_v32, %v10856_v43  ;;  %5340 = vmatpush2.msra.mxu1 %v4552_v2  ;;  %5273 = vmatpush2.msra.mxu0 %v4430_v38  ;;  %v9515_v14 = vld [vmem:[#allocation8 + $0x10] sm:$0xff]  ;;  %v10862_v21 = vrot.slane %v10807_v26, %v10629_v63  ;;  %v10865_v43 = vld [vmem:[#allocation46_spill] sm:$0xff]  ;;  %v10866_v2 = vld [vmem:[#allocation108_spill] sm:$0xff] }
 0x45f   :  { %v4492_v52 = vmul.f32 %v10858_v41, %v9224_v17  ;;  %v4346_v7 = vmul.f32 %v10859_v57, %v4300_v25  ;;  %10861 = vst [vmem:[#allocation43_spill] sm:$0xff] %v9515_v14  ;;  %v10863_v17 = vld [vmem:[#allocation68_spill] sm:$0xff]  ;;  %5341 = vmatprep.subr.mxu1 %v4493_v42  ;;  %5274 = vmatprep.subr.mxu0 %v4347_v23  ;;  %v10864_v25 = vld [vmem:[#allocation37_spill] sm:$0xff] }
 0x460   :  { %v4432_v47 = vmul.f32 %v10862_v21, %v4382_v58  ;;  %v4157_v41 = vrot.slane %v10813_v44, %v10863_v17  ;;  %v4073_v57 = vrot.slane %v10864_v25, %v10863_v17  ;;  %v4128_v38 = vsel %vm1274_vm1, %v10866_v2, %v10865_v43  ;;  %v10872_v2 = vld [vmem:[#allocation72_spill] sm:$0xff] }
 0x461   :  { %v10867_v32 = vrot.slane %v10803_v51, %v10802_v18  ;;  %5342 = vmatpush2.msra.mxu1 %v4492_v52  ;;  %5275 = vmatpush2.msra.mxu0 %v4346_v7  ;;  %v4127_v58 = vsel %vm1274_vm1, %v10865_v43, %v4123_v49  ;;  %v10868_v23 = vrot.slane %v10803_v51, %v10863_v17  ;;  %v9545_v7 = vpop.permute.xlu0 %3556  ;;  %v10870_v43 = vld [vmem:[#allocation44_spill] sm:$0xff] }
 0x462   :  { %5343 = vmatprep.subr.mxu1 %v4433_v9  ;;  %v10869_v21 = vrot.slane %v10813_v44, %v10802_v18  ;;  %5277 = vmatmul.mubr.f32.vlgmr.msra.gmra.mxu0 %v9515_v14  ;;  %v4317_v52 = vrot.slane %v10853_v8, %v10629_v63  ;;  %v10871_v9 = vrot.slane %v10864_v25, %v10802_v18  ;;  %v9557_v63 = vpop.permute.xlu1 %4286 }
 0x463   :  { %v4267_v35 = vmul.f32 %v10867_v32, %v4211_v22  ;;  %v4266_v42 = vmul.f32 %v10868_v23, %v4212_v24  ;;  %v4321_v22 = vrot.slane %v10853_v8, %v10628_v13  ;;  %5344 = vmatpush2.msra.mxu1 %v4432_v47  ;;  %v4298_v32 = vsel %vm1446_vm14, %v10841_v6, %v10872_v2  ;;  %v10873_v23 = vld [vmem:[#allocation21_spill] sm:$0xff] }
 0x464   :  { %v4183_v39 = vmul.f32 %v10869_v21, %v4127_v58  ;;  %v4099_v24 = vmul.f32 %v10871_v9, %v10870_v43  ;;  %v4182_v58 = vmul.f32 %v4157_v41, %v4128_v38  ;;  %v4253_v13 = vrot.slane %v10803_v51, %v10873_v23  ;;  %10874 = vst [vmem:[#allocation22_spill] sm:$0xff] %v9557_v63  ;;  %v10875_v47 = vld [vmem:[#allocation29_spill] sm:$0xff]  ;;  %v10876_v43 = vld [vmem:[#allocation39_spill] sm:$0xff] }
 0x465   :  { %5354 = vmatprep.subr.mxu0 %v4267_v35  ;;  %v5948_v35 = vld [vmem:[#allocation8 + $0x18] sm:$0xff]  ;;  %v4217_v21 = vsel %vm1360_vm0, %v9194_v40, %v10875_v47  ;;  %v4249_v9 = vrot.slane %v10803_v51, %v10876_v43  ;;  %v4297_v6 = vsel %vm1446_vm14, %v10872_v2, %v9557_v63  ;;  %v10877_v41 = vld [vmem:[#allocation45_spill] sm:$0xff]  ;;  %v10878_v47 = vld [vmem:[#allocation40_spill] sm:$0xff]  ;;  %v9579_v31 = vpop.permute.xlu0 %3472 }
 0x466   :  { %5355 = vmatpush1.msra.mxu0 %v4266_v42  ;;  %5831 = vmatprep.mubr.msk.f32.mxu0 %vm2374_vm7, %v5948_v35  ;;  %v4098_v38 = vmul.f32 %v4073_v57, %v10877_v41  ;;  %v4210_v42 = vsel %vm1360_vm0, %v9423_v29, %v9194_v40  ;;  %v4349_v8 = vmul.f32 %v4321_v22, %v4297_v6  ;;  %v3975_v57 = vpop.permute.xlu1 %3974  ;;  %v10880_v29 = vld [vmem:[#allocation35_spill] sm:$0xff]  ;;  %vm10894_vm0 = vcmp.lt.s32.totalorder %v6261_v10, 9 }
 0x467   :  { %5356 = vmatprep.subr.mxu0 %v4183_v39  ;;  %v4013_v26 = vrot.slane %v10878_v47, %v10863_v17  ;;  %v4017_v51 = vrot.slane %v10878_v47, %v10802_v18  ;;  %v4348_v39 = vmul.f32 %v4317_v52, %v4298_v32  ;;  %10879 = vst [vmem:[#allocation50_spill] sm:$0xff] %v9579_v31 }
 0x468   :  { %5357 = vmatpush1.msra.mxu0 %v4182_v58  ;;  %v4269_v2 = vmul.f32 %v4253_v13, %v4217_v21  ;;  %5345 = vmatprep.subr.mxu1 %v4349_v8  ;;  %v4268_v41 = vmul.f32 %v4249_v9, %v4210_v42  ;;  %v3984_v40 = vsel %vm1127_vm2, %v3975_v57, %v9256_v30  ;;  %v10881_v9 = vld [vmem:[#allocation31_spill] sm:$0xff] }
 0x469   :  { %5358 = vmatprep.subr.mxu0 %v4099_v24  ;;  %v3985_v22 = vsel %vm1127_vm2, %v10880_v29, %v3975_v57  ;;  %5346 = vmatpush2.msra.mxu1 %v4348_v39  ;;  %v4165_v52 = vrot.slane %v10813_v44, %v10876_v43  ;;  %v4039_v32 = vmul.f32 %v4017_v51, %v3984_v40  ;;  %v9592_v58 = vpop.permute.xlu0 %3388  ;;  %v10882_v51 = vld [vmem:[#allocation24_spill] sm:$0xff]  ;;  %v10883_v57 = vld [vmem:[#allocation79_spill] sm:$0xff]  ;;  %v10884_v40 = vld [vmem:[#allocation30_spill] sm:$0xff] }
 0x46a   :  { %5359 = vmatpush1.msra.mxu0 %v4098_v38  ;;  %v4038_v24 = vmul.f32 %v4013_v26, %v3985_v22  ;;  %5348 = vmatmul.mubr.f32.vlgmr.msra.gmra.mxu1 %v9515_v14  ;;  %v4169_v8 = vrot.slane %v10813_v44, %v10873_v23  ;;  %v4125_v13 = vpop.permute.xlu1 %4124  ;;  %v4085_v21 = vrot.slane %v10864_v25, %v10873_v23  ;;  %v10897_v14 = vld [vmem:[#allocation81_spill] sm:$0xff] }
 0x46b   :  { %5425 = vmatprep.subr.mxu1 %v4269_v2  ;;  %5832 = vmatprep.mubr.msk.f32.mxu1 %vm2374_vm7, %v5948_v35  ;;  %v4126_v26 = vsel %vm1274_vm1, %v4123_v49, %v4125_v13  ;;  %v4133_v6 = vsel %vm1274_vm1, %v4125_v13, %v10881_v9  ;;  %v4081_v44 = vrot.slane %v10864_v25, %v10876_v43  ;;  %vm10896_vm1 = vmmov %vm10894_vm0 }
 0x46c   :  { %5426 = vmatpush1.msra.mxu1 %v4268_v41  ;;  %5360 = vmatprep.subr.mxu0 %v4039_v32  ;;  %v4025_v38 = vrot.slane %v10878_v47, %v10873_v23  ;;  %v4184_v35 = vmul.f32 %v4165_v52, %v4126_v26  ;;  %v4185_v42 = vmul.f32 %v4169_v8, %v4133_v6  ;;  %v10886_v8 = vld [vmem:[#allocation53_spill] sm:$0xff]  ;;  %v10887_v6 = vld [vmem:[#allocation23_spill] sm:$0xff]  ;;  %vm10908_vm7 = vmmov %vm10894_vm0 }
 0x46d   :  { %5361 = vmatpush1.msra.mxu0 %v4038_v24  ;;  %v3933_v39 = vrot.slane %v10882_v51, %v10802_v18  ;;  %v3929_v2 = vrot.slane %v10882_v51, %v10863_v17  ;;  %v4021_v49 = vrot.slane %v10878_v47, %v10876_v43  ;;  %v3982_v41 = vsel %vm1127_vm2, %v9409_v5, %v10883_v57  ;;  %v9616_v25 = vpop.permute.xlu0 %3304  ;;  %v10885_v47 = vld [vmem:[#allocation33_spill] sm:$0xff] }
 0x46e   :  { %v3901_v29 = vsel %vm1041_vm3, %v10884_v40, %v9305_v54  ;;  %v3983_v22 = vsel %vm1127_vm2, %v9256_v30, %v9409_v5  ;;  %5427 = vmatprep.subr.mxu1 %v4185_v42  ;;  %v3893_v52 = vpop.permute.xlu1 %3892  ;;  %v4101_v24 = vmul.f32 %v4085_v21, %v10885_v47  ;;  %v4100_v13 = vmul.f32 %v4081_v44, %v10886_v8  ;;  %v10888_v21 = vld [vmem:[#allocation48_spill] sm:$0xff]  ;;  %v10891_v47 = vld [vmem:[#allocation83_spill] sm:$0xff] }
 0x46f   :  { %v3900_v32 = vsel %vm1041_vm3, %v9305_v54, %v3893_v52  ;;  %5428 = vmatpush1.msra.mxu1 %v4184_v35  ;;  %v4041_v26 = vmul.f32 %v4025_v38, %v3982_v41  ;;  %v3849_v57 = vrot.slane %v10887_v6, %v10802_v18  ;;  %v3954_v40 = vmul.f32 %v3929_v2, %v3901_v29  ;;  %v10890_v41 = vld [vmem:[#allocation78_spill] sm:$0xff] }
 0x470   :  { %v3955_v9 = vmul.f32 %v3933_v39, %v3900_v32  ;;  %5429 = vmatprep.subr.mxu1 %v4101_v24  ;;  %v3845_v30 = vrot.slane %v10887_v6, %v10863_v17  ;;  %v4040_v5 = vmul.f32 %v4021_v49, %v3983_v22  ;;  %v3817_v54 = vsel %vm955_vm4, %v10888_v21, %v9356_v55  ;;  %v10889_v39 = vld [vmem:[#allocation71_spill] sm:$0xff]  ;;  %v10892_v32 = vld [vmem:[#allocation89_spill] sm:$0xff] }
 0x471   :  { %5430 = vmatpush1.msra.mxu1 %v4100_v13  ;;  %v9639_v38 = vpop.permute.xlu0 %3220  ;;  %v3761_v2 = vrot.slane %v10889_v39, %v10863_v17  ;;  %v3765_v49 = vrot.slane %v10889_v39, %v10802_v18  ;;  %v3593_v29 = vrot.slane %v10890_v41, %v10863_v17  ;;  %v3425_v24 = vrot.slane %v10891_v47, %v10863_v17 }
 0x472   :  { %5362 = vmatprep.subr.mxu0 %v3955_v9  ;;  %5431 = vmatprep.subr.mxu1 %v4041_v26  ;;  %v3809_v44 = vpop.permute.xlu1 %3808  ;;  %v3870_v22 = vmul.f32 %v3845_v30, %v3817_v54  ;;  %v3509_v63 = vrot.slane %v10897_v14, %v10863_v17  ;;  %v9702_v8 = vsel %vm611_vm9, %v9262_v27, %v9579_v31  ;;  %vm10899_vm2 = vcmp.lt.s32.totalorder %v6261_v10, 63  ;;  %v10900_v31 = vld [vmem:[#allocation98_spill] sm:$0xff] }
 0x473   :  { %v3816_v35 = vsel %vm955_vm4, %v9356_v55, %v3809_v44  ;;  %5363 = vmatpush1.msra.mxu0 %v3954_v40  ;;  %5432 = vmatpush1.msra.mxu1 %v4040_v5  ;;  %v10893_v55 = vld [vmem:[#allocation73_spill] sm:$0xff]  ;;  %v3597_v40 = vrot.slane %v10890_v41, %v10802_v18  ;;  %v10895_v5 = vld [vmem:[#allocation36_spill] sm:$0xff]  ;;  %v3618_v27 = vmul.f32 %v3593_v29, %v9278_v36 }
 0x474   :  { %v3871_v42 = vmul.f32 %v3849_v57, %v3816_v35  ;;  %v3677_v13 = vrot.slane %v10893_v55, %v10863_v17  ;;  %v3681_v26 = vrot.slane %v10893_v55, %v10802_v18  ;;  %v9662_v57 = vsel %vm783_vm6, %v9214_v48, %v9513_v33 }
 0x475   :  { %v3941_v48 = vrot.slane %v10882_v51, %v10873_v23 }
 0x476   :  { %5364 = vmatprep.subr.mxu0 %v3871_v42  ;;  %v3723_v9 = vpop.permute.xlu1 %3722  ;;  %v3937_v42 = vrot.slane %v10882_v51, %v10876_v43  ;;  %v3429_v51 = vrot.slane %v10891_v47, %v10802_v18 }
 0x477   :  { %v3732_v30 = vsel %vm10894_vm0, %v3723_v9, %v9465_v60  ;;  %v3733_v21 = vsel %vm10896_vm1, %v10895_v5, %v3723_v9  ;;  %5365 = vmatpush1.msra.mxu0 %v3870_v22  ;;  %v9684_v9 = vsel %vm697_vm8, %v8750_v50, %v9545_v7  ;;  %v3703_v22 = vmul.f32 %v3681_v26, %v9662_v57  ;;  %v10898_v26 = vld [vmem:[#allocation32_spill] sm:$0xff] }
 0x478   :  { %v3786_v54 = vmul.f32 %v3761_v2, %v3733_v21  ;;  %v3787_v35 = vmul.f32 %v3765_v49, %v3732_v30  ;;  %v3513_v2 = vrot.slane %v10897_v14, %v10802_v18  ;;  %v9688_v49 = vpop.permute.xlu0 %3136  ;;  %v3853_v5 = vrot.slane %v10887_v6, %v10876_v43 }
 0x479   :  { %v3857_v21 = vrot.slane %v10887_v6, %v10873_v23  ;;  %v3702_v50 = vmul.f32 %v3677_v13, %v9254_v34  ;;  %v3619_v62 = vmul.f32 %v3597_v40, %v9684_v9  ;;  %v9714_v34 = vsel %vm10899_vm2, %v10810_v53, %v9592_v58 }
 0x47a   :  { %5366 = vmatprep.subr.mxu0 %v3787_v35  ;;  %v3895_v30 = vpop.permute.xlu1 %3894  ;;  %v3345_v40 = vrot.slane %v10901_v12, %v10802_v18  ;;  %v3535_v53 = vmul.f32 %v3513_v2, %v9702_v8  ;;  %v3451_v29 = vmul.f32 %v3429_v51, %v9714_v34 }
 0x47b   :  { %v3898_v1 = vsel %vm1041_vm3, %v3895_v30, %v10898_v26  ;;  %v3899_v35 = vsel %vm1041_vm3, %v3893_v52, %v3895_v30  ;;  %5367 = vmatpush1.msra.mxu0 %v3786_v54  ;;  %v3005_v26 = vrot.slane %v10900_v31, %v10863_v17  ;;  %v3341_v52 = vrot.slane %v10901_v12, %v10863_v17  ;;  %vm10903_vm3 = vmmov %vm10823_vm5  ;;  %v10904_v30 = vld [vmem:[#allocation92_spill] sm:$0xff] }
 0x47c   :  { %v3956_v6 = vmul.f32 %v3937_v42, %v3899_v35  ;;  %v3957_v13 = vmul.f32 %v3941_v48, %v3898_v1  ;;  %5368 = vmatprep.subr.mxu0 %v3703_v22  ;;  %v3534_v54 = vmul.f32 %v3509_v63, %v9303_v56  ;;  %v3261_v1 = vrot.slane %v10892_v32, %v10802_v18  ;;  %v9734_v48 = vpop.permute.xlu0 %3052  ;;  %v10902_v22 = vld [vmem:[#allocation84_spill] sm:$0xff]  ;;  %vm10909_vm5 = vmmov %vm10894_vm0 }
 0x47d   :  { %5369 = vmatpush1.msra.mxu0 %v3702_v50  ;;  %v9732_v42 = vsel %vm439_vm11, %v9313_v19, %v9616_v25  ;;  %v3450_v19 = vmul.f32 %v3425_v24, %v9333_v0  ;;  %v3173_v50 = vrot.slane %v10904_v30, %v10863_v17  ;;  %v3773_v35 = vrot.slane %v10889_v39, %v10873_v23 }
 0x47e   :  { %5370 = vmatprep.subr.mxu0 %v3619_v62  ;;  %5433 = vmatprep.subr.mxu1 %v3957_v13  ;;  %v3811_v36 = vpop.permute.xlu1 %3810  ;;  %v9745_v62 = vsel %vm10903_vm3, %v10822_v59, %v9639_v38  ;;  %v10905_v13 = vld [vmem:[#allocation77_spill] sm:$0xff]  ;;  %v3366_v24 = vmul.f32 %v3341_v52, %v9354_v28 }
 0x47f   :  { %v3814_v56 = vsel %vm955_vm4, %v3811_v36, %v10902_v22  ;;  %v3815_v63 = vsel %vm955_vm4, %v3809_v44, %v3811_v36  ;;  %5371 = vmatpush1.msra.mxu0 %v3618_v27  ;;  %5434 = vmatpush1.msra.mxu1 %v3956_v6  ;;  %v3769_v44 = vrot.slane %v10889_v39, %v10876_v43  ;;  %vm10906_vm4 = vmmov %vm10829_vm12 }
 0x480   :  { %v3872_v2 = vmul.f32 %v3853_v5, %v3815_v63  ;;  %v3873_v51 = vmul.f32 %v3857_v21, %v3814_v56  ;;  %5372 = vmatprep.subr.mxu0 %v3535_v53  ;;  %v4949_v59 = vrot.slane %v10905_v13, %v10863_v17  ;;  %v3367_v5 = vmul.f32 %v3345_v40, %v9732_v42  ;;  %vm10911_vm12 = vmmov %vm10838_vm10 }
 0x481   :  { %5373 = vmatpush1.msra.mxu0 %v3534_v54  ;;  %v3177_v21 = vrot.slane %v10904_v30, %v10802_v18  ;;  %v3283_v6 = vmul.f32 %v3261_v1, %v9745_v62  ;;  %v3685_v27 = vrot.slane %v10893_v55, %v10876_v43  ;;  %v3689_v39 = vrot.slane %v10893_v55, %v10873_v23  ;;  %v10907_v54 = vld [vmem:[#allocation54_spill] sm:$0xff]  ;;  %vm10931_vm0 = vmmov %vm10906_vm4 }
 0x482   :  { %5374 = vmatprep.subr.mxu0 %v3451_v29  ;;  %5435 = vmatprep.subr.mxu1 %v3873_v51  ;;  %v3727_v0 = vpop.permute.xlu1 %3726  ;;  %v9769_v40 = vsel %vm10906_vm4, %v9370_v11, %v9688_v49  ;;  %v10910_v55 = vrot.slane %v10892_v32, %v10863_v17  ;;  %v3093_v1 = vrot.slane %v8574_v16, %v10802_v18  ;;  %v9783_v11 = vpop.permute.xlu0 %2968  ;;  %v10912_v51 = vld [vmem:[#allocation90_spill] sm:$0xff]  ;;  %vm10932_vm1 = vmmov %vm10931_vm0 }
 0x483   :  { %5375 = vmatpush1.msra.mxu0 %v3450_v19  ;;  %v3730_v53 = vsel %vm10908_vm7, %v3727_v0, %v10907_v54  ;;  %v3731_v28 = vsel %vm10909_vm5, %v9465_v60, %v3727_v0  ;;  %5436 = vmatpush1.msra.mxu1 %v3872_v2  ;;  %v9789_v60 = vsel %vm10911_vm12, %v10837_v46, %v9734_v48  ;;  %v10914_v54 = vld [vmem:[#allocation76_spill] sm:$0xff] }
 0x484   :  { %5376 = vmatprep.subr.mxu0 %v3367_v5  ;;  %v3282_v52 = vmul.f32 %v10910_v55, %v9384_v20  ;;  %v3788_v36 = vmul.f32 %v3769_v44, %v3731_v28  ;;  %v3789_v29 = vmul.f32 %v3773_v35, %v3730_v53  ;;  %v3009_v22 = vrot.slane %v10900_v31, %v10802_v18 }
 0x485   :  { %5377 = vmatpush1.msra.mxu0 %v3366_v24  ;;  %v3601_v20 = vrot.slane %v10890_v41, %v10876_v43  ;;  %v3605_v63 = vrot.slane %v10890_v41, %v10873_v23  ;;  %v3199_v2 = vmul.f32 %v3177_v21, %v9769_v40  ;;  %v3198_v44 = vmul.f32 %v3173_v50, %v9407_v45 }
 0x486   :  { %5378 = vmatprep.subr.mxu0 %v3283_v6  ;;  %v3643_v56 = vpop.permute.xlu1 %3642  ;;  %5437 = vmatprep.subr.mxu1 %v3789_v29  ;;  %v9811_v41 = vsel %vm96_vm15, %v10846_v37, %v9783_v11  ;;  %v4889_v21 = vrot.slane %v8452_v4, %v10863_v17  ;;  %v3115_v0 = vmul.f32 %v3093_v1, %v9789_v60 }
 0x487   :  { %v9801_v19 = vsel %vm783_vm6, %v3643_v56, %v10912_v51  ;;  %v3647_v46 = vsel %vm783_vm6, %v9513_v33, %v3643_v56  ;;  %5379 = vmatpush1.msra.mxu0 %v3282_v52  ;;  %5438 = vmatpush1.msra.mxu1 %v3788_v36  ;;  %v4953_v33 = vrot.slane %v10905_v13, %v10802_v18  ;;  %v10917_v51 = vld [vmem:[#allocation50_spill] sm:$0xff]  ;;  %vm10919_vm6 = vmmov %vm10899_vm2 }
 0x488   :  { %v3704_v35 = vmul.f32 %v3685_v27, %v3647_v46  ;;  %v3705_v5 = vmul.f32 %v3689_v39, %v9801_v19  ;;  %5380 = vmatprep.subr.mxu0 %v3199_v2  ;;  %v4893_v45 = vrot.slane %v8452_v4, %v10802_v18  ;;  %v10913_v37 = vrot.slane %v8574_v16, %v10863_v17 }
 0x489   :  { %5381 = vmatpush1.msra.mxu0 %v3198_v44  ;;  %v3517_v6 = vrot.slane %v10897_v14, %v10876_v43  ;;  %v3521_v27 = vrot.slane %v10897_v14, %v10873_v23  ;;  %v3031_v39 = vmul.f32 %v3009_v22, %v9811_v41  ;;  %v3030_v28 = vmul.f32 %v3005_v26, %v9463_v15  ;;  %v10915_v22 = vld [vmem:[#allocation82_spill] sm:$0xff] }
 0x48a   :  { %v3114_v50 = vmul.f32 %v10913_v37, %v9437_v61  ;;  %5439 = vmatprep.subr.mxu1 %v3705_v5  ;;  %v3559_v24 = vpop.permute.xlu1 %3558  ;;  %5382 = vmatprep.subr.mxu0 %v3115_v0  ;;  %v4833_v52 = vrot.slane %v8474_v3, %v10802_v18  ;;  %v4829_v1 = vrot.slane %v8474_v3, %v10863_v17 }
 0x48b   :  { %v9833_v53 = vsel %vm697_vm8, %v3559_v24, %v10914_v54  ;;  %v3563_v61 = vsel %vm697_vm8, %v9545_v7, %v3559_v24  ;;  %5440 = vmatpush1.msra.mxu1 %v3704_v35  ;;  %v4975_v36 = vmul.f32 %v4953_v33, %v3647_v46  ;;  %v3433_v7 = vrot.slane %v10891_v47, %v10876_v43  ;;  %vm10920_vm8 = vmmov %vm10899_vm2 }
 0x48c   :  { %v3620_v55 = vmul.f32 %v3601_v20, %v3563_v61  ;;  %v3621_v14 = vmul.f32 %v3605_v63, %v9833_v53  ;;  %5383 = vmatpush1.msra.mxu0 %v3114_v50  ;;  %v4974_v15 = vmul.f32 %v4949_v59, %v9662_v57  ;;  %v3437_v29 = vrot.slane %v10891_v47, %v10873_v23  ;;  %v10916_v63 = vld [vmem:[#allocation96_spill] sm:$0xff]  ;;  %vm10934_vm2 = vmmov %vm10838_vm10 }
 0x48d   :  { %5384 = vmatprep.subr.mxu0 %v3031_v39  ;;  %v4773_v56 = vrot.slane %v10915_v22, %v10802_v18  ;;  %v4915_v20 = vmul.f32 %v4893_v45, %v3563_v61  ;;  %v4914_v59 = vmul.f32 %v4889_v21, %v9684_v9  ;;  %v4769_v35 = vrot.slane %v10915_v22, %v10863_v17  ;;  %v10918_v45 = vld [vmem:[#allocation47_spill] sm:$0xff] }
 0x48e   :  { %5385 = vmatpush1.msra.mxu0 %v3030_v28  ;;  %5441 = vmatprep.subr.mxu1 %v3621_v14  ;;  %v3475_v26 = vpop.permute.xlu1 %3474  ;;  %v4854_v5 = vmul.f32 %v4829_v1, %v9702_v8  ;;  %v3349_v33 = vrot.slane %v10901_v12, %v10876_v43  ;;  %v3353_v8 = vrot.slane %v10901_v12, %v10873_v23  ;;  %v10922_v12 = vld [vmem:[#allocation101_spill] sm:$0xff] }
 0x48f   :  { %5396 = vmatprep.subr.mxu0 %v4975_v36  ;;  %v9860_v2 = vsel %vm611_vm9, %v3475_v26, %v10916_v63  ;;  %v3479_v57 = vsel %vm611_vm9, %v10917_v51, %v3475_v26  ;;  %5442 = vmatpush1.msra.mxu1 %v3620_v55  ;;  %v4794_v39 = vmul.f32 %v4769_v35, %v9714_v34  ;;  %v10923_v36 = vld [vmem:[#allocation88_spill] sm:$0xff]  ;;  %v3055_v51 = vpop.permute.xlu0 %3054  ;;  %vm10927_vm9 = vmmov %vm10903_vm3 }
 0x490   :  { %v3536_v46 = vmul.f32 %v3517_v6, %v3479_v57  ;;  %v3537_v47 = vmul.f32 %v3521_v27, %v9860_v2  ;;  %v4855_v44 = vmul.f32 %v4833_v52, %v3479_v57  ;;  %5397 = vmatpush2.msra.mxu0 %v4974_v15  ;;  %v10921_v6 = vld [vmem:[#allocation86_spill] sm:$0xff]  ;;  %v3265_v61 = vrot.slane %v10892_v32, %v10876_v43 }
 0x491   :  { %5398 = vmatprep.subr.mxu0 %v4915_v20  ;;  %v4713_v27 = vrot.slane %v10921_v6, %v10802_v18  ;;  %v4709_v54 = vrot.slane %v10921_v6, %v10863_v17  ;;  %v3269_v34 = vrot.slane %v10892_v32, %v10873_v23  ;;  %v4649_v26 = vrot.slane %v10923_v36, %v10863_v17  ;;  %v10926_v57 = vld [vmem:[#allocation42_spill] sm:$0xff] }
 0x492   :  { %5399 = vmatpush2.msra.mxu0 %v4914_v59  ;;  %5443 = vmatprep.subr.mxu1 %v3537_v47  ;;  %v3391_v0 = vpop.permute.xlu1 %3390  ;;  %v3181_v63 = vrot.slane %v10904_v30, %v10876_v43 }
 0x493   :  { %5400 = vmatprep.subr.mxu0 %v4855_v44  ;;  %v9875_v9 = vsel %vm10919_vm6, %v3391_v0, %v10918_v45  ;;  %v3395_v21 = vsel %vm10920_vm8, %v9592_v58, %v3391_v0  ;;  %5444 = vmatpush1.msra.mxu1 %v3536_v46  ;;  %v4734_v15 = vmul.f32 %v4709_v54, %v9732_v42 }
 0x494   :  { %v3452_v37 = vmul.f32 %v3433_v7, %v3395_v21  ;;  %v3453_v50 = vmul.f32 %v3437_v29, %v9875_v9  ;;  %v4795_v24 = vmul.f32 %v4773_v56, %v3395_v21  ;;  %5401 = vmatpush2.msra.mxu0 %v4854_v5  ;;  %v4653_v7 = vrot.slane %v10923_v36, %v10802_v18  ;;  %v10924_v29 = vld [vmem:[#allocation93_spill] sm:$0xff]  ;;  %v10925_v56 = vld [vmem:[#allocation95_spill] sm:$0xff] }
 0x495   :  { %v4529_v20 = vrot.slane %v10925_v56, %v10863_v17  ;;  %v3185_v46 = vrot.slane %v10904_v30, %v10873_v23  ;;  %v4593_v5 = vrot.slane %v10924_v29, %v10802_v18  ;;  %v4674_v0 = vmul.f32 %v4649_v26, %v9745_v62  ;;  %v10929_v62 = vld [vmem:[#allocation100_spill] sm:$0xff] }
 0x496   :  { %5402 = vmatprep.subr.mxu0 %v4795_v24  ;;  %5445 = vmatprep.subr.mxu1 %v3453_v50  ;;  %v3307_v58 = vpop.permute.xlu1 %3306  ;;  %v4533_v45 = vrot.slane %v10925_v56, %v10802_v18  ;;  %v3013_v21 = vrot.slane %v10900_v31, %v10876_v43  ;;  %v3059_v50 = vsel %vm10838_vm10, %v9734_v48, %v3055_v51 }
 0x497   :  { %v9893_v28 = vsel %vm439_vm11, %v3307_v58, %v10922_v12  ;;  %v3311_v55 = vsel %vm439_vm11, %v9616_v25, %v3307_v58  ;;  %5403 = vmatpush2.msra.mxu0 %v4794_v39  ;;  %5446 = vmatpush1.msra.mxu1 %v3452_v37  ;;  %v4589_v25 = vrot.slane %v10924_v29, %v10863_v17  ;;  %vm10928_vm11 = vmmov %vm10903_vm3  ;;  %v10933_v39 = vld [vmem:[#allocation59_spill] sm:$0xff] }
 0x498   :  { %v3368_v14 = vmul.f32 %v3349_v33, %v3311_v55  ;;  %v3369_v52 = vmul.f32 %v3353_v8, %v9893_v28  ;;  %v4735_v1 = vmul.f32 %v4713_v27, %v3311_v55  ;;  %v3097_v33 = vrot.slane %v8574_v16, %v10876_v43 }
 0x499   :  { %v3017_v8 = vrot.slane %v10900_v31, %v10873_v23  ;;  %v4473_v37 = vrot.slane %v10929_v62, %v10802_v18  ;;  %v9952_v31 = vsel %vm10934_vm2, %v3055_v51, %v10933_v39  ;;  %v4614_v12 = vmul.f32 %v4589_v25, %v9769_v40  ;;  %v10941_v39 = vld [vmem:[#allocation22_spill] sm:$0xff] }
 0x49a   :  { %5404 = vmatprep.subr.mxu0 %v4735_v1  ;;  %5447 = vmatprep.subr.mxu1 %v3369_v52  ;;  %v3223_v32 = vpop.permute.xlu1 %3222  ;;  %v4469_v55 = vrot.slane %v10929_v62, %v10863_v17  ;;  %v4555_v52 = vmul.f32 %v4533_v45, %v3059_v50  ;;  %v4901_v51 = vrot.slane %v8452_v4, %v10873_v23 }
 0x49b   :  { %v9915_v42 = vsel %vm10927_vm9, %v3223_v32, %v10926_v57  ;;  %v3227_v59 = vsel %vm10928_vm11, %v9639_v38, %v3223_v32  ;;  %5405 = vmatpush2.msra.mxu0 %v4734_v15  ;;  %5448 = vmatpush1.msra.mxu1 %v3368_v14  ;;  %v3101_v38 = vrot.slane %v8574_v16, %v10873_v23  ;;  %v10930_v16 = vld [vmem:[#allocation104_spill] sm:$0xff]  ;;  %v10936_v32 = vld [vmem:[#allocation106_spill] sm:$0xff] }
 0x49c   :  { %v3284_v47 = vmul.f32 %v3265_v61, %v3227_v59  ;;  %v3285_v44 = vmul.f32 %v3269_v34, %v9915_v42  ;;  %v4675_v35 = vmul.f32 %v4653_v7, %v3227_v59  ;;  %v4961_v61 = vrot.slane %v10905_v13, %v10873_v23  ;;  %v10935_v7 = vld [vmem:[#allocation97_spill] sm:$0xff] }
 0x49d   :  { %v4957_v34 = vrot.slane %v10905_v13, %v10876_v43  ;;  %v4554_v14 = vmul.f32 %v4529_v20, %v9789_v60  ;;  %v4413_v15 = vrot.slane %v10935_v7, %v10802_v18  ;;  %v3117_v26 = vmul.f32 %v3101_v38, %v9952_v31 }
 0x49e   :  { %5406 = vmatprep.subr.mxu0 %v4675_v35  ;;  %5449 = vmatprep.subr.mxu1 %v3285_v44  ;;  %v3139_v30 = vpop.permute.xlu1 %3138  ;;  %v3116_v60 = vmul.f32 %v3097_v33, %v3059_v50  ;;  %v4494_v57 = vmul.f32 %v4469_v55, %v9811_v41  ;;  %v4409_v59 = vrot.slane %v10935_v7, %v10863_v17  ;;  %v10938_v35 = vld [vmem:[#allocation34_spill] sm:$0xff] }
 0x49f   :  { %v9944_v24 = vsel %vm10931_vm0, %v3139_v30, %v10930_v16  ;;  %v3143_v27 = vsel %vm10932_vm1, %v9688_v49, %v3139_v30  ;;  %5407 = vmatpush2.msra.mxu0 %v4674_v0  ;;  %5450 = vmatpush1.msra.mxu1 %v3284_v47  ;;  %v4373_v49 = vpop.permute.xlu0 %4372  ;;  %v4897_v47 = vrot.slane %v8452_v4, %v10876_v43  ;;  %v10939_v30 = vld [vmem:[#allocation103_spill] sm:$0xff] }
 0x4a0   :  { %v3200_v54 = vmul.f32 %v3181_v63, %v3143_v27  ;;  %v3201_v58 = vmul.f32 %v3185_v46, %v9944_v24  ;;  %v4615_v48 = vmul.f32 %v4593_v5, %v3143_v27  ;;  %v10937_v46 = vld [vmem:[#allocation27_spill] sm:$0xff]  ;;  %v4977_v5 = vmul.f32 %v4961_v61, %v10938_v35 }
 0x4a1   :  { %v4841_v41 = vrot.slane %v8474_v3, %v10873_v23  ;;  %v4976_v38 = vmul.f32 %v4957_v34, %v9801_v19  ;;  %v4837_v4 = vrot.slane %v8474_v3, %v10876_v43  ;;  %v4781_v50 = vrot.slane %v10915_v22, %v10873_v23  ;;  %v10949_v35 = vld [vmem:[#allocation99_spill] sm:$0xff] }
 0x4a2   :  { %5408 = vmatprep.subr.mxu0 %v4615_v48  ;;  %5451 = vmatprep.subr.mxu1 %v3201_v58  ;;  %v2971_v1 = vpop.permute.xlu1 %2970  ;;  %v4325_v27 = vrot.slane %v10939_v30, %v10863_v17  ;;  %v4916_v3 = vmul.f32 %v4897_v47, %v9833_v53  ;;  %v10942_v58 = vld [vmem:[#allocation52_spill] sm:$0xff]  ;;  %v4721_v61 = vrot.slane %v10921_v6, %v10873_v23 }
 0x4a3   :  { %v9969_v40 = vsel %vm96_vm15, %v2971_v1, %v10936_v32  ;;  %v2975_v13 = vsel %vm96_vm15, %v9783_v11, %v2971_v1  ;;  %5409 = vmatpush2.msra.mxu0 %v4614_v12  ;;  %5452 = vmatpush1.msra.mxu1 %v3200_v54  ;;  %v4380_v11 = vsel %vm1532_vm13, %v10937_v46, %v4373_v49  ;;  %v4289_v0 = vpop.permute.xlu0 %4288  ;;  %v10948_v46 = vld [vmem:[#allocation57_spill] sm:$0xff] }
 0x4a4   :  { %v3032_v25 = vmul.f32 %v3013_v21, %v2975_v13  ;;  %v3033_v20 = vmul.f32 %v3017_v8, %v9969_v40  ;;  %v4495_v63 = vmul.f32 %v4473_v37, %v2975_v13  ;;  %5410 = vmatprep.subr.mxu0 %v4555_v52  ;;  %5453 = vmatprep.subr.mxu1 %v3117_v26  ;;  %v10940_v8 = vld [vmem:[#allocation49_spill] sm:$0xff]  ;;  %v10945_v13 = vld [vmem:[#allocation43_spill] sm:$0xff] }
 0x4a5   :  { %5411 = vmatpush2.msra.mxu0 %v4554_v14  ;;  %5454 = vmatpush1.msra.mxu1 %v3116_v60  ;;  %v4329_v21 = vrot.slane %v10939_v30, %v10802_v18  ;;  %v4917_v37 = vmul.f32 %v4901_v51, %v10940_v8  ;;  %v4434_v16 = vmul.f32 %v4409_v59, %v4380_v11 }
 0x4a6   :  { %5412 = vmatprep.subr.mxu0 %v4495_v63  ;;  %v9985_v44 = vpop.permute.xlu1 %4374  ;;  %5455 = vmatprep.subr.mxu1 %v3033_v20  ;;  %v4296_v19 = vsel %vm1446_vm14, %v10941_v39, %v4289_v0  ;;  %v4777_v54 = vrot.slane %v10915_v22, %v10876_v43  ;;  %v4857_v48 = vmul.f32 %v4841_v41, %v10942_v58  ;;  %v10943_v22 = vld [vmem:[#allocation38_spill] sm:$0xff]  ;;  %v10947_v63 = vld [vmem:[#allocation63_spill] sm:$0xff] }
 0x4a7   :  { %v4379_v33 = vsel %vm1532_vm13, %v4373_v49, %v9985_v44  ;;  %5413 = vmatpush2.msra.mxu0 %v4494_v57  ;;  %5456 = vmatpush1.msra.mxu1 %v3032_v25  ;;  %v4856_v12 = vmul.f32 %v4837_v4, %v9860_v2  ;;  %v4717_v53 = vrot.slane %v10921_v6, %v10876_v43  ;;  %v10944_v2 = vld [vmem:[#allocation55_spill] sm:$0xff]  ;;  %v4377_v51 = vpop.permute.xlu0 %4376  ;;  %v10950_v41 = vld [vmem:[#allocation66_spill] sm:$0xff]  ;;  %v10951_v4 = vld [vmem:[#allocation105_spill] sm:$0xff] }
 0x4a8   :  { %v4435_v45 = vmul.f32 %v4413_v15, %v4379_v33  ;;  %5467 = vmatprep.subr.mxu1 %v4977_v5  ;;  %v4797_v49 = vmul.f32 %v4781_v50, %v10943_v22  ;;  %v4661_v34 = vrot.slane %v10923_v36, %v10873_v23  ;;  %v4350_v14 = vmul.f32 %v4325_v27, %v4296_v19 }
 0x4a9   :  { %5468 = vmatpush2.msra.mxu1 %v4976_v38  ;;  %v4796_v52 = vmul.f32 %v4777_v54, %v9875_v9  ;;  %v4657_v1 = vrot.slane %v10923_v36, %v10876_v43  ;;  %v4737_v15 = vmul.f32 %v4721_v61, %v10944_v2  ;;  %v4601_v6 = vrot.slane %v10924_v29, %v10873_v23  ;;  %v10946_v9 = vld [vmem:[#allocation58_spill] sm:$0xff] }
 0x4aa   :  { %5414 = vmatprep.subr.mxu0 %v4435_v45  ;;  %v4291_v18 = vpop.permute.xlu1 %4290  ;;  %5469 = vmatprep.subr.mxu1 %v4917_v37  ;;  %v4736_v26 = vmul.f32 %v4717_v53, %v9893_v28  ;;  %v4597_v32 = vrot.slane %v10924_v29, %v10876_v43  ;;  %v4677_v60 = vmul.f32 %v4661_v34, %v10946_v9 }
 0x4ab   :  { %v4295_v17 = vsel %vm1446_vm14, %v4289_v0, %v4291_v18  ;;  %5415 = vmatpush2.msra.mxu0 %v4434_v16  ;;  %5470 = vmatpush2.msra.mxu1 %v4916_v3  ;;  %v4541_v36 = vrot.slane %v10925_v56, %v10873_v23  ;;  %v4537_v25 = vrot.slane %v10925_v56, %v10876_v43 }
 0x4ac   :  { %v4351_v55 = vmul.f32 %v4329_v21, %v4295_v17  ;;  %5471 = vmatprep.subr.mxu1 %v4857_v48  ;;  %v4676_v20 = vmul.f32 %v4657_v1, %v9915_v42  ;;  %v4617_v28 = vmul.f32 %v4601_v6, %v10947_v63  ;;  %v4481_v29 = vrot.slane %v10929_v62, %v10873_v23 }
 0x4ad   :  { %5472 = vmatpush2.msra.mxu1 %v4856_v12  ;;  %v4616_v57 = vmul.f32 %v4597_v32, %v9944_v24  ;;  %v4477_v59 = vrot.slane %v10929_v62, %v10876_v43  ;;  %v4557_v11 = vmul.f32 %v4541_v36, %v10948_v46  ;;  %v4421_v56 = vrot.slane %v10935_v7, %v10873_v23 }
 0x4ae   :  { %5416 = vmatprep.subr.mxu0 %v4351_v55  ;;  %5473 = vmatprep.subr.mxu1 %v4797_v49  ;;  %v4293_v42 = vpop.permute.xlu1 %4292  ;;  %v4556_v47 = vmul.f32 %v4537_v25, %v9952_v31  ;;  %v4385_v5 = vsel %vm1532_vm13, %v4377_v51, %v10949_v35  ;;  %v4417_v24 = vrot.slane %v10935_v7, %v10876_v43 }
 0x4af   :  { %5417 = vmatpush2.msra.mxu0 %v4350_v14  ;;  %5474 = vmatpush2.msra.mxu1 %v4796_v52  ;;  %v4497_v62 = vmul.f32 %v4481_v29, %v10950_v41  ;;  %v4378_v0 = vsel %vm1532_vm13, %v9985_v44, %v4377_v51  ;;  %v4337_v33 = vrot.slane %v10939_v30, %v10873_v23 }
 0x4b0   :  { %5419 = vmatmul.mubr.f32.vlgmr.msra.gmra.mxu0 %v10945_v13  ;;  %5475 = vmatprep.subr.mxu1 %v4737_v15  ;;  %v4496_v31 = vmul.f32 %v4477_v59, %v9969_v40  ;;  %v4333_v38 = vrot.slane %v10939_v30, %v10876_v43  ;;  %v4301_v7 = vsel %vm1446_vm14, %v4293_v42, %v10951_v4  ;;  %v6094_v43 = vmov 4   ;;  %v10066_v40 = vpop.permute.xlu0 %5206 }
 0x4b1   :  { %5476 = vmatpush2.msra.mxu1 %v4736_v26  ;;  %v4437_v45 = vmul.f32 %v4421_v56, %v4385_v5  ;;  %v4294_v21 = vsel %vm1446_vm14, %v4291_v18, %v4293_v42  ;;  %v4436_v44 = vmul.f32 %v4417_v24, %v4378_v0  ;;  %v4353_v8 = vmul.f32 %v4337_v33, %v4301_v7 }
 0x4b2   :  { %5477 = vmatprep.subr.mxu1 %v4677_v60  ;;  %v4352_v23 = vmul.f32 %v4333_v38, %v4294_v21  ;;  %5868 = vset.pattern.permute.xlu1 %v6094_v43 }
 0x4b3   :  { %5478 = vmatpush2.msra.mxu1 %v4676_v20 }
 0x4b4   :  { %5479 = vmatprep.subr.mxu1 %v4617_v28 }
 0x4b5   :  { %5480 = vmatpush2.msra.mxu1 %v4616_v57 }
 0x4b6   :  { %5481 = vmatprep.subr.mxu1 %v4557_v11  ;;  %v6095_v11 = vmov 5  }
 0x4b7   :  { %5482 = vmatpush2.msra.mxu1 %v4556_v47  ;;  %5869 = vset.pattern.permute.xlu0 %v6095_v11 }
 0x4b8   :  { %5483 = vmatprep.subr.mxu1 %v4497_v62 }
 0x4b9   :  { %5484 = vmatpush2.msra.mxu1 %v4496_v31 }
 0x4ba   :  { %5485 = vmatprep.subr.mxu1 %v4437_v45 }
 0x4bb   :  { %5486 = vmatpush2.msra.mxu1 %v4436_v44 }
 0x4bc   :  { %5487 = vmatprep.subr.mxu1 %v4353_v8 }
 0x4bd   :  { %5488 = vmatpush2.msra.mxu1 %v4352_v23 }
 0x4be   :  { %5490 = vmatmul.mubr.f32.vlgmr.msra.gmra.mxu1 %v10945_v13 }
 0x522   :  { %v5278_v30 = vpop.f32.mrf.mxu0 }
 0x523   :  { %v10069_v37 = vadd.f32 %v5278_v30, %v10066_v40 }
 0x524   :  { %v5280_v10 = vpop.f32.mrf.mxu0 }
 0x525   :  { %v5496_v50 = vand.u32 2147483647, %v10069_v37  ;;  %v10073_v16 = vadd.f32 %v5280_v10, %v10066_v40  ;;  %vm5664_vm13 = vcmp.ge.f32.partialorder %v10069_v37, 0.0 }
 0x527   :  { %v5504_v27 = vmul.f32 0.70710677, %v5496_v50  ;;  %v5497_v39 = vand.u32 2147483647, %v10073_v16  ;;  %vm5665_vm14 = vcmp.ge.f32.partialorder %v10073_v16, 0.0 }
 0x529   :  { %v5512_v19 = vmul.f32 0.3275911, %v5504_v27  ;;  %v5505_v3 = vmul.f32 0.70710677, %v5497_v39  ;;  %v5616_v49 = vsub.f32 0.0, %v5504_v27 }
 0x52a   :  { %v5349_v54 = vpop.f32.mrf.mxu1 }
 0x52b   :  { %v5520_v18 = vadd.f32 1.0, %v5512_v19  ;;  %v5513_v58 = vmul.f32 0.3275911, %v5505_v3  ;;  %v10077_v48 = vadd.f32 %v5349_v54, %v10066_v40  ;;  %v5617_v52 = vsub.f32 0.0, %v5505_v3 }
 0x52c   :  { %v5351_v61 = vpop.f32.mrf.mxu1  ;;  %v5624_v15 = vmul.f32 %v5616_v49, %v5504_v27 }
 0x52d   :  { %5906 = vrcp.f32 %v5520_v18  ;;  %v5521_v17 = vadd.f32 1.0, %v5513_v58  ;;  %v5498_v12 = vand.u32 2147483647, %v10077_v48  ;;  %v10081_v53 = vadd.f32 %v5351_v61, %v10066_v40 }
 0x52e   :  { %v5625_v26 = vmul.f32 %v5617_v52, %v5505_v3  ;;  %v5632_v32 = vmul.f32 1.442695, %v5624_v15  ;;  %vm5666_vm15 = vcmp.ge.f32.partialorder %v10077_v48, 0.0  ;;  %v5690_v11 = vmul.f32 0.5, %v10077_v48 }
 0x52f   :  { %5908 = vrcp.f32 %v5521_v17  ;;  %v5506_v55 = vmul.f32 0.70710677, %v5498_v12  ;;  %v5499_v22 = vand.u32 2147483647, %v10081_v53  ;;  %vm5667_vm3 = vcmp.ge.f32.partialorder %v10081_v53, 0.0 }
 0x530   :  { %v5634_v36 = vmul.f32 1.442695, %v5625_v26 }
 0x531   :  { %v5514_v34 = vmul.f32 0.3275911, %v5506_v55  ;;  %v5507_v14 = vmul.f32 0.70710677, %v5499_v22  ;;  %v5618_v9 = vsub.f32 0.0, %v5506_v55 }
 0x533   :  { %v5522_v1 = vadd.f32 1.0, %v5514_v34  ;;  %v5515_v2 = vmul.f32 0.3275911, %v5507_v14  ;;  %v5619_v63 = vsub.f32 0.0, %v5507_v14  ;;  %v5626_v29 = vmul.f32 %v5618_v9, %v5506_v55 }
 0x535   :  { %5910 = vrcp.f32 %v5522_v1  ;;  %v5523_v6 = vadd.f32 1.0, %v5515_v2  ;;  %v5627_v46 = vmul.f32 %v5619_v63, %v5507_v14  ;;  %v5636_v42 = vmul.f32 1.442695, %v5626_v29 }
 0x537   :  { %5912 = vrcp.f32 %v5523_v6  ;;  %v5638_v62 = vmul.f32 1.442695, %v5627_v46 }
 0x538   :  { %5914 = vpow2.f32 %v5632_v32 }
 0x539   :  { %5916 = vpow2.f32 %v5634_v36 }
 0x53a   :  { %v5907_v13 = vpop.eup %5906  ;;  %5918 = vpow2.f32 %v5636_v42 }
 0x53b   :  { %v5544_v60 = vmul.f32 1.0614054, %v5907_v13  ;;  %5920 = vpow2.f32 %v5638_v62 }
 0x53c   :  { %v5909_v25 = vpop.eup %5908 }
 0x53d   :  { %v5552_v20 = vadd.f32 -1.4531521, %v5544_v60  ;;  %v5545_v28 = vmul.f32 1.0614054, %v5909_v25 }
 0x53f   :  { %v5560_v51 = vmul.f32 %v5907_v13, %v5552_v20  ;;  %v5553_v57 = vadd.f32 -1.4531521, %v5545_v28  ;;  %v5688_v28 = vmul.f32 0.5, %v10069_v37 }
 0x541   :  { %v5568_v59 = vadd.f32 1.4214138, %v5560_v51  ;;  %v5561_v56 = vmul.f32 %v5909_v25, %v5553_v57 }
 0x542   :  { %v5911_v47 = vpop.eup %5910 }
 0x543   :  { %v5576_v35 = vmul.f32 %v5907_v13, %v5568_v59  ;;  %v5569_v5 = vadd.f32 1.4214138, %v5561_v56  ;;  %v5546_v24 = vmul.f32 1.0614054, %v5911_v47 }
 0x544   :  { %v5913_v0 = vpop.eup %5912 }
 0x545   :  { %v5584_v41 = vadd.f32 -0.28449672, %v5576_v35  ;;  %v5577_v33 = vmul.f32 %v5909_v25, %v5569_v5  ;;  %v5554_v31 = vadd.f32 -1.4531521, %v5546_v24  ;;  %v5547_v4 = vmul.f32 1.0614054, %v5913_v0  ;;  %v5915_v8 = vpop.eup %5914 }
 0x546   :  { %v5917_v39 = vpop.eup %5916  ;;  %v5691_v5 = vmul.f32 0.5, %v10081_v53 }
 0x547   :  { %v5592_v38 = vmul.f32 %v5907_v13, %v5584_v41  ;;  %v5585_v7 = vadd.f32 -0.28449672, %v5577_v33  ;;  %v5562_v45 = vmul.f32 %v5911_v47, %v5554_v31  ;;  %v5555_v44 = vadd.f32 -1.4531521, %v5547_v4  ;;  %v5919_v14 = vpop.eup %5918 }
 0x548   :  { %v5921_v26 = vpop.eup %5920 }
 0x549   :  { %v5600_v21 = vadd.f32 0.2548296, %v5592_v38  ;;  %v5593_v23 = vmul.f32 %v5909_v25, %v5585_v7  ;;  %v5570_v43 = vadd.f32 1.4214138, %v5562_v45  ;;  %v5563_v10 = vmul.f32 %v5913_v0, %v5555_v44 }
 0x54b   :  { %v5608_v30 = vmul.f32 %v5907_v13, %v5600_v21  ;;  %v5601_v50 = vadd.f32 0.2548296, %v5593_v23  ;;  %v5578_v27 = vmul.f32 %v5911_v47, %v5570_v43  ;;  %v5571_v3 = vadd.f32 1.4214138, %v5563_v10 }
 0x54d   :  { %v5648_v19 = vmul.f32 %v5915_v8, %v5608_v30  ;;  %v5609_v54 = vmul.f32 %v5909_v25, %v5601_v50  ;;  %v5586_v18 = vadd.f32 -0.28449672, %v5578_v27  ;;  %v5579_v61 = vmul.f32 %v5913_v0, %v5571_v3 }
 0x54e   :  { %v5689_v25 = vmul.f32 0.5, %v10073_v16 }
 0x54f   :  { %v5656_v58 = vsub.f32 1.0, %v5648_v19  ;;  %v5649_v17 = vmul.f32 %v5917_v39, %v5609_v54  ;;  %v5594_v12 = vmul.f32 %v5911_v47, %v5586_v18  ;;  %v5587_v22 = vadd.f32 -0.28449672, %v5579_v61  ;;  %v10120_v39 = vld [vmem:[#allocation9] sm:$0xff] }
 0x551   :  { %v5672_v55 = vsub.f32 0.0, %v5656_v58  ;;  %v5657_v49 = vsub.f32 1.0, %v5649_v17  ;;  %v5602_v34 = vadd.f32 0.2548296, %v5594_v12  ;;  %v5595_v52 = vmul.f32 %v5913_v0, %v5587_v22 }
 0x553   :  { %v5673_v1 = vsub.f32 0.0, %v5657_v49  ;;  %v5610_v2 = vmul.f32 %v5911_v47, %v5602_v34  ;;  %v5680_v15 = vsel %vm5664_vm13, %v5656_v58, %v5672_v55  ;;  %v5603_v6 = vadd.f32 0.2548296, %v5595_v52 }
 0x554   :  { %v5696_v36 = vadd.f32 1.0, %v5680_v15 }
 0x555   :  { %v5681_v32 = vsel %vm5665_vm14, %v5657_v49, %v5673_v1  ;;  %v5650_v13 = vmul.f32 %v5919_v14, %v5610_v2  ;;  %v5611_v60 = vmul.f32 %v5913_v0, %v5603_v6 }
 0x556   :  { %v5697_v9 = vadd.f32 1.0, %v5681_v32  ;;  %v10091_v59 = vmul.f32 %v5696_v36, %v5688_v28 }
 0x557   :  { %v5658_v20 = vsub.f32 1.0, %v5650_v13  ;;  %v5651_v63 = vmul.f32 %v5921_v26, %v5611_v60 }
 0x558   :  { %v10088_v29 = vmul.f32 %v5697_v9, %v5689_v25  ;;  %v5718_v41 = vmul.f32 %v10091_v59, %v10091_v59 }
 0x559   :  { %v5674_v51 = vsub.f32 0.0, %v5658_v20  ;;  %v5659_v57 = vsub.f32 1.0, %v5651_v63 }
 0x55a   :  { %v5719_v16 = vmul.f32 %v10088_v29, %v10088_v29  ;;  %v5712_v35 = vadd.f32 %v10088_v29, %v10091_v59 }
 0x55b   :  { %v5682_v46 = vsel %vm5666_vm15, %v5658_v20, %v5674_v51  ;;  %v5675_v42 = vsub.f32 0.0, %v5659_v57 }
 0x55c   :  { %v5698_v56 = vadd.f32 1.0, %v5682_v46  ;;  %v5722_v33 = vadd.f32 %v5719_v16, %v5718_v41 }
 0x55d   :  { %v5683_v37 = vsel %vm5667_vm3, %v5659_v57, %v5675_v42 }
 0x55e   :  { %v10097_v47 = vmul.f32 %v5698_v56, %v5690_v11  ;;  %v5699_v24 = vadd.f32 1.0, %v5683_v37 }
 0x560   :  { %v5713_v48 = vadd.f32 %v5712_v35, %v10097_v47  ;;  %v5720_v62 = vmul.f32 %v10097_v47, %v10097_v47  ;;  %v10107_v0 = vmul.f32 %v5699_v24, %v5691_v5 }
 0x562   :  { %v5714_v31 = vadd.f32 %v5713_v48, %v10107_v0  ;;  %v5721_v38 = vmul.f32 %v10107_v0, %v10107_v0  ;;  %v5723_v4 = vadd.f32 %v5722_v33, %v5720_v62 }
 0x564   :  { %5715 = vadd.xlane.f32.xlu1 %v5714_v31  ;;  %v5724_v53 = vadd.f32 %v5723_v4, %v5721_v38 }
 0x568   :  { %5725 = vadd.xlane.f32.xlu1 %v5724_v53 }
 0x570   :  { %v5420_v7 = vpop.f32.mrf.mxu0 }
 0x571   :  { %v10113_v45 = vadd.f32 %v5420_v7, %v10066_v40 }
 0x572   :  { %v5422_v21 = vpop.f32.mrf.mxu0 }
 0x573   :  { %v5500_v44 = vand.u32 2147483647, %v10113_v45  ;;  %v10117_v8 = vadd.f32 %v5422_v21, %v10066_v40  ;;  %vm5668_vm7 = vcmp.ge.f32.partialorder %v10113_v45, 0.0 }
 0x575   :  { %v5508_v23 = vmul.f32 0.70710677, %v5500_v44  ;;  %v5501_v43 = vand.u32 2147483647, %v10117_v8  ;;  %vm5669_vm4 = vcmp.ge.f32.partialorder %v10117_v8, 0.0 }
 0x577   :  { %v5516_v30 = vmul.f32 0.3275911, %v5508_v23  ;;  %v5509_v10 = vmul.f32 0.70710677, %v5501_v43  ;;  %v5620_v17 = vsub.f32 0.0, %v5508_v23 }
 0x579   :  { %v5524_v50 = vadd.f32 1.0, %v5516_v30  ;;  %v5517_v27 = vmul.f32 0.3275911, %v5509_v10  ;;  %5769 = vperm.xlu1 %5868, %v10120_v39   ;;  %v5621_v12 = vsub.f32 0.0, %v5509_v10  ;;  %v5628_v14 = vmul.f32 %v5620_v17, %v5508_v23 }
 0x57b   :  { %5922 = vrcp.f32 %v5524_v50  ;;  %v5525_v19 = vadd.f32 1.0, %v5517_v27  ;;  %v5629_v1 = vmul.f32 %v5621_v12, %v5509_v10  ;;  %v5640_v9 = vmul.f32 1.442695, %v5628_v14 }
 0x57d   :  { %5924 = vrcp.f32 %v5525_v19  ;;  %v5642_v60 = vmul.f32 1.442695, %v5629_v1 }
 0x57e   :  { %v5491_v3 = vpop.f32.mrf.mxu1 }
 0x57f   :  { %v10124_v54 = vadd.f32 %v5491_v3, %v10066_v40 }
 0x580   :  { %v5493_v18 = vpop.f32.mrf.mxu1 }
 0x581   :  { %v5502_v58 = vand.u32 2147483647, %v10124_v54  ;;  %v10128_v61 = vadd.f32 %v5493_v18, %v10066_v40  ;;  %vm5670_vm5 = vcmp.ge.f32.partialorder %v10124_v54, 0.0 }
 0x583   :  { %v5510_v55 = vmul.f32 0.70710677, %v5502_v58  ;;  %v5503_v22 = vand.u32 2147483647, %v10128_v61  ;;  %vm5671_vm12 = vcmp.ge.f32.partialorder %v10128_v61, 0.0 }
 0x585   :  { %v5518_v49 = vmul.f32 0.3275911, %v5510_v55  ;;  %v5511_v34 = vmul.f32 0.70710677, %v5503_v22  ;;  %v5622_v28 = vsub.f32 0.0, %v5510_v55 }
 0x587   :  { %v5526_v2 = vadd.f32 1.0, %v5518_v49  ;;  %v5519_v15 = vmul.f32 0.3275911, %v5511_v34  ;;  %v5623_v11 = vsub.f32 0.0, %v5511_v34  ;;  %v5630_v42 = vmul.f32 %v5622_v28, %v5510_v55 }
 0x588   :  { %v5923_v52 = vpop.eup %5922  ;;  %v5692_v28 = vmul.f32 0.5, %v10113_v45 }
 0x589   :  { %v5548_v6 = vmul.f32 1.0614054, %v5923_v52  ;;  %5926 = vrcp.f32 %v5526_v2  ;;  %v5527_v26 = vadd.f32 1.0, %v5519_v15  ;;  %v5631_v24 = vmul.f32 %v5623_v11, %v5511_v34 }
 0x58a   :  { %v5925_v32 = vpop.eup %5924  ;;  %v5644_v62 = vmul.f32 1.442695, %v5630_v42  ;;  %v5694_v42 = vmul.f32 0.5, %v10124_v54 }
 0x58b   :  { %v5556_v13 = vadd.f32 -1.4531521, %v5548_v6  ;;  %v5549_v40 = vmul.f32 1.0614054, %v5925_v32  ;;  %5928 = vrcp.f32 %v5527_v26  ;;  %v5646_v7 = vmul.f32 1.442695, %v5631_v24 }
 0x58c   :  { %5930 = vpow2.f32 %v5640_v9  ;;  %v5695_v24 = vmul.f32 0.5, %v10128_v61 }
 0x58d   :  { %v5564_v36 = vmul.f32 %v5923_v52, %v5556_v13  ;;  %v5557_v25 = vadd.f32 -1.4531521, %v5549_v40  ;;  %5932 = vpow2.f32 %v5642_v60 }
 0x58e   :  { %5934 = vpow2.f32 %v5644_v62 }
 0x58f   :  { %v5572_v20 = vadd.f32 1.4214138, %v5564_v36  ;;  %v5565_v63 = vmul.f32 %v5925_v32, %v5557_v25  ;;  %5936 = vpow2.f32 %v5646_v7  ;;  %v5693_v25 = vmul.f32 0.5, %v10117_v8 }
 0x591   :  { %v5580_v51 = vmul.f32 %v5923_v52, %v5572_v20  ;;  %v5573_v57 = vadd.f32 1.4214138, %v5565_v63 }
 0x593   :  { %v5588_v46 = vadd.f32 -0.28449672, %v5580_v51  ;;  %v5581_v56 = vmul.f32 %v5925_v32, %v5573_v57 }
 0x595   :  { %v5596_v16 = vmul.f32 %v5923_v52, %v5588_v46  ;;  %v5589_v37 = vadd.f32 -0.28449672, %v5581_v56 }
 0x596   :  { %v5927_v35 = vpop.eup %5926 }
 0x597   :  { %v5604_v5 = vadd.f32 0.2548296, %v5596_v16  ;;  %v5597_v41 = vmul.f32 %v5925_v32, %v5589_v37  ;;  %v5550_v48 = vmul.f32 1.0614054, %v5927_v35 }
 0x598   :  { %v5929_v31 = vpop.eup %5928 }
 0x599   :  { %v5612_v33 = vmul.f32 %v5923_v52, %v5604_v5  ;;  %v5605_v38 = vadd.f32 0.2548296, %v5597_v41  ;;  %v5558_v4 = vadd.f32 -1.4531521, %v5550_v48  ;;  %v5551_v53 = vmul.f32 1.0614054, %v5929_v31  ;;  %v5931_v21 = vpop.eup %5930 }
 0x59a   :  { %v5933_v43 = vpop.eup %5932 }
 0x59b   :  { %v5613_v44 = vmul.f32 %v5925_v32, %v5605_v38  ;;  %v5566_v23 = vmul.f32 %v5927_v35, %v5558_v4  ;;  %v5652_v30 = vmul.f32 %v5931_v21, %v5612_v33  ;;  %v5559_v10 = vadd.f32 -1.4531521, %v5551_v53  ;;  %v5935_v6 = vpop.eup %5934 }
 0x59c   :  { %v5937_v60 = vpop.eup %5936 }
 0x59d   :  { %v5653_v50 = vmul.f32 %v5933_v43, %v5613_v44  ;;  %v5574_v27 = vadd.f32 1.4214138, %v5566_v23  ;;  %v5567_v19 = vmul.f32 %v5929_v31, %v5559_v10  ;;  %v5660_v58 = vsub.f32 1.0, %v5652_v30 }
 0x59f   :  { %v5661_v3 = vsub.f32 1.0, %v5653_v50  ;;  %v5582_v18 = vmul.f32 %v5927_v35, %v5574_v27  ;;  %v5575_v17 = vadd.f32 1.4214138, %v5567_v19  ;;  %v5676_v34 = vsub.f32 0.0, %v5660_v58 }
 0x5a1   :  { %v5590_v12 = vadd.f32 -0.28449672, %v5582_v18  ;;  %v5677_v55 = vsub.f32 0.0, %v5661_v3  ;;  %v5583_v22 = vmul.f32 %v5929_v31, %v5575_v17  ;;  %v5684_v26 = vsel %vm5668_vm7, %v5660_v58, %v5676_v34 }
 0x5a2   :  { %v5700_v36 = vadd.f32 1.0, %v5684_v26 }
 0x5a3   :  { %v5598_v49 = vmul.f32 %v5927_v35, %v5590_v12  ;;  %v5591_v14 = vadd.f32 -0.28449672, %v5583_v22  ;;  %v5685_v1 = vsel %vm5669_vm4, %v5661_v3, %v5677_v55 }
 0x5a4   :  { %v5701_v13 = vadd.f32 1.0, %v5685_v1  ;;  %v10138_v11 = vmul.f32 %v5700_v36, %v5692_v28 }
 0x5a5   :  { %v5606_v52 = vadd.f32 0.2548296, %v5598_v49  ;;  %v5599_v2 = vmul.f32 %v5929_v31, %v5591_v14 }
 0x5a6   :  { %v10135_v51 = vmul.f32 %v5701_v13, %v5693_v25  ;;  %v5746_v48 = vmul.f32 %v10138_v11, %v10138_v11  ;;  %v5952_v25 = vld [vmem:[#allocation3 + $0x10] sm:$0xff] }
 0x5a7   :  { %v5614_v15 = vmul.f32 %v5927_v35, %v5606_v52  ;;  %v5607_v32 = vadd.f32 0.2548296, %v5599_v2 }
 0x5a8   :  { %v5747_v8 = vmul.f32 %v10135_v51, %v10135_v51  ;;  %v5740_v5 = vadd.f32 %v10135_v51, %v10138_v11 }
 0x5a9   :  { %v5654_v9 = vmul.f32 %v5935_v6, %v5614_v15  ;;  %v5615_v40 = vmul.f32 %v5929_v31, %v5607_v32 }
 0x5aa   :  { %v5750_v31 = vadd.f32 %v5747_v8, %v5746_v48 }
 0x5ab   :  { %v5662_v20 = vsub.f32 1.0, %v5654_v9  ;;  %v5655_v63 = vmul.f32 %v5937_v60, %v5615_v40  ;;  %v5951_v60 = vld [vmem:[#allocation3 + $0x8] sm:$0xff] }
 0x5ad   :  { %v5678_v57 = vsub.f32 0.0, %v5662_v20  ;;  %v5663_v46 = vsub.f32 1.0, %v5655_v63  ;;  %v5953_v63 = vld [vmem:[#allocation3 + $0x18] sm:$0xff] }
 0x5af   :  { %v5686_v56 = vsel %vm5670_vm5, %v5662_v20, %v5678_v57  ;;  %v5679_v37 = vsub.f32 0.0, %v5663_v46 }
 0x5b0   :  { %v5702_v16 = vadd.f32 1.0, %v5686_v56 }
 0x5b1   :  { %v5687_v45 = vsel %vm5671_vm12, %v5663_v46, %v5679_v37 }
 0x5b2   :  { %v10144_v35 = vmul.f32 %v5702_v16, %v5694_v42  ;;  %v5703_v41 = vadd.f32 1.0, %v5687_v45 }
 0x5b4   :  { %v5741_v54 = vadd.f32 %v5740_v5, %v10144_v35  ;;  %v5748_v62 = vmul.f32 %v10144_v35, %v10144_v35  ;;  %v10154_v33 = vmul.f32 %v5703_v41, %v5695_v24 }
 0x5b6   :  { %v5742_v38 = vadd.f32 %v5741_v54, %v10154_v33  ;;  %v5749_v4 = vmul.f32 %v10154_v33, %v10154_v33  ;;  %v5751_v53 = vadd.f32 %v5750_v31, %v5748_v62 }
 0x5b8   :  { %5743 = vadd.xlane.f32.xlu0 %v5742_v38  ;;  %v5752_v61 = vadd.f32 %v5751_v53, %v5749_v4 }
 0x5bc   :  { %5753 = vadd.xlane.f32.xlu0 %v5752_v61 }
 0x5d2   :  { %5781 = vperm.xlu0 %5869, %v10120_v39  }
 0x5ed   :  { %v5716_v7 = vpop.xlane.xlu1 %5715 }
 0x5ee   :  { %v5717_v44 = vmul.f32 0.001953125, %v5716_v7  ;;  %v5957_v7 = vld [vmem:[#allocation3 + $0x38] sm:$0xff] }
 0x5f0   :  { %v5728_v43 = vmul.f32 %v5717_v44, %v5717_v44  ;;  %v5730_v3 = vsub.f32 %v10091_v59, %v5717_v44  ;;  %v5731_v18 = vsub.f32 %v10088_v29, %v5717_v44  ;;  %v5732_v17 = vsub.f32 %v10097_v47, %v5717_v44 }
 0x5f1   :  { %v5726_v21 = vpop.xlane.xlu1 %5725  ;;  %v5733_v39 = vsub.f32 %v10107_v0, %v5717_v44  ;;  %v5950_v0 = vld [vmem:[#allocation3] sm:$0xff] }
 0x5f2   :  { %v5727_v23 = vmul.f32 0.001953125, %v5726_v21 }
 0x5f4   :  { %v5729_v30 = vsub.f32 %v5727_v23, %v5728_v43 }
 0x5f5   :  { %v5770_v52 = vpop.permute.xlu1 %5769 }
 0x5f6   :  { %v5734_v10 = vadd.f32 1e-05, %v5729_v30 }
 0x5f8   :  { %5938 = vrsqrt.f32 %v5734_v10 }
 0x605   :  { %v5939_v19 = vpop.eup %5938 }
 0x606   :  { %v5736_v22 = vmul.f32 %v5939_v19, %v5730_v3  ;;  %v5737_v49 = vmul.f32 %v5939_v19, %v5731_v18  ;;  %v5738_v34 = vmul.f32 %v5939_v19, %v5732_v17  ;;  %v5739_v14 = vmul.f32 %v5939_v19, %v5733_v39 }
 0x608   :  { %v5772_v15 = vmul.f32 %v5770_v52, %v5736_v22  ;;  %v5773_v6 = vmul.f32 %v5770_v52, %v5737_v49  ;;  %v5774_v26 = vmul.f32 %v5770_v52, %v5738_v34  ;;  %v5775_v59 = vmul.f32 %v5770_v52, %v5739_v14 }
 0x641   :  { %v5744_v50 = vpop.xlane.xlu0 %5743 }
 0x642   :  { %v5745_v27 = vmul.f32 0.001953125, %v5744_v50 }
 0x644   :  { %v5756_v12 = vmul.f32 %v5745_v27, %v5745_v27  ;;  %v5758_v57 = vsub.f32 %v10138_v11, %v5745_v27  ;;  %v5759_v46 = vsub.f32 %v10135_v51, %v5745_v27  ;;  %v5760_v56 = vsub.f32 %v10144_v35, %v5745_v27  ;;  %v5954_v51 = vld [vmem:[#allocation3 + $0x20] sm:$0xff]  ;;  %v5955_v35 = vld [vmem:[#allocation3 + $0x28] sm:$0xff] }
 0x645   :  { %v5754_v58 = vpop.xlane.xlu0 %5753  ;;  %v5761_v42 = vsub.f32 %v10154_v33, %v5745_v27  ;;  %v5956_v33 = vld [vmem:[#allocation3 + $0x30] sm:$0xff] }
 0x646   :  { %v5755_v55 = vmul.f32 0.001953125, %v5754_v58 }
 0x648   :  { %v5757_v1 = vsub.f32 %v5755_v55, %v5756_v12 }
 0x64a   :  { %v5762_v2 = vadd.f32 1e-05, %v5757_v1 }
 0x64c   :  { %5940 = vrsqrt.f32 %v5762_v2 }
 0x64d   :  { %v5782_v29 = vpop.permute.xlu0 %5781 }
 0x64e   :  { %v5784_v32 = vadd.f32 %v5782_v29, %v5772_v15  ;;  %v5785_v13 = vadd.f32 %v5782_v29, %v5773_v6  ;;  %v5786_v47 = vadd.f32 %v5782_v29, %v5774_v26  ;;  %v5787_v9 = vadd.f32 %v5782_v29, %v5775_v59 }
 0x650   :  { %v5792_v40 = vadd.f32 %v5950_v0, %v5784_v32  ;;  %v5793_v36 = vadd.f32 %v5951_v60, %v5785_v13  ;;  %v5794_v20 = vadd.f32 %v5952_v25, %v5786_v47  ;;  %v5795_v28 = vadd.f32 %v5953_v63, %v5787_v9 }
 0x652   :  { %5800 = vst [vmem:[#allocation11] sm:$0xff] %v5792_v40  ;;  %5801 = vst [vmem:[#allocation11 + $0x8] sm:$0xff] %v5793_v36 }
 0x653   :  { %5802 = vst [vmem:[#allocation11 + $0x10] sm:$0xff] %v5794_v20  ;;  %5803 = vst [vmem:[#allocation11 + $0x18] sm:$0xff] %v5795_v28 }
 0x659   :  { %v5941_v16 = vpop.eup %5940 }
 0x65a   :  { %v5764_v37 = vmul.f32 %v5941_v16, %v5758_v57  ;;  %v5765_v8 = vmul.f32 %v5941_v16, %v5759_v46  ;;  %v5766_v45 = vmul.f32 %v5941_v16, %v5760_v56  ;;  %v5767_v5 = vmul.f32 %v5941_v16, %v5761_v42 }
 0x65c   :  { %v5776_v24 = vmul.f32 %v5770_v52, %v5764_v37  ;;  %v5777_v41 = vmul.f32 %v5770_v52, %v5765_v8  ;;  %v5778_v48 = vmul.f32 %v5770_v52, %v5766_v45  ;;  %v5779_v54 = vmul.f32 %v5770_v52, %v5767_v5 }
 0x65e   :  { %v5788_v62 = vadd.f32 %v5782_v29, %v5776_v24  ;;  %v5789_v31 = vadd.f32 %v5782_v29, %v5777_v41  ;;  %v5790_v11 = vadd.f32 %v5782_v29, %v5778_v48  ;;  %v5791_v38 = vadd.f32 %v5782_v29, %v5779_v54 }
 0x660   :  { %v5796_v4 = vadd.f32 %v5954_v51, %v5788_v62  ;;  %v5797_v53 = vadd.f32 %v5955_v35, %v5789_v31  ;;  %v5798_v61 = vadd.f32 %v5956_v33, %v5790_v11  ;;  %v5799_v21 = vadd.f32 %v5957_v7, %v5791_v38 }
 0x662   :  { %5804 = vst [vmem:[#allocation11 + $0x20] sm:$0xff] %v5796_v4  ;;  %5805 = vst [vmem:[#allocation11 + $0x28] sm:$0xff] %v5797_v53 }
 0x663   :  { %5806 = vst [vmem:[#allocation11 + $0x30] sm:$0xff] %v5798_v61  ;;  %5807 = vst [vmem:[#allocation11 + $0x38] sm:$0xff] %v5799_v21 }
 0x664   :  { %6049 = shalt.err (!%p6046_p10)
}
 0x665   :  { %5817 = dma.vmem_to_hbm [thread:$0]  %s5815_s26, 1024, %s10175_s4, [#allocation5]  }
 0x666   :  { %6064 = dma.done.wait [#allocation5], 1024  }
 0x667   :  { %6065 = vsyncadd [#allocation5], 4294966272 }
 0x668   :  { %5821 = vsyncpa [#allocation4], 1 }
 0x669   :  { %5822 = vsyncpa [#allocation7], 1 }
 0x66a   :  { %5823 = vsyncpa [#allocation10], 1 }
 0x66b   :  { %5824 = vsyncpa [#allocation5], 1 }

</bundles_post_ra>
